<compile_context>
chip_gen: v7x
topology: tpu7x:2x2x1
jax: 0.10.0
libtpu: 0.0.40
codegen_flags: <defaults>
</compile_context>

<pallas_src>
import math
import functools

import jax
import jax.numpy as jnp
from jax.experimental import pallas as pl
from jax.experimental.pallas import tpu as pltpu

WEIGHT_BIT_WIDTH = 4
ACT_BIT_WIDTH = 4
FIRST_LAYER_BIT_WIDTH = 8
ACT_MAX_VAL = 6.0
BN_EPS = 1e-5


def _round_up(x, m):
    return (x + m - 1) // m * m


# ----------------------------------------------------------------------------
# Pallas kernel: single-K-block GEMM with fused BN scale/shift
#                (+ optional residual add) (+ optional ReLU + uniform act quant)
# ----------------------------------------------------------------------------
def _gemm_kernel(*refs, has_residual, relu_quant, act_scale, inv_act, act_levels):
    if has_residual:
        a_ref, b_ref, ss_ref, res_ref, o_ref = refs
    else:
        a_ref, b_ref, ss_ref, o_ref = refs
        res_ref = None

    # bf16 x bf16 -> fp32 accumulate on the MXU (full K in one block).
    y = jnp.dot(a_ref[...], b_ref[...], preferred_element_type=jnp.float32)
    ss = ss_ref[...]                       # (2, tn): row 0 = scale, row 1 = shift
    y = y * ss[0:1, :] + ss[1:2, :]        # folded BatchNorm (pre-divided by act_scale when quantizing)
    if res_ref is not None:
        r = res_ref[...].astype(jnp.float32)   # bf16 residual, fp32 add
        if relu_quant:
            r = r * inv_act                    # bring residual into the same 1/act_scale units
        y = y + r
    if relu_quant:                         # QuantReLU: unsigned uniform fake-quant
        q = jnp.clip(jnp.round(jnp.maximum(y, 0.0)), 0.0, act_levels - 1.0)
        y = q * act_scale
    o_ref[...] = y.astype(o_ref.dtype)     # bf16 store: half the output HBM traffic


def pallas_gemm_fused(a, b, scale, shift, *, residual=None, relu_quant,
                      act_scale, act_levels):
    """a:(M,K) bf16, b:(K,N) bf16, scale/shift:(N,) f32, residual:(M,N) bf16 or None.

    Returns (M, N) bf16 = quant(relu(a @ b * scale + shift (+ residual))) or the plain
    BN output when relu_quant=False.
    """
    M, K = a.shape
    K2, Nc = b.shape
    assert K == K2
    has_res = residual is not None

    # ---- N tiling: channel counts here are <= 128 -> one full-N block normally.
    if Nc <= 128:
        tn, Np = Nc, Nc
    else:
        tn = 128
        Np = _round_up(Nc, tn)

    # ---- M tiling: budget-derived; >= 2 grid steps for large M so the A DMA overlaps the
    #      matmul (double-buffering) and v7x's second TensorCore can be used.
    A_ELT = 2  # bf16
    O_ELT = 2  # bf16
    BUDGET = 40 * 1024 * 1024  # conservative tiling budget (fits v7x 64 MiB VMEM w/ headroom)
    if M <= 256:
        tm = M                                    # tiny GEMM: single block, no grid overhead
    else:
        nblk = 4 if M >= 2048 else 2
        tm = _round_up(-(-M // nblk), 8)
        fixed = 2 * K * tn * A_ELT + 2 * 2 * tn * 4
        per_tm = 2 * K * A_ELT + 2 * tn * O_ELT + (2 * tn * A_ELT if has_res else 0)
        tm_budget = max(8, (BUDGET - fixed) // per_tm // 8 * 8)
        tm = max(8, min(tm, tm_budget, 1024))
    Mp = _round_up(M, tm)

    # ---- pad operands (no-ops in the common case: tm | M and Nc <= 128)
    a_p = a if Mp == M else jnp.pad(a, ((0, Mp - M), (0, 0)))
    b_p = b if Np == Nc else jnp.pad(b, ((0, 0), (0, Np - Nc)))

    inv_act = 1.0 / float(act_scale)
    sc = scale.astype(jnp.float32)
    sh = shift.astype(jnp.float32)
    if relu_quant:                # fold 1/act_scale into BN scale/shift (one fewer epilogue vmul)
        sc = sc * inv_act
        sh = sh * inv_act
    if Np != Nc:
        sc = jnp.pad(sc, (0, Np - Nc))
        sh = jnp.pad(sh, (0, Np - Nc))
    ss = jnp.stack([sc, sh], axis=0)   # single (2, Np) input instead of two DMA streams

    inputs = [a_p, b_p, ss]
    in_specs = [pl.BlockSpec((tm, K), lambda i, j: (i, 0)),
                pl.BlockSpec((K, tn), lambda i, j: (0, j)),
                pl.BlockSpec((2, tn), lambda i, j: (0, j))]
    if has_res:
        r = residual.astype(jnp.bfloat16)
        if Mp != M or Np != Nc:
            r = jnp.pad(r, ((0, Mp - M), (0, Np - Nc)))
        inputs.append(r)
        in_specs.append(pl.BlockSpec((tm, tn), lambda i, j: (i, j)))

    kernel = functools.partial(_gemm_kernel,
                               has_residual=has_res,
                               relu_quant=relu_quant,
                               act_scale=float(act_scale),
                               inv_act=inv_act,
                               act_levels=float(act_levels))

    # scoped-VMEM request sized from the actual double-buffered tiles + headroom
    need = (2 * tm * K * A_ELT + 2 * K * tn * A_ELT + 2 * 2 * tn * 4
            + 2 * tm * tn * O_ELT + (2 * tm * tn * A_ELT if has_res else 0))
    vmem_limit = int(min(48 * 1024 * 1024, max(32 * 1024 * 1024, need + 8 * 1024 * 1024)))

    out = pl.pallas_call(
        kernel,
        out_shape=jax.ShapeDtypeStruct((Mp, Np), jnp.bfloat16),
        grid_spec=pltpu.PrefetchScalarGridSpec(
            num_scalar_prefetch=0,
            grid=(Mp // tm, Np // tn),
            in_specs=in_specs,
            out_specs=pl.BlockSpec((tm, tn), lambda i, j: (i, j))),
        compiler_params=pltpu.CompilerParams(
            dimension_semantics=("parallel", "parallel"),
            vmem_limit_bytes=vmem_limit),
    )(*inputs)

    if Mp != M or Np != Nc:
        out = out[:M, :Nc]
    return out


# ----------------------------------------------------------------------------
# im2col glue (plain JAX slicing) — patches built directly in bf16
# ----------------------------------------------------------------------------
def im2col_3d(x, ksize, stride, padding, pad_value=0.0):
    """x: (N, D, H, W, C) -> patches (N, Do, Ho, Wo, kd*kh*kw, C)."""
    kd, kh, kw = ksize
    sd, sh, sw = stride
    pd, ph, pw = padding
    xp = jnp.pad(x, ((0, 0), (pd, pd), (ph, ph), (pw, pw), (0, 0)),
                 constant_values=pad_value)
    _, Dp, Hp, Wp, _ = xp.shape
    Do = (Dp - kd) // sd + 1
    Ho = (Hp - kh) // sh + 1
    Wo = (Wp - kw) // sw + 1
    cols = []
    for i in range(kd):
        for j in range(kh):
            for k in range(kw):
                cols.append(xp[:,
                               i:i + (Do - 1) * sd + 1:sd,
                               j:j + (Ho - 1) * sh + 1:sh,
                               k:k + (Wo - 1) * sw + 1:sw, :])
    patches = jnp.stack(cols, axis=4)
    return patches, (Do, Ho, Wo)


# ----------------------------------------------------------------------------
# Pooling (plain JAX: separable running max / mean; no patch blow-up)
# ----------------------------------------------------------------------------
def _maxpool1d_k3s2p1(x, axis):
    size = x.shape[axis]
    out_size = (size + 2 - 3) // 2 + 1
    pad_cfg = [(0, 0)] * x.ndim
    pad_cfg[axis] = (1, 1)
    xp = jnp.pad(x, pad_cfg, constant_values=-jnp.inf)

    def tap(off):
        idx = [slice(None)] * x.ndim
        idx[axis] = slice(off, off + (out_size - 1) * 2 + 1, 2)
        return xp[tuple(idx)]

    return jnp.maximum(jnp.maximum(tap(0), tap(1)), tap(2))


def maxpool3d(x):
    """QuantMaxPool3d(kernel=3, stride=2, padding=1), separable over (D, H, W)."""
    for ax in (1, 2, 3):
        x = _maxpool1d_k3s2p1(x, ax)
    return x


# ----------------------------------------------------------------------------
# Fake quantization of weights (parameter preprocessing, plain JAX)
# ----------------------------------------------------------------------------
def quant_weight(w, bits, per_channel):
    int_max = 2.0 ** (bits - 1) - 1.0
    wf = w.reshape(w.shape[0], -1)
    if per_channel:
        s = jnp.maximum(jnp.max(jnp.abs(wf), axis=1, keepdims=True), 2e-16) / int_max
    else:
        s = jnp.maximum(jnp.max(jnp.abs(wf)), 2e-16) / int_max
    q = jnp.clip(jnp.round(wf / s), -int_max, int_max) * s
    return q.reshape(w.shape)


def act_quant_consts(act_bits):
    levels = float(2 ** act_bits)
    scale = ACT_MAX_VAL / (levels - 1.0)
    return scale, levels


# ----------------------------------------------------------------------------
# Network forward
# ----------------------------------------------------------------------------
def conv_bn(x, w, bn, *, stride, padding, wbits, per_channel, relu_quant,
            act_scale, act_levels, residual=None):
    """Conv3d + folded BN (+ fused residual) (+ QuantReLU) via im2col + Pallas GEMM."""
    wq = quant_weight(w, wbits, per_channel)
    patches, (Do, Ho, Wo) = im2col_3d(x.astype(jnp.bfloat16), w.shape[2:],
                                      stride, padding)
    N, Cout = x.shape[0], w.shape[0]
    K = patches.shape[-2] * patches.shape[-1]
    A = patches.reshape(N * Do * Ho * Wo, K)                                # bf16
    B = jnp.transpose(wq, (2, 3, 4, 1, 0)).reshape(K, Cout).astype(jnp.bfloat16)
    scale = bn['gamma'] / jnp.sqrt(bn['var'] + BN_EPS)
    shift = bn['beta'] - bn['mean'] * scale
    res2d = None if residual is None else residual.astype(jnp.bfloat16).reshape(-1, Cout)
    out = pallas_gemm_fused(A, B, scale, shift, residual=res2d,
                            relu_quant=relu_quant, act_scale=act_scale,
                            act_levels=act_levels)
    return out.reshape(N, Do, Ho, Wo, Cout)


def basic_block(x, bp, stride, wbits, act_scale, act_levels):
    out1 = conv_bn(x, bp['conv1'], bp['bn1'], stride=(stride,) * 3,
                   padding=(1, 1, 1), wbits=wbits, per_channel=True,
                   relu_quant=True, act_scale=act_scale, act_levels=act_levels)
    if 'down_conv' in bp:
        residual = conv_bn(x, bp['down_conv'], bp['down_bn'],
                           stride=(stride,) * 3, padding=(0, 0, 0),
                           wbits=wbits, per_channel=True, relu_quant=False,
                           act_scale=act_scale, act_levels=act_levels)
    else:
        residual = x
    # conv2 + bn2 + residual add + ReLU + act-quant, all fused in the GEMM epilogue
    out = conv_bn(out1, bp['conv2'], bp['bn2'], stride=(1, 1, 1),
                  padding=(1, 1, 1), wbits=wbits, per_channel=True,
                  relu_quant=True, act_scale=act_scale, act_levels=act_levels,
                  residual=residual)
    return out


def quant_resnet_forward(params, x_ncdhw, *, wbits=WEIGHT_BIT_WIDTH,
                         abits=ACT_BIT_WIDTH):
    act_scale, act_levels = act_quant_consts(abits)
    # NCDHW -> NDHWC
    x = jnp.transpose(x_ncdhw, (0, 2, 3, 4, 1)).astype(jnp.float32)

    # stem: conv1 + bn1 + QuantReLU, then maxpool
    x = conv_bn(x, params['conv1'], params['bn1'], stride=(1, 2, 2),
                padding=(params['conv1'].shape[2] // 2, 3, 3),
                wbits=wbits, per_channel=True, relu_quant=True,
                act_scale=act_scale, act_levels=act_levels)
    x = maxpool3d(x)

    layer_strides = (1, 2, 2, 2)
    for blocks, stride in zip(params['layers'], layer_strides):
        for bi, bp in enumerate(blocks):
            s = stride if bi == 0 else 1
            x = basic_block(x, bp, s, wbits, act_scale, act_levels)

    # global avg-pool + FC head (tiny; plain JAX per review)
    pooled = jnp.mean(x.astype(jnp.float32), axis=(1, 2, 3))                # (N, C)
    wq = quant_weight(params['fc_w'], FIRST_LAYER_BIT_WIDTH, per_channel=False)
    logits = pooled @ wq.T + params['fc_b']
    return logits


# ----------------------------------------------------------------------------
# Deterministic parameter init (mirrors the module's __init__)
# ----------------------------------------------------------------------------
def _kaiming_normal_fan_out(key, shape):
    fan_out = shape[0] * shape[2] * shape[3] * shape[4]
    std = math.sqrt(2.0 / fan_out)
    return std * jax.random.normal(key, shape, jnp.float32)


def _bn_init(c):
    return dict(gamma=jnp.ones((c,), jnp.float32),
                beta=jnp.zeros((c,), jnp.float32),
                mean=jnp.zeros((c,), jnp.float32),
                var=jnp.ones((c,), jnp.float32))


def init_params(key, block_inplanes, layers, n_input_channels, conv1_t_size,
                n_classes):
    keys = iter(jax.random.split(key, 128))
    params = {}
    in_planes = block_inplanes[0]
    params['conv1'] = _kaiming_normal_fan_out(
        next(keys), (in_planes, n_input_channels, conv1_t_size, 7, 7))
    params['bn1'] = _bn_init(in_planes)

    layer_params = []
    for planes, nblocks, stride in zip(block_inplanes, layers, (1, 2, 2, 2)):
        blocks = []
        for bi in range(nblocks):
            s = stride if bi == 0 else 1
            bp = {
                'conv1': _kaiming_normal_fan_out(next(keys), (planes, in_planes, 3, 3, 3)),
                'bn1': _bn_init(planes),
                'conv2': _kaiming_normal_fan_out(next(keys), (planes, planes, 3, 3, 3)),
                'bn2': _bn_init(planes),
            }
            if s != 1 or in_planes != planes:
                bp['down_conv'] = _kaiming_normal_fan_out(next(keys), (planes, in_planes, 1, 1, 1))
                bp['down_bn'] = _bn_init(planes)
            blocks.append(bp)
            in_planes = planes
        layer_params.append(blocks)
    params['layers'] = layer_params

    fan_in = block_inplanes[3]
    bound = 1.0 / math.sqrt(fan_in)
    params['fc_w'] = jax.random.uniform(next(keys), (n_classes, fan_in),
                                        jnp.float32, -bound, bound)
    params['fc_b'] = jax.random.uniform(next(keys), (n_classes,),
                                        jnp.float32, -bound, bound)
    return params


# ----------------------------------------------------------------------------
if __name__ == "__main__":
    key = jax.random.PRNGKey(0)
    kp, kx = jax.random.split(key)

    block_inplanes = [8, 16, 32, 64]       # small widths for the synthetic test
    layers = [1, 1, 1, 1]                  # basic-block ResNet-10 layout
    n_input_channels = 3
    conv1_t_size = 7
    n_classes = 10

    params = init_params(kp, block_inplanes, layers, n_input_channels,
                         conv1_t_size, n_classes)

    # PyTorch-convention input: (N, C, D, H, W)
    x = jax.random.normal(kx, (2, 3, 16, 16, 16), jnp.float32)

    fwd = jax.jit(quant_resnet_forward)
    logits = fwd(params, x)
    jax.block_until_ready(logits)
    assert logits.shape == (2, n_classes)
    print("KERNEL_OK")
</pallas_src>

<mosaic_0001>
module attributes {stable_mosaic.version = 11 : i64} {
  func.func @_gemm_kernel(%arg0: i32, %arg1: i32, %arg2: memref<512x1029xbf16, #tpu.memory_space<vmem>>, %arg3: memref<1029x8xbf16, #tpu.memory_space<vmem>>, %arg4: memref<2x8xf32, #tpu.memory_space<vmem>>, %arg5: memref<512x8xbf16, #tpu.memory_space<vmem>>) attributes {dimension_semantics = [#tpu.dimension_semantics<parallel>, #tpu.dimension_semantics<parallel>], iteration_bounds = array<i64: 4, 1>, scalar_prefetch = 0 : i64, scratch_operands = 0 : i64, tpu.core_type = #tpu.core_type<tc>, window_params = [{transform_indices = @transform_0, window_bounds = array<i64: 512, 1029>}, {transform_indices = @transform_1, window_bounds = array<i64: 1029, 8>}, {transform_indices = @transform_2, window_bounds = array<i64: 2, 8>}, {transform_indices = @transform_3, window_bounds = array<i64: 512, 8>}]} {
    %c0 = arith.constant 0 : index
    %c0_0 = arith.constant 0 : index
    %0 = vector.load %arg2[%c0, %c0_0] : memref<512x1029xbf16, #tpu.memory_space<vmem>>, vector<512x1029xbf16>
    %c0_1 = arith.constant 0 : index
    %c0_2 = arith.constant 0 : index
    %1 = vector.load %arg3[%c0_1, %c0_2] : memref<1029x8xbf16, #tpu.memory_space<vmem>>, vector<1029x8xbf16>
    %cst = arith.constant dense<0.000000e+00> : vector<512x8xf32>
    %2 = tpu.matmul %0, %1, %cst {dimension_numbers = #tpu.dot_dimension_numbers<[1], [0], [0], [1], [0, 0, 1, 1], [], []>} : vector<512x1029xbf16>, vector<1029x8xbf16>, vector<512x8xf32> -> vector<512x8xf32>
    %c0_3 = arith.constant 0 : index
    %c0_4 = arith.constant 0 : index
    %3 = vector.load %arg4[%c0_3, %c0_4] : memref<2x8xf32, #tpu.memory_space<vmem>>, vector<2x8xf32>
    %4 = vector.extract_strided_slice %3 {offsets = [0, 0], sizes = [1, 8], strides = [1, 1]} : vector<2x8xf32> to vector<1x8xf32>
    %5 = vector.broadcast %4 : vector<1x8xf32> to vector<512x8xf32>
    %6 = arith.mulf %2, %5 : vector<512x8xf32>
    %7 = vector.extract_strided_slice %3 {offsets = [1, 0], sizes = [1, 8], strides = [1, 1]} : vector<2x8xf32> to vector<1x8xf32>
    %8 = vector.broadcast %7 : vector<1x8xf32> to vector<512x8xf32>
    %9 = arith.addf %6, %8 : vector<512x8xf32>
    %cst_5 = arith.constant 0.000000e+00 : f32
    %10 = vector.broadcast %cst_5 : f32 to vector<512x8xf32>
    %11 = arith.maximumf %9, %10 : vector<512x8xf32>
    %12 = math.roundeven %11 : vector<512x8xf32>
    %cst_6 = arith.constant 0.000000e+00 : f32
    %cst_7 = arith.constant 1.500000e+01 : f32
    %13 = vector.broadcast %cst_6 : f32 to vector<512x8xf32>
    %14 = arith.maximumf %13, %12 : vector<512x8xf32>
    %15 = vector.broadcast %cst_7 : f32 to vector<512x8xf32>
    %16 = arith.minimumf %15, %14 : vector<512x8xf32>
    %cst_8 = arith.constant 4.000000e-01 : f32
    %17 = vector.broadcast %cst_8 : f32 to vector<512x8xf32>
    %18 = arith.mulf %16, %17 : vector<512x8xf32>
    %19 = arith.truncf %18 : vector<512x8xf32> to vector<512x8xbf16>
    %c0_9 = arith.constant 0 : index
    %c0_10 = arith.constant 0 : index
    %20 = vector.load %arg5[%c0_9, %c0_10] : memref<512x8xbf16, #tpu.memory_space<vmem>>, vector<512x8xbf16>
    tpu.vector_store %arg5[%c0_9, %c0_10], %19 {strides = array<i32>} : memref<512x8xbf16, #tpu.memory_space<vmem>>, vector<512x8xbf16>,
    return
  }
  func.func @transform_0(%arg0: i32, %arg1: i32) -> (i32, i32) {
    %c0_i32 = arith.constant 0 : i32
    %c0_i32_0 = arith.constant 0 : i32
    return %arg0, %c0_i32 : i32, i32
  }
  func.func @transform_1(%arg0: i32, %arg1: i32) -> (i32, i32) {
    %c0_i32 = arith.constant 0 : i32
    %c0_i32_0 = arith.constant 0 : i32
    return %c0_i32, %arg1 : i32, i32
  }
  func.func @transform_2(%arg0: i32, %arg1: i32) -> (i32, i32) {
    %c0_i32 = arith.constant 0 : i32
    %c0_i32_0 = arith.constant 0 : i32
    return %c0_i32, %arg1 : i32, i32
  }
  func.func @transform_3(%arg0: i32, %arg1: i32) -> (i32, i32) {
    %c0_i32 = arith.constant 0 : i32
    return %arg0, %arg1 : i32, i32
  }
}

module attributes {stable_mosaic.version = 11 : i64} {
  func.func @_gemm_kernel(%arg0: i32, %arg1: i32, %arg2: memref<256x216xbf16, #tpu.memory_space<vmem>>, %arg3: memref<216x8xbf16, #tpu.memory_space<vmem>>, %arg4: memref<2x8xf32, #tpu.memory_space<vmem>>, %arg5: memref<256x8xbf16, #tpu.memory_space<vmem>>) attributes {dimension_semantics = [#tpu.dimension_semantics<parallel>, #tpu.dimension_semantics<parallel>], iteration_bounds = array<i64: 1, 1>, scalar_prefetch = 0 : i64, scratch_operands = 0 : i64, tpu.core_type = #tpu.core_type<tc>, window_params = [{transform_indices = @transform_0, window_bounds = array<i64: 256, 216>}, {transform_indices = @transform_1, window_bounds = array<i64: 216, 8>}, {transform_indices = @transform_2, window_bounds = array<i64: 2, 8>}, {transform_indices = @transform_3, window_bounds = array<i64: 256, 8>}]} {
    %c0 = arith.constant 0 : index
    %c0_0 = arith.constant 0 : index
    %0 = vector.load %arg2[%c0, %c0_0] : memref<256x216xbf16, #tpu.memory_space<vmem>>, vector<256x216xbf16>
    %c0_1 = arith.constant 0 : index
    %c0_2 = arith.constant 0 : index
    %1 = vector.load %arg3[%c0_1, %c0_2] : memref<216x8xbf16, #tpu.memory_space<vmem>>, vector<216x8xbf16>
    %cst = arith.constant dense<0.000000e+00> : vector<256x8xf32>
    %2 = tpu.matmul %0, %1, %cst {dimension_numbers = #tpu.dot_dimension_numbers<[1], [0], [0], [1], [0, 0, 1, 1], [], []>} : vector<256x216xbf16>, vector<216x8xbf16>, vector<256x8xf32> -> vector<256x8xf32>
    %c0_3 = arith.constant 0 : index
    %c0_4 = arith.constant 0 : index
    %3 = vector.load %arg4[%c0_3, %c0_4] : memref<2x8xf32, #tpu.memory_space<vmem>>, vector<2x8xf32>
    %4 = vector.extract_strided_slice %3 {offsets = [0, 0], sizes = [1, 8], strides = [1, 1]} : vector<2x8xf32> to vector<1x8xf32>
    %5 = vector.broadcast %4 : vector<1x8xf32> to vector<256x8xf32>
    %6 = arith.mulf %2, %5 : vector<256x8xf32>
    %7 = vector.extract_strided_slice %3 {offsets = [1, 0], sizes = [1, 8], strides = [1, 1]} : vector<2x8xf32> to vector<1x8xf32>
    %8 = vector.broadcast %7 : vector<1x8xf32> to vector<256x8xf32>
    %9 = arith.addf %6, %8 : vector<256x8xf32>
    %cst_5 = arith.constant 0.000000e+00 : f32
    %10 = vector.broadcast %cst_5 : f32 to vector<256x8xf32>
    %11 = arith.maximumf %9, %10 : vector<256x8xf32>
    %12 = math.roundeven %11 : vector<256x8xf32>
    %cst_6 = arith.constant 0.000000e+00 : f32
    %cst_7 = arith.constant 1.500000e+01 : f32
    %13 = vector.broadcast %cst_6 : f32 to vector<256x8xf32>
    %14 = arith.maximumf %13, %12 : vector<256x8xf32>
    %15 = vector.broadcast %cst_7 : f32 to vector<256x8xf32>
    %16 = arith.minimumf %15, %14 : vector<256x8xf32>
    %cst_8 = arith.constant 4.000000e-01 : f32
    %17 = vector.broadcast %cst_8 : f32 to vector<256x8xf32>
    %18 = arith.mulf %16, %17 : vector<256x8xf32>
    %19 = arith.truncf %18 : vector<256x8xf32> to vector<256x8xbf16>
    %c0_9 = arith.constant 0 : index
    %c0_10 = arith.constant 0 : index
    %20 = vector.load %arg5[%c0_9, %c0_10] : memref<256x8xbf16, #tpu.memory_space<vmem>>, vector<256x8xbf16>
    tpu.vector_store %arg5[%c0_9, %c0_10], %19 {strides = array<i32>} : memref<256x8xbf16, #tpu.memory_space<vmem>>, vector<256x8xbf16>,
    return
  }
  func.func @transform_0(%arg0: i32, %arg1: i32) -> (i32, i32) {
    %c0_i32 = arith.constant 0 : i32
    %c0_i32_0 = arith.constant 0 : i32
    return %arg0, %c0_i32 : i32, i32
  }
  func.func @transform_1(%arg0: i32, %arg1: i32) -> (i32, i32) {
    %c0_i32 = arith.constant 0 : i32
    %c0_i32_0 = arith.constant 0 : i32
    return %c0_i32, %arg1 : i32, i32
  }
  func.func @transform_2(%arg0: i32, %arg1: i32) -> (i32, i32) {
    %c0_i32 = arith.constant 0 : i32
    %c0_i32_0 = arith.constant 0 : i32
    return %c0_i32, %arg1 : i32, i32
  }
  func.func @transform_3(%arg0: i32, %arg1: i32) -> (i32, i32) {
    %c0_i32 = arith.constant 0 : i32
    return %arg0, %arg1 : i32, i32
  }
}

module attributes {stable_mosaic.version = 11 : i64} {
  func.func @_gemm_kernel(%arg0: i32, %arg1: i32, %arg2: memref<256x216xbf16, #tpu.memory_space<vmem>>, %arg3: memref<216x8xbf16, #tpu.memory_space<vmem>>, %arg4: memref<2x8xf32, #tpu.memory_space<vmem>>, %arg5: memref<256x8xbf16, #tpu.memory_space<vmem>>, %arg6: memref<256x8xbf16, #tpu.memory_space<vmem>>) attributes {dimension_semantics = [#tpu.dimension_semantics<parallel>, #tpu.dimension_semantics<parallel>], iteration_bounds = array<i64: 1, 1>, scalar_prefetch = 0 : i64, scratch_operands = 0 : i64, tpu.core_type = #tpu.core_type<tc>, window_params = [{transform_indices = @transform_0, window_bounds = array<i64: 256, 216>}, {transform_indices = @transform_1, window_bounds = array<i64: 216, 8>}, {transform_indices = @transform_2, window_bounds = array<i64: 2, 8>}, {transform_indices = @transform_3, window_bounds = array<i64: 256, 8>}, {transform_indices = @transform_4, window_bounds = array<i64: 256, 8>}]} {
    %c0 = arith.constant 0 : index
    %c0_0 = arith.constant 0 : index
    %0 = vector.load %arg2[%c0, %c0_0] : memref<256x216xbf16, #tpu.memory_space<vmem>>, vector<256x216xbf16>
    %c0_1 = arith.constant 0 : index
    %c0_2 = arith.constant 0 : index
    %1 = vector.load %arg3[%c0_1, %c0_2] : memref<216x8xbf16, #tpu.memory_space<vmem>>, vector<216x8xbf16>
    %cst = arith.constant dense<0.000000e+00> : vector<256x8xf32>
    %2 = tpu.matmul %0, %1, %cst {dimension_numbers = #tpu.dot_dimension_numbers<[1], [0], [0], [1], [0, 0, 1, 1], [], []>} : vector<256x216xbf16>, vector<216x8xbf16>, vector<256x8xf32> -> vector<256x8xf32>
    %c0_3 = arith.constant 0 : index
    %c0_4 = arith.constant 0 : index
    %3 = vector.load %arg4[%c0_3, %c0_4] : memref<2x8xf32, #tpu.memory_space<vmem>>, vector<2x8xf32>
    %4 = vector.extract_strided_slice %3 {offsets = [0, 0], sizes = [1, 8], strides = [1, 1]} : vector<2x8xf32> to vector<1x8xf32>
    %5 = vector.broadcast %4 : vector<1x8xf32> to vector<256x8xf32>
    %6 = arith.mulf %2, %5 : vector<256x8xf32>
    %7 = vector.extract_strided_slice %3 {offsets = [1, 0], sizes = [1, 8], strides = [1, 1]} : vector<2x8xf32> to vector<1x8xf32>
    %8 = vector.broadcast %7 : vector<1x8xf32> to vector<256x8xf32>
    %9 = arith.addf %6, %8 : vector<256x8xf32>
    %c0_5 = arith.constant 0 : index
    %c0_6 = arith.constant 0 : index
    %10 = vector.load %arg5[%c0_5, %c0_6] : memref<256x8xbf16, #tpu.memory_space<vmem>>, vector<256x8xbf16>
    %11 = arith.extf %10 : vector<256x8xbf16> to vector<256x8xf32>
    %cst_7 = arith.constant 2.500000e+00 : f32
    %12 = vector.broadcast %cst_7 : f32 to vector<256x8xf32>
    %13 = arith.mulf %11, %12 : vector<256x8xf32>
    %14 = arith.addf %9, %13 : vector<256x8xf32>
    %cst_8 = arith.constant 0.000000e+00 : f32
    %15 = vector.broadcast %cst_8 : f32 to vector<256x8xf32>
    %16 = arith.maximumf %14, %15 : vector<256x8xf32>
    %17 = math.roundeven %16 : vector<256x8xf32>
    %cst_9 = arith.constant 0.000000e+00 : f32
    %cst_10 = arith.constant 1.500000e+01 : f32
    %18 = vector.broadcast %cst_9 : f32 to vector<256x8xf32>
    %19 = arith.maximumf %18, %17 : vector<256x8xf32>
    %20 = vector.broadcast %cst_10 : f32 to vector<256x8xf32>
    %21 = arith.minimumf %20, %19 : vector<256x8xf32>
    %cst_11 = arith.constant 4.000000e-01 : f32
    %22 = vector.broadcast %cst_11 : f32 to vector<256x8xf32>
    %23 = arith.mulf %21, %22 : vector<256x8xf32>
    %24 = arith.truncf %23 : vector<256x8xf32> to vector<256x8xbf16>
    %c0_12 = arith.constant 0 : index
    %c0_13 = arith.constant 0 : index
    %25 = vector.load %arg6[%c0_12, %c0_13] : memref<256x8xbf16, #tpu.memory_space<vmem>>, vector<256x8xbf16>
    tpu.vector_store %arg6[%c0_12, %c0_13], %24 {strides = array<i32>} : memref<256x8xbf16, #tpu.memory_space<vmem>>, vector<256x8xbf16>,
    return
  }
  func.func @transform_0(%arg0: i32, %arg1: i32) -> (i32, i32) {
    %c0_i32 = arith.constant 0 : i32
    %c0_i32_0 = arith.constant 0 : i32
    return %arg0, %c0_i32 : i32, i32
  }
  func.func @transform_1(%arg0: i32, %arg1: i32) -> (i32, i32) {
    %c0_i32 = arith.constant 0 : i32
    %c0_i32_0 = arith.constant 0 : i32
    return %c0_i32, %arg1 : i32, i32
  }
  func.func @transform_2(%arg0: i32, %arg1: i32) -> (i32, i32) {
    %c0_i32 = arith.constant 0 : i32
    %c0_i32_0 = arith.constant 0 : i32
    return %c0_i32, %arg1 : i32, i32
  }
  func.func @transform_3(%arg0: i32, %arg1: i32) -> (i32, i32) {
    %c0_i32 = arith.constant 0 : i32
    return %arg0, %arg1 : i32, i32
  }
  func.func @transform_4(%arg0: i32, %arg1: i32) -> (i32, i32) {
    %c0_i32 = arith.constant 0 : i32
    return %arg0, %arg1 : i32, i32
  }
}

module attributes {stable_mosaic.version = 11 : i64} {
  func.func @_gemm_kernel(%arg0: i32, %arg1: i32, %arg2: memref<32x216xbf16, #tpu.memory_space<vmem>>, %arg3: memref<216x16xbf16, #tpu.memory_space<vmem>>, %arg4: memref<2x16xf32, #tpu.memory_space<vmem>>, %arg5: memref<32x16xbf16, #tpu.memory_space<vmem>>) attributes {dimension_semantics = [#tpu.dimension_semantics<parallel>, #tpu.dimension_semantics<parallel>], iteration_bounds = array<i64: 1, 1>, scalar_prefetch = 0 : i64, scratch_operands = 0 : i64, tpu.core_type = #tpu.core_type<tc>, window_params = [{transform_indices = @transform_0, window_bounds = array<i64: 32, 216>}, {transform_indices = @transform_1, window_bounds = array<i64: 216, 16>}, {transform_indices = @transform_2, window_bounds = array<i64: 2, 16>}, {transform_indices = @transform_3, window_bounds = array<i64: 32, 16>}]} {
    %c0 = arith.constant 0 : index
    %c0_0 = arith.constant 0 : index
    %0 = vector.load %arg2[%c0, %c0_0] : memref<32x216xbf16, #tpu.memory_space<vmem>>, vector<32x216xbf16>
    %c0_1 = arith.constant 0 : index
    %c0_2 = arith.constant 0 : index
    %1 = vector.load %arg3[%c0_1, %c0_2] : memref<216x16xbf16, #tpu.memory_space<vmem>>, vector<216x16xbf16>
    %cst = arith.constant dense<0.000000e+00> : vector<32x16xf32>
    %2 = tpu.matmul %0, %1, %cst {dimension_numbers = #tpu.dot_dimension_numbers<[1], [0], [0], [1], [0, 0, 1, 1], [], []>} : vector<32x216xbf16>, vector<216x16xbf16>, vector<32x16xf32> -> vector<32x16xf32>
    %c0_3 = arith.constant 0 : index
    %c0_4 = arith.constant 0 : index
    %3 = vector.load %arg4[%c0_3, %c0_4] : memref<2x16xf32, #tpu.memory_space<vmem>>, vector<2x16xf32>
    %4 = vector.extract_strided_slice %3 {offsets = [0, 0], sizes = [1, 16], strides = [1, 1]} : vector<2x16xf32> to vector<1x16xf32>
    %5 = vector.broadcast %4 : vector<1x16xf32> to vector<32x16xf32>
    %6 = arith.mulf %2, %5 : vector<32x16xf32>
    %7 = vector.extract_strided_slice %3 {offsets = [1, 0], sizes = [1, 16], strides = [1, 1]} : vector<2x16xf32> to vector<1x16xf32>
    %8 = vector.broadcast %7 : vector<1x16xf32> to vector<32x16xf32>
    %9 = arith.addf %6, %8 : vector<32x16xf32>
    %cst_5 = arith.constant 0.000000e+00 : f32
    %10 = vector.broadcast %cst_5 : f32 to vector<32x16xf32>
    %11 = arith.maximumf %9, %10 : vector<32x16xf32>
    %12 = math.roundeven %11 : vector<32x16xf32>
    %cst_6 = arith.constant 0.000000e+00 : f32
    %cst_7 = arith.constant 1.500000e+01 : f32
    %13 = vector.broadcast %cst_6 : f32 to vector<32x16xf32>
    %14 = arith.maximumf %13, %12 : vector<32x16xf32>
    %15 = vector.broadcast %cst_7 : f32 to vector<32x16xf32>
    %16 = arith.minimumf %15, %14 : vector<32x16xf32>
    %cst_8 = arith.constant 4.000000e-01 : f32
    %17 = vector.broadcast %cst_8 : f32 to vector<32x16xf32>
    %18 = arith.mulf %16, %17 : vector<32x16xf32>
    %19 = arith.truncf %18 : vector<32x16xf32> to vector<32x16xbf16>
    %c0_9 = arith.constant 0 : index
    %c0_10 = arith.constant 0 : index
    %20 = vector.load %arg5[%c0_9, %c0_10] : memref<32x16xbf16, #tpu.memory_space<vmem>>, vector<32x16xbf16>
    tpu.vector_store %arg5[%c0_9, %c0_10], %19 {strides = array<i32>} : memref<32x16xbf16, #tpu.memory_space<vmem>>, vector<32x16xbf16>,
    return
  }
  func.func @transform_0(%arg0: i32, %arg1: i32) -> (i32, i32) {
    %c0_i32 = arith.constant 0 : i32
    %c0_i32_0 = arith.constant 0 : i32
    return %arg0, %c0_i32 : i32, i32
  }
  func.func @transform_1(%arg0: i32, %arg1: i32) -> (i32, i32) {
    %c0_i32 = arith.constant 0 : i32
    %c0_i32_0 = arith.constant 0 : i32
    return %c0_i32, %arg1 : i32, i32
  }
  func.func @transform_2(%arg0: i32, %arg1: i32) -> (i32, i32) {
    %c0_i32 = arith.constant 0 : i32
    %c0_i32_0 = arith.constant 0 : i32
    return %c0_i32, %arg1 : i32, i32
  }
  func.func @transform_3(%arg0: i32, %arg1: i32) -> (i32, i32) {
    %c0_i32 = arith.constant 0 : i32
    return %arg0, %arg1 : i32, i32
  }
}

module attributes {stable_mosaic.version = 11 : i64} {
  func.func @_gemm_kernel(%arg0: i32, %arg1: i32, %arg2: memref<32x8xbf16, #tpu.memory_space<vmem>>, %arg3: memref<8x16xbf16, #tpu.memory_space<vmem>>, %arg4: memref<2x16xf32, #tpu.memory_space<vmem>>, %arg5: memref<32x16xbf16, #tpu.memory_space<vmem>>) attributes {dimension_semantics = [#tpu.dimension_semantics<parallel>, #tpu.dimension_semantics<parallel>], iteration_bounds = array<i64: 1, 1>, scalar_prefetch = 0 : i64, scratch_operands = 0 : i64, tpu.core_type = #tpu.core_type<tc>, window_params = [{transform_indices = @transform_0, window_bounds = array<i64: 32, 8>}, {transform_indices = @transform_1, window_bounds = array<i64: 8, 16>}, {transform_indices = @transform_2, window_bounds = array<i64: 2, 16>}, {transform_indices = @transform_3, window_bounds = array<i64: 32, 16>}]} {
    %c0 = arith.constant 0 : index
    %c0_0 = arith.constant 0 : index
    %0 = vector.load %arg2[%c0, %c0_0] : memref<32x8xbf16, #tpu.memory_space<vmem>>, vector<32x8xbf16>
    %c0_1 = arith.constant 0 : index
    %c0_2 = arith.constant 0 : index
    %1 = vector.load %arg3[%c0_1, %c0_2] : memref<8x16xbf16, #tpu.memory_space<vmem>>, vector<8x16xbf16>
    %cst = arith.constant dense<0.000000e+00> : vector<32x16xf32>
    %2 = tpu.matmul %0, %1, %cst {dimension_numbers = #tpu.dot_dimension_numbers<[1], [0], [0], [1], [0, 0, 1, 1], [], []>} : vector<32x8xbf16>, vector<8x16xbf16>, vector<32x16xf32> -> vector<32x16xf32>
    %c0_3 = arith.constant 0 : index
    %c0_4 = arith.constant 0 : index
    %3 = vector.load %arg4[%c0_3, %c0_4] : memref<2x16xf32, #tpu.memory_space<vmem>>, vector<2x16xf32>
    %4 = vector.extract_strided_slice %3 {offsets = [0, 0], sizes = [1, 16], strides = [1, 1]} : vector<2x16xf32> to vector<1x16xf32>
    %5 = vector.broadcast %4 : vector<1x16xf32> to vector<32x16xf32>
    %6 = arith.mulf %2, %5 : vector<32x16xf32>
    %7 = vector.extract_strided_slice %3 {offsets = [1, 0], sizes = [1, 16], strides = [1, 1]} : vector<2x16xf32> to vector<1x16xf32>
    %8 = vector.broadcast %7 : vector<1x16xf32> to vector<32x16xf32>
    %9 = arith.addf %6, %8 : vector<32x16xf32>
    %10 = arith.truncf %9 : vector<32x16xf32> to vector<32x16xbf16>
    %c0_5 = arith.constant 0 : index
    %c0_6 = arith.constant 0 : index
    %11 = vector.load %arg5[%c0_5, %c0_6] : memref<32x16xbf16, #tpu.memory_space<vmem>>, vector<32x16xbf16>
    tpu.vector_store %arg5[%c0_5, %c0_6], %10 {strides = array<i32>} : memref<32x16xbf16, #tpu.memory_space<vmem>>, vector<32x16xbf16>,
    return
  }
  func.func @transform_0(%arg0: i32, %arg1: i32) -> (i32, i32) {
    %c0_i32 = arith.constant 0 : i32
    %c0_i32_0 = arith.constant 0 : i32
    return %arg0, %c0_i32 : i32, i32
  }
  func.func @transform_1(%arg0: i32, %arg1: i32) -> (i32, i32) {
    %c0_i32 = arith.constant 0 : i32
    %c0_i32_0 = arith.constant 0 : i32
    return %c0_i32, %arg1 : i32, i32
  }
  func.func @transform_2(%arg0: i32, %arg1: i32) -> (i32, i32) {
    %c0_i32 = arith.constant 0 : i32
    %c0_i32_0 = arith.constant 0 : i32
    return %c0_i32, %arg1 : i32, i32
  }
  func.func @transform_3(%arg0: i32, %arg1: i32) -> (i32, i32) {
    %c0_i32 = arith.constant 0 : i32
    return %arg0, %arg1 : i32, i32
  }
}

module attributes {stable_mosaic.version = 11 : i64} {
  func.func @_gemm_kernel(%arg0: i32, %arg1: i32, %arg2: memref<32x432xbf16, #tpu.memory_space<vmem>>, %arg3: memref<432x16xbf16, #tpu.memory_space<vmem>>, %arg4: memref<2x16xf32, #tpu.memory_space<vmem>>, %arg5: memref<32x16xbf16, #tpu.memory_space<vmem>>, %arg6: memref<32x16xbf16, #tpu.memory_space<vmem>>) attributes {dimension_semantics = [#tpu.dimension_semantics<parallel>, #tpu.dimension_semantics<parallel>], iteration_bounds = array<i64: 1, 1>, scalar_prefetch = 0 : i64, scratch_operands = 0 : i64, tpu.core_type = #tpu.core_type<tc>, window_params = [{transform_indices = @transform_0, window_bounds = array<i64: 32, 432>}, {transform_indices = @transform_1, window_bounds = array<i64: 432, 16>}, {transform_indices = @transform_2, window_bounds = array<i64: 2, 16>}, {transform_indices = @transform_3, window_bounds = array<i64: 32, 16>}, {transform_indices = @transform_4, window_bounds = array<i64: 32, 16>}]} {
    %c0 = arith.constant 0 : index
    %c0_0 = arith.constant 0 : index
    %0 = vector.load %arg2[%c0, %c0_0] : memref<32x432xbf16, #tpu.memory_space<vmem>>, vector<32x432xbf16>
    %c0_1 = arith.constant 0 : index
    %c0_2 = arith.constant 0 : index
    %1 = vector.load %arg3[%c0_1, %c0_2] : memref<432x16xbf16, #tpu.memory_space<vmem>>, vector<432x16xbf16>
    %cst = arith.constant dense<0.000000e+00> : vector<32x16xf32>
    %2 = tpu.matmul %0, %1, %cst {dimension_numbers = #tpu.dot_dimension_numbers<[1], [0], [0], [1], [0, 0, 1, 1], [], []>} : vector<32x432xbf16>, vector<432x16xbf16>, vector<32x16xf32> -> vector<32x16xf32>
    %c0_3 = arith.constant 0 : index
    %c0_4 = arith.constant 0 : index
    %3 = vector.load %arg4[%c0_3, %c0_4] : memref<2x16xf32, #tpu.memory_space<vmem>>, vector<2x16xf32>
    %4 = vector.extract_strided_slice %3 {offsets = [0, 0], sizes = [1, 16], strides = [1, 1]} : vector<2x16xf32> to vector<1x16xf32>
    %5 = vector.broadcast %4 : vector<1x16xf32> to vector<32x16xf32>
    %6 = arith.mulf %2, %5 : vector<32x16xf32>
    %7 = vector.extract_strided_slice %3 {offsets = [1, 0], sizes = [1, 16], strides = [1, 1]} : vector<2x16xf32> to vector<1x16xf32>
    %8 = vector.broadcast %7 : vector<1x16xf32> to vector<32x16xf32>
    %9 = arith.addf %6, %8 : vector<32x16xf32>
    %c0_5 = arith.constant 0 : index
    %c0_6 = arith.constant 0 : index
    %10 = vector.load %arg5[%c0_5, %c0_6] : memref<32x16xbf16, #tpu.memory_space<vmem>>, vector<32x16xbf16>
    %11 = arith.extf %10 : vector<32x16xbf16> to vector<32x16xf32>
    %cst_7 = arith.constant 2.500000e+00 : f32
    %12 = vector.broadcast %cst_7 : f32 to vector<32x16xf32>
    %13 = arith.mulf %11, %12 : vector<32x16xf32>
    %14 = arith.addf %9, %13 : vector<32x16xf32>
    %cst_8 = arith.constant 0.000000e+00 : f32
    %15 = vector.broadcast %cst_8 : f32 to vector<32x16xf32>
    %16 = arith.maximumf %14, %15 : vector<32x16xf32>
    %17 = math.roundeven %16 : vector<32x16xf32>
    %cst_9 = arith.constant 0.000000e+00 : f32
    %cst_10 = arith.constant 1.500000e+01 : f32
    %18 = vector.broadcast %cst_9 : f32 to vector<32x16xf32>
    %19 = arith.maximumf %18, %17 : vector<32x16xf32>
    %20 = vector.broadcast %cst_10 : f32 to vector<32x16xf32>
    %21 = arith.minimumf %20, %19 : vector<32x16xf32>
    %cst_11 = arith.constant 4.000000e-01 : f32
    %22 = vector.broadcast %cst_11 : f32 to vector<32x16xf32>
    %23 = arith.mulf %21, %22 : vector<32x16xf32>
    %24 = arith.truncf %23 : vector<32x16xf32> to vector<32x16xbf16>
    %c0_12 = arith.constant 0 : index
    %c0_13 = arith.constant 0 : index
    %25 = vector.load %arg6[%c0_12, %c0_13] : memref<32x16xbf16, #tpu.memory_space<vmem>>, vector<32x16xbf16>
    tpu.vector_store %arg6[%c0_12, %c0_13], %24 {strides = array<i32>} : memref<32x16xbf16, #tpu.memory_space<vmem>>, vector<32x16xbf16>,
    return
  }
  func.func @transform_0(%arg0: i32, %arg1: i32) -> (i32, i32) {
    %c0_i32 = arith.constant 0 : i32
    %c0_i32_0 = arith.constant 0 : i32
    return %arg0, %c0_i32 : i32, i32
  }
  func.func @transform_1(%arg0: i32, %arg1: i32) -> (i32, i32) {
    %c0_i32 = arith.constant 0 : i32
    %c0_i32_0 = arith.constant 0 : i32
    return %c0_i32, %arg1 : i32, i32
  }
  func.func @transform_2(%arg0: i32, %arg1: i32) -> (i32, i32) {
    %c0_i32 = arith.constant 0 : i32
    %c0_i32_0 = arith.constant 0 : i32
    return %c0_i32, %arg1 : i32, i32
  }
  func.func @transform_3(%arg0: i32, %arg1: i32) -> (i32, i32) {
    %c0_i32 = arith.constant 0 : i32
    return %arg0, %arg1 : i32, i32
  }
  func.func @transform_4(%arg0: i32, %arg1: i32) -> (i32, i32) {
    %c0_i32 = arith.constant 0 : i32
    return %arg0, %arg1 : i32, i32
  }
}

module attributes {stable_mosaic.version = 11 : i64} {
  func.func @_gemm_kernel(%arg0: i32, %arg1: i32, %arg2: memref<4x432xbf16, #tpu.memory_space<vmem>>, %arg3: memref<432x32xbf16, #tpu.memory_space<vmem>>, %arg4: memref<2x32xf32, #tpu.memory_space<vmem>>, %arg5: memref<4x32xbf16, #tpu.memory_space<vmem>>) attributes {dimension_semantics = [#tpu.dimension_semantics<parallel>, #tpu.dimension_semantics<parallel>], iteration_bounds = array<i64: 1, 1>, scalar_prefetch = 0 : i64, scratch_operands = 0 : i64, tpu.core_type = #tpu.core_type<tc>, window_params = [{transform_indices = @transform_0, window_bounds = array<i64: 4, 432>}, {transform_indices = @transform_1, window_bounds = array<i64: 432, 32>}, {transform_indices = @transform_2, window_bounds = array<i64: 2, 32>}, {transform_indices = @transform_3, window_bounds = array<i64: 4, 32>}]} {
    %c0 = arith.constant 0 : index
    %c0_0 = arith.constant 0 : index
    %0 = vector.load %arg2[%c0, %c0_0] : memref<4x432xbf16, #tpu.memory_space<vmem>>, vector<4x432xbf16>
    %c0_1 = arith.constant 0 : index
    %c0_2 = arith.constant 0 : index
    %1 = vector.load %arg3[%c0_1, %c0_2] : memref<432x32xbf16, #tpu.memory_space<vmem>>, vector<432x32xbf16>
    %cst = arith.constant dense<0.000000e+00> : vector<4x32xf32>
    %2 = tpu.matmul %0, %1, %cst {dimension_numbers = #tpu.dot_dimension_numbers<[1], [0], [0], [1], [0, 0, 1, 1], [], []>} : vector<4x432xbf16>, vector<432x32xbf16>, vector<4x32xf32> -> vector<4x32xf32>
    %c0_3 = arith.constant 0 : index
    %c0_4 = arith.constant 0 : index
    %3 = vector.load %arg4[%c0_3, %c0_4] : memref<2x32xf32, #tpu.memory_space<vmem>>, vector<2x32xf32>
    %4 = vector.extract_strided_slice %3 {offsets = [0, 0], sizes = [1, 32], strides = [1, 1]} : vector<2x32xf32> to vector<1x32xf32>
    %5 = vector.broadcast %4 : vector<1x32xf32> to vector<4x32xf32>
    %6 = arith.mulf %2, %5 : vector<4x32xf32>
    %7 = vector.extract_strided_slice %3 {offsets = [1, 0], sizes = [1, 32], strides = [1, 1]} : vector<2x32xf32> to vector<1x32xf32>
    %8 = vector.broadcast %7 : vector<1x32xf32> to vector<4x32xf32>
    %9 = arith.addf %6, %8 : vector<4x32xf32>
    %cst_5 = arith.constant 0.000000e+00 : f32
    %10 = vector.broadcast %cst_5 : f32 to vector<4x32xf32>
    %11 = arith.maximumf %9, %10 : vector<4x32xf32>
    %12 = math.roundeven %11 : vector<4x32xf32>
    %cst_6 = arith.constant 0.000000e+00 : f32
    %cst_7 = arith.constant 1.500000e+01 : f32
    %13 = vector.broadcast %cst_6 : f32 to vector<4x32xf32>
    %14 = arith.maximumf %13, %12 : vector<4x32xf32>
    %15 = vector.broadcast %cst_7 : f32 to vector<4x32xf32>
    %16 = arith.minimumf %15, %14 : vector<4x32xf32>
    %cst_8 = arith.constant 4.000000e-01 : f32
    %17 = vector.broadcast %cst_8 : f32 to vector<4x32xf32>
    %18 = arith.mulf %16, %17 : vector<4x32xf32>
    %19 = arith.truncf %18 : vector<4x32xf32> to vector<4x32xbf16>
    %c0_9 = arith.constant 0 : index
    %c0_10 = arith.constant 0 : index
    %20 = vector.load %arg5[%c0_9, %c0_10] : memref<4x32xbf16, #tpu.memory_space<vmem>>, vector<4x32xbf16>
    tpu.vector_store %arg5[%c0_9, %c0_10], %19 {strides = array<i32>} : memref<4x32xbf16, #tpu.memory_space<vmem>>, vector<4x32xbf16>,
    return
  }
  func.func @transform_0(%arg0: i32, %arg1: i32) -> (i32, i32) {
    %c0_i32 = arith.constant 0 : i32
    %c0_i32_0 = arith.constant 0 : i32
    return %arg0, %c0_i32 : i32, i32
  }
  func.func @transform_1(%arg0: i32, %arg1: i32) -> (i32, i32) {
    %c0_i32 = arith.constant 0 : i32
    %c0_i32_0 = arith.constant 0 : i32
    return %c0_i32, %arg1 : i32, i32
  }
  func.func @transform_2(%arg0: i32, %arg1: i32) -> (i32, i32) {
    %c0_i32 = arith.constant 0 : i32
    %c0_i32_0 = arith.constant 0 : i32
    return %c0_i32, %arg1 : i32, i32
  }
  func.func @transform_3(%arg0: i32, %arg1: i32) -> (i32, i32) {
    %c0_i32 = arith.constant 0 : i32
    return %arg0, %arg1 : i32, i32
  }
}

module attributes {stable_mosaic.version = 11 : i64} {
  func.func @_gemm_kernel(%arg0: i32, %arg1: i32, %arg2: memref<4x16xbf16, #tpu.memory_space<vmem>>, %arg3: memref<16x32xbf16, #tpu.memory_space<vmem>>, %arg4: memref<2x32xf32, #tpu.memory_space<vmem>>, %arg5: memref<4x32xbf16, #tpu.memory_space<vmem>>) attributes {dimension_semantics = [#tpu.dimension_semantics<parallel>, #tpu.dimension_semantics<parallel>], iteration_bounds = array<i64: 1, 1>, scalar_prefetch = 0 : i64, scratch_operands = 0 : i64, tpu.core_type = #tpu.core_type<tc>, window_params = [{transform_indices = @transform_0, window_bounds = array<i64: 4, 16>}, {transform_indices = @transform_1, window_bounds = array<i64: 16, 32>}, {transform_indices = @transform_2, window_bounds = array<i64: 2, 32>}, {transform_indices = @transform_3, window_bounds = array<i64: 4, 32>}]} {
    %c0 = arith.constant 0 : index
    %c0_0 = arith.constant 0 : index
    %0 = vector.load %arg2[%c0, %c0_0] : memref<4x16xbf16, #tpu.memory_space<vmem>>, vector<4x16xbf16>
    %c0_1 = arith.constant 0 : index
    %c0_2 = arith.constant 0 : index
    %1 = vector.load %arg3[%c0_1, %c0_2] : memref<16x32xbf16, #tpu.memory_space<vmem>>, vector<16x32xbf16>
    %cst = arith.constant dense<0.000000e+00> : vector<4x32xf32>
    %2 = tpu.matmul %0, %1, %cst {dimension_numbers = #tpu.dot_dimension_numbers<[1], [0], [0], [1], [0, 0, 1, 1], [], []>} : vector<4x16xbf16>, vector<16x32xbf16>, vector<4x32xf32> -> vector<4x32xf32>
    %c0_3 = arith.constant 0 : index
    %c0_4 = arith.constant 0 : index
    %3 = vector.load %arg4[%c0_3, %c0_4] : memref<2x32xf32, #tpu.memory_space<vmem>>, vector<2x32xf32>
    %4 = vector.extract_strided_slice %3 {offsets = [0, 0], sizes = [1, 32], strides = [1, 1]} : vector<2x32xf32> to vector<1x32xf32>
    %5 = vector.broadcast %4 : vector<1x32xf32> to vector<4x32xf32>
    %6 = arith.mulf %2, %5 : vector<4x32xf32>
    %7 = vector.extract_strided_slice %3 {offsets = [1, 0], sizes = [1, 32], strides = [1, 1]} : vector<2x32xf32> to vector<1x32xf32>
    %8 = vector.broadcast %7 : vector<1x32xf32> to vector<4x32xf32>
    %9 = arith.addf %6, %8 : vector<4x32xf32>
    %10 = arith.truncf %9 : vector<4x32xf32> to vector<4x32xbf16>
    %c0_5 = arith.constant 0 : index
    %c0_6 = arith.constant 0 : index
    %11 = vector.load %arg5[%c0_5, %c0_6] : memref<4x32xbf16, #tpu.memory_space<vmem>>, vector<4x32xbf16>
    tpu.vector_store %arg5[%c0_5, %c0_6], %10 {strides = array<i32>} : memref<4x32xbf16, #tpu.memory_space<vmem>>, vector<4x32xbf16>,
    return
  }
  func.func @transform_0(%arg0: i32, %arg1: i32) -> (i32, i32) {
    %c0_i32 = arith.constant 0 : i32
    %c0_i32_0 = arith.constant 0 : i32
    return %arg0, %c0_i32 : i32, i32
  }
  func.func @transform_1(%arg0: i32, %arg1: i32) -> (i32, i32) {
    %c0_i32 = arith.constant 0 : i32
    %c0_i32_0 = arith.constant 0 : i32
    return %c0_i32, %arg1 : i32, i32
  }
  func.func @transform_2(%arg0: i32, %arg1: i32) -> (i32, i32) {
    %c0_i32 = arith.constant 0 : i32
    %c0_i32_0 = arith.constant 0 : i32
    return %c0_i32, %arg1 : i32, i32
  }
  func.func @transform_3(%arg0: i32, %arg1: i32) -> (i32, i32) {
    %c0_i32 = arith.constant 0 : i32
    return %arg0, %arg1 : i32, i32
  }
}

module attributes {stable_mosaic.version = 11 : i64} {
  func.func @_gemm_kernel(%arg0: i32, %arg1: i32, %arg2: memref<4x864xbf16, #tpu.memory_space<vmem>>, %arg3: memref<864x32xbf16, #tpu.memory_space<vmem>>, %arg4: memref<2x32xf32, #tpu.memory_space<vmem>>, %arg5: memref<4x32xbf16, #tpu.memory_space<vmem>>, %arg6: memref<4x32xbf16, #tpu.memory_space<vmem>>) attributes {dimension_semantics = [#tpu.dimension_semantics<parallel>, #tpu.dimension_semantics<parallel>], iteration_bounds = array<i64: 1, 1>, scalar_prefetch = 0 : i64, scratch_operands = 0 : i64, tpu.core_type = #tpu.core_type<tc>, window_params = [{transform_indices = @transform_0, window_bounds = array<i64: 4, 864>}, {transform_indices = @transform_1, window_bounds = array<i64: 864, 32>}, {transform_indices = @transform_2, window_bounds = array<i64: 2, 32>}, {transform_indices = @transform_3, window_bounds = array<i64: 4, 32>}, {transform_indices = @transform_4, window_bounds = array<i64: 4, 32>}]} {
    %c0 = arith.constant 0 : index
    %c0_0 = arith.constant 0 : index
    %0 = vector.load %arg2[%c0, %c0_0] : memref<4x864xbf16, #tpu.memory_space<vmem>>, vector<4x864xbf16>
    %c0_1 = arith.constant 0 : index
    %c0_2 = arith.constant 0 : index
    %1 = vector.load %arg3[%c0_1, %c0_2] : memref<864x32xbf16, #tpu.memory_space<vmem>>, vector<864x32xbf16>
    %cst = arith.constant dense<0.000000e+00> : vector<4x32xf32>
    %2 = tpu.matmul %0, %1, %cst {dimension_numbers = #tpu.dot_dimension_numbers<[1], [0], [0], [1], [0, 0, 1, 1], [], []>} : vector<4x864xbf16>, vector<864x32xbf16>, vector<4x32xf32> -> vector<4x32xf32>
    %c0_3 = arith.constant 0 : index
    %c0_4 = arith.constant 0 : index
    %3 = vector.load %arg4[%c0_3, %c0_4] : memref<2x32xf32, #tpu.memory_space<vmem>>, vector<2x32xf32>
    %4 = vector.extract_strided_slice %3 {offsets = [0, 0], sizes = [1, 32], strides = [1, 1]} : vector<2x32xf32> to vector<1x32xf32>
    %5 = vector.broadcast %4 : vector<1x32xf32> to vector<4x32xf32>
    %6 = arith.mulf %2, %5 : vector<4x32xf32>
    %7 = vector.extract_strided_slice %3 {offsets = [1, 0], sizes = [1, 32], strides = [1, 1]} : vector<2x32xf32> to vector<1x32xf32>
    %8 = vector.broadcast %7 : vector<1x32xf32> to vector<4x32xf32>
    %9 = arith.addf %6, %8 : vector<4x32xf32>
    %c0_5 = arith.constant 0 : index
    %c0_6 = arith.constant 0 : index
    %10 = vector.load %arg5[%c0_5, %c0_6] : memref<4x32xbf16, #tpu.memory_space<vmem>>, vector<4x32xbf16>
    %11 = arith.extf %10 : vector<4x32xbf16> to vector<4x32xf32>
    %cst_7 = arith.constant 2.500000e+00 : f32
    %12 = vector.broadcast %cst_7 : f32 to vector<4x32xf32>
    %13 = arith.mulf %11, %12 : vector<4x32xf32>
    %14 = arith.addf %9, %13 : vector<4x32xf32>
    %cst_8 = arith.constant 0.000000e+00 : f32
    %15 = vector.broadcast %cst_8 : f32 to vector<4x32xf32>
    %16 = arith.maximumf %14, %15 : vector<4x32xf32>
    %17 = math.roundeven %16 : vector<4x32xf32>
    %cst_9 = arith.constant 0.000000e+00 : f32
    %cst_10 = arith.constant 1.500000e+01 : f32
    %18 = vector.broadcast %cst_9 : f32 to vector<4x32xf32>
    %19 = arith.maximumf %18, %17 : vector<4x32xf32>
    %20 = vector.broadcast %cst_10 : f32 to vector<4x32xf32>
    %21 = arith.minimumf %20, %19 : vector<4x32xf32>
    %cst_11 = arith.constant 4.000000e-01 : f32
    %22 = vector.broadcast %cst_11 : f32 to vector<4x32xf32>
    %23 = arith.mulf %21, %22 : vector<4x32xf32>
    %24 = arith.truncf %23 : vector<4x32xf32> to vector<4x32xbf16>
    %c0_12 = arith.constant 0 : index
    %c0_13 = arith.constant 0 : index
    %25 = vector.load %arg6[%c0_12, %c0_13] : memref<4x32xbf16, #tpu.memory_space<vmem>>, vector<4x32xbf16>
    tpu.vector_store %arg6[%c0_12, %c0_13], %24 {strides = array<i32>} : memref<4x32xbf16, #tpu.memory_space<vmem>>, vector<4x32xbf16>,
    return
  }
  func.func @transform_0(%arg0: i32, %arg1: i32) -> (i32, i32) {
    %c0_i32 = arith.constant 0 : i32
    %c0_i32_0 = arith.constant 0 : i32
    return %arg0, %c0_i32 : i32, i32
  }
  func.func @transform_1(%arg0: i32, %arg1: i32) -> (i32, i32) {
    %c0_i32 = arith.constant 0 : i32
    %c0_i32_0 = arith.constant 0 : i32
    return %c0_i32, %arg1 : i32, i32
  }
  func.func @transform_2(%arg0: i32, %arg1: i32) -> (i32, i32) {
    %c0_i32 = arith.constant 0 : i32
    %c0_i32_0 = arith.constant 0 : i32
    return %c0_i32, %arg1 : i32, i32
  }
  func.func @transform_3(%arg0: i32, %arg1: i32) -> (i32, i32) {
    %c0_i32 = arith.constant 0 : i32
    return %arg0, %arg1 : i32, i32
  }
  func.func @transform_4(%arg0: i32, %arg1: i32) -> (i32, i32) {
    %c0_i32 = arith.constant 0 : i32
    return %arg0, %arg1 : i32, i32
  }
}

module attributes {stable_mosaic.version = 11 : i64} {
  func.func @_gemm_kernel(%arg0: i32, %arg1: i32, %arg2: memref<2x864xbf16, #tpu.memory_space<vmem>>, %arg3: memref<864x64xbf16, #tpu.memory_space<vmem>>, %arg4: memref<2x64xf32, #tpu.memory_space<vmem>>, %arg5: memref<2x64xbf16, #tpu.memory_space<vmem>>) attributes {dimension_semantics = [#tpu.dimension_semantics<parallel>, #tpu.dimension_semantics<parallel>], iteration_bounds = array<i64: 1, 1>, scalar_prefetch = 0 : i64, scratch_operands = 0 : i64, tpu.core_type = #tpu.core_type<tc>, window_params = [{transform_indices = @transform_0, window_bounds = array<i64: 2, 864>}, {transform_indices = @transform_1, window_bounds = array<i64: 864, 64>}, {transform_indices = @transform_2, window_bounds = array<i64: 2, 64>}, {transform_indices = @transform_3, window_bounds = array<i64: 2, 64>}]} {
    %c0 = arith.constant 0 : index
    %c0_0 = arith.constant 0 : index
    %0 = vector.load %arg2[%c0, %c0_0] : memref<2x864xbf16, #tpu.memory_space<vmem>>, vector<2x864xbf16>
    %c0_1 = arith.constant 0 : index
    %c0_2 = arith.constant 0 : index
    %1 = vector.load %arg3[%c0_1, %c0_2] : memref<864x64xbf16, #tpu.memory_space<vmem>>, vector<864x64xbf16>
    %cst = arith.constant dense<0.000000e+00> : vector<2x64xf32>
    %2 = tpu.matmul %0, %1, %cst {dimension_numbers = #tpu.dot_dimension_numbers<[1], [0], [0], [1], [0, 0, 1, 1], [], []>} : vector<2x864xbf16>, vector<864x64xbf16>, vector<2x64xf32> -> vector<2x64xf32>
    %c0_3 = arith.constant 0 : index
    %c0_4 = arith.constant 0 : index
    %3 = vector.load %arg4[%c0_3, %c0_4] : memref<2x64xf32, #tpu.memory_space<vmem>>, vector<2x64xf32>
    %4 = vector.extract_strided_slice %3 {offsets = [0, 0], sizes = [1, 64], strides = [1, 1]} : vector<2x64xf32> to vector<1x64xf32>
    %5 = vector.broadcast %4 : vector<1x64xf32> to vector<2x64xf32>
    %6 = arith.mulf %2, %5 : vector<2x64xf32>
    %7 = vector.extract_strided_slice %3 {offsets = [1, 0], sizes = [1, 64], strides = [1, 1]} : vector<2x64xf32> to vector<1x64xf32>
    %8 = vector.broadcast %7 : vector<1x64xf32> to vector<2x64xf32>
    %9 = arith.addf %6, %8 : vector<2x64xf32>
    %cst_5 = arith.constant 0.000000e+00 : f32
    %10 = vector.broadcast %cst_5 : f32 to vector<2x64xf32>
    %11 = arith.maximumf %9, %10 : vector<2x64xf32>
    %12 = math.roundeven %11 : vector<2x64xf32>
    %cst_6 = arith.constant 0.000000e+00 : f32
    %cst_7 = arith.constant 1.500000e+01 : f32
    %13 = vector.broadcast %cst_6 : f32 to vector<2x64xf32>
    %14 = arith.maximumf %13, %12 : vector<2x64xf32>
    %15 = vector.broadcast %cst_7 : f32 to vector<2x64xf32>
    %16 = arith.minimumf %15, %14 : vector<2x64xf32>
    %cst_8 = arith.constant 4.000000e-01 : f32
    %17 = vector.broadcast %cst_8 : f32 to vector<2x64xf32>
    %18 = arith.mulf %16, %17 : vector<2x64xf32>
    %19 = arith.truncf %18 : vector<2x64xf32> to vector<2x64xbf16>
    %c0_9 = arith.constant 0 : index
    %c0_10 = arith.constant 0 : index
    %20 = vector.load %arg5[%c0_9, %c0_10] : memref<2x64xbf16, #tpu.memory_space<vmem>>, vector<2x64xbf16>
    tpu.vector_store %arg5[%c0_9, %c0_10], %19 {strides = array<i32>} : memref<2x64xbf16, #tpu.memory_space<vmem>>, vector<2x64xbf16>,
    return
  }
  func.func @transform_0(%arg0: i32, %arg1: i32) -> (i32, i32) {
    %c0_i32 = arith.constant 0 : i32
    %c0_i32_0 = arith.constant 0 : i32
    return %arg0, %c0_i32 : i32, i32
  }
  func.func @transform_1(%arg0: i32, %arg1: i32) -> (i32, i32) {
    %c0_i32 = arith.constant 0 : i32
    %c0_i32_0 = arith.constant 0 : i32
    return %c0_i32, %arg1 : i32, i32
  }
  func.func @transform_2(%arg0: i32, %arg1: i32) -> (i32, i32) {
    %c0_i32 = arith.constant 0 : i32
    %c0_i32_0 = arith.constant 0 : i32
    return %c0_i32, %arg1 : i32, i32
  }
  func.func @transform_3(%arg0: i32, %arg1: i32) -> (i32, i32) {
    %c0_i32 = arith.constant 0 : i32
    return %arg0, %arg1 : i32, i32
  }
}

module attributes {stable_mosaic.version = 11 : i64} {
  func.func @_gemm_kernel(%arg0: i32, %arg1: i32, %arg2: memref<2x32xbf16, #tpu.memory_space<vmem>>, %arg3: memref<32x64xbf16, #tpu.memory_space<vmem>>, %arg4: memref<2x64xf32, #tpu.memory_space<vmem>>, %arg5: memref<2x64xbf16, #tpu.memory_space<vmem>>) attributes {dimension_semantics = [#tpu.dimension_semantics<parallel>, #tpu.dimension_semantics<parallel>], iteration_bounds = array<i64: 1, 1>, scalar_prefetch = 0 : i64, scratch_operands = 0 : i64, tpu.core_type = #tpu.core_type<tc>, window_params = [{transform_indices = @transform_0, window_bounds = array<i64: 2, 32>}, {transform_indices = @transform_1, window_bounds = array<i64: 32, 64>}, {transform_indices = @transform_2, window_bounds = array<i64: 2, 64>}, {transform_indices = @transform_3, window_bounds = array<i64: 2, 64>}]} {
    %c0 = arith.constant 0 : index
    %c0_0 = arith.constant 0 : index
    %0 = vector.load %arg2[%c0, %c0_0] : memref<2x32xbf16, #tpu.memory_space<vmem>>, vector<2x32xbf16>
    %c0_1 = arith.constant 0 : index
    %c0_2 = arith.constant 0 : index
    %1 = vector.load %arg3[%c0_1, %c0_2] : memref<32x64xbf16, #tpu.memory_space<vmem>>, vector<32x64xbf16>
    %cst = arith.constant dense<0.000000e+00> : vector<2x64xf32>
    %2 = tpu.matmul %0, %1, %cst {dimension_numbers = #tpu.dot_dimension_numbers<[1], [0], [0], [1], [0, 0, 1, 1], [], []>} : vector<2x32xbf16>, vector<32x64xbf16>, vector<2x64xf32> -> vector<2x64xf32>
    %c0_3 = arith.constant 0 : index
    %c0_4 = arith.constant 0 : index
    %3 = vector.load %arg4[%c0_3, %c0_4] : memref<2x64xf32, #tpu.memory_space<vmem>>, vector<2x64xf32>
    %4 = vector.extract_strided_slice %3 {offsets = [0, 0], sizes = [1, 64], strides = [1, 1]} : vector<2x64xf32> to vector<1x64xf32>
    %5 = vector.broadcast %4 : vector<1x64xf32> to vector<2x64xf32>
    %6 = arith.mulf %2, %5 : vector<2x64xf32>
    %7 = vector.extract_strided_slice %3 {offsets = [1, 0], sizes = [1, 64], strides = [1, 1]} : vector<2x64xf32> to vector<1x64xf32>
    %8 = vector.broadcast %7 : vector<1x64xf32> to vector<2x64xf32>
    %9 = arith.addf %6, %8 : vector<2x64xf32>
    %10 = arith.truncf %9 : vector<2x64xf32> to vector<2x64xbf16>
    %c0_5 = arith.constant 0 : index
    %c0_6 = arith.constant 0 : index
    %11 = vector.load %arg5[%c0_5, %c0_6] : memref<2x64xbf16, #tpu.memory_space<vmem>>, vector<2x64xbf16>
    tpu.vector_store %arg5[%c0_5, %c0_6], %10 {strides = array<i32>} : memref<2x64xbf16, #tpu.memory_space<vmem>>, vector<2x64xbf16>,
    return
  }
  func.func @transform_0(%arg0: i32, %arg1: i32) -> (i32, i32) {
    %c0_i32 = arith.constant 0 : i32
    %c0_i32_0 = arith.constant 0 : i32
    return %arg0, %c0_i32 : i32, i32
  }
  func.func @transform_1(%arg0: i32, %arg1: i32) -> (i32, i32) {
    %c0_i32 = arith.constant 0 : i32
    %c0_i32_0 = arith.constant 0 : i32
    return %c0_i32, %arg1 : i32, i32
  }
  func.func @transform_2(%arg0: i32, %arg1: i32) -> (i32, i32) {
    %c0_i32 = arith.constant 0 : i32
    %c0_i32_0 = arith.constant 0 : i32
    return %c0_i32, %arg1 : i32, i32
  }
  func.func @transform_3(%arg0: i32, %arg1: i32) -> (i32, i32) {
    %c0_i32 = arith.constant 0 : i32
    return %arg0, %arg1 : i32, i32
  }
}

module attributes {stable_mosaic.version = 11 : i64} {
  func.func @_gemm_kernel(%arg0: i32, %arg1: i32, %arg2: memref<2x1728xbf16, #tpu.memory_space<vmem>>, %arg3: memref<1728x64xbf16, #tpu.memory_space<vmem>>, %arg4: memref<2x64xf32, #tpu.memory_space<vmem>>, %arg5: memref<2x64xbf16, #tpu.memory_space<vmem>>, %arg6: memref<2x64xbf16, #tpu.memory_space<vmem>>) attributes {dimension_semantics = [#tpu.dimension_semantics<parallel>, #tpu.dimension_semantics<parallel>], iteration_bounds = array<i64: 1, 1>, scalar_prefetch = 0 : i64, scratch_operands = 0 : i64, tpu.core_type = #tpu.core_type<tc>, window_params = [{transform_indices = @transform_0, window_bounds = array<i64: 2, 1728>}, {transform_indices = @transform_1, window_bounds = array<i64: 1728, 64>}, {transform_indices = @transform_2, window_bounds = array<i64: 2, 64>}, {transform_indices = @transform_3, window_bounds = array<i64: 2, 64>}, {transform_indices = @transform_4, window_bounds = array<i64: 2, 64>}]} {
    %c0 = arith.constant 0 : index
    %c0_0 = arith.constant 0 : index
    %0 = vector.load %arg2[%c0, %c0_0] : memref<2x1728xbf16, #tpu.memory_space<vmem>>, vector<2x1728xbf16>
    %c0_1 = arith.constant 0 : index
    %c0_2 = arith.constant 0 : index
    %1 = vector.load %arg3[%c0_1, %c0_2] : memref<1728x64xbf16, #tpu.memory_space<vmem>>, vector<1728x64xbf16>
    %cst = arith.constant dense<0.000000e+00> : vector<2x64xf32>
    %2 = tpu.matmul %0, %1, %cst {dimension_numbers = #tpu.dot_dimension_numbers<[1], [0], [0], [1], [0, 0, 1, 1], [], []>} : vector<2x1728xbf16>, vector<1728x64xbf16>, vector<2x64xf32> -> vector<2x64xf32>
    %c0_3 = arith.constant 0 : index
    %c0_4 = arith.constant 0 : index
    %3 = vector.load %arg4[%c0_3, %c0_4] : memref<2x64xf32, #tpu.memory_space<vmem>>, vector<2x64xf32>
    %4 = vector.extract_strided_slice %3 {offsets = [0, 0], sizes = [1, 64], strides = [1, 1]} : vector<2x64xf32> to vector<1x64xf32>
    %5 = vector.broadcast %4 : vector<1x64xf32> to vector<2x64xf32>
    %6 = arith.mulf %2, %5 : vector<2x64xf32>
    %7 = vector.extract_strided_slice %3 {offsets = [1, 0], sizes = [1, 64], strides = [1, 1]} : vector<2x64xf32> to vector<1x64xf32>
    %8 = vector.broadcast %7 : vector<1x64xf32> to vector<2x64xf32>
    %9 = arith.addf %6, %8 : vector<2x64xf32>
    %c0_5 = arith.constant 0 : index
    %c0_6 = arith.constant 0 : index
    %10 = vector.load %arg5[%c0_5, %c0_6] : memref<2x64xbf16, #tpu.memory_space<vmem>>, vector<2x64xbf16>
    %11 = arith.extf %10 : vector<2x64xbf16> to vector<2x64xf32>
    %cst_7 = arith.constant 2.500000e+00 : f32
    %12 = vector.broadcast %cst_7 : f32 to vector<2x64xf32>
    %13 = arith.mulf %11, %12 : vector<2x64xf32>
    %14 = arith.addf %9, %13 : vector<2x64xf32>
    %cst_8 = arith.constant 0.000000e+00 : f32
    %15 = vector.broadcast %cst_8 : f32 to vector<2x64xf32>
    %16 = arith.maximumf %14, %15 : vector<2x64xf32>
    %17 = math.roundeven %16 : vector<2x64xf32>
    %cst_9 = arith.constant 0.000000e+00 : f32
    %cst_10 = arith.constant 1.500000e+01 : f32
    %18 = vector.broadcast %cst_9 : f32 to vector<2x64xf32>
    %19 = arith.maximumf %18, %17 : vector<2x64xf32>
    %20 = vector.broadcast %cst_10 : f32 to vector<2x64xf32>
    %21 = arith.minimumf %20, %19 : vector<2x64xf32>
    %cst_11 = arith.constant 4.000000e-01 : f32
    %22 = vector.broadcast %cst_11 : f32 to vector<2x64xf32>
    %23 = arith.mulf %21, %22 : vector<2x64xf32>
    %24 = arith.truncf %23 : vector<2x64xf32> to vector<2x64xbf16>
    %c0_12 = arith.constant 0 : index
    %c0_13 = arith.constant 0 : index
    %25 = vector.load %arg6[%c0_12, %c0_13] : memref<2x64xbf16, #tpu.memory_space<vmem>>, vector<2x64xbf16>
    tpu.vector_store %arg6[%c0_12, %c0_13], %24 {strides = array<i32>} : memref<2x64xbf16, #tpu.memory_space<vmem>>, vector<2x64xbf16>,
    return
  }
  func.func @transform_0(%arg0: i32, %arg1: i32) -> (i32, i32) {
    %c0_i32 = arith.constant 0 : i32
    %c0_i32_0 = arith.constant 0 : i32
    return %arg0, %c0_i32 : i32, i32
  }
  func.func @transform_1(%arg0: i32, %arg1: i32) -> (i32, i32) {
    %c0_i32 = arith.constant 0 : i32
    %c0_i32_0 = arith.constant 0 : i32
    return %c0_i32, %arg1 : i32, i32
  }
  func.func @transform_2(%arg0: i32, %arg1: i32) -> (i32, i32) {
    %c0_i32 = arith.constant 0 : i32
    %c0_i32_0 = arith.constant 0 : i32
    return %c0_i32, %arg1 : i32, i32
  }
  func.func @transform_3(%arg0: i32, %arg1: i32) -> (i32, i32) {
    %c0_i32 = arith.constant 0 : i32
    return %arg0, %arg1 : i32, i32
  }
  func.func @transform_4(%arg0: i32, %arg1: i32) -> (i32, i32) {
    %c0_i32 = arith.constant 0 : i32
    return %arg0, %arg1 : i32, i32
  }
}

</mosaic_0001>

<bundles_post_ra>
// kernel: quant_resnet_forward.13
= control target key start
LH: loop header
LB: loop body
LE: loop exit
PB: predicated region body
PF: predicated region fallthrough
CT: control target
= control target key end

     0   :  { %s6535_s12 = smov 0   ;;  %s6537_s13 = smov 0   ;;  %s8006_s0 = inlined_call_operand.vmem [shape: bf16[2048,1029], index: 0, kind: input, shape index: {}]   ;;  %s8007_s1 = inlined_call_operand.vmem [shape: bf16[1029,8], index: 1, kind: input, shape index: {}]   ;;  %s8008_s2 = inlined_call_operand.vmem [shape: f32[2,8], index: 2, kind: input, shape index: {}]   ;;  %s8009_s3 = inlined_call_operand.vmem [shape: bf16[2048,8], index: 3, kind: output, shape index: {}]  }
   0x1   :  { %s6539_s14 = smov 0  }
   0x2 LB: > { %s25_s15 = sadd.s32 1, %s6507_s13  ;;  %p4946_p0 = scmp.ge.s32.totalorder %s6511_s14, 1  ;;  %s6511_s14 = sphi %s6539_s14, %s13_s14   ;;  %s6507_s13 = sphi %s6537_s13, %s8047_s13   ;;  %s6503_s12 = sphi %s6535_s12, %s8046_s12  }
   0x3   : > { %p27_p1 = scmp.ge.s32.totalorder %s25_s15, 4  ;;  %p171_p2 = scmp.lt.s32.totalorder %s6511_s14, 5 }
   0x5   : > { %s8049_s15 = smov (%p27_p1, %s25_s15), 0  ;;  %p172_p3 = pnand %p4946_p0, %p171_p2 }
   0x7   : > { %175 = sbr.rel (%p172_p3) target bundleno = 903 (0x387), region = 32 }
   0xe   : > { %v6008_v0 = vld [vmem:[%s8007_s1] sm:$0xff]   ;;  %v6513_v1 = vmov 0   ;;  %v6010_v3 = vld [vmem:[%s8007_s1 + $0x8] sm:$0xff]   ;;  %v6012_v5 = vld [vmem:[%s8007_s1 + $0x10] sm:$0xff]   ;;  %s4947_s9 = sshll.u32 %s6503_s12, 6  ;;  %vm2605_vm0 = vcmask 1041408  }
   0xf   : > { %2612 = vmatprep.subr.bf16.mxu1 %v6513_v1  ;;  %2901 = vmatprep.subr.bf16.mxu0 %v6513_v1  ;;  %v6563_v2 = vld [vmem:[%s8007_s1 + $0x80] sm:$0xff]   ;;  %v6573_v4 = vld [vmem:[%s8007_s1 + $0x88] sm:$0xff]   ;;  %v6584_v6 = vld [vmem:[%s8007_s1 + $0x90] sm:$0xff]   ;;  %p208_p4 = scmp.lt.s32.totalorder %s4947_s9, 255  ;;  %vm2606_vm1 = vcmask 1042432   ;;  %vm2508_vm2 = vcmask 39936  }
  0x10   : > { %2613 = vmatpush1.bf16.msra.mxu1 %v6008_v0  ;;  %2902 = vmatpush1.bf16.msra.mxu0 %v6563_v2  ;;  %v6014_v7 = vld [vmem:[%s8007_s1 + $0x18] sm:$0xff]   ;;  %v6016_v9 = vld [vmem:[%s8007_s1 + $0x20] sm:$0xff]   ;;  %v6018_v11 = vld [vmem:[%s8007_s1 + $0x28] sm:$0xff]   ;;  %vm4770_vm3 = vcmask 60416  }
  0x11   : > { %2614 = vmatprep.subr.bf16.mxu1 %v6513_v1  ;;  %2903 = vmatprep.subr.bf16.mxu0 %v6513_v1  ;;  %v6595_v8 = vld [vmem:[%s8007_s1 + $0x98] sm:$0xff]   ;;  %v6606_v10 = vld [vmem:[%s8007_s1 + $0xa0] sm:$0xff]   ;;  %v6618_v12 = vld [vmem:[%s8007_s1 + $0xa8] sm:$0xff]   ;;  %s8051_s9 = smov (!%p208_p4, %s4947_s9), 255 }
  0x12   : > { %v6020_v13 = vld [vmem:[%s8007_s1 + $0x30] sm:$0xff]   ;;  %v6022_v15 = vld [vmem:[%s8007_s1 + $0x38] sm:$0xff]   ;;  %s5917_s23 = smul.u32 36, %s8051_s9  ;;  %v6024_v17 = vld [vmem:[%s8007_s1 + $0x40] sm:$0xff]   ;;  %s4950_s12 = sshll.u32 %s8051_s9, 2 }
  0x13   : > { %v6631_v14 = vld [vmem:[%s8007_s1 + $0xb0] sm:$0xff]   ;;  %v6643_v16 = vld [vmem:[%s8007_s1 + $0xb8] sm:$0xff]   ;;  %v6659_v18 = vld [vmem:[%s8007_s1 + $0xc0] sm:$0xff]   ;;  %s7496_s9 = scalar_lea.vmem %s8009_s3, %s4950_s12 }
  0x14   : > { %2615 = vmatpush1.bf16.msra.mxu1 %v6010_v3  ;;  %2904 = vmatpush1.bf16.msra.mxu0 %v6573_v4  ;;  %s6652_s30 = scalar_lea.vmem %s8006_s0, %s5917_s23  ;;  %v6026_v20 = vld [vmem:[%s8007_s1 + $0x48] sm:$0xff]   ;;  %v6028_v23 = vld [vmem:[%s8007_s1 + $0x50] sm:$0xff]   ;;  %v6030_v25 = vld [vmem:[%s8007_s1 + $0x58] sm:$0xff]  }
  0x15   : > { %2616 = vmatprep.subr.bf16.mxu1 %v6513_v1  ;;  %2905 = vmatprep.subr.bf16.mxu0 %v6513_v1  ;;  %v6042_v19 = vld [vmem:[%s6652_s30 + $0x4] ss:$36 sps:$4 sm:$0xff]   ;;  %v6045_v21 = vld [vmem:[%s6652_s30 + $0xc] ss:$36 sps:$4 sm:$0xff]   ;;  %v6694_v26 = vld [vmem:[%s8007_s1 + $0xd8] sm:$0xff]  }
  0x16   : > { %v6672_v22 = vld [vmem:[%s8007_s1 + $0xc8] sm:$0xff]   ;;  %2644 = vmatprep.mubr.bf16.mxu1 %v6042_v19  ;;  %2933 = vmatprep.mubr.bf16.mxu0 %v6045_v21  ;;  %v6683_v24 = vld [vmem:[%s8007_s1 + $0xd0] sm:$0xff]   ;;  %v6032_v27 = vld [vmem:[%s8007_s1 + $0x60] sm:$0xff]  }
  0x17   : > { %v6705_v28 = vld [vmem:[%s8007_s1 + $0xe0] sm:$0xff]   ;;  %v6034_v29 = vld [vmem:[%s8007_s1 + $0x68] sm:$0xff]   ;;  %v6036_v31 = vld [vmem:[%s8007_s1 + $0x70] sm:$0xff]  }
  0x18   : > { %2617 = vmatpush1.bf16.msra.mxu1 %v6012_v5  ;;  %2906 = vmatpush1.bf16.msra.mxu0 %v6584_v6  ;;  %v6716_v30 = vld [vmem:[%s8007_s1 + $0xe8] sm:$0xff]   ;;  %v6727_v32 = vld [vmem:[%s8007_s1 + $0xf0] sm:$0xff]   ;;  %v6038_v33 = vld [vmem:[%s8007_s1 + $0x78] sm:$0xff]  }
  0x19   : > { %2618 = vmatprep.subr.bf16.mxu1 %v6513_v1  ;;  %2907 = vmatprep.subr.bf16.mxu0 %v6513_v1  ;;  %v6738_v34 = vld [vmem:[%s8007_s1 + $0xf8] sm:$0xff]   ;;  %v6040_v35 = vld [vmem:[%s6652_s30] ss:$36 sps:$4 sm:$0xff]   ;;  %v6043_v36 = vld [vmem:[%s6652_s30 + $0x8] ss:$36 sps:$4 sm:$0xff]  }
  0x1a   : > { %v6046_v37 = vld [vmem:[%s8007_s1 + $0x100] sm:$0xff]   ;;  %v6048_v38 = vld [vmem:[%s6652_s30 + $0x4c] ss:$36 sps:$4 sm:$0xff]   ;;  %v6050_v39 = vld [vmem:[%s6652_s30 + $0x54] ss:$36 sps:$4 sm:$0xff]  }
  0x1b   : > { %v6047_v40 = vld [vmem:[%s8007_s1 + $0x108] sm:$0xff]   ;;  %v6053_v42 = vld [vmem:[%s6652_s30 + $0x50] ss:$36 sps:$4 sm:$0xff]   ;;  %v6058_v45 = vld [vmem:[%s6652_s30 + $0x9c] ss:$36 sps:$4 sm:$0xff]  }
  0x1c   : > { %2619 = vmatpush1.bf16.msra.mxu1 %v6014_v7  ;;  %2908 = vmatpush1.bf16.msra.mxu0 %v6595_v8  ;;  %v6052_v41 = vld [vmem:[%s6652_s30 + $0x48] ss:$36 sps:$4 sm:$0xff]   ;;  %v6056_v43 = vld [vmem:[%s6652_s30 + $0x94] ss:$36 sps:$4 sm:$0xff]   ;;  %v6062_v49 = vld [vmem:[%s8007_s1 + $0x120] sm:$0xff]  }
  0x1d   : > { %2620 = vmatprep.subr.bf16.mxu1 %v6513_v1  ;;  %2909 = vmatprep.subr.bf16.mxu0 %v6513_v1  ;;  %v6054_v44 = vld [vmem:[%s8007_s1 + $0x110] sm:$0xff]   ;;  %v6055_v46 = vld [vmem:[%s8007_s1 + $0x118] sm:$0xff]   ;;  %v6066_v51 = vld [vmem:[%s6652_s30 + $0xe4] ss:$36 sps:$4 sm:$0xff]  }
  0x1e   : > { %v6060_v47 = vld [vmem:[%s6652_s30 + $0x90] ss:$36 sps:$4 sm:$0xff]   ;;  %v6061_v48 = vld [vmem:[%s6652_s30 + $0x98] ss:$36 sps:$4 sm:$0xff]   ;;  %v6063_v52 = vld [vmem:[%s8007_s1 + $0x128] sm:$0xff]  }
  0x1f   : > { %v6064_v50 = vld [vmem:[%s6652_s30 + $0xdc] ss:$36 sps:$4 sm:$0xff]   ;;  %v6072_v55 = vld [vmem:[%s6652_s30 + $0x124] ss:$36 sps:$4 sm:$0xff]   ;;  %v6070_v56 = vld [vmem:[%s8007_s1 + $0x130] sm:$0xff]  }
  0x20   : > { %2621 = vmatpush1.bf16.msra.mxu1 %v6016_v9  ;;  %2910 = vmatpush1.bf16.msra.mxu0 %v6606_v10  ;;  %v6068_v53 = vld [vmem:[%s6652_s30 + $0xd8] ss:$36 sps:$4 sm:$0xff]   ;;  %v6069_v54 = vld [vmem:[%s6652_s30 + $0xe0] ss:$36 sps:$4 sm:$0xff]   ;;  %v6074_v57 = vld [vmem:[%s6652_s30 + $0x12c] ss:$36 sps:$4 sm:$0xff]  }
  0x21   : > { %2622 = vmatprep.subr.bf16.mxu1 %v6513_v1  ;;  %2911 = vmatprep.subr.bf16.mxu0 %v6513_v1  ;;  %v6071_v58 = vld [vmem:[%s8007_s1 + $0x138] sm:$0xff]   ;;  %v6076_v59 = vld [vmem:[%s6652_s30 + $0x120] ss:$36 sps:$4 sm:$0xff]   ;;  %v6077_v60 = vld [vmem:[%s6652_s30 + $0x128] ss:$36 sps:$4 sm:$0xff]  }
  0x22   : > { %v6078_v61 = vld [vmem:[%s8007_s1 + $0x140] sm:$0xff]   ;;  %v6080_v62 = vld [vmem:[%s6652_s30 + $0x16c] ss:$36 sps:$4 sm:$0xff]   ;;  %v6082_v63 = vld [vmem:[%s6652_s30 + $0x174] ss:$36 sps:$4 sm:$0xff]  }
  0x23   : > { %v6079_v0 = vld [vmem:[%s8007_s1 + $0x148] sm:$0xff]   ;;  %v6085_v3 = vld [vmem:[%s6652_s30 + $0x170] ss:$36 sps:$4 sm:$0xff]   ;;  %v6087_v7 = vld [vmem:[%s8007_s1 + $0x158] sm:$0xff]  }
  0x24   : > { %2623 = vmatpush1.bf16.msra.mxu1 %v6018_v11  ;;  %2912 = vmatpush1.bf16.msra.mxu0 %v6618_v12  ;;  %v6086_v5 = vld [vmem:[%s8007_s1 + $0x150] sm:$0xff]   ;;  %v6093_v9 = vld [vmem:[%s6652_s30 + $0x1b8] ss:$36 sps:$4 sm:$0xff]  }
  0x25   : > { %2624 = vmatprep.subr.bf16.mxu1 %v6513_v1  ;;  %2913 = vmatprep.subr.bf16.mxu0 %v6513_v1  ;;  %v6096_v11 = vld [vmem:[%s6652_s30 + $0x1fc] ss:$36 sps:$4 sm:$0xff]   ;;  %v6106_v21 = vld [vmem:[%s6652_s30 + $0x10] ss:$36 sps:$4 sm:$0xff]  }
  0x26   : > { %v6103_v19 = vld [vmem:[%s8007_s1 + $0x178] sm:$0xff]  }
  0x28   : > { %2625 = vmatpush1.bf16.msra.mxu1 %v6020_v13  ;;  %2914 = vmatpush1.bf16.msra.mxu0 %v6631_v14  ;;  %v6095_v13 = vld [vmem:[%s8007_s1 + $0x168] sm:$0xff]  }
  0x29   : > { %2626 = vmatprep.subr.bf16.mxu1 %v6513_v1  ;;  %2915 = vmatprep.subr.bf16.mxu0 %v6513_v1 }
  0x2c   : > { %2627 = vmatpush1.bf16.msra.mxu1 %v6022_v15  ;;  %2916 = vmatpush1.bf16.msra.mxu0 %v6643_v16  ;;  %v6101_v15 = vld [vmem:[%s6652_s30 + $0x200] ss:$36 sps:$4 sm:$0xff]  }
  0x2d   : > { %2628 = vmatprep.subr.bf16.mxu1 %v6513_v1  ;;  %2917 = vmatprep.subr.bf16.mxu0 %v6513_v1 }
  0x30   : > { %2629 = vmatpush1.bf16.msra.mxu1 %v6024_v17  ;;  %2918 = vmatpush1.bf16.msra.mxu0 %v6659_v18  ;;  %v6102_v17 = vld [vmem:[%s8007_s1 + $0x170] sm:$0xff]  }
  0x31   : > { %2630 = vmatprep.subr.bf16.mxu1 %v6513_v1  ;;  %2919 = vmatprep.subr.bf16.mxu0 %v6513_v1 }
  0x34   : > { %2631 = vmatpush1.bf16.msra.mxu1 %v6026_v20  ;;  %2920 = vmatpush1.bf16.msra.mxu0 %v6672_v22  ;;  %v6109_v20 = vld [vmem:[%s6652_s30 + $0x240] ss:$36 sps:$4 sm:$0xff]  }
  0x35   : > { %2632 = vmatprep.subr.bf16.mxu1 %v6513_v1  ;;  %2921 = vmatprep.subr.bf16.mxu0 %v6513_v1 }
  0x38   : > { %2633 = vmatpush1.bf16.msra.mxu1 %v6028_v23  ;;  %2922 = vmatpush1.bf16.msra.mxu0 %v6683_v24  ;;  %v6110_v23 = vld [vmem:[%s8007_s1 + $0x180] sm:$0xff]  }
  0x39   : > { %2634 = vmatprep.subr.bf16.mxu1 %v6513_v1  ;;  %2923 = vmatprep.subr.bf16.mxu0 %v6513_v1 }
  0x3c   : > { %2635 = vmatpush1.bf16.msra.mxu1 %v6030_v25  ;;  %2924 = vmatpush1.bf16.msra.mxu0 %v6694_v26  ;;  %v6115_v25 = vld [vmem:[%s6652_s30 + $0x288] ss:$36 sps:$4 sm:$0xff]  }
  0x3d   : > { %2636 = vmatprep.subr.bf16.mxu1 %v6513_v1  ;;  %2925 = vmatprep.subr.bf16.mxu0 %v6513_v1 }
  0x40   : > { %2637 = vmatpush1.bf16.msra.mxu1 %v6032_v27  ;;  %2926 = vmatpush1.bf16.msra.mxu0 %v6705_v28  ;;  %v6116_v27 = vld [vmem:[%s6652_s30 + $0x58] ss:$36 sps:$4 sm:$0xff]  }
  0x41   : > { %2638 = vmatprep.subr.bf16.mxu1 %v6513_v1  ;;  %2927 = vmatprep.subr.bf16.mxu0 %v6513_v1 }
  0x44   : > { %2639 = vmatpush1.bf16.msra.mxu1 %v6034_v29  ;;  %2928 = vmatpush1.bf16.msra.mxu0 %v6716_v30  ;;  %v6119_v29 = vld [vmem:[%s6652_s30 + $0xa4] ss:$36 sps:$4 sm:$0xff]  }
  0x45   : > { %2640 = vmatprep.subr.bf16.mxu1 %v6513_v1  ;;  %2929 = vmatprep.subr.bf16.mxu0 %v6513_v1 }
  0x48   : > { %2641 = vmatpush1.bf16.msra.mxu1 %v6036_v31  ;;  %2930 = vmatpush1.bf16.msra.mxu0 %v6727_v32  ;;  %v6121_v31 = vld [vmem:[%s6652_s30 + $0x2d0] ss:$36 sps:$4 sm:$0xff]  }
  0x49   : > { %2642 = vmatprep.subr.bf16.mxu1 %v6513_v1  ;;  %2931 = vmatprep.subr.bf16.mxu0 %v6513_v1 }
  0x4c   : > { %2643 = vmatpush1.bf16.msra.mxu1 %v6038_v33  ;;  %2932 = vmatpush1.bf16.msra.mxu0 %v6738_v34  ;;  %v6122_v33 = vld [vmem:[%s6652_s30 + $0xa0] ss:$36 sps:$4 sm:$0xff]  }
  0x4d   : > { %5565 = vmatprep.subr.bf16.mxu1 %v6513_v1  ;;  %3190 = vmatprep.subr.bf16.mxu0 %v6513_v1 }
  0x4f   : > { %2645 = vmatmul.mubr.bf16.vlgmr.msra.gmra.mrb[0].mxu1 %v6040_v35  ;;  %2934 = vmatmul.mubr.bf16.vlgmr.msra.gmra.mrb[0].mxu0 %v6043_v36  ;;  %v6126_v35 = vld [vmem:[%s6652_s30 + $0xec] ss:$36 sps:$4 sm:$0xff]   ;;  %v6162_v36 = vld [vmem:[%s8007_s1 + $0x1a0] sm:$0xff]  }
  0x50   : > { %5581 = vmatpush1.bf16.msra.mxu1 %v6563_v2  ;;  %3191 = vmatpush1.bf16.msra.mxu0 %v6046_v37  ;;  %v6084_v2 = vld [vmem:[%s6652_s30 + $0x168] ss:$36 sps:$4 sm:$0xff]  }
  0x51   : > { %2652 = vmatprep.mubr.bf16.mxu1 %v6048_v38  ;;  %3192 = vmatprep.subr.bf16.mxu0 %v6513_v1  ;;  %v6175_v37 = vld [vmem:[%s8007_s1 + $0x1a8] sm:$0xff]   ;;  %v6128_v38 = vld [vmem:[%s6652_s30 + $0x318] ss:$36 sps:$4 sm:$0xff]  }
  0x52   : > { %2941 = vmatprep.mubr.bf16.mxu0 %v6050_v39  ;;  %5566 = vmatprep.subr.bf16.mxu1 %v6513_v1  ;;  %v6129_v39 = vld [vmem:[%s6652_s30 + $0xe8] ss:$36 sps:$4 sm:$0xff]  }
  0x54   : > { %5582 = vmatpush1.bf16.msra.mxu1 %v6573_v4  ;;  %3193 = vmatpush1.bf16.msra.mxu0 %v6047_v40  ;;  %v6088_v4 = vld [vmem:[%s6652_s30 + $0x1b4] ss:$36 sps:$4 sm:$0xff]   ;;  %v6130_v40 = vld [vmem:[%s6652_s30 + $0x364] ss:$36 sps:$4 sm:$0xff]  }
  0x55   : > { %5567 = vmatprep.subr.bf16.mxu1 %v6513_v1  ;;  %3194 = vmatprep.subr.bf16.mxu0 %v6513_v1 }
  0x57   : > { %2653 = vmatmul.mubr.bf16.gmra.mrb[4].mxu1 %v6052_v41  ;;  %2942 = vmatmul.mubr.bf16.gmra.mrb[4].mxu0 %v6053_v42  ;;  %v6132_v41 = vld [vmem:[%s6652_s30 + $0x134] ss:$36 sps:$4 sm:$0xff]  }
  0x58   : > { %2660 = vmatprep.mubr.bf16.mxu1 %v6056_v43  ;;  %3195 = vmatpush1.bf16.msra.mxu0 %v6054_v44  ;;  %v6188_v42 = vld [vmem:[%s8007_s1 + $0x1b0] sm:$0xff]   ;;  %v6201_v43 = vld [vmem:[%s8007_s1 + $0x1b8] sm:$0xff]   ;;  %v6134_v44 = vld [vmem:[%s6652_s30 + $0x360] ss:$36 sps:$4 sm:$0xff]  }
  0x59   : > { %2949 = vmatprep.mubr.bf16.mxu0 %v6058_v45  ;;  %3196 = vmatprep.subr.bf16.mxu0 %v6513_v1  ;;  %v6135_v45 = vld [vmem:[%s6652_s30 + $0x130] ss:$36 sps:$4 sm:$0xff]  }
  0x5a   : > { %5583 = vmatpush1.bf16.msra.mxu1 %v6584_v6  ;;  %v6090_v6 = vld [vmem:[%s6652_s30 + $0x1bc] ss:$36 sps:$4 sm:$0xff]  }
  0x5b   : > { %5568 = vmatprep.subr.bf16.mxu1 %v6513_v1 }
  0x5c   : > { %3197 = vmatpush1.bf16.msra.mxu0 %v6055_v46  ;;  %v6137_v46 = vld [vmem:[%s6652_s30 + $0x3ac] ss:$36 sps:$4 sm:$0xff]  }
  0x5d   : > { %3198 = vmatprep.subr.bf16.mxu0 %v6513_v1 }
  0x5e   : > { %5584 = vmatpush1.bf16.msra.mxu1 %v6595_v8  ;;  %v6092_v8 = vld [vmem:[%s6652_s30 + $0x1b0] ss:$36 sps:$4 sm:$0xff]  }
  0x5f   : > { %2661 = vmatmul.mubr.bf16.gmra.mrb[8].mxu1 %v6060_v47  ;;  %5569 = vmatprep.subr.bf16.mxu1 %v6513_v1  ;;  %v6139_v47 = vld [vmem:[%s6652_s30 + $0x17c] ss:$36 sps:$4 sm:$0xff]  }
  0x60   : > { %2950 = vmatmul.mubr.bf16.gmra.mrb[8].mxu0 %v6061_v48  ;;  %2668 = vmatprep.mubr.bf16.mxu1 %v6064_v50  ;;  %v6214_v48 = vld [vmem:[%s8007_s1 + $0x1c0] sm:$0xff]   ;;  %v6141_v50 = vld [vmem:[%s6652_s30 + $0x3a8] ss:$36 sps:$4 sm:$0xff]  }
  0x61   : > { %3199 = vmatpush1.bf16.msra.mxu0 %v6062_v49  ;;  %2957 = vmatprep.mubr.bf16.mxu0 %v6066_v51  ;;  %v6227_v49 = vld [vmem:[%s8007_s1 + $0x1c8] sm:$0xff]   ;;  %v6142_v51 = vld [vmem:[%s6652_s30 + $0x178] ss:$36 sps:$4 sm:$0xff]  }
  0x62   : > { %3200 = vmatprep.subr.bf16.mxu0 %v6513_v1  ;;  %5585 = vmatpush1.bf16.msra.mxu1 %v6606_v10  ;;  %v6094_v10 = vld [vmem:[%s8007_s1 + $0x160] sm:$0xff]  }
  0x63   : > { %5570 = vmatprep.subr.bf16.mxu1 %v6513_v1 }
  0x65   : > { %3201 = vmatpush1.bf16.msra.mxu0 %v6063_v52  ;;  %v6143_v52 = vld [vmem:[%s6652_s30 + $0x3f4] ss:$36 sps:$4 sm:$0xff]  }
  0x66   : > { %3202 = vmatprep.subr.bf16.mxu0 %v6513_v1  ;;  %5586 = vmatpush1.bf16.msra.mxu1 %v6618_v12  ;;  %v6098_v12 = vld [vmem:[%s6652_s30 + $0x204] ss:$36 sps:$4 sm:$0xff]  }
  0x67   : > { %2669 = vmatmul.mubr.bf16.gmra.mrb[12].mxu1 %v6068_v53  ;;  %5571 = vmatprep.subr.bf16.mxu1 %v6513_v1  ;;  %v6145_v53 = vld [vmem:[%s6652_s30 + $0x1c4] ss:$36 sps:$4 sm:$0xff]  }
  0x68   : > { %2958 = vmatmul.mubr.bf16.gmra.mrb[12].mxu0 %v6069_v54  ;;  %2676 = vmatprep.mubr.bf16.mxu1 %v6072_v55  ;;  %v6240_v54 = vld [vmem:[%s8007_s1 + $0x1d0] sm:$0xff]  }
  0x69   : > { %3203 = vmatpush1.bf16.msra.mxu0 %v6070_v56  ;;  %2965 = vmatprep.mubr.bf16.mxu0 %v6074_v57  ;;  %v6147_v55 = vld [vmem:[%s6652_s30 + $0x3f0] ss:$36 sps:$4 sm:$0xff]   ;;  %v6148_v56 = vld [vmem:[%s6652_s30 + $0x1c0] ss:$36 sps:$4 sm:$0xff]  }
  0x6a   : > { %3204 = vmatprep.subr.bf16.mxu0 %v6513_v1  ;;  %5587 = vmatpush1.bf16.msra.mxu1 %v6631_v14  ;;  %v6100_v14 = vld [vmem:[%s6652_s30 + $0x1f8] ss:$36 sps:$4 sm:$0xff]  }
  0x6b   : > { %5572 = vmatprep.subr.bf16.mxu1 %v6513_v1  ;;  %v6150_v57 = vld [vmem:[%s6652_s30 + $0x43c] ss:$36 sps:$4 sm:$0xff]  }
  0x6d   : > { %3205 = vmatpush1.bf16.msra.mxu0 %v6071_v58  ;;  %v6152_v58 = vld [vmem:[%s6652_s30 + $0x20c] ss:$36 sps:$4 sm:$0xff]  }
  0x6e   : > { %3206 = vmatprep.subr.bf16.mxu0 %v6513_v1  ;;  %5588 = vmatpush1.bf16.msra.mxu1 %v6643_v16  ;;  %v6104_v16 = vld [vmem:[%s6652_s30 + $0x244] ss:$36 sps:$4 sm:$0xff]  }
  0x6f   : > { %2677 = vmatmul.mubr.bf16.gmra.mrb[16].mxu1 %v6076_v59  ;;  %5573 = vmatprep.subr.bf16.mxu1 %v6513_v1  ;;  %v6253_v59 = vld [vmem:[%s8007_s1 + $0x1d8] sm:$0xff]  }
  0x70   : > { %2966 = vmatmul.mubr.bf16.gmra.mrb[16].mxu0 %v6077_v60  ;;  %2684 = vmatprep.mubr.bf16.mxu1 %v6080_v62  ;;  %v6154_v60 = vld [vmem:[%s6652_s30 + $0x438] ss:$36 sps:$4 sm:$0xff]   ;;  %v6156_v62 = vld [vmem:[%s6652_s30 + $0x484] ss:$36 sps:$4 sm:$0xff]  }
  0x71   : > { %3207 = vmatpush1.bf16.msra.mxu0 %v6078_v61  ;;  %2973 = vmatprep.mubr.bf16.mxu0 %v6082_v63  ;;  %v6155_v61 = vld [vmem:[%s6652_s30 + $0x208] ss:$36 sps:$4 sm:$0xff]   ;;  %v6158_v63 = vld [vmem:[%s6652_s30 + $0x254] ss:$36 sps:$4 sm:$0xff]  }
  0x72   : > { %3208 = vmatprep.subr.bf16.mxu0 %v6513_v1  ;;  %5589 = vmatpush1.bf16.msra.mxu1 %v6659_v18  ;;  %v6108_v18 = vld [vmem:[%s6652_s30 + $0x14] ss:$36 sps:$4 sm:$0xff]  }
  0x73   : > { %5574 = vmatprep.subr.bf16.mxu1 %v6513_v1 }
  0x75   : > { %3209 = vmatpush1.bf16.msra.mxu0 %v6079_v0  ;;  %v6160_v0 = vld [vmem:[%s6652_s30 + $0x480] ss:$36 sps:$4 sm:$0xff]  }
  0x76   : > { %3210 = vmatprep.subr.bf16.mxu0 %v6513_v1  ;;  %5590 = vmatpush1.bf16.msra.mxu1 %v6672_v22  ;;  %v6111_v22 = vld [vmem:[%s6652_s30 + $0x28c] ss:$36 sps:$4 sm:$0xff]  }
  0x77   : > { %2685 = vmatmul.mubr.bf16.gmra.mrb[20].mxu1 %v6084_v2  ;;  %5575 = vmatprep.subr.bf16.mxu1 %v6513_v1  ;;  %v6161_v2 = vld [vmem:[%s6652_s30 + $0x250] ss:$36 sps:$4 sm:$0xff]  }
  0x78   : > { %2974 = vmatmul.mubr.bf16.gmra.mrb[20].mxu0 %v6085_v3  ;;  %2692 = vmatprep.mubr.bf16.mxu1 %v6088_v4  ;;  %v6163_v3 = vld [vmem:[%s6652_s30 + $0x4cc] ss:$36 sps:$4 sm:$0xff]   ;;  %v6165_v4 = vld [vmem:[%s6652_s30 + $0x29c] ss:$36 sps:$4 sm:$0xff]  }
  0x79   : > { %3211 = vmatpush1.bf16.msra.mxu0 %v6086_v5  ;;  %2981 = vmatprep.mubr.bf16.mxu0 %v6090_v6  ;;  %v6266_v5 = vld [vmem:[%s8007_s1 + $0x1e0] sm:$0xff]  }
  0x7a   : > { %3212 = vmatprep.subr.bf16.mxu0 %v6513_v1  ;;  %5591 = vmatpush1.bf16.msra.mxu1 %v6683_v24  ;;  %v6113_v24 = vld [vmem:[%s6652_s30 + $0x5c] ss:$36 sps:$4 sm:$0xff]  }
  0x7b   : > { %5576 = vmatprep.subr.bf16.mxu1 %v6513_v1  ;;  %v6267_v6 = vld [vmem:[%s8007_s1 + $0x200] ss:$0 sps:$4 sm:$0x77]  }
  0x7d   : > { %3213 = vmatpush1.bf16.msra.mxu0 %v6087_v7  ;;  %v6167_v7 = vld [vmem:[%s6652_s30 + $0x4c8] ss:$36 sps:$4 sm:$0xff]  }
  0x7e   : > { %3214 = vmatprep.subr.bf16.mxu0 %v6513_v1  ;;  %5592 = vmatpush1.bf16.msra.mxu1 %v6694_v26  ;;  %v6123_v26 = vld [vmem:[%s8007_s1 + $0x188] sm:$0xff]  }
  0x7f   : > { %2693 = vmatmul.mubr.bf16.gmra.mrb[24].mxu1 %v6092_v8  ;;  %5577 = vmatprep.subr.bf16.mxu1 %v6513_v1  ;;  %v6168_v8 = vld [vmem:[%s6652_s30 + $0x298] ss:$36 sps:$4 sm:$0xff]  }
  0x80   : > { %2982 = vmatmul.mubr.bf16.gmra.mrb[24].mxu0 %v6093_v9  ;;  %2700 = vmatprep.mubr.bf16.mxu1 %v6096_v11  ;;  %v6169_v9 = vld [vmem:[%s6652_s30 + $0x514] ss:$36 sps:$4 sm:$0xff]  }
  0x81   : > { %3215 = vmatpush1.bf16.msra.mxu0 %v6094_v10  ;;  %2989 = vmatprep.mubr.bf16.mxu0 %v6098_v12  ;;  %v6514_v10 = vmov 65535  }
  0x82   : > { %3216 = vmatprep.subr.bf16.mxu0 %v6513_v1  ;;  %5593 = vmatpush1.bf16.msra.mxu1 %v6705_v28  ;;  %v6117_v28 = vld [vmem:[%s6652_s30 + $0x2d4] ss:$36 sps:$4 sm:$0xff]   ;;  %v2607_v11 = vsel %vm2605_vm0, 4294967295, %v6514_v10 }
  0x83   : > { %5578 = vmatprep.subr.bf16.mxu1 %v6513_v1  ;;  %v2608_v12 = vsel %vm2606_vm1, %v2607_v11, 0  ;;  %v6246_v10 = vld [vmem:[%s6652_s30 + $0x5f8] ss:$36 sps:$4 sm:$0xff]  }
  0x84   : > { %v6247_v11 = vld [vmem:[%s6652_s30 + $0x874] ss:$36 sps:$4 sm:$0xff]  }
  0x85   : > { %3217 = vmatpush1.bf16.msra.mxu0 %v6095_v13  ;;  %v6965_v13 = vand.u32 %v6267_v6, %v2608_v12 }
  0x86   : > { %3218 = vmatprep.subr.bf16.mxu0 %v6513_v1  ;;  %5594 = vmatpush1.bf16.msra.mxu1 %v6716_v30  ;;  %v6136_v30 = vld [vmem:[%s8007_s1 + $0x190] sm:$0xff]  }
  0x87   : > { %2701 = vmatmul.mubr.bf16.gmra.mrb[28].mxu1 %v6100_v14  ;;  %5579 = vmatprep.subr.bf16.mxu1 %v6513_v1  ;;  %v6171_v14 = vld [vmem:[%s6652_s30 + $0x2e4] ss:$36 sps:$4 sm:$0xff]  }
  0x88   : > { %2990 = vmatmul.mubr.bf16.gmra.mrb[28].mxu0 %v6101_v15  ;;  %2708 = vmatprep.mubr.bf16.mxu1 %v6104_v16  ;;  %v6173_v15 = vld [vmem:[%s6652_s30 + $0x510] ss:$36 sps:$4 sm:$0xff]   ;;  %v6174_v16 = vld [vmem:[%s6652_s30 + $0x2e0] ss:$36 sps:$4 sm:$0xff]  }
  0x89   : > { %3219 = vmatpush1.bf16.msra.mxu0 %v6102_v17  ;;  %3222 = vmatprep.mubr.bf16.mxu0 %v6108_v18  ;;  %v6176_v17 = vld [vmem:[%s6652_s30 + $0x55c] ss:$36 sps:$4 sm:$0xff]   ;;  %v6178_v18 = vld [vmem:[%s6652_s30 + $0x32c] ss:$36 sps:$4 sm:$0xff]  }
  0x8a   : > { %3220 = vmatprep.subr.bf16.mxu0 %v6513_v1  ;;  %5595 = vmatpush1.bf16.msra.mxu1 %v6727_v32  ;;  %v6149_v32 = vld [vmem:[%s8007_s1 + $0x198] sm:$0xff]  }
  0x8b   : > { %5580 = vmatprep.subr.bf16.mxu1 %v6513_v1 }
  0x8d   : > { %3221 = vmatpush1.bf16.msra.mxu0 %v6103_v19  ;;  %v6280_v19 = vld [vmem:[%s8007_s1 + $0x1e8] sm:$0xff]  }
  0x8e   : > { %3479 = vmatprep.subr.bf16.mxu0 %v6513_v1  ;;  %5596 = vmatpush1.bf16.msra.mxu1 %v6738_v34  ;;  %v6124_v34 = vld [vmem:[%s6652_s30 + $0x31c] ss:$36 sps:$4 sm:$0xff]  }
  0x8f   : > { %2709 = vmatmul.mubr.bf16.gmra.mrb[32].mxu1 %v6109_v20  ;;  %5499 = vmatprep.subr.bf16.mxu1 %v6965_v13  ;;  %v6180_v20 = vld [vmem:[%s6652_s30 + $0x558] ss:$36 sps:$4 sm:$0xff]  }
  0x90   : > { %3223 = vmatmul.mubr.bf16.vlgmr.msra.gmra.mrb[0].mxu0 %v6106_v21  ;;  %2716 = vmatprep.mubr.bf16.mxu1 %v6111_v22  ;;  %v6181_v21 = vld [vmem:[%s6652_s30 + $0x328] ss:$36 sps:$4 sm:$0xff]  }
  0x91   : > { %3480 = vmatpush1.bf16.msra.mxu0 %v6110_v23  ;;  %3230 = vmatprep.mubr.bf16.mxu0 %v6113_v24  ;;  %v6182_v22 = vld [vmem:[%s6652_s30 + $0x5a4] ss:$36 sps:$4 sm:$0xff]   ;;  %v6184_v23 = vld [vmem:[%s6652_s30 + $0x374] ss:$36 sps:$4 sm:$0xff]  }
  0x92   : > { %3481 = vmatprep.subr.bf16.mxu0 %v6513_v1  ;;  %v6186_v24 = vld [vmem:[%s6652_s30 + $0x5a0] ss:$36 sps:$4 sm:$0xff]  }
  0x95   : > { %3482 = vmatpush1.bf16.msra.mxu0 %v6123_v26  ;;  %v6189_v26 = vld [vmem:[%s6652_s30 + $0x5ec] ss:$36 sps:$4 sm:$0xff]  }
  0x96   : > { %3483 = vmatprep.subr.bf16.mxu0 %v6513_v1 }
  0x97   : > { %2717 = vmatmul.mubr.bf16.gmra.mrb[36].mxu1 %v6115_v25  ;;  %v6187_v25 = vld [vmem:[%s6652_s30 + $0x370] ss:$36 sps:$4 sm:$0xff]  }
  0x98   : > { %3231 = vmatmul.mubr.bf16.gmra.mrb[4].mxu0 %v6116_v27  ;;  %2724 = vmatprep.mubr.bf16.mxu1 %v6117_v28  ;;  %v6191_v27 = vld [vmem:[%s6652_s30 + $0x3bc] ss:$36 sps:$4 sm:$0xff]   ;;  %v6293_v28 = vld [vmem:[%s8007_s1 + $0x1f0] sm:$0xff]  }
  0x99   : > { %3238 = vmatprep.mubr.bf16.mxu0 %v6119_v29  ;;  %3484 = vmatpush1.bf16.msra.mxu0 %v6136_v30  ;;  %v6193_v29 = vld [vmem:[%s6652_s30 + $0x5e8] ss:$36 sps:$4 sm:$0xff]   ;;  %v6194_v30 = vld [vmem:[%s6652_s30 + $0x3b8] ss:$36 sps:$4 sm:$0xff]  }
  0x9a   : > { %3485 = vmatprep.subr.bf16.mxu0 %v6513_v1 }
  0x9d   : > { %3486 = vmatpush1.bf16.msra.mxu0 %v6149_v32  ;;  %v6197_v32 = vld [vmem:[%s6652_s30 + $0x404] ss:$36 sps:$4 sm:$0xff]  }
  0x9e   : > { %3487 = vmatprep.subr.bf16.mxu0 %v6513_v1 }
  0x9f   : > { %2725 = vmatmul.mubr.bf16.gmra.mrb[40].mxu1 %v6121_v31  ;;  %v6195_v31 = vld [vmem:[%s6652_s30 + $0x634] ss:$36 sps:$4 sm:$0xff]  }
  0xa0   : > { %3239 = vmatmul.mubr.bf16.gmra.mrb[8].mxu0 %v6122_v33  ;;  %2732 = vmatprep.mubr.bf16.mxu1 %v6124_v34  ;;  %v6199_v33 = vld [vmem:[%s6652_s30 + $0x630] ss:$36 sps:$4 sm:$0xff]   ;;  %v6200_v34 = vld [vmem:[%s6652_s30 + $0x400] ss:$36 sps:$4 sm:$0xff]  }
  0xa1   : > { %3246 = vmatprep.mubr.bf16.mxu0 %v6126_v35  ;;  %3488 = vmatpush1.bf16.msra.mxu0 %v6162_v36  ;;  %v6202_v35 = vld [vmem:[%s6652_s30 + $0x67c] ss:$36 sps:$4 sm:$0xff]   ;;  %v6204_v36 = vld [vmem:[%s6652_s30 + $0x44c] ss:$36 sps:$4 sm:$0xff]  }
  0xa2   : > { %3489 = vmatprep.subr.bf16.mxu0 %v6513_v1 }
  0xa5   : > { %3490 = vmatpush1.bf16.msra.mxu0 %v6175_v37  ;;  %v6206_v37 = vld [vmem:[%s6652_s30 + $0x678] ss:$36 sps:$4 sm:$0xff]  }
  0xa6   : > { %3491 = vmatprep.subr.bf16.mxu0 %v6513_v1 }
  0xa7   : > { %2733 = vmatmul.mubr.bf16.gmra.mrb[44].mxu1 %v6128_v38  ;;  %v6207_v38 = vld [vmem:[%s6652_s30 + $0x448] ss:$36 sps:$4 sm:$0xff]  }
  0xa8   : > { %3247 = vmatmul.mubr.bf16.gmra.mrb[12].mxu0 %v6129_v39  ;;  %2740 = vmatprep.mubr.bf16.mxu1 %v6130_v40  ;;  %v6208_v39 = vld [vmem:[%s6652_s30 + $0x6c4] ss:$36 sps:$4 sm:$0xff]   ;;  %v6210_v40 = vld [vmem:[%s6652_s30 + $0x494] ss:$36 sps:$4 sm:$0xff]  }
  0xa9   : > { %3254 = vmatprep.mubr.bf16.mxu0 %v6132_v41  ;;  %3492 = vmatpush1.bf16.msra.mxu0 %v6188_v42  ;;  %v6212_v41 = vld [vmem:[%s6652_s30 + $0x6c0] ss:$36 sps:$4 sm:$0xff]   ;;  %v6213_v42 = vld [vmem:[%s6652_s30 + $0x490] ss:$36 sps:$4 sm:$0xff]  }
  0xaa   : > { %3493 = vmatprep.subr.bf16.mxu0 %v6513_v1 }
  0xad   : > { %3494 = vmatpush1.bf16.msra.mxu0 %v6201_v43  ;;  %v6215_v43 = vld [vmem:[%s6652_s30 + $0x70c] ss:$36 sps:$4 sm:$0xff]  }
  0xae   : > { %3495 = vmatprep.subr.bf16.mxu0 %v6513_v1 }
  0xaf   : > { %2741 = vmatmul.mubr.bf16.gmra.mrb[48].mxu1 %v6134_v44  ;;  %v6217_v44 = vld [vmem:[%s6652_s30 + $0x4dc] ss:$36 sps:$4 sm:$0xff]  }
  0xb0   : > { %3255 = vmatmul.mubr.bf16.gmra.mrb[16].mxu0 %v6135_v45  ;;  %2748 = vmatprep.mubr.bf16.mxu1 %v6137_v46  ;;  %v6219_v45 = vld [vmem:[%s6652_s30 + $0x708] ss:$36 sps:$4 sm:$0xff]   ;;  %v6220_v46 = vld [vmem:[%s6652_s30 + $0x4d8] ss:$36 sps:$4 sm:$0xff]  }
  0xb1   : > { %3262 = vmatprep.mubr.bf16.mxu0 %v6139_v47  ;;  %3496 = vmatpush1.bf16.msra.mxu0 %v6214_v48  ;;  %v6221_v47 = vld [vmem:[%s6652_s30 + $0x754] ss:$36 sps:$4 sm:$0xff]   ;;  %v6223_v48 = vld [vmem:[%s6652_s30 + $0x524] ss:$36 sps:$4 sm:$0xff]  }
  0xb2   : > { %3497 = vmatprep.subr.bf16.mxu0 %v6513_v1 }
  0xb5   : > { %3498 = vmatpush1.bf16.msra.mxu0 %v6227_v49  ;;  %v6225_v49 = vld [vmem:[%s6652_s30 + $0x750] ss:$36 sps:$4 sm:$0xff]  }
  0xb6   : > { %3499 = vmatprep.subr.bf16.mxu0 %v6513_v1 }
  0xb7   : > { %2749 = vmatmul.mubr.bf16.gmra.mrb[52].mxu1 %v6141_v50  ;;  %v6226_v50 = vld [vmem:[%s6652_s30 + $0x520] ss:$36 sps:$4 sm:$0xff]  }
  0xb8   : > { %3263 = vmatmul.mubr.bf16.gmra.mrb[20].mxu0 %v6142_v51  ;;  %2756 = vmatprep.mubr.bf16.mxu1 %v6143_v52  ;;  %v6228_v51 = vld [vmem:[%s6652_s30 + $0x79c] ss:$36 sps:$4 sm:$0xff]   ;;  %v6230_v52 = vld [vmem:[%s6652_s30 + $0x56c] ss:$36 sps:$4 sm:$0xff]  }
  0xb9   : > { %3270 = vmatprep.mubr.bf16.mxu0 %v6145_v53  ;;  %3500 = vmatpush1.bf16.msra.mxu0 %v6240_v54 }
  0xba   : > { %3501 = vmatprep.subr.bf16.mxu0 %v6513_v1 }
  0xbd   : > { %3502 = vmatpush1.bf16.msra.mxu0 %v6253_v59 }
  0xbe   : > { %3503 = vmatprep.subr.bf16.mxu0 %v6513_v1 }
  0xbf   : > { %2757 = vmatmul.mubr.bf16.gmra.mrb[56].mxu1 %v6147_v55  ;;  %v6232_v55 = vld [vmem:[%s6652_s30 + $0x798] ss:$36 sps:$4 sm:$0xff]  }
  0xc0   : > { %3271 = vmatmul.mubr.bf16.gmra.mrb[24].mxu0 %v6148_v56  ;;  %2764 = vmatprep.mubr.bf16.mxu1 %v6150_v57  ;;  %v6233_v57 = vld [vmem:[%s6652_s30 + $0x568] ss:$36 sps:$4 sm:$0xff]  }
  0xc1   : > { %3278 = vmatprep.mubr.bf16.mxu0 %v6152_v58  ;;  %3504 = vmatpush1.bf16.msra.mxu0 %v6266_v5  ;;  %v6234_v58 = vld [vmem:[%s6652_s30 + $0x7e4] ss:$36 sps:$4 sm:$0xff]   ;;  %v6243_v5 = vld [vmem:[%s6652_s30 + $0x5fc] ss:$36 sps:$4 sm:$0xff]  }
  0xc2   : > { %3505 = vmatprep.subr.bf16.mxu0 %v6513_v1 }
  0xc5   : > { %3506 = vmatpush1.bf16.msra.mxu0 %v6280_v19  ;;  %v6252_v19 = vld [vmem:[%s6652_s30 + $0x640] ss:$36 sps:$4 sm:$0xff]  }
  0xc6   : > { %3507 = vmatprep.subr.bf16.mxu0 %v6513_v1 }
  0xc7   : > { %2765 = vmatmul.mubr.bf16.gmra.mrb[60].mxu1 %v6154_v60  ;;  %v6236_v60 = vld [vmem:[%s6652_s30 + $0x5b4] ss:$36 sps:$4 sm:$0xff]  }
  0xc8   : > { %3279 = vmatmul.mubr.bf16.gmra.mrb[28].mxu0 %v6155_v61  ;;  %2772 = vmatprep.mubr.bf16.mxu1 %v6156_v62 }
  0xc9   : > { %3286 = vmatprep.mubr.bf16.mxu0 %v6158_v63  ;;  %3508 = vmatpush1.bf16.msra.mxu0 %v6293_v28  ;;  %v6238_v63 = vld [vmem:[%s6652_s30 + $0x7e0] ss:$36 sps:$4 sm:$0xff]   ;;  %v6262_v28 = vld [vmem:[%s6652_s30 + $0x24c] ss:$36 sps:$4 sm:$0xff]  }
  0xca   : > { %3509 = vmatprep.subr.bf16.mxu0 %v6513_v1  ;;  %v6306_v1 = vld [vmem:[%s8007_s1 + $0x1f8] sm:$0xff]  }
  0xcd   : > { %3510 = vmatpush1.bf16.msra.mxu0 %v6306_v1  ;;  %v6268_v1 = vld [vmem:[%s6652_s30 + $0x294] ss:$36 sps:$4 sm:$0xff]  }
  0xcf   : > { %2773 = vmatmul.mubr.bf16.gmra.mrb[64].mxu1 %v6160_v0 }
  0xd0   : > { %3287 = vmatmul.mubr.bf16.gmra.mrb[32].mxu0 %v6161_v2  ;;  %2780 = vmatprep.mubr.bf16.mxu1 %v6163_v3  ;;  %v6239_v2 = vld [vmem:[%s6652_s30 + $0x5b0] ss:$36 sps:$4 sm:$0xff]  }
  0xd1   : > { %3294 = vmatprep.mubr.bf16.mxu0 %v6165_v4  ;;  %v6241_v3 = vld [vmem:[%s6652_s30 + $0x82c] ss:$36 sps:$4 sm:$0xff]  }
  0xd7   : > { %2781 = vmatmul.mubr.bf16.gmra.mrb[68].mxu1 %v6167_v7 }
  0xd8   : > { %3295 = vmatmul.mubr.bf16.gmra.mrb[36].mxu0 %v6168_v8  ;;  %2788 = vmatprep.mubr.bf16.mxu1 %v6169_v9  ;;  %v6245_v8 = vld [vmem:[%s6652_s30 + $0x828] ss:$36 sps:$4 sm:$0xff]  }
  0xd9   : > { %3302 = vmatprep.mubr.bf16.mxu0 %v6171_v14  ;;  %v6249_v14 = vld [vmem:[%s6652_s30 + $0x644] ss:$36 sps:$4 sm:$0xff]  }
  0xdf   : > { %2789 = vmatmul.mubr.bf16.gmra.mrb[72].mxu1 %v6173_v15 }
  0xe0   : > { %3303 = vmatmul.mubr.bf16.gmra.mrb[40].mxu0 %v6174_v16  ;;  %2796 = vmatprep.mubr.bf16.mxu1 %v6176_v17  ;;  %v6251_v17 = vld [vmem:[%s6652_s30 + $0x870] ss:$36 sps:$4 sm:$0xff]  }
  0xe1   : > { %3310 = vmatprep.mubr.bf16.mxu0 %v6178_v18 }
  0xe7   : > { %2797 = vmatmul.mubr.bf16.gmra.mrb[76].mxu1 %v6180_v20  ;;  %v6254_v20 = vld [vmem:[%s6652_s30 + $0x8bc] ss:$36 sps:$4 sm:$0xff]  }
  0xe8   : > { %3311 = vmatmul.mubr.bf16.gmra.mrb[44].mxu0 %v6181_v21  ;;  %2804 = vmatprep.mubr.bf16.mxu1 %v6182_v22  ;;  %v6256_v22 = vld [vmem:[%s6652_s30 + $0x68c] ss:$36 sps:$4 sm:$0xff]  }
  0xe9   : > { %3318 = vmatprep.mubr.bf16.mxu0 %v6184_v23 }
  0xef   : > { %2805 = vmatmul.mubr.bf16.gmra.mrb[80].mxu1 %v6186_v24 }
  0xf0   : > { %3319 = vmatmul.mubr.bf16.gmra.mrb[48].mxu0 %v6187_v25  ;;  %2812 = vmatprep.mubr.bf16.mxu1 %v6189_v26  ;;  %v6258_v25 = vld [vmem:[%s6652_s30 + $0x8b8] ss:$36 sps:$4 sm:$0xff]  }
  0xf1   : > { %3326 = vmatprep.mubr.bf16.mxu0 %v6191_v27  ;;  %v6259_v27 = vld [vmem:[%s6652_s30 + $0x688] ss:$36 sps:$4 sm:$0xff]  }
  0xf7   : > { %2813 = vmatmul.mubr.bf16.gmra.mrb[84].mxu1 %v6193_v29 }
  0xf8   : > { %3327 = vmatmul.mubr.bf16.gmra.mrb[52].mxu0 %v6194_v30  ;;  %2820 = vmatprep.mubr.bf16.mxu1 %v6195_v31  ;;  %v6263_v30 = vld [vmem:[%s6652_s30 + $0x6d4] ss:$36 sps:$4 sm:$0xff]  }
  0xf9   : > { %3334 = vmatprep.mubr.bf16.mxu0 %v6197_v32 }
  0xff   : > { %2821 = vmatmul.mubr.bf16.gmra.mrb[88].mxu1 %v6199_v33  ;;  %v6260_v33 = vld [vmem:[%s6652_s30 + $0x248] ss:$36 sps:$4 sm:$0xff]  }
 0x100   : > { %3335 = vmatmul.mubr.bf16.gmra.mrb[56].mxu0 %v6200_v34  ;;  %2828 = vmatprep.mubr.bf16.mxu1 %v6202_v35  ;;  %v6265_v35 = vld [vmem:[%s6652_s30 + $0x6d0] ss:$36 sps:$4 sm:$0xff]  }
 0x101   : > { %3342 = vmatprep.mubr.bf16.mxu0 %v6204_v36 }
 0x107   : > { %2829 = vmatmul.mubr.bf16.gmra.mrb[92].mxu1 %v6206_v37  ;;  %v6270_v37 = vld [vmem:[%s6652_s30 + $0x71c] ss:$36 sps:$4 sm:$0xff]  }
 0x108   : > { %3343 = vmatmul.mubr.bf16.gmra.mrb[60].mxu0 %v6207_v38  ;;  %2836 = vmatprep.mubr.bf16.mxu1 %v6208_v39 }
 0x109   : > { %3350 = vmatprep.mubr.bf16.mxu0 %v6210_v40  ;;  %v6272_v40 = vld [vmem:[%s6652_s30 + $0x290] ss:$36 sps:$4 sm:$0xff]  }
 0x10f   : > { %2837 = vmatmul.mubr.bf16.gmra.mrb[96].mxu1 %v6212_v41 }
 0x110   : > { %3351 = vmatmul.mubr.bf16.gmra.mrb[64].mxu0 %v6213_v42  ;;  %2844 = vmatprep.mubr.bf16.mxu1 %v6215_v43  ;;  %v6273_v42 = vld [vmem:[%s6652_s30 + $0x718] ss:$36 sps:$4 sm:$0xff]  }
 0x111   : > { %3358 = vmatprep.mubr.bf16.mxu0 %v6217_v44  ;;  %v6274_v43 = vld [vmem:[%s6652_s30 + $0x2dc] ss:$36 sps:$4 sm:$0xff]  }
 0x117   : > { %2845 = vmatmul.mubr.bf16.gmra.mrb[100].mxu1 %v6219_v45  ;;  %v6276_v45 = vld [vmem:[%s6652_s30 + $0x764] ss:$36 sps:$4 sm:$0xff]  }
 0x118   : > { %3359 = vmatmul.mubr.bf16.gmra.mrb[68].mxu0 %v6220_v46  ;;  %2852 = vmatprep.mubr.bf16.mxu1 %v6221_v47  ;;  %v6278_v47 = vld [vmem:[%s6652_s30 + $0x2d8] ss:$36 sps:$4 sm:$0xff]  }
 0x119   : > { %3366 = vmatprep.mubr.bf16.mxu0 %v6223_v48 }
 0x11f   : > { %2853 = vmatmul.mubr.bf16.gmra.mrb[104].mxu1 %v6225_v49  ;;  %v6279_v49 = vld [vmem:[%s6652_s30 + $0x760] ss:$36 sps:$4 sm:$0xff]  }
 0x120   : > { %3367 = vmatmul.mubr.bf16.gmra.mrb[72].mxu0 %v6226_v50  ;;  %2860 = vmatprep.mubr.bf16.mxu1 %v6228_v51  ;;  %v6281_v50 = vld [vmem:[%s6652_s30 + $0x324] ss:$36 sps:$4 sm:$0xff]  }
 0x121   : > { %3374 = vmatprep.mubr.bf16.mxu0 %v6230_v52  ;;  %v6283_v52 = vld [vmem:[%s6652_s30 + $0x7ac] ss:$36 sps:$4 sm:$0xff]  }
 0x122   : > { %v7016_v53 = vpop.f32.mrb[0].mxu1 }
 0x123   : > { %v2648_v54 = vpop.f32.mrb[1].mxu1 }
 0x124   : > { %v7019_v56 = vpop.f32.mrb[2].mxu1  ;;  %v6285_v54 = vld [vmem:[%s6652_s30 + $0x320] ss:$36 sps:$4 sm:$0xff]  }
 0x125   : > { %v2651_v59 = vpop.f32.mrb[3].mxu1 }
 0x126   : > { %v6291_v59 = vld [vmem:[%s6652_s30 + $0x368] ss:$36 sps:$4 sm:$0xff]  }
 0x127   : > { %2861 = vmatmul.mubr.bf16.gmra.mrb[108].mxu1 %v6232_v55  ;;  %v6286_v55 = vld [vmem:[%s6652_s30 + $0x7a8] ss:$36 sps:$4 sm:$0xff]  }
 0x128   : > { %3375 = vmatmul.mubr.bf16.gmra.mrb[76].mxu0 %v6233_v57  ;;  %2868 = vmatprep.mubr.bf16.mxu1 %v6234_v58  ;;  %v6287_v57 = vld [vmem:[%s6652_s30 + $0x36c] ss:$36 sps:$4 sm:$0xff]   ;;  %v6289_v58 = vld [vmem:[%s6652_s30 + $0x7f4] ss:$36 sps:$4 sm:$0xff]  }
 0x129   : > { %3382 = vmatprep.mubr.bf16.mxu0 %v6236_v60  ;;  %v6292_v60 = vld [vmem:[%s6652_s30 + $0x7f0] ss:$36 sps:$4 sm:$0xff]  }
 0x12a   : > { %v7024_v61 = vpop.f32.mrb[4].mxu1 }
 0x12b   : > { %v2656_v62 = vpop.f32.mrb[5].mxu1 }
 0x12c   : > { %v7027_v0 = vpop.f32.mrb[6].mxu1  ;;  %v6294_v62 = vld [vmem:[%s6652_s30 + $0x3b4] ss:$36 sps:$4 sm:$0xff]  }
 0x12d   : > { %v2659_v4 = vpop.f32.mrb[7].mxu1 }
 0x12e   : > { %v6300_v4 = vld [vmem:[%s6652_s30 + $0x3fc] ss:$36 sps:$4 sm:$0xff]  }
 0x12f   : > { %2869 = vmatmul.mubr.bf16.gmra.mrb[112].mxu1 %v6238_v63  ;;  %v6296_v63 = vld [vmem:[%s6652_s30 + $0x83c] ss:$36 sps:$4 sm:$0xff]  }
 0x130   : > { %3383 = vmatmul.mubr.bf16.gmra.mrb[80].mxu0 %v6239_v2  ;;  %2876 = vmatprep.mubr.bf16.mxu1 %v6241_v3  ;;  %v6298_v2 = vld [vmem:[%s6652_s30 + $0x3b0] ss:$36 sps:$4 sm:$0xff]   ;;  %v6299_v3 = vld [vmem:[%s6652_s30 + $0x838] ss:$36 sps:$4 sm:$0xff]  }
 0x131   : > { %3390 = vmatprep.mubr.bf16.mxu0 %v6243_v5  ;;  %v6302_v5 = vld [vmem:[%s6652_s30 + $0x884] ss:$36 sps:$4 sm:$0xff]  }
 0x132   : > { %v7032_v6 = vpop.f32.mrb[8].mxu1 }
 0x133   : > { %v2664_v7 = vpop.f32.mrb[9].mxu1 }
 0x134   : > { %v7035_v9 = vpop.f32.mrb[10].mxu1  ;;  %v6304_v7 = vld [vmem:[%s6652_s30 + $0x3f8] ss:$36 sps:$4 sm:$0xff]  }
 0x135   : > { %v2667_v12 = vpop.f32.mrb[11].mxu1 }
 0x136   : > { %v6311_v12 = vld [vmem:[%s6652_s30 + $0x440] ss:$36 sps:$4 sm:$0xff]  }
 0x137   : > { %2877 = vmatmul.mubr.bf16.gmra.mrb[116].mxu1 %v6245_v8  ;;  %v6305_v8 = vld [vmem:[%s6652_s30 + $0x880] ss:$36 sps:$4 sm:$0xff]  }
 0x138   : > { %3391 = vmatmul.mubr.bf16.gmra.mrb[84].mxu0 %v6246_v10  ;;  %2884 = vmatprep.mubr.bf16.mxu1 %v6247_v11  ;;  %v6307_v10 = vld [vmem:[%s6652_s30 + $0x444] ss:$36 sps:$4 sm:$0xff]   ;;  %v6309_v11 = vld [vmem:[%s6652_s30 + $0x8cc] ss:$36 sps:$4 sm:$0xff]  }
 0x139   : > { %3398 = vmatprep.mubr.bf16.mxu0 %v6249_v14  ;;  %v6312_v14 = vld [vmem:[%s6652_s30 + $0x8c8] ss:$36 sps:$4 sm:$0xff]  }
 0x13a   : > { %v7040_v15 = vpop.f32.mrb[12].mxu1 }
 0x13b   : > { %v2672_v16 = vpop.f32.mrb[13].mxu1 }
 0x13c   : > { %v7043_v18 = vpop.f32.mrb[14].mxu1  ;;  %v6313_v16 = vld [vmem:[%s6652_s30 + $0x48c] ss:$36 sps:$4 sm:$0xff]  }
 0x13d   : > { %v2675_v21 = vpop.f32.mrb[15].mxu1 }
 0x13e   : > { %v6319_v21 = vld [vmem:[%s6652_s30 + $0x4d4] ss:$36 sps:$4 sm:$0xff]  }
 0x13f   : > { %2885 = vmatmul.mubr.bf16.gmra.mrb[120].mxu1 %v6251_v17  ;;  %v6317_v17 = vld [vmem:[%s6652_s30 + $0x1c] ss:$36 sps:$4 sm:$0xff]  }
 0x140   : > { %3399 = vmatmul.mubr.bf16.gmra.mrb[88].mxu0 %v6252_v19  ;;  %2892 = vmatprep.mubr.bf16.mxu1 %v6254_v20  ;;  %v6318_v19 = vld [vmem:[%s6652_s30 + $0x488] ss:$36 sps:$4 sm:$0xff]   ;;  %v6315_v20 = vld [vmem:[%s6652_s30 + $0x18] ss:$36 sps:$4 sm:$0xff]  }
 0x141   : > { %3406 = vmatprep.mubr.bf16.mxu0 %v6256_v22  ;;  %v6321_v22 = vld [vmem:[%s6652_s30 + $0x64] ss:$36 sps:$4 sm:$0xff]  }
 0x142   : > { %v7048_v23 = vpop.f32.mrb[16].mxu1 }
 0x143   : > { %v2680_v24 = vpop.f32.mrb[17].mxu1 }
 0x144   : > { %v7051_v26 = vpop.f32.mrb[18].mxu1  ;;  %v6323_v24 = vld [vmem:[%s6652_s30 + $0x4d0] ss:$36 sps:$4 sm:$0xff]  }
 0x145   : > { %v2683_v29 = vpop.f32.mrb[19].mxu1 }
 0x146   : > { %v6329_v29 = vld [vmem:[%s6652_s30 + $0x518] ss:$36 sps:$4 sm:$0xff]  }
 0x147   : > { %2893 = vmatmul.mubr.bf16.gmra.mrb[124].mxu1 %v6258_v25  ;;  %v6324_v25 = vld [vmem:[%s6652_s30 + $0x60] ss:$36 sps:$4 sm:$0xff]  }
 0x148   : > { %3407 = vmatmul.mubr.bf16.gmra.mrb[92].mxu0 %v6259_v27  ;;  %2997 = vmatprep.mubr.bf16.mxu1 %v6262_v28  ;;  %v6325_v27 = vld [vmem:[%s6652_s30 + $0x51c] ss:$36 sps:$4 sm:$0xff]   ;;  %v6327_v28 = vld [vmem:[%s6652_s30 + $0xac] ss:$36 sps:$4 sm:$0xff]  }
 0x149   : > { %3414 = vmatprep.mubr.bf16.mxu0 %v6263_v30  ;;  %v6330_v30 = vld [vmem:[%s6652_s30 + $0xa8] ss:$36 sps:$4 sm:$0xff]  }
 0x14a   : > { %v7056_v31 = vpop.f32.mrb[20].mxu1 }
 0x14b   : > { %v2688_v32 = vpop.f32.mrb[21].mxu1 }
 0x14c   : > { %v7059_v34 = vpop.f32.mrb[22].mxu1  ;;  %v6331_v32 = vld [vmem:[%s6652_s30 + $0x564] ss:$36 sps:$4 sm:$0xff]  }
 0x14d   : > { %v2691_v36 = vpop.f32.mrb[23].mxu1 }
 0x14e   : > { %v6336_v36 = vld [vmem:[%s6652_s30 + $0xf0] ss:$36 sps:$4 sm:$0xff]  }
 0x14f   : > { %2998 = vmatmul.mubr.bf16.vlgmr.msra.gmra.mrb[32].mxu1 %v6260_v33  ;;  %v6333_v33 = vld [vmem:[%s6652_s30 + $0xf4] ss:$36 sps:$4 sm:$0xff]  }
 0x150   : > { %3415 = vmatmul.mubr.bf16.gmra.mrb[96].mxu0 %v6265_v35  ;;  %5500 = vmatpush3.bf16.msra.mxu1 %v6965_v13  ;;  %v6335_v35 = vld [vmem:[%s6652_s30 + $0x560] ss:$36 sps:$4 sm:$0xff]  }
 0x151   : > { %3005 = vmatprep.mubr.bf16.mxu1 %v6268_v1  ;;  %3422 = vmatprep.mubr.bf16.mxu0 %v6270_v37  ;;  %v6337_v1 = vld [vmem:[%s6652_s30 + $0x5ac] ss:$36 sps:$4 sm:$0xff]   ;;  %v6339_v37 = vld [vmem:[%s6652_s30 + $0x13c] ss:$36 sps:$4 sm:$0xff]  }
 0x152   : > { %v7065_v38 = vpop.f32.mrb[24].mxu1 }
 0x153   : > { %v2696_v39 = vpop.f32.mrb[25].mxu1 }
 0x154   : > { %v7068_v41 = vpop.f32.mrb[26].mxu1  ;;  %v6341_v39 = vld [vmem:[%s6652_s30 + $0x5a8] ss:$36 sps:$4 sm:$0xff]  }
 0x155   : > { %v2699_v44 = vpop.f32.mrb[27].mxu1 }
 0x156   : > { %v6347_v44 = vld [vmem:[%s6652_s30 + $0x5f0] ss:$36 sps:$4 sm:$0xff]  }
 0x157   : > { %3006 = vmatmul.mubr.bf16.gmra.mrb[36].mxu1 %v6272_v40  ;;  %v6342_v40 = vld [vmem:[%s6652_s30 + $0x138] ss:$36 sps:$4 sm:$0xff]  }
 0x158   : > { %3423 = vmatmul.mubr.bf16.gmra.mrb[100].mxu0 %v6273_v42  ;;  %3013 = vmatprep.mubr.bf16.mxu1 %v6274_v43  ;;  %v6343_v42 = vld [vmem:[%s6652_s30 + $0x5f4] ss:$36 sps:$4 sm:$0xff]   ;;  %v6345_v43 = vld [vmem:[%s6652_s30 + $0x184] ss:$36 sps:$4 sm:$0xff]  }
 0x159   : > { %3430 = vmatprep.mubr.bf16.mxu0 %v6276_v45  ;;  %v6348_v45 = vld [vmem:[%s6652_s30 + $0x180] ss:$36 sps:$4 sm:$0xff]  }
 0x15a   : > { %v7073_v13 = vpop.f32.mrb[28].mxu1 }
 0x15b   : > { %v2704_v46 = vpop.f32.mrb[29].mxu1 }
 0x15c   : > { %v7076_v48 = vpop.f32.mrb[30].mxu1  ;;  %v6349_v46 = vld [vmem:[%s6652_s30 + $0x63c] ss:$36 sps:$4 sm:$0xff]  }
 0x15d   : > { %v2707_v51 = vpop.f32.mrb[31].mxu1 }
 0x15e   : > { %v6355_v51 = vld [vmem:[%s6652_s30 + $0x684] ss:$36 sps:$4 sm:$0xff]  }
 0x15f   : > { %3014 = vmatmul.mubr.bf16.gmra.mrb[40].mxu1 %v6278_v47  ;;  %v6351_v47 = vld [vmem:[%s6652_s30 + $0x1cc] ss:$36 sps:$4 sm:$0xff]  }
 0x160   : > { %3431 = vmatmul.mubr.bf16.gmra.mrb[104].mxu0 %v6279_v49  ;;  %3021 = vmatprep.mubr.bf16.mxu1 %v6281_v50  ;;  %v6353_v49 = vld [vmem:[%s6652_s30 + $0x638] ss:$36 sps:$4 sm:$0xff]   ;;  %v6354_v50 = vld [vmem:[%s6652_s30 + $0x1c8] ss:$36 sps:$4 sm:$0xff]  }
 0x161   : > { %3438 = vmatprep.mubr.bf16.mxu0 %v6283_v52  ;;  %v6357_v52 = vld [vmem:[%s6652_s30 + $0x214] ss:$36 sps:$4 sm:$0xff]  }
 0x167   : > { %3022 = vmatmul.mubr.bf16.gmra.mrb[44].mxu1 %v6285_v54  ;;  %v6359_v54 = vld [vmem:[%s6652_s30 + $0x680] ss:$36 sps:$4 sm:$0xff]  }
 0x168   : > { %3439 = vmatmul.mubr.bf16.gmra.mrb[108].mxu0 %v6286_v55  ;;  %3029 = vmatprep.mubr.bf16.mxu1 %v6287_v57  ;;  %v6360_v55 = vld [vmem:[%s6652_s30 + $0x210] ss:$36 sps:$4 sm:$0xff]  }
 0x169   : > { %3446 = vmatprep.mubr.bf16.mxu0 %v6289_v58  ;;  %v6361_v57 = vld [vmem:[%s6652_s30 + $0x6cc] ss:$36 sps:$4 sm:$0xff]   ;;  %v6363_v58 = vld [vmem:[%s6652_s30 + $0x25c] ss:$36 sps:$4 sm:$0xff]  }
 0x16f   : > { %3030 = vmatmul.mubr.bf16.gmra.mrb[48].mxu1 %v6291_v59  ;;  %v6365_v59 = vld [vmem:[%s6652_s30 + $0x6c8] ss:$36 sps:$4 sm:$0xff]  }
 0x170   : > { %3447 = vmatmul.mubr.bf16.gmra.mrb[112].mxu0 %v6292_v60  ;;  %3037 = vmatprep.mubr.bf16.mxu1 %v6294_v62  ;;  %v6366_v60 = vld [vmem:[%s6652_s30 + $0x258] ss:$36 sps:$4 sm:$0xff]  }
 0x171   : > { %3454 = vmatprep.mubr.bf16.mxu0 %v6296_v63  ;;  %v6367_v62 = vld [vmem:[%s6652_s30 + $0x714] ss:$36 sps:$4 sm:$0xff]   ;;  %v6369_v63 = vld [vmem:[%s6652_s30 + $0x2a4] ss:$36 sps:$4 sm:$0xff]  }
 0x177   : > { %3038 = vmatmul.mubr.bf16.gmra.mrb[52].mxu1 %v6298_v2  ;;  %v6371_v2 = vld [vmem:[%s6652_s30 + $0x710] ss:$36 sps:$4 sm:$0xff]  }
 0x178   : > { %3455 = vmatmul.mubr.bf16.gmra.mrb[116].mxu0 %v6299_v3  ;;  %3045 = vmatprep.mubr.bf16.mxu1 %v6300_v4  ;;  %v6372_v3 = vld [vmem:[%s6652_s30 + $0x2a0] ss:$36 sps:$4 sm:$0xff]  }
 0x179   : > { %3462 = vmatprep.mubr.bf16.mxu0 %v6302_v5  ;;  %v6373_v4 = vld [vmem:[%s6652_s30 + $0x75c] ss:$36 sps:$4 sm:$0xff]   ;;  %v6375_v5 = vld [vmem:[%s6652_s30 + $0x2ec] ss:$36 sps:$4 sm:$0xff]  }
 0x17f   : > { %3046 = vmatmul.mubr.bf16.gmra.mrb[56].mxu1 %v6304_v7  ;;  %v6377_v7 = vld [vmem:[%s6652_s30 + $0x758] ss:$36 sps:$4 sm:$0xff]  }
 0x180   : > { %3463 = vmatmul.mubr.bf16.gmra.mrb[120].mxu0 %v6305_v8  ;;  %3053 = vmatprep.mubr.bf16.mxu1 %v6307_v10  ;;  %v6378_v8 = vld [vmem:[%s6652_s30 + $0x2e8] ss:$36 sps:$4 sm:$0xff]  }
 0x181   : > { %3470 = vmatprep.mubr.bf16.mxu0 %v6309_v11  ;;  %v6379_v10 = vld [vmem:[%s6652_s30 + $0x7a4] ss:$36 sps:$4 sm:$0xff]   ;;  %v6381_v11 = vld [vmem:[%s6652_s30 + $0x334] ss:$36 sps:$4 sm:$0xff]  }
 0x187   : > { %3054 = vmatmul.mubr.bf16.gmra.mrb[60].mxu1 %v6311_v12  ;;  %v6383_v12 = vld [vmem:[%s6652_s30 + $0x7a0] ss:$36 sps:$4 sm:$0xff]  }
 0x188   : > { %3471 = vmatmul.mubr.bf16.gmra.mrb[124].mxu0 %v6312_v14  ;;  %3061 = vmatprep.mubr.bf16.mxu1 %v6313_v16  ;;  %v6384_v14 = vld [vmem:[%s6652_s30 + $0x330] ss:$36 sps:$4 sm:$0xff]  }
 0x189   : > { %3511 = vmatprep.mubr.bf16.mxu0 %v6317_v17  ;;  %v6385_v16 = vld [vmem:[%s6652_s30 + $0x7ec] ss:$36 sps:$4 sm:$0xff]   ;;  %v6387_v17 = vld [vmem:[%s6652_s30 + $0x37c] ss:$36 sps:$4 sm:$0xff]  }
 0x18f   : > { %3062 = vmatmul.mubr.bf16.gmra.mrb[64].mxu1 %v6318_v19  ;;  %v6389_v19 = vld [vmem:[%s6652_s30 + $0x7e8] ss:$36 sps:$4 sm:$0xff]  }
 0x190   : > { %3512 = vmatmul.mubr.bf16.vlgmr.msra.gmra.mrb[0].mxu0 %v6315_v20  ;;  %3069 = vmatprep.mubr.bf16.mxu1 %v6319_v21  ;;  %v6390_v20 = vld [vmem:[%s6652_s30 + $0x378] ss:$36 sps:$4 sm:$0xff]  }
 0x191   : > { %3519 = vmatprep.mubr.bf16.mxu0 %v6321_v22  ;;  %v6391_v21 = vld [vmem:[%s6652_s30 + $0x834] ss:$36 sps:$4 sm:$0xff]   ;;  %v6393_v22 = vld [vmem:[%s6652_s30 + $0x3c4] ss:$36 sps:$4 sm:$0xff]  }
 0x197   : > { %3070 = vmatmul.mubr.bf16.gmra.mrb[68].mxu1 %v6323_v24  ;;  %v6395_v24 = vld [vmem:[%s6652_s30 + $0x830] ss:$36 sps:$4 sm:$0xff]  }
 0x198   : > { %3520 = vmatmul.mubr.bf16.gmra.mrb[4].mxu0 %v6324_v25  ;;  %3077 = vmatprep.mubr.bf16.mxu1 %v6325_v27  ;;  %v6396_v25 = vld [vmem:[%s6652_s30 + $0x3c0] ss:$36 sps:$4 sm:$0xff]  }
 0x199   : > { %3527 = vmatprep.mubr.bf16.mxu0 %v6327_v28  ;;  %v6397_v27 = vld [vmem:[%s6652_s30 + $0x87c] ss:$36 sps:$4 sm:$0xff]   ;;  %v6399_v28 = vld [vmem:[%s6652_s30 + $0x40c] ss:$36 sps:$4 sm:$0xff]  }
 0x19f   : > { %3078 = vmatmul.mubr.bf16.gmra.mrb[72].mxu1 %v6329_v29  ;;  %v6401_v29 = vld [vmem:[%s6652_s30 + $0x878] ss:$36 sps:$4 sm:$0xff]  }
 0x1a0   : > { %3528 = vmatmul.mubr.bf16.gmra.mrb[8].mxu0 %v6330_v30  ;;  %3085 = vmatprep.mubr.bf16.mxu1 %v6331_v32  ;;  %v6402_v30 = vld [vmem:[%s6652_s30 + $0x408] ss:$36 sps:$4 sm:$0xff]  }
 0x1a1   : > { %3535 = vmatprep.mubr.bf16.mxu0 %v6333_v33  ;;  %v6403_v32 = vld [vmem:[%s6652_s30 + $0x8c4] ss:$36 sps:$4 sm:$0xff]   ;;  %v6405_v33 = vld [vmem:[%s6652_s30 + $0x454] ss:$36 sps:$4 sm:$0xff]  }
 0x1a7   : > { %3086 = vmatmul.mubr.bf16.gmra.mrb[76].mxu1 %v6335_v35  ;;  %v6407_v35 = vld [vmem:[%s6652_s30 + $0x8c0] ss:$36 sps:$4 sm:$0xff]  }
 0x1a8   : > { %3536 = vmatmul.mubr.bf16.gmra.mrb[12].mxu0 %v6336_v36  ;;  %3093 = vmatprep.mubr.bf16.mxu1 %v6337_v1  ;;  %v6408_v36 = vld [vmem:[%s6652_s30 + $0x450] ss:$36 sps:$4 sm:$0xff]   ;;  %v6411_v1 = vld [vmem:[%s6652_s30 + $0x20] ss:$36 sps:$4 sm:$0xff]  }
 0x1a9   : > { %3543 = vmatprep.mubr.bf16.mxu0 %v6339_v37  ;;  %v6409_v37 = vld [vmem:[%s6652_s30 + $0x49c] ss:$36 sps:$4 sm:$0xff]  }
 0x1af   : > { %3094 = vmatmul.mubr.bf16.gmra.mrb[80].mxu1 %v6341_v39  ;;  %v6413_v39 = vld [vmem:[%s6652_s30 + $0x68] ss:$36 sps:$4 sm:$0xff]  }
 0x1b0   : > { %3544 = vmatmul.mubr.bf16.gmra.mrb[16].mxu0 %v6342_v40  ;;  %3101 = vmatprep.mubr.bf16.mxu1 %v6343_v42  ;;  %v6412_v40 = vld [vmem:[%s6652_s30 + $0x498] ss:$36 sps:$4 sm:$0xff]   ;;  %v6416_v42 = vld [vmem:[%s6652_s30 + $0xb0] ss:$36 sps:$4 sm:$0xff]  }
 0x1b1   : > { %3551 = vmatprep.mubr.bf16.mxu0 %v6345_v43  ;;  %v6414_v43 = vld [vmem:[%s6652_s30 + $0x4e4] ss:$36 sps:$4 sm:$0xff]  }
 0x1b7   : > { %3102 = vmatmul.mubr.bf16.gmra.mrb[84].mxu1 %v6347_v44  ;;  %v6418_v44 = vld [vmem:[%s6652_s30 + $0xf8] ss:$36 sps:$4 sm:$0xff]  }
 0x1b8   : > { %3552 = vmatmul.mubr.bf16.gmra.mrb[20].mxu0 %v6348_v45  ;;  %3109 = vmatprep.mubr.bf16.mxu1 %v6349_v46  ;;  %v6417_v45 = vld [vmem:[%s6652_s30 + $0x4e0] ss:$36 sps:$4 sm:$0xff]  }
 0x1b9   : > { %3559 = vmatprep.mubr.bf16.mxu0 %v6351_v47  ;;  %v6421_v46 = vld [vmem:[%s6652_s30 + $0x140] ss:$36 sps:$4 sm:$0xff]   ;;  %v6419_v47 = vld [vmem:[%s6652_s30 + $0x52c] ss:$36 sps:$4 sm:$0xff]  }
 0x1bf   : > { %3110 = vmatmul.mubr.bf16.gmra.mrb[88].mxu1 %v6353_v49  ;;  %v6423_v49 = vld [vmem:[%s6652_s30 + $0x188] ss:$36 sps:$4 sm:$0xff]  }
 0x1c0   : > { %3560 = vmatmul.mubr.bf16.gmra.mrb[24].mxu0 %v6354_v50  ;;  %3117 = vmatprep.mubr.bf16.mxu1 %v6355_v51  ;;  %v6422_v50 = vld [vmem:[%s6652_s30 + $0x528] ss:$36 sps:$4 sm:$0xff]   ;;  %v6426_v51 = vld [vmem:[%s6652_s30 + $0x1d0] ss:$36 sps:$4 sm:$0xff]  }
 0x1c1   : > { %3567 = vmatprep.mubr.bf16.mxu0 %v6357_v52  ;;  %v6424_v52 = vld [vmem:[%s6652_s30 + $0x574] ss:$36 sps:$4 sm:$0xff]  }
 0x1c7   : > { %3118 = vmatmul.mubr.bf16.gmra.mrb[92].mxu1 %v6359_v54 }
 0x1c8   : > { %3568 = vmatmul.mubr.bf16.gmra.mrb[28].mxu0 %v6360_v55  ;;  %3125 = vmatprep.mubr.bf16.mxu1 %v6361_v57  ;;  %v6428_v57 = vld [vmem:[%s6652_s30 + $0x218] ss:$36 sps:$4 sm:$0xff]  }
 0x1c9   : > { %3575 = vmatprep.mubr.bf16.mxu0 %v6363_v58 }
 0x1cf   : > { %3126 = vmatmul.mubr.bf16.gmra.mrb[96].mxu1 %v6365_v59  ;;  %v6427_v59 = vld [vmem:[%s6652_s30 + $0x570] ss:$36 sps:$4 sm:$0xff]  }
 0x1d0   : > { %3576 = vmatmul.mubr.bf16.gmra.mrb[32].mxu0 %v6366_v60  ;;  %3133 = vmatprep.mubr.bf16.mxu1 %v6367_v62  ;;  %v6431_v60 = vld [vmem:[%s6652_s30 + $0x260] ss:$36 sps:$4 sm:$0xff]  }
 0x1d1   : > { %3583 = vmatprep.mubr.bf16.mxu0 %v6369_v63  ;;  %v6429_v63 = vld [vmem:[%s6652_s30 + $0x5bc] ss:$36 sps:$4 sm:$0xff]  }
 0x1d7   : > { %3134 = vmatmul.mubr.bf16.gmra.mrb[100].mxu1 %v6371_v2 }
 0x1d8   : > { %3584 = vmatmul.mubr.bf16.gmra.mrb[36].mxu0 %v6372_v3  ;;  %3141 = vmatprep.mubr.bf16.mxu1 %v6373_v4  ;;  %v6433_v4 = vld [vmem:[%s6652_s30 + $0x2a8] ss:$36 sps:$4 sm:$0xff]  }
 0x1d9   : > { %3591 = vmatprep.mubr.bf16.mxu0 %v6375_v5 }
 0x1df   : > { %3142 = vmatmul.mubr.bf16.gmra.mrb[104].mxu1 %v6377_v7  ;;  %v6432_v7 = vld [vmem:[%s6652_s30 + $0x5b8] ss:$36 sps:$4 sm:$0xff]  }
 0x1e0   : > { %3592 = vmatmul.mubr.bf16.gmra.mrb[40].mxu0 %v6378_v8  ;;  %3149 = vmatprep.mubr.bf16.mxu1 %v6379_v10  ;;  %v6436_v8 = vld [vmem:[%s6652_s30 + $0x2f0] ss:$36 sps:$4 sm:$0xff]  }
 0x1e1   : > { %3599 = vmatprep.mubr.bf16.mxu0 %v6381_v11  ;;  %v6434_v11 = vld [vmem:[%s6652_s30 + $0x604] ss:$36 sps:$4 sm:$0xff]  }
 0x1e7   : > { %3150 = vmatmul.mubr.bf16.gmra.mrb[108].mxu1 %v6383_v12 }
 0x1e8   : > { %3600 = vmatmul.mubr.bf16.gmra.mrb[44].mxu0 %v6384_v14  ;;  %3157 = vmatprep.mubr.bf16.mxu1 %v6385_v16  ;;  %v6438_v16 = vld [vmem:[%s6652_s30 + $0x338] ss:$36 sps:$4 sm:$0xff]  }
 0x1e9   : > { %3607 = vmatprep.mubr.bf16.mxu0 %v6387_v17 }
 0x1ef   : > { %3158 = vmatmul.mubr.bf16.gmra.mrb[112].mxu1 %v6389_v19  ;;  %v6437_v19 = vld [vmem:[%s6652_s30 + $0x600] ss:$36 sps:$4 sm:$0xff]  }
 0x1f0   : > { %3608 = vmatmul.mubr.bf16.gmra.mrb[48].mxu0 %v6390_v20  ;;  %3165 = vmatprep.mubr.bf16.mxu1 %v6391_v21  ;;  %v6441_v20 = vld [vmem:[%s6652_s30 + $0x380] ss:$36 sps:$4 sm:$0xff]  }
 0x1f1   : > { %3615 = vmatprep.mubr.bf16.mxu0 %v6393_v22  ;;  %v6439_v22 = vld [vmem:[%s6652_s30 + $0x64c] ss:$36 sps:$4 sm:$0xff]  }
 0x1f7   : > { %3166 = vmatmul.mubr.bf16.gmra.mrb[116].mxu1 %v6395_v24 }
 0x1f8   : > { %3616 = vmatmul.mubr.bf16.gmra.mrb[52].mxu0 %v6396_v25  ;;  %3173 = vmatprep.mubr.bf16.mxu1 %v6397_v27  ;;  %v6443_v27 = vld [vmem:[%s6652_s30 + $0x3c8] ss:$36 sps:$4 sm:$0xff]  }
 0x1f9   : > { %3623 = vmatprep.mubr.bf16.mxu0 %v6399_v28 }
 0x1ff   : > { %3174 = vmatmul.mubr.bf16.gmra.mrb[120].mxu1 %v6401_v29  ;;  %v6442_v29 = vld [vmem:[%s6652_s30 + $0x648] ss:$36 sps:$4 sm:$0xff]  }
 0x200   : > { %3624 = vmatmul.mubr.bf16.gmra.mrb[56].mxu0 %v6402_v30  ;;  %3181 = vmatprep.mubr.bf16.mxu1 %v6403_v32  ;;  %v6446_v30 = vld [vmem:[%s6652_s30 + $0x410] ss:$36 sps:$4 sm:$0xff]  }
 0x201   : > { %3631 = vmatprep.mubr.bf16.mxu0 %v6405_v33  ;;  %v6444_v33 = vld [vmem:[%s6652_s30 + $0x694] ss:$36 sps:$4 sm:$0xff]  }
 0x207   : > { %3182 = vmatmul.mubr.bf16.gmra.mrb[124].mxu1 %v6407_v35 }
 0x208   : > { %3632 = vmatmul.mubr.bf16.gmra.mrb[60].mxu0 %v6408_v36  ;;  %5501 = vmatprep.mubr.msk.bf16.mxu1 %vm2508_vm2, %v6411_v1  ;;  %v6448_v1 = vld [vmem:[%s6652_s30 + $0x458] ss:$36 sps:$4 sm:$0xff]  }
 0x209   : > { %3639 = vmatprep.mubr.bf16.mxu0 %v6409_v37 }
 0x20f   : > { %5502 = vmatmul.mubr.msk.bf16.vlgmr.msra.gmra.mrb[128].mxu1 %vm2508_vm2, %v6413_v39  ;;  %v6447_v39 = vld [vmem:[%s6652_s30 + $0x690] ss:$36 sps:$4 sm:$0xff]  }
 0x210   : > { %3640 = vmatmul.mubr.bf16.gmra.mrb[64].mxu0 %v6412_v40  ;;  %5505 = vmatprep.mubr.msk.bf16.mxu1 %vm2508_vm2, %v6416_v42  ;;  %v6451_v40 = vld [vmem:[%s6652_s30 + $0x4a0] ss:$36 sps:$4 sm:$0xff]  }
 0x211   : > { %3647 = vmatprep.mubr.bf16.mxu0 %v6414_v43  ;;  %v6449_v43 = vld [vmem:[%s6652_s30 + $0x6dc] ss:$36 sps:$4 sm:$0xff]  }
 0x217   : > { %5506 = vmatmul.mubr.msk.bf16.gmra.mrb[132].mxu1 %vm2508_vm2, %v6418_v44 }
 0x218   : > { %3648 = vmatmul.mubr.bf16.gmra.mrb[68].mxu0 %v6417_v45  ;;  %5509 = vmatprep.mubr.msk.bf16.mxu1 %vm2508_vm2, %v6421_v46  ;;  %v6453_v46 = vld [vmem:[%s6652_s30 + $0x4e8] ss:$36 sps:$4 sm:$0xff]  }
 0x219   : > { %3655 = vmatprep.mubr.bf16.mxu0 %v6419_v47 }
 0x21f   : > { %5510 = vmatmul.mubr.msk.bf16.gmra.mrb[136].mxu1 %vm2508_vm2, %v6423_v49  ;;  %v6452_v49 = vld [vmem:[%s6652_s30 + $0x6d8] ss:$36 sps:$4 sm:$0xff]  }
 0x220   : > { %3656 = vmatmul.mubr.bf16.gmra.mrb[72].mxu0 %v6422_v50  ;;  %5513 = vmatprep.mubr.msk.bf16.mxu1 %vm2508_vm2, %v6426_v51  ;;  %v6456_v50 = vld [vmem:[%s6652_s30 + $0x530] ss:$36 sps:$4 sm:$0xff]  }
 0x221   : > { %3663 = vmatprep.mubr.bf16.mxu0 %v6424_v52  ;;  %v6454_v52 = vld [vmem:[%s6652_s30 + $0x724] ss:$36 sps:$4 sm:$0xff]  }
 0x222   : > { %v7184_v54 = vpop.f32.mrb[32].mxu1 }
 0x223   : > { %v3001_v55 = vpop.f32.mrb[33].mxu1 }
 0x224   : > { %v7187_v58 = vpop.f32.mrb[34].mxu1 }
 0x225   : > { %v3004_v62 = vpop.f32.mrb[35].mxu1 }
 0x226   : > { %v6457_v62 = vld [vmem:[%s6652_s30 + $0x720] ss:$36 sps:$4 sm:$0xff]  }
 0x227   : > { %5514 = vmatmul.mubr.msk.bf16.gmra.mrb[140].mxu1 %vm2508_vm2, %v6428_v57 }
 0x228   : > { %3664 = vmatmul.mubr.bf16.gmra.mrb[76].mxu0 %v6427_v59  ;;  %5517 = vmatprep.mubr.msk.bf16.mxu1 %vm2508_vm2, %v6431_v60  ;;  %v6458_v59 = vld [vmem:[%s6652_s30 + $0x578] ss:$36 sps:$4 sm:$0xff]  }
 0x229   : > { %3671 = vmatprep.mubr.bf16.mxu0 %v6429_v63  ;;  %v6461_v63 = vld [vmem:[%s6652_s30 + $0x5c0] ss:$36 sps:$4 sm:$0xff]  }
 0x22a   : > { %v7194_v2 = vpop.f32.mrb[36].mxu1 }
 0x22b   : > { %v3009_v3 = vpop.f32.mrb[37].mxu1 }
 0x22c   : > { %v7197_v5 = vpop.f32.mrb[38].mxu1 }
 0x22d   : > { %v3012_v10 = vpop.f32.mrb[39].mxu1 }
 0x22e   : > { %v6463_v10 = vld [vmem:[%s6652_s30 + $0x608] ss:$36 sps:$4 sm:$0xff]  }
 0x22f   : > { %5518 = vmatmul.mubr.msk.bf16.gmra.mrb[144].mxu1 %vm2508_vm2, %v6433_v4  ;;  %v6459_v4 = vld [vmem:[%s6652_s30 + $0x76c] ss:$36 sps:$4 sm:$0xff]  }
 0x230   : > { %3672 = vmatmul.mubr.bf16.gmra.mrb[80].mxu0 %v6432_v7  ;;  %5521 = vmatprep.mubr.msk.bf16.mxu1 %vm2508_vm2, %v6436_v8 }
 0x231   : > { %3679 = vmatprep.mubr.bf16.mxu0 %v6434_v11 }
 0x232   : > { %v7204_v12 = vpop.f32.mrb[40].mxu1 }
 0x233   : > { %v3017_v14 = vpop.f32.mrb[41].mxu1 }
 0x234   : > { %v7207_v17 = vpop.f32.mrb[42].mxu1  ;;  %v6462_v14 = vld [vmem:[%s6652_s30 + $0x768] ss:$36 sps:$4 sm:$0xff]  }
 0x235   : > { %v3020_v21 = vpop.f32.mrb[43].mxu1 }
 0x237   : > { %5522 = vmatmul.mubr.msk.bf16.gmra.mrb[148].mxu1 %vm2508_vm2, %v6438_v16  ;;  %v6466_v16 = vld [vmem:[%s6652_s30 + $0x650] ss:$36 sps:$4 sm:$0xff]  }
 0x238   : > { %3680 = vmatmul.mubr.bf16.gmra.mrb[84].mxu0 %v6437_v19  ;;  %5525 = vmatprep.mubr.msk.bf16.mxu1 %vm2508_vm2, %v6441_v20  ;;  %v6464_v20 = vld [vmem:[%s6652_s30 + $0x7b4] ss:$36 sps:$4 sm:$0xff]  }
 0x239   : > { %3687 = vmatprep.mubr.bf16.mxu0 %v6439_v22 }
 0x23a   : > { %v7214_v24 = vpop.f32.mrb[44].mxu1 }
 0x23b   : > { %v3025_v25 = vpop.f32.mrb[45].mxu1 }
 0x23c   : > { %v7217_v28 = vpop.f32.mrb[46].mxu1 }
 0x23d   : > { %v3028_v32 = vpop.f32.mrb[47].mxu1 }
 0x23f   : > { %5526 = vmatmul.mubr.msk.bf16.gmra.mrb[152].mxu1 %vm2508_vm2, %v6443_v27  ;;  %v6468_v27 = vld [vmem:[%s6652_s30 + $0x698] ss:$36 sps:$4 sm:$0xff]  }
 0x240   : > { %3688 = vmatmul.mubr.bf16.gmra.mrb[88].mxu0 %v6442_v29  ;;  %5529 = vmatprep.mubr.msk.bf16.mxu1 %vm2508_vm2, %v6446_v30 }
 0x241   : > { %3695 = vmatprep.mubr.bf16.mxu0 %v6444_v33  ;;  %v6467_v33 = vld [vmem:[%s6652_s30 + $0x7b0] ss:$36 sps:$4 sm:$0xff]  }
 0x242   : > { %v7224_v35 = vpop.f32.mrb[48].mxu1 }
 0x243   : > { %v3033_v36 = vpop.f32.mrb[49].mxu1 }
 0x244   : > { %v7227_v37 = vpop.f32.mrb[50].mxu1  ;;  %v6471_v36 = vld [vmem:[%s6652_s30 + $0x6e0] ss:$36 sps:$4 sm:$0xff]  }
 0x245   : > { %v3036_v42 = vpop.f32.mrb[51].mxu1 }
 0x247   : > { %5530 = vmatmul.mubr.msk.bf16.gmra.mrb[156].mxu1 %vm2508_vm2, %v6448_v1 }
 0x248   : > { %3696 = vmatmul.mubr.bf16.gmra.mrb[92].mxu0 %v6447_v39  ;;  %5533 = vmatprep.mubr.msk.bf16.mxu1 %vm2508_vm2, %v6451_v40  ;;  %v6469_v40 = vld [vmem:[%s6652_s30 + $0x7fc] ss:$36 sps:$4 sm:$0xff]  }
 0x249   : > { %3703 = vmatprep.mubr.bf16.mxu0 %v6449_v43 }
 0x24a   : > { %v7234_v44 = vpop.f32.mrb[52].mxu1 }
 0x24b   : > { %v3041_v45 = vpop.f32.mrb[53].mxu1 }
 0x24c   : > { %v7237_v47 = vpop.f32.mrb[54].mxu1 }
 0x24d   : > { %v3044_v51 = vpop.f32.mrb[55].mxu1 }
 0x24f   : > { %5534 = vmatmul.mubr.msk.bf16.gmra.mrb[160].mxu1 %vm2508_vm2, %v6453_v46 }
 0x250   : > { %3704 = vmatmul.mubr.bf16.gmra.mrb[96].mxu0 %v6452_v49  ;;  %5537 = vmatprep.mubr.msk.bf16.mxu1 %vm2508_vm2, %v6456_v50  ;;  %v6473_v49 = vld [vmem:[%s6652_s30 + $0x728] ss:$36 sps:$4 sm:$0xff]  }
 0x251   : > { %3711 = vmatprep.mubr.bf16.mxu0 %v6454_v52  ;;  %v6472_v52 = vld [vmem:[%s6652_s30 + $0x7f8] ss:$36 sps:$4 sm:$0xff]  }
 0x252   : > { %v7244_v55 = vpop.f32.mrb[56].mxu1 }
 0x253   : > { %v3049_v57 = vpop.f32.mrb[57].mxu1 }
 0x254   : > { %v7247_v60 = vpop.f32.mrb[58].mxu1  ;;  %v6476_v57 = vld [vmem:[%s6652_s30 + $0x770] ss:$36 sps:$4 sm:$0xff]  }
 0x255   : > { %v3052_v3 = vpop.f32.mrb[59].mxu1 }
 0x257   : > { %5538 = vmatmul.mubr.msk.bf16.gmra.mrb[164].mxu1 %vm2508_vm2, %v6458_v59 }
 0x258   : > { %3712 = vmatmul.mubr.bf16.gmra.mrb[100].mxu0 %v6457_v62  ;;  %5541 = vmatprep.mubr.msk.bf16.mxu1 %vm2508_vm2, %v6461_v63  ;;  %v6474_v63 = vld [vmem:[%s6652_s30 + $0x844] ss:$36 sps:$4 sm:$0xff]  }
 0x259   : > { %3719 = vmatprep.mubr.bf16.mxu0 %v6459_v4 }
 0x25a   : > { %v7254_v7 = vpop.f32.mrb[60].mxu1 }
 0x25b   : > { %v3057_v8 = vpop.f32.mrb[61].mxu1 }
 0x25c   : > { %v7257_v11 = vpop.f32.mrb[62].mxu1 }
 0x25d   : > { %v3060_v19 = vpop.f32.mrb[63].mxu1 }
 0x25f   : > { %5542 = vmatmul.mubr.msk.bf16.gmra.mrb[168].mxu1 %vm2508_vm2, %v6463_v10 }
 0x260   : > { %3720 = vmatmul.mubr.bf16.gmra.mrb[104].mxu0 %v6462_v14  ;;  %5545 = vmatprep.mubr.msk.bf16.mxu1 %vm2508_vm2, %v6466_v16  ;;  %v6478_v14 = vld [vmem:[%s6652_s30 + $0x7b8] ss:$36 sps:$4 sm:$0xff]  }
 0x261   : > { %3727 = vmatprep.mubr.bf16.mxu0 %v6464_v20  ;;  %v6477_v20 = vld [vmem:[%s6652_s30 + $0x840] ss:$36 sps:$4 sm:$0xff]  }
 0x262   : > { %v7264_v21 = vpop.f32.mrb[64].mxu1 }
 0x263   : > { %v3513_v22 = vpop.f32.mrb[0].mxu0  ;;  %v3065_v25 = vpop.f32.mrb[65].mxu1 }
 0x264   : > { %v7268_v29 = vadd.f32 %v3513_v22, %v7016_v53  ;;  %v3515_v30 = vpop.f32.mrb[1].mxu0  ;;  %v7270_v32 = vpop.f32.mrb[66].mxu1  ;;  %v6481_v22 = vld [vmem:[%s6652_s30 + $0x800] ss:$36 sps:$4 sm:$0xff]  }
 0x265   : > { %v3516_v1 = vpop.f32.mrb[2].mxu0  ;;  %v3068_v39 = vpop.f32.mrb[67].mxu1  ;;  %v6479_v30 = vld [vmem:[%s6652_s30 + $0x88c] ss:$36 sps:$4 sm:$0xff]  }
 0x266   : > { %v7276_v42 = vadd.f32 %v3516_v1, %v7019_v56  ;;  %v3518_v43 = vpop.f32.mrb[3].mxu0 }
 0x267   : > { %5546 = vmatmul.mubr.msk.bf16.gmra.mrb[172].mxu1 %vm2508_vm2, %v6468_v27 }
 0x268   : > { %3728 = vmatmul.mubr.bf16.gmra.mrb[108].mxu0 %v6467_v33  ;;  %5549 = vmatprep.mubr.msk.bf16.mxu1 %vm2508_vm2, %v6471_v36 }
 0x269   : > { %3735 = vmatprep.mubr.bf16.mxu0 %v6469_v40  ;;  %v6483_v40 = vld [vmem:[%s6652_s30 + $0x848] ss:$36 sps:$4 sm:$0xff]  }
 0x26a   : > { %v7280_v53 = vpop.f32.mrb[68].mxu1 }
 0x26b   : > { %v3521_v45 = vpop.f32.mrb[4].mxu0  ;;  %v3073_v46 = vpop.f32.mrb[69].mxu1 }
 0x26c   : > { %v7284_v50 = vadd.f32 %v3521_v45, %v7024_v61  ;;  %v3523_v51 = vpop.f32.mrb[5].mxu0  ;;  %v7286_v56 = vpop.f32.mrb[70].mxu1  ;;  %v6482_v46 = vld [vmem:[%s6652_s30 + $0x888] ss:$36 sps:$4 sm:$0xff]  }
 0x26d   : > { %v3524_v59 = vpop.f32.mrb[6].mxu0  ;;  %v3076_v62 = vpop.f32.mrb[71].mxu1 }
 0x26e   : > { %v7292_v3 = vadd.f32 %v3524_v59, %v7027_v0  ;;  %v3526_v4 = vpop.f32.mrb[7].mxu0 }
 0x26f   : > { %5550 = vmatmul.mubr.msk.bf16.gmra.mrb[176].mxu1 %vm2508_vm2, %v6473_v49  ;;  %v6486_v49 = vld [vmem:[%s6652_s30 + $0x890] ss:$36 sps:$4 sm:$0xff]  }
 0x270   : > { %3736 = vmatmul.mubr.bf16.gmra.mrb[112].mxu0 %v6472_v52  ;;  %5553 = vmatprep.mubr.msk.bf16.mxu1 %vm2508_vm2, %v6476_v57  ;;  %v6484_v57 = vld [vmem:[%s6652_s30 + $0x8d4] ss:$36 sps:$4 sm:$0xff]  }
 0x271   : > { %3743 = vmatprep.mubr.bf16.mxu0 %v6474_v63 }
 0x272   : > { %v7296_v61 = vpop.f32.mrb[72].mxu1 }
 0x273   : > { %v3529_v8 = vpop.f32.mrb[8].mxu0  ;;  %v3081_v10 = vpop.f32.mrb[73].mxu1 }
 0x274   : > { %v7300_v16 = vadd.f32 %v3529_v8, %v7032_v6  ;;  %v3531_v19 = vpop.f32.mrb[9].mxu0  ;;  %v7302_v0 = vpop.f32.mrb[74].mxu1  ;;  %v6488_v8 = vld [vmem:[%s6652_s30 + $0x8d8] ss:$36 sps:$4 sm:$0xff]  }
 0x275   : > { %v3532_v25 = vpop.f32.mrb[10].mxu0  ;;  %v3084_v27 = vpop.f32.mrb[75].mxu1 }
 0x276   : > { %v7308_v33 = vadd.f32 %v3532_v25, %v7035_v9  ;;  %v3534_v36 = vpop.f32.mrb[11].mxu0 }
 0x277   : > { %5554 = vmatmul.mubr.msk.bf16.gmra.mrb[180].mxu1 %vm2508_vm2, %v6478_v14 }
 0x278   : > { %3744 = vmatmul.mubr.bf16.gmra.mrb[116].mxu0 %v6477_v20  ;;  %5557 = vmatprep.mubr.msk.bf16.mxu1 %vm2508_vm2, %v6481_v22 }
 0x279   : > { %3751 = vmatprep.mubr.bf16.mxu0 %v6479_v30 }
 0x27a   : > { %v7312_v6 = vpop.f32.mrb[76].mxu1 }
 0x27b   : > { %v3537_v1 = vpop.f32.mrb[12].mxu0  ;;  %v3089_v39 = vpop.f32.mrb[77].mxu1 }
 0x27c   : > { %v7316_v43 = vadd.f32 %v3537_v1, %v7040_v15  ;;  %v3539_v45 = vpop.f32.mrb[13].mxu0  ;;  %v7318_v9 = vpop.f32.mrb[78].mxu1 }
 0x27d   : > { %v3540_v51 = vpop.f32.mrb[14].mxu0  ;;  %v3092_v52 = vpop.f32.mrb[79].mxu1 }
 0x27e   : > { %v7324_v59 = vadd.f32 %v3540_v51, %v7043_v18  ;;  %v3542_v62 = vpop.f32.mrb[15].mxu0  ;;  %v6487_v18 = vld [vmem:[%s6652_s30 + $0x8d0] ss:$36 sps:$4 sm:$0xff]  }
 0x27f   : > { %5558 = vmatmul.mubr.msk.bf16.gmra.mrb[184].mxu1 %vm2508_vm2, %v6483_v40 }
 0x280   : > { %3752 = vmatmul.mubr.bf16.gmra.mrb[120].mxu0 %v6482_v46  ;;  %5561 = vmatprep.mubr.msk.bf16.mxu1 %vm2508_vm2, %v6486_v49 }
 0x281   : > { %3759 = vmatprep.mubr.bf16.mxu0 %v6484_v57 }
 0x282   : > { %v7328_v15 = vpop.f32.mrb[80].mxu1 }
 0x283   : > { %v3545_v63 = vpop.f32.mrb[16].mxu0  ;;  %v3097_v4 = vpop.f32.mrb[81].mxu1 }
 0x284   : > { %v7332_v10 = vadd.f32 %v3545_v63, %v7048_v23  ;;  %v3547_v14 = vpop.f32.mrb[17].mxu0  ;;  %v7334_v19 = vpop.f32.mrb[82].mxu1 }
 0x285   : > { %v3548_v20 = vpop.f32.mrb[18].mxu0  ;;  %v3100_v22 = vpop.f32.mrb[83].mxu1 }
 0x286   : > { %v7338_v25 = vadd.f32 %v3548_v20, %v7051_v26  ;;  %v3550_v27 = vpop.f32.mrb[19].mxu0 }
 0x287   : > { %5562 = vmatmul.mubr.msk.bf16.gmra.mrb[188].mxu1 %vm2508_vm2, %v6488_v8 }
 0x288   : > { %3760 = vmatmul.mubr.bf16.gmra.mrb[124].mxu0 %v6487_v18 }
 0x28a   : > { %v7341_v30 = vpop.f32.mrb[84].mxu1 }
 0x28b   : > { %v3553_v36 = vpop.f32.mrb[20].mxu0  ;;  %v3105_v1 = vpop.f32.mrb[85].mxu1 }
 0x28c   : > { %v7344_v23 = vadd.f32 %v3553_v36, %v7056_v31  ;;  %v3555_v39 = vpop.f32.mrb[21].mxu0  ;;  %v7346_v40 = vpop.f32.mrb[86].mxu1 }
 0x28d   : > { %v3556_v45 = vpop.f32.mrb[22].mxu0  ;;  %v3108_v46 = vpop.f32.mrb[87].mxu1 }
 0x28e   : > { %v7349_v49 = vadd.f32 %v3556_v45, %v7059_v34  ;;  %v3558_v26 = vpop.f32.mrb[23].mxu0 }
 0x292   : > { %v7351_v51 = vpop.f32.mrb[88].mxu1 }
 0x293   : > { %v3561_v52 = vpop.f32.mrb[24].mxu0  ;;  %v3113_v57 = vpop.f32.mrb[89].mxu1 }
 0x294   : > { %v7354_v62 = vadd.f32 %v3561_v52, %v7065_v38  ;;  %v3563_v63 = vpop.f32.mrb[25].mxu0  ;;  %v7356_v4 = vpop.f32.mrb[90].mxu1 }
 0x295   : > { %v3564_v31 = vpop.f32.mrb[26].mxu0  ;;  %v3116_v8 = vpop.f32.mrb[91].mxu1 }
 0x296   : > { %v7359_v14 = vadd.f32 %v3564_v31, %v7068_v41  ;;  %v3566_v18 = vpop.f32.mrb[27].mxu0 }
 0x29a   : > { %v7361_v20 = vpop.f32.mrb[92].mxu1 }
 0x29b   : > { %v3569_v34 = vpop.f32.mrb[28].mxu0  ;;  %v3121_v22 = vpop.f32.mrb[93].mxu1 }
 0x29c   : > { %v7364_v27 = vadd.f32 %v3569_v34, %v7073_v13  ;;  %v3571_v36 = vpop.f32.mrb[29].mxu0  ;;  %v7366_v1 = vpop.f32.mrb[94].mxu1 }
 0x29d   : > { %v3572_v38 = vpop.f32.mrb[30].mxu0  ;;  %v3124_v39 = vpop.f32.mrb[95].mxu1 }
 0x29e   : > { %v7369_v45 = vadd.f32 %v3572_v38, %v7076_v48  ;;  %v3574_v46 = vpop.f32.mrb[31].mxu0 }
 0x2a2   : > { %v7371_v26 = vpop.f32.mrb[96].mxu1 }
 0x2a3   : > { %8010 = vst [vmem:[#allocation2_spill] sm:$0xff] %v7371_v26  ;;  %v3577_v41 = vpop.f32.mrb[32].mxu0  ;;  %v3129_v52 = vpop.f32.mrb[97].mxu1 }
 0x2a4   : > { %v7374_v57 = vadd.f32 %v3577_v41, %v7184_v54  ;;  %v3579_v63 = vpop.f32.mrb[33].mxu0  ;;  %v7376_v31 = vpop.f32.mrb[98].mxu1 }
 0x2a5   : > { %8011 = vst [vmem:[#allocation3_spill] sm:$0xff] %v7376_v31  ;;  %v3580_v13 = vpop.f32.mrb[34].mxu0  ;;  %v3132_v8 = vpop.f32.mrb[99].mxu1 }
 0x2a6   : > { %v7379_v18 = vadd.f32 %v3580_v13, %v7187_v58  ;;  %v3582_v34 = vpop.f32.mrb[35].mxu0 }
 0x2aa   : > { %v7381_v22 = vpop.f32.mrb[100].mxu1 }
 0x2ab   : > { %8012 = vst [vmem:[#allocation4_spill] sm:$0xff] %v7381_v22  ;;  %v3585_v48 = vpop.f32.mrb[36].mxu0  ;;  %v3137_v36 = vpop.f32.mrb[101].mxu1 }
 0x2ac   : > { %v7384_v38 = vadd.f32 %v3585_v48, %v7194_v2  ;;  %v3587_v39 = vpop.f32.mrb[37].mxu0  ;;  %v7386_v46 = vpop.f32.mrb[102].mxu1 }
 0x2ad   : > { %8013 = vst [vmem:[#allocation5_spill] sm:$0xff] %v7386_v46  ;;  %v3588_v54 = vpop.f32.mrb[38].mxu0  ;;  %v3140_v41 = vpop.f32.mrb[103].mxu1 }
 0x2ae   : > { %v7389_v52 = vadd.f32 %v3588_v54, %v7197_v5  ;;  %v3590_v63 = vpop.f32.mrb[39].mxu0 }
 0x2b2   : > { %v7391_v8 = vpop.f32.mrb[104].mxu1 }
 0x2b3   : > { %8014 = vst [vmem:[#allocation6_spill] sm:$0xff] %v7391_v8  ;;  %v3593_v58 = vpop.f32.mrb[40].mxu0  ;;  %v3145_v13 = vpop.f32.mrb[105].mxu1 }
 0x2b4   : > { %v7394_v34 = vadd.f32 %v3593_v58, %v7204_v12  ;;  %v3595_v36 = vpop.f32.mrb[41].mxu0  ;;  %v7396_v22 = vpop.f32.mrb[106].mxu1 }
 0x2b5   : > { %8015 = vst [vmem:[#allocation7_spill] sm:$0xff] %v7396_v22  ;;  %v3596_v2 = vpop.f32.mrb[42].mxu0  ;;  %v3148_v48 = vpop.f32.mrb[107].mxu1 }
 0x2b6   : > { %v7399_v39 = vadd.f32 %v3596_v2, %v7207_v17  ;;  %v3598_v41 = vpop.f32.mrb[43].mxu0 }
 0x2ba   : > { %v7401_v46 = vpop.f32.mrb[108].mxu1 }
 0x2bb   : > { %8016 = vst [vmem:[#allocation8_spill] sm:$0xff] %v7401_v46  ;;  %v3601_v5 = vpop.f32.mrb[44].mxu0  ;;  %v3153_v54 = vpop.f32.mrb[109].mxu1 }
 0x2bc   : > { %v7404_v63 = vadd.f32 %v3601_v5, %v7214_v24  ;;  %v3603_v13 = vpop.f32.mrb[45].mxu0  ;;  %v7406_v8 = vpop.f32.mrb[110].mxu1 }
 0x2bd   : > { %8017 = vst [vmem:[#allocation9_spill] sm:$0xff] %v7406_v8  ;;  %v3604_v12 = vpop.f32.mrb[46].mxu0  ;;  %v3156_v58 = vpop.f32.mrb[111].mxu1 }
 0x2be   : > { %v7409_v36 = vadd.f32 %v3604_v12, %v7217_v28  ;;  %v3606_v48 = vpop.f32.mrb[47].mxu0 }
 0x2c2   : > { %v7411_v22 = vpop.f32.mrb[112].mxu1 }
 0x2c3   : > { %8018 = vst [vmem:[#allocation10_spill] sm:$0xff] %v7411_v22  ;;  %v3609_v17 = vpop.f32.mrb[48].mxu0  ;;  %v3161_v2 = vpop.f32.mrb[113].mxu1 }
 0x2c4   : > { %v7414_v41 = vadd.f32 %v3609_v17, %v7224_v35  ;;  %v3611_v54 = vpop.f32.mrb[49].mxu0  ;;  %v7416_v46 = vpop.f32.mrb[114].mxu1 }
 0x2c5   : > { %8019 = vst [vmem:[#allocation11_spill] sm:$0xff] %v7416_v46  ;;  %v3612_v24 = vpop.f32.mrb[50].mxu0  ;;  %v3164_v5 = vpop.f32.mrb[115].mxu1 }
 0x2c6   : > { %v7419_v13 = vadd.f32 %v3612_v24, %v7227_v37  ;;  %v3614_v58 = vpop.f32.mrb[51].mxu0 }
 0x2ca   : > { %v7421_v8 = vpop.f32.mrb[116].mxu1 }
 0x2cb   : > { %8020 = vst [vmem:[#allocation12_spill] sm:$0xff] %v7421_v8  ;;  %v3617_v28 = vpop.f32.mrb[52].mxu0  ;;  %v3169_v12 = vpop.f32.mrb[117].mxu1 }
 0x2cc   : > { %v7424_v48 = vadd.f32 %v3617_v28, %v7234_v44  ;;  %v3619_v2 = vpop.f32.mrb[53].mxu0  ;;  %v7426_v22 = vpop.f32.mrb[118].mxu1 }
 0x2cd   : > { %8021 = vst [vmem:[#allocation13_spill] sm:$0xff] %v7426_v22  ;;  %v3620_v35 = vpop.f32.mrb[54].mxu0  ;;  %v3172_v17 = vpop.f32.mrb[119].mxu1  ;;  %v4058_v2 = vlaneseq }
 0x2ce   : > { %v7429_v54 = vadd.f32 %v3620_v35, %v7237_v47  ;;  %v3622_v5 = vpop.f32.mrb[55].mxu0 }
 0x2cf   : > { %v4059_v47 = vshrl.u32 %v4058_v2, 7 }
 0x2d1   : > { %v4060_v31 = vsub.s32 0, %v4059_v47  ;;  %v4128_v2 = vsub.s32 1, %v4059_v47 }
 0x2d2   : > { %v7431_v46 = vpop.f32.mrb[120].mxu1 }
 0x2d3   : > { %8022 = vst [vmem:[#allocation14_spill] sm:$0xff] %v7431_v46  ;;  %v3625_v37 = vpop.f32.mrb[56].mxu0  ;;  %v3177_v24 = vpop.f32.mrb[121].mxu1 }
 0x2d4   : > { %v7434_v58 = vadd.f32 %v3625_v37, %v7244_v55  ;;  %v3627_v12 = vpop.f32.mrb[57].mxu0  ;;  %v7436_v8 = vpop.f32.mrb[122].mxu1 }
 0x2d5   : > { %8023 = vst [vmem:[#allocation15_spill] sm:$0xff] %v7436_v8  ;;  %v3628_v44 = vpop.f32.mrb[58].mxu0  ;;  %v3180_v28 = vpop.f32.mrb[123].mxu1 }
 0x2d6   : > { %v7439_v22 = vadd.f32 %v3628_v44, %v7247_v60  ;;  %v3630_v17 = vpop.f32.mrb[59].mxu0  ;;  %v4057_v44 = vld [vmem:[%s8008_s2] sm:$0x3] }
 0x2d7   : > { %v7454_v17 = vrot.slane %v4057_v44, %v4060_v31 }
 0x2d8   : > { %8024 = vst [vmem:[#allocation16_spill] sm:$0xff] %v7439_v22 }
 0x2da   : > { %v7441_v35 = vpop.f32.mrb[124].mxu1 }
 0x2db   : > { %8025 = vst [vmem:[#allocation17_spill] sm:$0xff] %v7441_v35  ;;  %v3633_v5 = vpop.f32.mrb[60].mxu0  ;;  %v3185_v46 = vpop.f32.mrb[125].mxu1 }
 0x2dc   : > { %v7444_v24 = vadd.f32 %v3633_v5, %v7254_v7  ;;  %v3635_v55 = vpop.f32.mrb[61].mxu0  ;;  %v7446_v37 = vpop.f32.mrb[126].mxu1 }
 0x2dd   : > { %8026 = vst [vmem:[#allocation18_spill] sm:$0xff] %v7446_v37  ;;  %v3636_v12 = vpop.f32.mrb[62].mxu0  ;;  %v3188_v8 = vpop.f32.mrb[127].mxu1  ;;  %v7457_v55 = vrot.slane %v4057_v44, %v4128_v2 }
 0x2de   : > { %v7449_v28 = vadd.f32 %v3636_v12, %v7257_v11  ;;  %v3638_v60 = vpop.f32.mrb[63].mxu0 }
 0x2e2   : > { %v5503_v46 = vpop.f32.mrb[128].mxu1 }
 0x2e3   : > { %v3641_v7 = vpop.f32.mrb[64].mxu0  ;;  %v3811_v5 = vadd.f32 %v7284_v50, %v5503_v46  ;;  %v3802_v37 = vpop.f32.mrb[129].mxu1 }
 0x2e4   : > { %v7460_v8 = vadd.f32 %v3641_v7, %v7264_v21  ;;  %v3643_v11 = vpop.f32.mrb[65].mxu0  ;;  %v3803_v12 = vadd.f32 %v7268_v29, %v3802_v37  ;;  %v5504_v60 = vpop.f32.mrb[130].mxu1 }
 0x2e5   : > { %v4064_v35 = vmul.f32 %v7454_v17, %v3811_v5  ;;  %v3644_v26 = vpop.f32.mrb[66].mxu0  ;;  %v3814_v31 = vadd.f32 %v7292_v3, %v5504_v60  ;;  %v3805_v47 = vpop.f32.mrb[131].mxu1 }
 0x2e6   : > { %v4062_v22 = vmul.f32 %v7454_v17, %v3803_v12  ;;  %v7467_v50 = vadd.f32 %v3644_v26, %v7270_v32  ;;  %v3646_v44 = vpop.f32.mrb[67].mxu0  ;;  %v3806_v2 = vadd.f32 %v7276_v42, %v3805_v47 }
 0x2e7   : > { %v4132_v21 = vadd.f32 %v7457_v55, %v4064_v35  ;;  %v4065_v46 = vmul.f32 %v7454_v17, %v3814_v31 }
 0x2e8   : > { %8027 = vst [vmem:[#allocation19_spill] sm:$0xff] %v7467_v50  ;;  %v4130_v29 = vadd.f32 %v7457_v55, %v4062_v22  ;;  %v4063_v37 = vmul.f32 %v7454_v17, %v3806_v2 }
 0x2e9   : > { %v4196_v7 = vmax.f32 %v4132_v21, 0.0  ;;  %v4133_v3 = vadd.f32 %v7457_v55, %v4065_v46 }
 0x2ea   : > { %v4194_v5 = vmax.f32 %v4130_v29, 0.0  ;;  %v4131_v11 = vadd.f32 %v7457_v55, %v4063_v37  ;;  %v5507_v12 = vpop.f32.mrb[132].mxu1 }
 0x2eb   : > { %v5920_v32 = vround.rtne.f32 %v4196_v7  ;;  %v4197_v26 = vmax.f32 %v4133_v3, 0.0  ;;  %v3649_v60 = vpop.f32.mrb[68].mxu0  ;;  %v3827_v42 = vadd.f32 %v7316_v43, %v5507_v12  ;;  %v3818_v35 = vpop.f32.mrb[133].mxu1 }
 0x2ec   : > { %v5918_v47 = vround.rtne.f32 %v4194_v5  ;;  %v4195_v31 = vmax.f32 %v4131_v11, 0.0  ;;  %v7478_v22 = vadd.f32 %v3649_v60, %v7280_v53  ;;  %v3651_v44 = vpop.f32.mrb[69].mxu0  ;;  %v3819_v2 = vadd.f32 %v7300_v16, %v3818_v35  ;;  %v5508_v21 = vpop.f32.mrb[134].mxu1 }
 0x2ed   : > { %v4324_v46 = vmax.f32 %v5920_v32, 0.0  ;;  %v5921_v29 = vround.rtne.f32 %v4197_v26  ;;  %v4068_v37 = vmul.f32 %v7454_v17, %v3827_v42  ;;  %v3652_v7 = vpop.f32.mrb[70].mxu0  ;;  %v3830_v3 = vadd.f32 %v7324_v59, %v5508_v21  ;;  %v3821_v50 = vpop.f32.mrb[135].mxu1 }
 0x2ee   : > { %v4322_v43 = vmax.f32 %v5918_v47, 0.0  ;;  %v5919_v12 = vround.rtne.f32 %v4195_v31  ;;  %v4066_v5 = vmul.f32 %v7454_v17, %v3819_v2  ;;  %v7485_v11 = vadd.f32 %v3652_v7, %v7286_v56  ;;  %v3654_v53 = vpop.f32.mrb[71].mxu0 }
 0x2ef   : > { %v4388_v60 = vmin.f32 %v4324_v46, 15.0  ;;  %v4325_v16 = vmax.f32 %v5921_v29, 0.0  ;;  %v4136_v32 = vadd.f32 %v7457_v55, %v4068_v37  ;;  %v4069_v26 = vmul.f32 %v7454_v17, %v3830_v3 }
 0x2f0   : > { %v4386_v42 = vmin.f32 %v4322_v43, 15.0  ;;  %v4323_v35 = vmax.f32 %v5919_v12, 0.0  ;;  %v4134_v59 = vadd.f32 %v7457_v55, %v4066_v5  ;;  %v3822_v47 = vadd.f32 %v7308_v33, %v3821_v50 }
 0x2f1   : > { %v4452_v31 = vmul.f32 0.4, %v4388_v60  ;;  %v4389_v44 = vmin.f32 %v4325_v16, 15.0  ;;  %v4200_v2 = vmax.f32 %v4136_v32, 0.0  ;;  %v4137_v56 = vadd.f32 %v7457_v55, %v4069_v26 }
 0x2f2   : > { %v4450_v21 = vmul.f32 0.4, %v4386_v42  ;;  %v4387_v46 = vmin.f32 %v4323_v35, 15.0  ;;  %v4198_v29 = vmax.f32 %v4134_v59, 0.0  ;;  %v4067_v37 = vmul.f32 %v7454_v17, %v3822_v47  ;;  %v5511_v7 = vpop.f32.mrb[136].mxu1 }
 0x2f3   : > { %v5404_v3 = vpack.c.bf16 %v4452_v31, %v4452_v31  ;;  %v4453_v43 = vmul.f32 0.4, %v4389_v44  ;;  %v5924_v33 = vround.rtne.f32 %v4200_v2  ;;  %v4201_v50 = vmax.f32 %v4137_v56, 0.0  ;;  %v3657_v12 = vpop.f32.mrb[72].mxu0  ;;  %v3834_v5 = vpop.f32.mrb[137].mxu1 }
 0x2f4   : > { %v5402_v53 = vpack.c.bf16 %v4450_v21, %v4450_v21  ;;  %v4451_v60 = vmul.f32 0.4, %v4387_v46  ;;  %v5922_v16 = vround.rtne.f32 %v4198_v29  ;;  %v4135_v32 = vadd.f32 %v7457_v55, %v4067_v37  ;;  %v3659_v26 = vpop.f32.mrb[73].mxu0  ;;  %v5512_v42 = vpop.f32.mrb[138].mxu1 }
 0x2f5   : > { %4773 = vst.msk [vmem:[%s7496_s9 + $0x8] sm:$0xf] %vm4770_vm3, %v5404_v3  ;;  %v5405_v35 = vpack.c.bf16 %v4453_v43, %v4453_v43  ;;  %v4328_v59 = vmax.f32 %v5924_v33, 0.0  ;;  %v5925_v47 = vround.rtne.f32 %v4201_v50  ;;  %v7503_v31 = vadd.f32 %v3657_v12, %v7296_v61  ;;  %v3660_v44 = vpop.f32.mrb[74].mxu0  ;;  %v3837_v2 = vpop.f32.mrb[139].mxu1 }
 0x2f6   : > { %4771 = vst.msk [vmem:[%s7496_s9] sm:$0xf] %vm4770_vm3, %v5402_v53  ;;  %v5403_v56 = vpack.c.bf16 %v4451_v60, %v4451_v60  ;;  %v4326_v21 = vmax.f32 %v5922_v16, 0.0  ;;  %v4199_v46 = vmax.f32 %v4135_v32, 0.0  ;;  %v3843_v29 = vadd.f32 %v7344_v23, %v5511_v7  ;;  %v3662_v37 = vpop.f32.mrb[75].mxu0 }
 0x2f7   : > { %4774 = vst.msk [vmem:[%s7496_s9 + $0xc] sm:$0xf] %vm4770_vm3, %v5405_v35  ;;  %v4392_v3 = vmin.f32 %v4328_v59, 15.0  ;;  %v4329_v43 = vmax.f32 %v5925_v47, 0.0  ;;  %v3835_v33 = vadd.f32 %v7332_v10, %v3834_v5  ;;  %v7512_v50 = vadd.f32 %v3660_v44, %v7302_v0 }
 0x2f8   : > { %4772 = vst.msk [vmem:[%s7496_s9 + $0x4] sm:$0xf] %vm4770_vm3, %v5403_v56  ;;  %v4390_v61 = vmin.f32 %v4326_v21, 15.0  ;;  %v5923_v12 = vround.rtne.f32 %v4199_v46  ;;  %v4072_v53 = vmul.f32 %v7454_v17, %v3843_v29  ;;  %v3846_v60 = vadd.f32 %v7349_v49, %v5512_v42 }
 0x2f9   : > { %v4456_v16 = vmul.f32 0.4, %v4392_v3  ;;  %v4393_v23 = vmin.f32 %v4329_v43, 15.0  ;;  %v4070_v7 = vmul.f32 %v7454_v17, %v3835_v33  ;;  %v3838_v32 = vadd.f32 %v7338_v25, %v3837_v2 }
 0x2fa   : > { %v4454_v26 = vmul.f32 0.4, %v4390_v61  ;;  %v4327_v35 = vmax.f32 %v5923_v12, 0.0  ;;  %v4140_v0 = vadd.f32 %v7457_v55, %v4072_v53  ;;  %v4073_v10 = vmul.f32 %v7454_v17, %v3846_v60  ;;  %v5515_v5 = vpop.f32.mrb[140].mxu1 }
 0x2fb   : > { %v5408_v59 = vpack.c.bf16 %v4456_v16, %v4456_v16  ;;  %v4457_v47 = vmul.f32 0.4, %v4393_v23  ;;  %v4138_v44 = vadd.f32 %v7457_v55, %v4070_v7  ;;  %v4071_v49 = vmul.f32 %v7454_v17, %v3838_v32  ;;  %v3665_v42 = vpop.f32.mrb[76].mxu0  ;;  %v3850_v56 = vpop.f32.mrb[141].mxu1 }
 0x2fc   : > { %v5406_v21 = vpack.c.bf16 %v4454_v26, %v4454_v26  ;;  %v4391_v46 = vmin.f32 %v4327_v35, 15.0  ;;  %v4204_v25 = vmax.f32 %v4140_v0, 0.0  ;;  %v4141_v2 = vadd.f32 %v7457_v55, %v4073_v10  ;;  %v3667_v29 = vpop.f32.mrb[77].mxu0  ;;  %v5516_v37 = vpop.f32.mrb[142].mxu1 }
 0x2fd   : > { %4777 = vst.msk [vmem:[%s7496_s9 + $0x18] sm:$0xf] %vm4770_vm3, %v5408_v59  ;;  %v5409_v3 = vpack.c.bf16 %v4457_v47, %v4457_v47  ;;  %v4202_v43 = vmax.f32 %v4138_v44, 0.0  ;;  %v4139_v33 = vadd.f32 %v7457_v55, %v4071_v49  ;;  %v7529_v61 = vadd.f32 %v3665_v42, %v7312_v6  ;;  %v3668_v12 = vpop.f32.mrb[78].mxu0  ;;  %v3853_v53 = vpop.f32.mrb[143].mxu1 }
 0x2fe   : > { %4775 = vst.msk [vmem:[%s7496_s9 + $0x10] sm:$0xf] %vm4770_vm3, %v5406_v21  ;;  %v4455_v60 = vmul.f32 0.4, %v4391_v46  ;;  %v5928_v16 = vround.rtne.f32 %v4204_v25  ;;  %v4205_v23 = vmax.f32 %v4141_v2, 0.0  ;;  %v3859_v7 = vadd.f32 %v7364_v27, %v5515_v5  ;;  %v3670_v32 = vpop.f32.mrb[79].mxu0 }
 0x2ff   : > { %4778 = vst.msk [vmem:[%s7496_s9 + $0x1c] sm:$0xf] %vm4770_vm3, %v5409_v3  ;;  %v5926_v26 = vround.rtne.f32 %v4202_v43  ;;  %v4203_v35 = vmax.f32 %v4139_v33, 0.0  ;;  %v3851_v0 = vadd.f32 %v7354_v62, %v3850_v56  ;;  %v7538_v6 = vadd.f32 %v3668_v12, %v7318_v9 }
 0x300   : > { %v5407_v10 = vpack.c.bf16 %v4455_v60, %v4455_v60  ;;  %v4332_v59 = vmax.f32 %v5928_v16, 0.0  ;;  %v5929_v47 = vround.rtne.f32 %v4205_v23  ;;  %v4076_v44 = vmul.f32 %v7454_v17, %v3859_v7 }
 0x301   : > { %v4330_v49 = vmax.f32 %v5926_v26, 0.0  ;;  %v5927_v42 = vround.rtne.f32 %v4203_v35  ;;  %v4074_v21 = vmul.f32 %v7454_v17, %v3851_v0  ;;  %v3862_v27 = vadd.f32 %v7369_v45, %v5516_v37 }
 0x302   : > { %4776 = vst.msk [vmem:[%s7496_s9 + $0x14] sm:$0xf] %vm4770_vm3, %v5407_v10  ;;  %v4396_v5 = vmin.f32 %v4332_v59, 15.0  ;;  %v4333_v46 = vmax.f32 %v5929_v47, 0.0  ;;  %v4144_v62 = vadd.f32 %v7457_v55, %v4076_v44  ;;  %v3854_v9 = vadd.f32 %v7359_v14, %v3853_v53  ;;  %v5519_v56 = vpop.f32.mrb[144].mxu1 }
 0x303   : > { %v4394_v25 = vmin.f32 %v4330_v49, 15.0  ;;  %v4331_v2 = vmax.f32 %v5927_v42, 0.0  ;;  %v4142_v29 = vadd.f32 %v7457_v55, %v4074_v21  ;;  %v4077_v3 = vmul.f32 %v7454_v17, %v3862_v27  ;;  %v3673_v43 = vpop.f32.mrb[80].mxu0  ;;  %v3866_v33 = vpop.f32.mrb[145].mxu1 }
 0x304   : > { %v4460_v12 = vmul.f32 0.4, %v4396_v5  ;;  %v4397_v60 = vmin.f32 %v4333_v46, 15.0  ;;  %v4208_v45 = vmax.f32 %v4144_v62, 0.0  ;;  %v4075_v37 = vmul.f32 %v7454_v17, %v3854_v9  ;;  %v3675_v16 = vpop.f32.mrb[81].mxu0  ;;  %v5520_v23 = vpop.f32.mrb[146].mxu1 }
 0x305   : > { %v4458_v7 = vmul.f32 0.4, %v4394_v25  ;;  %v4395_v32 = vmin.f32 %v4331_v2, 15.0  ;;  %v4206_v14 = vmax.f32 %v4142_v29, 0.0  ;;  %v4145_v53 = vadd.f32 %v7457_v55, %v4077_v3  ;;  %v3676_v26 = vpop.f32.mrb[82].mxu0  ;;  %v3869_v35 = vpop.f32.mrb[147].mxu1 }
 0x306   : > { %v5412_v0 = vpack.c.bf16 %v4460_v12, %v4460_v12  ;;  %v4461_v10 = vmul.f32 0.4, %v4397_v60  ;;  %v5932_v59 = vround.rtne.f32 %v4208_v45  ;;  %v4143_v47 = vadd.f32 %v7457_v55, %v4075_v37  ;;  %v3678_v44 = vpop.f32.mrb[83].mxu0 }
 0x307   : > { %v5410_v49 = vpack.c.bf16 %v4458_v7, %v4458_v7  ;;  %v4459_v42 = vmul.f32 0.4, %v4395_v32  ;;  %v5930_v21 = vround.rtne.f32 %v4206_v14  ;;  %v4209_v27 = vmax.f32 %v4145_v53, 0.0 }
 0x308   : > { %4781 = vst.msk [vmem:[%s7496_s9 + $0x28] sm:$0xf] %vm4770_vm3, %v5412_v0  ;;  %v5413_v5 = vpack.c.bf16 %v4461_v10, %v4461_v10  ;;  %v4336_v46 = vmax.f32 %v5932_v59, 0.0  ;;  %v4207_v62 = vmax.f32 %v4143_v47, 0.0  ;;  %v7555_v9 = vadd.f32 %v3673_v43, %v7328_v15 }
 0x309   : > { %4779 = vst.msk [vmem:[%s7496_s9 + $0x20] sm:$0xf] %vm4770_vm3, %v5410_v49  ;;  %v5411_v25 = vpack.c.bf16 %v4459_v42, %v4459_v42  ;;  %v4334_v2 = vmax.f32 %v5930_v21, 0.0  ;;  %v5933_v29 = vround.rtne.f32 %v4209_v27  ;;  %v3875_v3 = vadd.f32 %v7384_v38, %v5519_v56 }
 0x30a   : > { %4782 = vst.msk [vmem:[%s7496_s9 + $0x2c] sm:$0xf] %vm4770_vm3, %v5413_v5  ;;  %v4400_v12 = vmin.f32 %v4336_v46, 15.0  ;;  %v5931_v60 = vround.rtne.f32 %v4207_v62  ;;  %v3867_v45 = vadd.f32 %v7374_v57, %v3866_v33  ;;  %v7564_v37 = vadd.f32 %v3676_v26, %v7334_v19  ;;  %v5523_v16 = vpop.f32.mrb[148].mxu1 }
 0x30b   : > { %4780 = vst.msk [vmem:[%s7496_s9 + $0x24] sm:$0xf] %vm4770_vm3, %v5411_v25  ;;  %v4398_v15 = vmin.f32 %v4334_v2, 15.0  ;;  %v4337_v43 = vmax.f32 %v5933_v29, 0.0  ;;  %v4080_v7 = vmul.f32 %v7454_v17, %v3875_v3  ;;  %v3878_v32 = vadd.f32 %v7389_v52, %v5520_v23  ;;  %v3681_v14 = vpop.f32.mrb[84].mxu0  ;;  %v3882_v38 = vpop.f32.mrb[149].mxu1 }
 0x30c   : > { %v4464_v56 = vmul.f32 0.4, %v4400_v12  ;;  %v4335_v53 = vmax.f32 %v5931_v60, 0.0  ;;  %v4078_v0 = vmul.f32 %v7454_v17, %v3867_v45  ;;  %v3870_v57 = vadd.f32 %v7379_v18, %v3869_v35  ;;  %v3683_v33 = vpop.f32.mrb[85].mxu0  ;;  %v5524_v19 = vpop.f32.mrb[150].mxu1 }
 0x30d   : > { %v4462_v26 = vmul.f32 0.4, %v4398_v15  ;;  %v4401_v10 = vmin.f32 %v4337_v43, 15.0  ;;  %v4148_v59 = vadd.f32 %v7457_v55, %v4080_v7  ;;  %v4081_v47 = vmul.f32 %v7454_v17, %v3878_v32  ;;  %v3684_v44 = vpop.f32.mrb[86].mxu0  ;;  %v3885_v52 = vpop.f32.mrb[151].mxu1 }
 0x30e   : > { %v5416_v23 = vpack.c.bf16 %v4464_v56, %v4464_v56  ;;  %v4399_v49 = vmin.f32 %v4335_v53, 15.0  ;;  %v4146_v42 = vadd.f32 %v7457_v55, %v4078_v0  ;;  %v4079_v21 = vmul.f32 %v7454_v17, %v3870_v57  ;;  %v3686_v27 = vpop.f32.mrb[87].mxu0 }
 0x30f   : > { %v5414_v18 = vpack.c.bf16 %v4462_v26, %v4462_v26  ;;  %v4465_v35 = vmul.f32 0.4, %v4401_v10  ;;  %v4212_v5 = vmax.f32 %v4148_v59, 0.0  ;;  %v4149_v46 = vadd.f32 %v7457_v55, %v4081_v47 }
 0x310   : > { %4785 = vst.msk [vmem:[%s7496_s9 + $0x38] sm:$0xf] %vm4770_vm3, %v5416_v23  ;;  %v4463_v62 = vmul.f32 0.4, %v4399_v49  ;;  %v4210_v25 = vmax.f32 %v4146_v42, 0.0  ;;  %v4147_v2 = vadd.f32 %v7457_v55, %v4079_v21  ;;  %v7581_v29 = vadd.f32 %v3681_v14, %v7341_v30 }
 0x311   : > { %4783 = vst.msk [vmem:[%s7496_s9 + $0x30] sm:$0xf] %vm4770_vm3, %v5414_v18  ;;  %v5417_v3 = vpack.c.bf16 %v4465_v35, %v4465_v35  ;;  %v5936_v12 = vround.rtne.f32 %v4212_v5  ;;  %v4213_v60 = vmax.f32 %v4149_v46, 0.0  ;;  %v3891_v45 = vadd.f32 %v7404_v63, %v5523_v16 }
 0x312   : > { %v5415_v15 = vpack.c.bf16 %v4463_v62, %v4463_v62  ;;  %v5934_v43 = vround.rtne.f32 %v4210_v25  ;;  %v4211_v7 = vmax.f32 %v4147_v2, 0.0  ;;  %v3883_v32 = vadd.f32 %v7394_v34, %v3882_v38  ;;  %v5527_v56 = vpop.f32.mrb[152].mxu1 }
 0x313   : > { %4786 = vst.msk [vmem:[%s7496_s9 + $0x3c] sm:$0xf] %vm4770_vm3, %v5417_v3  ;;  %v4340_v53 = vmax.f32 %v5936_v12, 0.0  ;;  %v5937_v0 = vround.rtne.f32 %v4213_v60  ;;  %v4084_v30 = vmul.f32 %v7454_v17, %v3891_v45  ;;  %v7591_v14 = vadd.f32 %v3684_v44, %v7346_v40  ;;  %v3689_v57 = vpop.f32.mrb[88].mxu0  ;;  %v3898_v33 = vpop.f32.mrb[153].mxu1 }
 0x314   : > { %4784 = vst.msk [vmem:[%s7496_s9 + $0x34] sm:$0xf] %vm4770_vm3, %v5415_v15  ;;  %v4338_v63 = vmax.f32 %v5934_v43, 0.0  ;;  %v5935_v16 = vround.rtne.f32 %v4211_v7  ;;  %v4082_v26 = vmul.f32 %v7454_v17, %v3883_v32  ;;  %v3894_v34 = vadd.f32 %v7409_v36, %v5524_v19  ;;  %v3691_v38 = vpop.f32.mrb[89].mxu0  ;;  %v5528_v10 = vpop.f32.mrb[154].mxu1 }
 0x315   : > { %v4404_v59 = vmin.f32 %v4340_v53, 15.0  ;;  %v4341_v47 = vmax.f32 %v5937_v0, 0.0  ;;  %v4152_v23 = vadd.f32 %v7457_v55, %v4084_v30  ;;  %v3886_v49 = vadd.f32 %v7399_v39, %v3885_v52  ;;  %v3692_v40 = vpop.f32.mrb[90].mxu0  ;;  %v3901_v44 = vpop.f32.mrb[155].mxu1 }
 0x316   : > { %v4402_v42 = vmin.f32 %v4338_v63, 15.0  ;;  %v4339_v21 = vmax.f32 %v5935_v16, 0.0  ;;  %v4150_v27 = vadd.f32 %v7457_v55, %v4082_v26  ;;  %v4085_v18 = vmul.f32 %v7454_v17, %v3894_v34  ;;  %v3694_v35 = vpop.f32.mrb[91].mxu0 }
 0x317   : > { %v4468_v5 = vmul.f32 0.4, %v4404_v59  ;;  %v4405_v46 = vmin.f32 %v4341_v47, 15.0  ;;  %v4216_v36 = vmax.f32 %v4152_v23, 0.0  ;;  %v4083_v19 = vmul.f32 %v7454_v17, %v3886_v49 }
 0x318   : > { %v4466_v62 = vmul.f32 0.4, %v4402_v42  ;;  %v4403_v25 = vmin.f32 %v4339_v21, 15.0  ;;  %v4214_v2 = vmax.f32 %v4150_v27, 0.0  ;;  %v4153_v39 = vadd.f32 %v7457_v55, %v4085_v18 }
 0x319   : > { %v5420_v52 = vpack.c.bf16 %v4468_v5, %v4468_v5  ;;  %v4469_v3 = vmul.f32 0.4, %v4405_v46  ;;  %v5940_v12 = vround.rtne.f32 %v4216_v36  ;;  %v4151_v60 = vadd.f32 %v7457_v55, %v4083_v19 }
 0x31a   : > { %v5418_v45 = vpack.c.bf16 %v4466_v62, %v4466_v62  ;;  %v4467_v15 = vmul.f32 0.4, %v4403_v25  ;;  %v5938_v43 = vround.rtne.f32 %v4214_v2  ;;  %v4217_v7 = vmax.f32 %v4153_v39, 0.0  ;;  %v5531_v32 = vpop.f32.mrb[156].mxu1 }
 0x31b   : > { %4789 = vst.msk [vmem:[%s7496_s9 + $0x48] sm:$0xf] %vm4770_vm3, %v5420_v52  ;;  %v5421_v53 = vpack.c.bf16 %v4469_v3, %v4469_v3  ;;  %v4344_v0 = vmax.f32 %v5940_v12, 0.0  ;;  %v4215_v30 = vmax.f32 %v4151_v60, 0.0  ;;  %v7607_v63 = vadd.f32 %v3689_v57, %v7351_v51  ;;  %v3697_v16 = vpop.f32.mrb[92].mxu0  ;;  %v3914_v26 = vpop.f32.mrb[157].mxu1 }
 0x31c   : > { %4787 = vst.msk [vmem:[%s7496_s9 + $0x40] sm:$0xf] %vm4770_vm3, %v5418_v45  ;;  %v5419_v34 = vpack.c.bf16 %v4467_v15, %v4467_v15  ;;  %v4342_v38 = vmax.f32 %v5938_v43, 0.0  ;;  %v5941_v59 = vround.rtne.f32 %v4217_v7  ;;  %v3907_v47 = vadd.f32 %v7424_v48, %v5527_v56  ;;  %v3699_v23 = vpop.f32.mrb[93].mxu0  ;;  %v5532_v49 = vpop.f32.mrb[158].mxu1 }
 0x31d   : > { %4790 = vst.msk [vmem:[%s7496_s9 + $0x4c] sm:$0xf] %vm4770_vm3, %v5421_v53  ;;  %v4408_v42 = vmin.f32 %v4344_v0, 15.0  ;;  %v5939_v21 = vround.rtne.f32 %v4215_v30  ;;  %v3899_v27 = vadd.f32 %v7414_v41, %v3898_v33  ;;  %v7616_v51 = vadd.f32 %v3692_v40, %v7356_v4  ;;  %v3700_v57 = vpop.f32.mrb[94].mxu0  ;;  %v3917_v18 = vpop.f32.mrb[159].mxu1 }
 0x31e   : > { %4788 = vst.msk [vmem:[%s7496_s9 + $0x44] sm:$0xf] %vm4770_vm3, %v5419_v34  ;;  %v4406_v35 = vmin.f32 %v4342_v38, 15.0  ;;  %v4345_v5 = vmax.f32 %v5941_v59, 0.0  ;;  %v4088_v46 = vmul.f32 %v7454_v17, %v3907_v47  ;;  %v3910_v48 = vadd.f32 %v7429_v54, %v5528_v10  ;;  %v3702_v56 = vpop.f32.mrb[95].mxu0 }
 0x31f   : > { %v4472_v36 = vmul.f32 0.4, %v4408_v42  ;;  %v4343_v19 = vmax.f32 %v5939_v21, 0.0  ;;  %v4086_v62 = vmul.f32 %v7454_v17, %v3899_v27  ;;  %v3902_v41 = vadd.f32 %v7419_v13, %v3901_v44 }
 0x320   : > { %v4470_v4 = vmul.f32 0.4, %v4406_v35  ;;  %v4409_v33 = vmin.f32 %v4345_v5, 15.0  ;;  %v4156_v40 = vadd.f32 %v7457_v55, %v4088_v46  ;;  %v4089_v25 = vmul.f32 %v7454_v17, %v3910_v48 }
 0x321   : > { %v5424_v2 = vpack.c.bf16 %v4472_v36, %v4472_v36  ;;  %v4407_v39 = vmin.f32 %v4343_v19, 15.0  ;;  %v4154_v52 = vadd.f32 %v7457_v55, %v4086_v62  ;;  %v4087_v54 = vmul.f32 %v7454_v17, %v3902_v41  ;;  %v8028_v41 = vld [vmem:[#allocation16_spill] sm:$0xff] }
 0x322   : > { %v5422_v10 = vpack.c.bf16 %v4470_v4, %v4470_v4  ;;  %v4473_v3 = vmul.f32 0.4, %v4409_v33  ;;  %v4220_v12 = vmax.f32 %v4156_v40, 0.0  ;;  %v4157_v60 = vadd.f32 %v7457_v55, %v4089_v25  ;;  %v7629_v45 = vpop.f32.mrb[160].mxu1 }
 0x323   : > { %4793 = vst.msk [vmem:[%s7496_s9 + $0x58] sm:$0xf] %vm4770_vm3, %v5424_v2  ;;  %v4471_v13 = vmul.f32 0.4, %v4407_v39  ;;  %v4218_v44 = vmax.f32 %v4154_v52, 0.0  ;;  %v4155_v15 = vadd.f32 %v7457_v55, %v4087_v54  ;;  %v7635_v43 = vadd.f32 %v3697_v16, %v7361_v20  ;;  %v3705_v7 = vpop.f32.mrb[96].mxu0 }
 0x324   : > { %v7637_v53 = vpop.f32.mrb[161].mxu1  ;;  %4791 = vst.msk [vmem:[%s7496_s9 + $0x50] sm:$0xf] %vm4770_vm3, %v5422_v10  ;;  %v5425_v0 = vpack.c.bf16 %v4473_v3, %v4473_v3  ;;  %v5944_v30 = vround.rtne.f32 %v4220_v12  ;;  %v4221_v34 = vmax.f32 %v4157_v60, 0.0  ;;  %v3923_v38 = vadd.f32 %v7444_v24, %v5531_v32  ;;  %v3707_v59 = vpop.f32.mrb[97].mxu0 }
 0x325   : > { %v7642_v47 = vpop.f32.mrb[162].mxu1  ;;  %v5423_v23 = vpack.c.bf16 %v4471_v13, %v4471_v13  ;;  %v5942_v42 = vround.rtne.f32 %v4218_v44  ;;  %v4219_v21 = vmax.f32 %v4155_v15, 0.0  ;;  %v3915_v20 = vadd.f32 %v7434_v58, %v3914_v26  ;;  %v3708_v16 = vpop.f32.mrb[98].mxu0 }
 0x326   : > { %v7645_v27 = vpop.f32.mrb[163].mxu1  ;;  %4794 = vst.msk [vmem:[%s7496_s9 + $0x5c] sm:$0xf] %vm4770_vm3, %v5425_v0  ;;  %v4348_v35 = vmax.f32 %v5944_v30, 0.0  ;;  %v5945_v5 = vround.rtne.f32 %v4221_v34  ;;  %v4092_v46 = vmul.f32 %v7454_v17, %v3923_v38  ;;  %v7651_v48 = vadd.f32 %v3700_v57, %v7366_v1  ;;  %v3710_v24 = vpop.f32.mrb[99].mxu0 }
 0x327   : > { %4792 = vst.msk [vmem:[%s7496_s9 + $0x54] sm:$0xf] %vm4770_vm3, %v5423_v23  ;;  %v4346_v32 = vmax.f32 %v5942_v42, 0.0  ;;  %v5943_v56 = vround.rtne.f32 %v4219_v21  ;;  %v4090_v36 = vmul.f32 %v7454_v17, %v3915_v20  ;;  %v3926_v58 = vadd.f32 %v7449_v28, %v5532_v49 }
 0x328   : > { %v4412_v26 = vmin.f32 %v4348_v35, 15.0  ;;  %v4349_v19 = vmax.f32 %v5945_v5, 0.0  ;;  %v4160_v62 = vadd.f32 %v7457_v55, %v4092_v46  ;;  %v3918_v4 = vadd.f32 %v8028_v41, %v3917_v18  ;;  %v8029_v46 = vld [vmem:[#allocation2_spill] sm:$0xff] }
 0x329   : > { %v4410_v33 = vmin.f32 %v4346_v32, 15.0  ;;  %v4347_v40 = vmax.f32 %v5943_v56, 0.0  ;;  %v4158_v1 = vadd.f32 %v7457_v55, %v4090_v36  ;;  %v4093_v57 = vmul.f32 %v7454_v17, %v3926_v58 }
 0x32a   : > { %v4476_v25 = vmul.f32 0.4, %v4412_v26  ;;  %v4413_v2 = vmin.f32 %v4349_v19, 15.0  ;;  %v4224_v39 = vmax.f32 %v4160_v62, 0.0  ;;  %v4091_v52 = vmul.f32 %v7454_v17, %v3918_v4  ;;  %v7662_v54 = vpop.f32.mrb[164].mxu1  ;;  %v8030_v4 = vld [vmem:[#allocation3_spill] sm:$0xff] }
 0x32b   : > { %v4474_v28 = vmul.f32 0.4, %v4410_v33  ;;  %v4411_v49 = vmin.f32 %v4347_v40, 15.0  ;;  %v4222_v10 = vmax.f32 %v4158_v1, 0.0  ;;  %v4161_v3 = vadd.f32 %v7457_v55, %v4093_v57  ;;  %v3713_v18 = vpop.f32.mrb[100].mxu0  ;;  %v7665_v12 = vpop.f32.mrb[165].mxu1 }
 0x32c   : > { %v5428_v60 = vpack.c.bf16 %v4476_v25, %v4476_v25  ;;  %v4477_v13 = vmul.f32 0.4, %v4413_v2  ;;  %v5948_v44 = vround.rtne.f32 %v4224_v39  ;;  %v4159_v15 = vadd.f32 %v7457_v55, %v4091_v52  ;;  %v3715_v0 = vpop.f32.mrb[101].mxu0  ;;  %v7668_v30 = vpop.f32.mrb[166].mxu1  ;;  %v8031_v2 = vld [vmem:[#allocation19_spill] sm:$0xff] }
 0x32d   : > { %v5426_v34 = vpack.c.bf16 %v4474_v28, %v4474_v28  ;;  %v4475_v38 = vmul.f32 0.4, %v4411_v49  ;;  %v5946_v59 = vround.rtne.f32 %v4222_v10  ;;  %v4225_v23 = vmax.f32 %v4161_v3, 0.0  ;;  %v7670_v42 = vpop.f32.mrb[102].mxu0  ;;  %v7672_v21 = vpop.f32.mrb[167].mxu1 }
 0x32e   : > { %4797 = vst.msk [vmem:[%s7496_s9 + $0x68] sm:$0xf] %vm4770_vm3, %v5428_v60  ;;  %v5429_v20 = vpack.c.bf16 %v4477_v13, %v4477_v13  ;;  %v4352_v35 = vmax.f32 %v5948_v44, 0.0  ;;  %v4223_v5 = vmax.f32 %v4159_v15, 0.0  ;;  %v7677_v24 = vadd.f32 %v3705_v7, %v8029_v46  ;;  %v3718_v32 = vpop.f32.mrb[103].mxu0 }
 0x32f   : > { %4795 = vst.msk [vmem:[%s7496_s9 + $0x60] sm:$0xf] %vm4770_vm3, %v5426_v34  ;;  %v5427_v56 = vpack.c.bf16 %v4475_v38, %v4475_v38  ;;  %v4350_v36 = vmax.f32 %v5946_v59, 0.0  ;;  %v5949_v58 = vround.rtne.f32 %v4225_v23  ;;  %v3939_v26 = vadd.f32 %v7478_v22, %v7629_v45 }
 0x330   : > { %4798 = vst.msk [vmem:[%s7496_s9 + $0x6c] sm:$0xf] %vm4770_vm3, %v5429_v20  ;;  %v4416_v19 = vmin.f32 %v4352_v35, 15.0  ;;  %v5947_v62 = vround.rtne.f32 %v4223_v5  ;;  %v3931_v41 = vadd.f32 %v7460_v8, %v7637_v53  ;;  %v7688_v33 = vadd.f32 %v3708_v16, %v8030_v4  ;;  %v8032_v5 = vld [vmem:[#allocation4_spill] sm:$0xff] }
 0x331   : > { %4796 = vst.msk [vmem:[%s7496_s9 + $0x64] sm:$0xf] %vm4770_vm3, %v5427_v56  ;;  %v4414_v7 = vmin.f32 %v4350_v36, 15.0  ;;  %v4353_v40 = vmax.f32 %v5949_v58, 0.0  ;;  %v4096_v1 = vmul.f32 %v7454_v17, %v3939_v26  ;;  %v3942_v57 = vadd.f32 %v7485_v11, %v7642_v47 }
 0x332   : > { %v4480_v22 = vmul.f32 0.4, %v4416_v19  ;;  %v4351_v45 = vmax.f32 %v5947_v62, 0.0  ;;  %v4094_v25 = vmul.f32 %v7454_v17, %v3931_v41  ;;  %v3934_v39 = vadd.f32 %v8031_v2, %v7645_v27  ;;  %v7698_v8 = vpop.f32.mrb[168].mxu1 }
 0x333   : > { %v4478_v53 = vmul.f32 0.4, %v4414_v7  ;;  %v4417_v16 = vmin.f32 %v4353_v40, 15.0  ;;  %v4164_v52 = vadd.f32 %v7457_v55, %v4096_v1  ;;  %v4097_v28 = vmul.f32 %v7454_v17, %v3942_v57  ;;  %v7702_v49 = vpop.f32.mrb[104].mxu0  ;;  %v7704_v10 = vpop.f32.mrb[169].mxu1  ;;  %v8033_v1 = vld [vmem:[#allocation5_spill] sm:$0xff] }
 0x334   : > { %v5432_v11 = vpack.c.bf16 %v4480_v22, %v4480_v22  ;;  %v4415_v47 = vmin.f32 %v4351_v45, 15.0  ;;  %v4162_v3 = vadd.f32 %v7457_v55, %v4094_v25  ;;  %v4095_v27 = vmul.f32 %v7454_v17, %v3934_v39  ;;  %v3723_v60 = vpop.f32.mrb[105].mxu0  ;;  %v7708_v13 = vpop.f32.mrb[170].mxu1 }
 0x335   : > { %v5430_v44 = vpack.c.bf16 %v4478_v53, %v4478_v53  ;;  %v4481_v15 = vmul.f32 0.4, %v4417_v16  ;;  %v4228_v0 = vmax.f32 %v4164_v52, 0.0  ;;  %v4165_v34 = vadd.f32 %v7457_v55, %v4097_v28  ;;  %v7711_v38 = vpop.f32.mrb[106].mxu0  ;;  %v7713_v59 = vpop.f32.mrb[171].mxu1 }
 0x336   : > { %4801 = vst.msk [vmem:[%s7496_s9 + $0x78] sm:$0xf] %vm4770_vm3, %v5432_v11  ;;  %v4479_v23 = vmul.f32 0.4, %v4415_v47  ;;  %v4226_v20 = vmax.f32 %v4162_v3, 0.0  ;;  %v4163_v35 = vadd.f32 %v7457_v55, %v4095_v27  ;;  %v7719_v46 = vadd.f32 %v3713_v18, %v8032_v5  ;;  %v3726_v32 = vpop.f32.mrb[107].mxu0 }
 0x337   : > { %4799 = vst.msk [vmem:[%s7496_s9 + $0x70] sm:$0xf] %vm4770_vm3, %v5430_v44  ;;  %v5433_v56 = vpack.c.bf16 %v4481_v15, %v4481_v15  ;;  %v5952_v36 = vround.rtne.f32 %v4228_v0  ;;  %v4229_v58 = vmax.f32 %v4165_v34, 0.0  ;;  %v3955_v26 = vadd.f32 %v7529_v61, %v7662_v54 }
 0x338   : > { %v5431_v19 = vpack.c.bf16 %v4479_v23, %v4479_v23  ;;  %v5950_v62 = vround.rtne.f32 %v4226_v20  ;;  %v4227_v41 = vmax.f32 %v4163_v35, 0.0  ;;  %v3947_v4 = vadd.f32 %v7503_v31, %v7665_v12 }
 0x339   : > { %4802 = vst.msk [vmem:[%s7496_s9 + $0x7c] sm:$0xf] %vm4770_vm3, %v5433_v56  ;;  %v4356_v18 = vmax.f32 %v5952_v36, 0.0  ;;  %v5953_v7 = vround.rtne.f32 %v4229_v58  ;;  %v4100_v40 = vmul.f32 %v7454_v17, %v3955_v26  ;;  %v7732_v57 = vadd.f32 %v7670_v42, %v8033_v1 }
 0x33a   : > { %4800 = vst.msk [vmem:[%s7496_s9 + $0x74] sm:$0xf] %vm4770_vm3, %v5431_v19  ;;  %v4354_v22 = vmax.f32 %v5950_v62, 0.0  ;;  %v5951_v61 = vround.rtne.f32 %v4227_v41  ;;  %v4098_v54 = vmul.f32 %v7454_v17, %v3947_v4  ;;  %v3958_v45 = vadd.f32 %v7538_v6, %v7668_v30  ;;  %v7739_v31 = vpop.f32.mrb[172].mxu1  ;;  %v8034_v4 = vld [vmem:[#allocation6_spill] sm:$0xff] }
 0x33b   : > { %v4420_v12 = vmin.f32 %v4356_v18, 15.0  ;;  %v4357_v25 = vmax.f32 %v5953_v7, 0.0  ;;  %v4168_v2 = vadd.f32 %v7457_v55, %v4100_v40  ;;  %v3950_v39 = vadd.f32 %v7512_v50, %v7672_v21  ;;  %v7744_v42 = vpop.f32.mrb[108].mxu0  ;;  %v7746_v53 = vpop.f32.mrb[173].mxu1 }
 0x33c   : > { %v4418_v16 = vmin.f32 %v4354_v22, 15.0  ;;  %v4355_v52 = vmax.f32 %v5951_v61, 0.0  ;;  %v4166_v28 = vadd.f32 %v7457_v55, %v4098_v54  ;;  %v4101_v11 = vmul.f32 %v7454_v17, %v3958_v45  ;;  %v3731_v6 = vpop.f32.mrb[109].mxu0  ;;  %v7750_v30 = vpop.f32.mrb[174].mxu1 }
 0x33d   : > { %v4484_v47 = vmul.f32 0.4, %v4420_v12  ;;  %v4421_v3 = vmin.f32 %v4357_v25, 15.0  ;;  %v4232_v27 = vmax.f32 %v4168_v2, 0.0  ;;  %v4099_v60 = vmul.f32 %v7454_v17, %v3950_v39  ;;  %v7753_v50 = vpop.f32.mrb[110].mxu0  ;;  %v7755_v21 = vpop.f32.mrb[175].mxu1 }
 0x33e   : > { %v4482_v44 = vmul.f32 0.4, %v4418_v16  ;;  %v4419_v15 = vmin.f32 %v4355_v52, 15.0  ;;  %v4230_v0 = vmax.f32 %v4166_v28, 0.0  ;;  %v4169_v34 = vadd.f32 %v7457_v55, %v4101_v11  ;;  %v3734_v23 = vpop.f32.mrb[111].mxu0  ;;  %v8035_v25 = vld [vmem:[#allocation7_spill] sm:$0xff] }
 0x33f   : > { %v5436_v20 = vpack.c.bf16 %v4484_v47, %v4484_v47  ;;  %v4485_v35 = vmul.f32 0.4, %v4421_v3  ;;  %v5956_v5 = vround.rtne.f32 %v4232_v27  ;;  %v4167_v32 = vadd.f32 %v7457_v55, %v4099_v60 }
 0x340   : > { %v5434_v56 = vpack.c.bf16 %v4482_v44, %v4482_v44  ;;  %v4483_v36 = vmul.f32 0.4, %v4419_v15  ;;  %v5954_v58 = vround.rtne.f32 %v4230_v0  ;;  %v4233_v26 = vmax.f32 %v4169_v34, 0.0 }
 0x341   : > { %4805 = vst.msk [vmem:[%s7496_s9 + $0x88] sm:$0xf] %vm4770_vm3, %v5436_v20  ;;  %v5437_v19 = vpack.c.bf16 %v4485_v35, %v4485_v35  ;;  %v4360_v62 = vmax.f32 %v5956_v5, 0.0  ;;  %v4231_v41 = vmax.f32 %v4167_v32, 0.0  ;;  %v7763_v18 = vadd.f32 %v7702_v49, %v8034_v4 }
 0x342   : > { %4803 = vst.msk [vmem:[%s7496_s9 + $0x80] sm:$0xf] %vm4770_vm3, %v5434_v56  ;;  %v5435_v7 = vpack.c.bf16 %v4483_v36, %v4483_v36  ;;  %v4358_v40 = vmax.f32 %v5954_v58, 0.0  ;;  %v5957_v1 = vround.rtne.f32 %v4233_v26  ;;  %v3971_v22 = vadd.f32 %v7581_v29, %v7698_v8  ;;  %v7769_v61 = vpop.f32.mrb[176].mxu1  ;;  %v8036_v36 = vld [vmem:[#allocation8_spill] sm:$0xff] }
 0x343   : > { %4806 = vst.msk [vmem:[%s7496_s9 + $0x8c] sm:$0xf] %vm4770_vm3, %v5437_v19  ;;  %v4424_v54 = vmin.f32 %v4360_v62, 15.0  ;;  %v5955_v45 = vround.rtne.f32 %v4231_v41  ;;  %v3963_v12 = vadd.f32 %v7555_v9, %v7704_v10  ;;  %v7777_v49 = vadd.f32 %v7711_v38, %v8035_v25  ;;  %v7779_v2 = vpop.f32.mrb[112].mxu0  ;;  %v7781_v39 = vpop.f32.mrb[177].mxu1 }
 0x344   : > { %4804 = vst.msk [vmem:[%s7496_s9 + $0x84] sm:$0xf] %vm4770_vm3, %v5435_v7  ;;  %v4422_v29 = vmin.f32 %v4358_v40, 15.0  ;;  %v4361_v8 = vmax.f32 %v5957_v1, 0.0  ;;  %v4104_v16 = vmul.f32 %v7454_v17, %v3971_v22  ;;  %v3974_v52 = vadd.f32 %v7591_v14, %v7708_v13  ;;  %v3739_v28 = vpop.f32.mrb[113].mxu0  ;;  %v7788_v11 = vpop.f32.mrb[178].mxu1 }
 0x345   : > { %v4488_v9 = vmul.f32 0.4, %v4424_v54  ;;  %v4359_v10 = vmax.f32 %v5955_v45, 0.0  ;;  %v4102_v38 = vmul.f32 %v7454_v17, %v3963_v12  ;;  %v3966_v6 = vadd.f32 %v7564_v37, %v7713_v59  ;;  %v7793_v47 = vpop.f32.mrb[114].mxu0  ;;  %v7795_v3 = vpop.f32.mrb[179].mxu1 }
 0x346   : > { %v4486_v27 = vmul.f32 0.4, %v4422_v29  ;;  %v4425_v60 = vmin.f32 %v4361_v8, 15.0  ;;  %v4172_v44 = vadd.f32 %v7457_v55, %v4104_v16  ;;  %v4105_v14 = vmul.f32 %v7454_v17, %v3974_v52  ;;  %v3742_v13 = vpop.f32.mrb[115].mxu0  ;;  %v8037_v29 = vld [vmem:[#allocation9_spill] sm:$0xff] }
 0x347   : > { %v5440_v15 = vpack.c.bf16 %v4488_v9, %v4488_v9  ;;  %v4423_v0 = vmin.f32 %v4359_v10, 15.0  ;;  %v4170_v34 = vadd.f32 %v7457_v55, %v4102_v38  ;;  %v4103_v23 = vmul.f32 %v7454_v17, %v3966_v6 }
 0x348   : > { %v5438_v37 = vpack.c.bf16 %v4486_v27, %v4486_v27  ;;  %v4489_v59 = vmul.f32 0.4, %v4425_v60  ;;  %v4236_v20 = vmax.f32 %v4172_v44, 0.0  ;;  %v4173_v35 = vadd.f32 %v7457_v55, %v4105_v14 }
 0x349   : > { %4809 = vst.msk [vmem:[%s7496_s9 + $0x98] sm:$0xf] %vm4770_vm3, %v5440_v15  ;;  %v4487_v5 = vmul.f32 0.4, %v4423_v0  ;;  %v4234_v32 = vmax.f32 %v4170_v34, 0.0  ;;  %v4171_v56 = vadd.f32 %v7457_v55, %v4103_v23  ;;  %v7807_v58 = vadd.f32 %v7744_v42, %v8036_v36 }
 0x34a   : > { %4807 = vst.msk [vmem:[%s7496_s9 + $0x90] sm:$0xf] %vm4770_vm3, %v5438_v37  ;;  %v5441_v26 = vpack.c.bf16 %v4489_v59, %v4489_v59  ;;  %v5960_v19 = vround.rtne.f32 %v4236_v20  ;;  %v4237_v62 = vmax.f32 %v4173_v35, 0.0  ;;  %v3987_v41 = vadd.f32 %v7635_v43, %v7739_v31  ;;  %v7813_v4 = vpop.f32.mrb[180].mxu1 }
 0x34b   : > { %v5439_v7 = vpack.c.bf16 %v4487_v5, %v4487_v5  ;;  %v5958_v40 = vround.rtne.f32 %v4234_v32  ;;  %v4235_v1 = vmax.f32 %v4171_v56, 0.0  ;;  %v3979_v22 = vadd.f32 %v7607_v63, %v7746_v53  ;;  %v7817_v54 = vpop.f32.mrb[116].mxu0  ;;  %v7819_v42 = vpop.f32.mrb[181].mxu1 }
 0x34c   : > { %4810 = vst.msk [vmem:[%s7496_s9 + $0x9c] sm:$0xf] %vm4770_vm3, %v5441_v26  ;;  %v4364_v45 = vmax.f32 %v5960_v19, 0.0  ;;  %v5961_v12 = vround.rtne.f32 %v4237_v62  ;;  %v4108_v25 = vmul.f32 %v7454_v17, %v3987_v41  ;;  %v7826_v43 = vadd.f32 %v7753_v50, %v8037_v29  ;;  %v3747_v31 = vpop.f32.mrb[117].mxu0  ;;  %v7828_v8 = vpop.f32.mrb[182].mxu1 }
 0x34d   : > { %4808 = vst.msk [vmem:[%s7496_s9 + $0x94] sm:$0xf] %vm4770_vm3, %v5439_v7  ;;  %v4362_v63 = vmax.f32 %v5958_v40, 0.0  ;;  %v5959_v53 = vround.rtne.f32 %v4235_v1  ;;  %v4106_v16 = vmul.f32 %v7454_v17, %v3979_v22  ;;  %v3990_v52 = vadd.f32 %v7651_v48, %v7750_v30  ;;  %v7835_v28 = vpop.f32.mrb[118].mxu0  ;;  %v7837_v9 = vpop.f32.mrb[183].mxu1  ;;  %v8038_v1 = vld [vmem:[#allocation10_spill] sm:$0xff] }
 0x34e   : > { %v4428_v10 = vmin.f32 %v4364_v45, 15.0  ;;  %v4365_v38 = vmax.f32 %v5961_v12, 0.0  ;;  %v4176_v50 = vadd.f32 %v7457_v55, %v4108_v25  ;;  %v3982_v6 = vadd.f32 %v7616_v51, %v7755_v21  ;;  %v3750_v27 = vpop.f32.mrb[119].mxu0 }
 0x34f   : > { %v4426_v60 = vmin.f32 %v4362_v63, 15.0  ;;  %v4363_v44 = vmax.f32 %v5959_v53, 0.0  ;;  %v4174_v14 = vadd.f32 %v7457_v55, %v4106_v16  ;;  %v4109_v13 = vmul.f32 %v7454_v17, %v3990_v52 }
 0x350   : > { %v4492_v15 = vmul.f32 0.4, %v4428_v10  ;;  %v4429_v48 = vmin.f32 %v4365_v38, 15.0  ;;  %v4240_v30 = vmax.f32 %v4176_v50, 0.0  ;;  %v4107_v0 = vmul.f32 %v7454_v17, %v3982_v6  ;;  %v8039_v38 = vld [vmem:[#allocation11_spill] sm:$0xff] }
 0x351   : > { %v4490_v34 = vmul.f32 0.4, %v4426_v60  ;;  %v4427_v23 = vmin.f32 %v4363_v44, 15.0  ;;  %v4238_v37 = vmax.f32 %v4174_v14, 0.0  ;;  %v4177_v59 = vadd.f32 %v7457_v55, %v4109_v13 }
 0x352   : > { %v5444_v20 = vpack.c.bf16 %v4492_v15, %v4492_v15  ;;  %v4493_v51 = vmul.f32 0.4, %v4429_v48  ;;  %v5964_v21 = vround.rtne.f32 %v4240_v30  ;;  %v4175_v35 = vadd.f32 %v7457_v55, %v4107_v0  ;;  %v7847_v5 = vpop.f32.mrb[184].mxu1 }
 0x353   : > { %v5442_v32 = vpack.c.bf16 %v4490_v34, %v4490_v34  ;;  %v4491_v56 = vmul.f32 0.4, %v4427_v23  ;;  %v5962_v36 = vround.rtne.f32 %v4238_v37  ;;  %v4241_v26 = vmax.f32 %v4177_v59, 0.0  ;;  %v7849_v19 = vpop.f32.mrb[120].mxu0  ;;  %v7851_v62 = vpop.f32.mrb[185].mxu1 }
 0x354   : > { %4813 = vst.msk [vmem:[%s7496_s9 + $0xa8] sm:$0xf] %vm4770_vm3, %v5444_v20  ;;  %v5445_v41 = vpack.c.bf16 %v4493_v51, %v4493_v51  ;;  %v4368_v7 = vmax.f32 %v5964_v21, 0.0  ;;  %v4239_v40 = vmax.f32 %v4175_v35, 0.0  ;;  %v7857_v22 = vadd.f32 %v7779_v2, %v8038_v1  ;;  %v3755_v45 = vpop.f32.mrb[121].mxu0  ;;  %v7859_v12 = vpop.f32.mrb[186].mxu1 }
 0x355   : > { %4811 = vst.msk [vmem:[%s7496_s9 + $0xa0] sm:$0xf] %vm4770_vm3, %v5442_v32  ;;  %v5443_v25 = vpack.c.bf16 %v4491_v56, %v4491_v56  ;;  %v4366_v29 = vmax.f32 %v5962_v36, 0.0  ;;  %v5965_v31 = vround.rtne.f32 %v4241_v26  ;;  %v4003_v63 = vadd.f32 %v7719_v46, %v7769_v61  ;;  %v7865_v53 = vpop.f32.mrb[122].mxu0  ;;  %v7867_v16 = vpop.f32.mrb[187].mxu1  ;;  %v8040_v32 = vld [vmem:[#allocation12_spill] sm:$0xff] }
 0x356   : > { %4814 = vst.msk [vmem:[%s7496_s9 + $0xac] sm:$0xf] %vm4770_vm3, %v5445_v41  ;;  %v4432_v2 = vmin.f32 %v4368_v7, 15.0  ;;  %v5963_v52 = vround.rtne.f32 %v4239_v40  ;;  %v3995_v10 = vadd.f32 %v7677_v24, %v7781_v39  ;;  %v7875_v50 = vadd.f32 %v7793_v47, %v8039_v38  ;;  %v3758_v6 = vpop.f32.mrb[123].mxu0 }
 0x357   : > { %4812 = vst.msk [vmem:[%s7496_s9 + $0xa4] sm:$0xf] %vm4770_vm3, %v5443_v25  ;;  %v4430_v27 = vmin.f32 %v4366_v29, 15.0  ;;  %v4369_v46 = vmax.f32 %v5965_v31, 0.0  ;;  %v4112_v61 = vmul.f32 %v7454_v17, %v4003_v63  ;;  %v4006_v60 = vadd.f32 %v7732_v57, %v7788_v11  ;;  %v8041_v6 = vld [vmem:[#allocation13_spill] sm:$0xff] }
 0x358   : > { %v4496_v44 = vmul.f32 0.4, %v4432_v2  ;;  %v4367_v14 = vmax.f32 %v5963_v52, 0.0  ;;  %v4110_v13 = vmul.f32 %v7454_v17, %v3995_v10  ;;  %v3998_v24 = vadd.f32 %v7688_v33, %v7795_v3 }
 0x359   : > { %v4494_v39 = vmul.f32 0.4, %v4430_v27  ;;  %v4433_v47 = vmin.f32 %v4369_v46, 15.0  ;;  %v4180_v15 = vadd.f32 %v7457_v55, %v4112_v61  ;;  %v4113_v48 = vmul.f32 %v7454_v17, %v4006_v60 }
 0x35a   : > { %v5448_v30 = vpack.c.bf16 %v4496_v44, %v4496_v44  ;;  %v4431_v0 = vmin.f32 %v4367_v14, 15.0  ;;  %v4178_v34 = vadd.f32 %v7457_v55, %v4110_v13  ;;  %v4111_v57 = vmul.f32 %v7454_v17, %v3998_v24  ;;  %v7889_v11 = vpop.f32.mrb[188].mxu1 }
 0x35b   : > { %v5446_v23 = vpack.c.bf16 %v4494_v39, %v4494_v39  ;;  %v4497_v37 = vmul.f32 0.4, %v4433_v47  ;;  %v4244_v59 = vmax.f32 %v4180_v15, 0.0  ;;  %v4181_v33 = vadd.f32 %v7457_v55, %v4113_v48  ;;  %v7892_v3 = vpop.f32.mrb[124].mxu0  ;;  %v7894_v20 = vpop.f32.mrb[189].mxu1 }
 0x35c   : > { %4817 = vst.msk [vmem:[%s7496_s9 + $0xb8] sm:$0xf] %vm4770_vm3, %v5448_v30  ;;  %v4495_v51 = vmul.f32 0.4, %v4431_v0  ;;  %v4242_v21 = vmax.f32 %v4178_v34, 0.0  ;;  %v4179_v35 = vadd.f32 %v7457_v55, %v4111_v57  ;;  %v5655_v56 = vadd.f32 %v7817_v54, %v8040_v32  ;;  %v3763_v36 = vpop.f32.mrb[125].mxu0 }
 0x35d   : > { %v7901_v26 = vpop.f32.mrb[190].mxu1  ;;  %4815 = vst.msk [vmem:[%s7496_s9 + $0xb0] sm:$0xf] %vm4770_vm3, %v5446_v23  ;;  %v5449_v41 = vpack.c.bf16 %v4497_v37, %v4497_v37  ;;  %v5968_v7 = vround.rtne.f32 %v4244_v59  ;;  %v4245_v40 = vmax.f32 %v4181_v33, 0.0  ;;  %v4019_v1 = vadd.f32 %v7807_v58, %v7813_v4  ;;  %v7907_v45 = vpop.f32.mrb[126].mxu0  ;;  %v8042_v32 = vld [vmem:[#allocation14_spill] sm:$0xff] }
 0x35e   : > { %v7909_v25 = vpop.f32.mrb[191].mxu1  ;;  %v5447_v29 = vpack.c.bf16 %v4495_v51, %v4495_v51  ;;  %v5966_v31 = vround.rtne.f32 %v4242_v21  ;;  %v4243_v63 = vmax.f32 %v4179_v35, 0.0  ;;  %v4011_v54 = vadd.f32 %v7763_v18, %v7819_v42  ;;  %v3766_v2 = vpop.f32.mrb[127].mxu0 }
 0x35f   : > { %4818 = vst.msk [vmem:[%s7496_s9 + $0xbc] sm:$0xf] %vm4770_vm3, %v5449_v41  ;;  %v4372_v52 = vmax.f32 %v5968_v7, 0.0  ;;  %v5969_v10 = vround.rtne.f32 %v4245_v40  ;;  %v4116_v38 = vmul.f32 %v7454_v17, %v4019_v1  ;;  %v5656_v58 = vadd.f32 %v7835_v28, %v8041_v6 }
 0x360   : > { %4816 = vst.msk [vmem:[%s7496_s9 + $0xb4] sm:$0xf] %vm4770_vm3, %v5447_v29  ;;  %v4370_v4 = vmax.f32 %v5966_v31, 0.0  ;;  %v5967_v27 = vround.rtne.f32 %v4243_v63  ;;  %v4114_v46 = vmul.f32 %v7454_v17, %v4011_v54  ;;  %v4022_v61 = vadd.f32 %v7826_v43, %v7828_v8  ;;  %v8043_v54 = vld [vmem:[#allocation15_spill] sm:$0xff] }
 0x361   : > { %v4436_v18 = vmin.f32 %v4372_v52, 15.0  ;;  %v4373_v42 = vmax.f32 %v5969_v10, 0.0  ;;  %v4184_v60 = vadd.f32 %v7457_v55, %v4116_v38  ;;  %v4014_v44 = vadd.f32 %v7777_v49, %v7837_v9 }
 0x362   : > { %v4434_v14 = vmin.f32 %v4370_v4, 15.0  ;;  %v4371_v13 = vmax.f32 %v5967_v27, 0.0  ;;  %v4182_v28 = vadd.f32 %v7457_v55, %v4114_v46  ;;  %v4117_v24 = vmul.f32 %v7454_v17, %v4022_v61 }
 0x363   : > { %v4500_v39 = vmul.f32 0.4, %v4436_v18  ;;  %v4437_v47 = vmin.f32 %v4373_v42, 15.0  ;;  %v4248_v15 = vmax.f32 %v4184_v60, 0.0  ;;  %v4115_v48 = vmul.f32 %v7454_v17, %v4014_v44 }
 0x364   : > { %v4498_v43 = vmul.f32 0.4, %v4434_v14  ;;  %v4435_v8 = vmin.f32 %v4371_v13, 15.0  ;;  %v4246_v30 = vmax.f32 %v4182_v28, 0.0  ;;  %v4185_v0 = vadd.f32 %v7457_v55, %v4117_v24  ;;  %v8044_v13 = vld [vmem:[#allocation17_spill] sm:$0xff] }
 0x365   : > { %v5452_v34 = vpack.c.bf16 %v4500_v39, %v4500_v39  ;;  %v4501_v49 = vmul.f32 0.4, %v4437_v47  ;;  %v5972_v9 = vround.rtne.f32 %v4248_v15  ;;  %v4183_v57 = vadd.f32 %v7457_v55, %v4115_v48 }
 0x366   : > { %v5450_v23 = vpack.c.bf16 %v4498_v43, %v4498_v43  ;;  %v4499_v37 = vmul.f32 0.4, %v4435_v8  ;;  %v5970_v59 = vround.rtne.f32 %v4246_v30  ;;  %v4249_v33 = vmax.f32 %v4185_v0, 0.0 }
 0x367   : > { %4821 = vst.msk [vmem:[%s7496_s9 + $0xc8] sm:$0xf] %vm4770_vm3, %v5452_v34  ;;  %v5453_v51 = vpack.c.bf16 %v4501_v49, %v4501_v49  ;;  %v4376_v21 = vmax.f32 %v5972_v9, 0.0  ;;  %v4247_v35 = vmax.f32 %v4183_v57, 0.0  ;;  %v5657_v36 = vadd.f32 %v7849_v19, %v8042_v32  ;;  %v8045_v9 = vld [vmem:[#allocation18_spill] sm:$0xff] }
 0x368   : > { %4819 = vst.msk [vmem:[%s7496_s9 + $0xc0] sm:$0xf] %vm4770_vm3, %v5450_v23  ;;  %v5451_v41 = vpack.c.bf16 %v4499_v37, %v4499_v37  ;;  %v4374_v7 = vmax.f32 %v5970_v59, 0.0  ;;  %v5973_v40 = vround.rtne.f32 %v4249_v33  ;;  %v4035_v1 = vadd.f32 %v5655_v56, %v7847_v5 }
 0x369   : > { %4822 = vst.msk [vmem:[%s7496_s9 + $0xcc] sm:$0xf] %vm4770_vm3, %v5453_v51  ;;  %v4440_v29 = vmin.f32 %v4376_v21, 15.0  ;;  %v5971_v31 = vround.rtne.f32 %v4247_v35  ;;  %v4027_v63 = vadd.f32 %v7857_v22, %v7851_v62  ;;  %v5658_v2 = vadd.f32 %v7865_v53, %v8043_v54 }
 0x36a   : > { %4820 = vst.msk [vmem:[%s7496_s9 + $0xc4] sm:$0xf] %vm4770_vm3, %v5451_v41  ;;  %v4438_v19 = vmin.f32 %v4374_v7, 15.0  ;;  %v4377_v52 = vmax.f32 %v5973_v40, 0.0  ;;  %v4120_v10 = vmul.f32 %v7454_v17, %v4035_v1  ;;  %v4038_v38 = vadd.f32 %v5656_v58, %v7859_v12 }
 0x36b   : > { %v4504_v6 = vmul.f32 0.4, %v4440_v29  ;;  %v4375_v5 = vmax.f32 %v5971_v31, 0.0  ;;  %v4118_v56 = vmul.f32 %v7454_v17, %v4027_v63  ;;  %v4030_v4 = vadd.f32 %v7875_v50, %v7867_v16 }
 0x36c   : > { %v4502_v62 = vmul.f32 0.4, %v4438_v19  ;;  %v4441_v22 = vmin.f32 %v4377_v52, 15.0  ;;  %v4188_v53 = vadd.f32 %v7457_v55, %v4120_v10  ;;  %v4121_v27 = vmul.f32 %v7454_v17, %v4038_v38 }
 0x36d   : > { %v5456_v46 = vpack.c.bf16 %v4504_v6, %v4504_v6  ;;  %v4439_v61 = vmin.f32 %v4375_v5, 15.0  ;;  %v4186_v18 = vadd.f32 %v7457_v55, %v4118_v56  ;;  %v4119_v12 = vmul.f32 %v7454_v17, %v4030_v4 }
 0x36e   : > { %v5454_v58 = vpack.c.bf16 %v4502_v62, %v4502_v62  ;;  %v4505_v42 = vmul.f32 0.4, %v4441_v22  ;;  %v4252_v60 = vmax.f32 %v4188_v53, 0.0  ;;  %v4189_v44 = vadd.f32 %v7457_v55, %v4121_v27 }
 0x36f   : > { %4825 = vst.msk [vmem:[%s7496_s9 + $0xd8] sm:$0xf] %vm4770_vm3, %v5456_v46  ;;  %v4503_v16 = vmul.f32 0.4, %v4439_v61  ;;  %v4250_v50 = vmax.f32 %v4186_v18, 0.0  ;;  %v4187_v14 = vadd.f32 %v7457_v55, %v4119_v12  ;;  %v5659_v28 = vadd.f32 %v7892_v3, %v8044_v13 }
 0x370   : > { %4823 = vst.msk [vmem:[%s7496_s9 + $0xd0] sm:$0xf] %vm4770_vm3, %v5454_v58  ;;  %v5457_v24 = vpack.c.bf16 %v4505_v42, %v4505_v42  ;;  %v5976_v39 = vround.rtne.f32 %v4252_v60  ;;  %v4253_v47 = vmax.f32 %v4189_v44, 0.0  ;;  %v4043_v15 = vadd.f32 %v5657_v36, %v7894_v20 }
 0x371   : > { %v5455_v48 = vpack.c.bf16 %v4503_v16, %v4503_v16  ;;  %v5974_v43 = vround.rtne.f32 %v4250_v50  ;;  %v4251_v8 = vmax.f32 %v4187_v14, 0.0  ;;  %v4051_v30 = vadd.f32 %v5659_v28, %v7889_v11 }
 0x372   : > { %4826 = vst.msk [vmem:[%s7496_s9 + $0xdc] sm:$0xf] %vm4770_vm3, %v5457_v24  ;;  %v4380_v0 = vmax.f32 %v5976_v39, 0.0  ;;  %v5977_v34 = vround.rtne.f32 %v4253_v47  ;;  %v4122_v49 = vmul.f32 %v7454_v17, %v4043_v15  ;;  %v5660_v3 = vadd.f32 %v7907_v45, %v8045_v9 }
 0x373   : > { %4824 = vst.msk [vmem:[%s7496_s9 + $0xd4] sm:$0xf] %vm4770_vm3, %v5455_v48  ;;  %v4378_v57 = vmax.f32 %v5974_v43, 0.0  ;;  %v5975_v23 = vround.rtne.f32 %v4251_v8  ;;  %v4124_v20 = vmul.f32 %v7454_v17, %v4051_v30  ;;  %v4046_v37 = vadd.f32 %v5658_v2, %v7909_v25 }
 0x374   : > { %v4444_v59 = vmin.f32 %v4380_v0, 15.0  ;;  %v4381_v33 = vmax.f32 %v5977_v34, 0.0  ;;  %v4190_v11 = vadd.f32 %v7457_v55, %v4122_v49  ;;  %v4054_v51 = vadd.f32 %v5660_v3, %v7901_v26 }
 0x375   : > { %v4442_v21 = vmin.f32 %v4378_v57, 15.0  ;;  %v4379_v35 = vmax.f32 %v5975_v23, 0.0  ;;  %v4192_v32 = vadd.f32 %v7457_v55, %v4124_v20  ;;  %v4123_v45 = vmul.f32 %v7454_v17, %v4046_v37 }
 0x376   : > { %v4508_v36 = vmul.f32 0.4, %v4444_v59  ;;  %v4445_v41 = vmin.f32 %v4381_v33, 15.0  ;;  %v4254_v7 = vmax.f32 %v4190_v11, 0.0  ;;  %v4125_v40 = vmul.f32 %v7454_v17, %v4054_v51 }
 0x377   : > { %v4506_v1 = vmul.f32 0.4, %v4442_v21  ;;  %v4443_v25 = vmin.f32 %v4379_v35, 15.0  ;;  %v4256_v29 = vmax.f32 %v4192_v32, 0.0  ;;  %v4191_v31 = vadd.f32 %v7457_v55, %v4123_v45 }
 0x378   : > { %v5460_v63 = vpack.c.bf16 %v4508_v36, %v4508_v36  ;;  %v4509_v26 = vmul.f32 0.4, %v4445_v41  ;;  %v5978_v54 = vround.rtne.f32 %v4254_v7  ;;  %v4193_v2 = vadd.f32 %v7457_v55, %v4125_v40 }
 0x379   : > { %v5458_v19 = vpack.c.bf16 %v4506_v1, %v4506_v1  ;;  %v4507_v52 = vmul.f32 0.4, %v4443_v25  ;;  %v5980_v10 = vround.rtne.f32 %v4256_v29  ;;  %v4255_v38 = vmax.f32 %v4191_v31, 0.0 }
 0x37a   : > { %4829 = vst.msk [vmem:[%s7496_s9 + $0xe8] sm:$0xf] %vm4770_vm3, %v5460_v63  ;;  %v5461_v17 = vpack.c.bf16 %v4509_v26, %v4509_v26  ;;  %v4382_v6 = vmax.f32 %v5978_v54, 0.0  ;;  %v4257_v5 = vmax.f32 %v4193_v2, 0.0 }
 0x37b   : > { %4827 = vst.msk [vmem:[%s7496_s9 + $0xe0] sm:$0xf] %vm4770_vm3, %v5458_v19  ;;  %v5459_v56 = vpack.c.bf16 %v4507_v52, %v4507_v52  ;;  %v4384_v4 = vmax.f32 %v5980_v10, 0.0  ;;  %v5979_v62 = vround.rtne.f32 %v4255_v38 }
 0x37c   : > { %4830 = vst.msk [vmem:[%s7496_s9 + $0xec] sm:$0xf] %vm4770_vm3, %v5461_v17  ;;  %v4446_v55 = vmin.f32 %v4382_v6, 15.0  ;;  %v5981_v22 = vround.rtne.f32 %v4257_v5 }
 0x37d   : > { %4828 = vst.msk [vmem:[%s7496_s9 + $0xe4] sm:$0xf] %vm4770_vm3, %v5459_v56  ;;  %v4448_v53 = vmin.f32 %v4384_v4, 15.0  ;;  %v4383_v27 = vmax.f32 %v5979_v62, 0.0 }
 0x37e   : > { %v4510_v46 = vmul.f32 0.4, %v4446_v55  ;;  %v4385_v61 = vmax.f32 %v5981_v22, 0.0 }
 0x37f   : > { %v4512_v18 = vmul.f32 0.4, %v4448_v53  ;;  %v4447_v12 = vmin.f32 %v4383_v27, 15.0 }
 0x380   : > { %v5462_v58 = vpack.c.bf16 %v4510_v46, %v4510_v46  ;;  %v4449_v42 = vmin.f32 %v4385_v61, 15.0 }
 0x381   : > { %v5464_v60 = vpack.c.bf16 %v4512_v18, %v4512_v18  ;;  %v4511_v44 = vmul.f32 0.4, %v4447_v12 }
 0x382   : > { %4831 = vst.msk [vmem:[%s7496_s9 + $0xf0] sm:$0xf] %vm4770_vm3, %v5462_v58  ;;  %v4513_v16 = vmul.f32 0.4, %v4449_v42 }
 0x383   : > { %4833 = vst.msk [vmem:[%s7496_s9 + $0xf8] sm:$0xf] %vm4770_vm3, %v5464_v60  ;;  %v5463_v50 = vpack.c.bf16 %v4511_v44, %v4511_v44 }
 0x384   : > { %v5465_v14 = vpack.c.bf16 %v4513_v16, %v4513_v16 }
 0x385   : > { %4832 = vst.msk [vmem:[%s7496_s9 + $0xf4] sm:$0xf] %vm4770_vm3, %v5463_v50 }
 0x386   : > { %4834 = vst.msk [vmem:[%s7496_s9 + $0xfc] sm:$0xf] %vm4770_vm3, %v5465_v14 }
 0x387 PF: > { %s13_s14 = sadd.s32 1, %s6511_s14   ;;  %s8046_s12 = smov %s6507_s13 }
 0x388   : > { %p10_p5 = scmp.ge.s32.totalorder %s13_s14, 6   ;;  %s8047_s13 = smov %s8049_s15 }
 0x38a   :  { %12 = sbr.rel (!%p10_p5) target bundleno = 2 (0x2), region = 68 }

// kernel: quant_resnet_forward.14
= control target key start
LH: loop header
LB: loop body
LE: loop exit
PB: predicated region body
PF: predicated region fallthrough
CT: control target
= control target key end

     0   :  { %v1160_v0 = vmov 0   ;;  %vm299_vm0 = vcmask 719872   ;;  %vm348_vm1 = vcmask 1043456   ;;  %v514_v48 = vlaneseq  ;;  %s1562_s1 = inlined_call_operand.vmem [shape: bf16[216,8], index: 1, kind: input, shape index: {}]   ;;  %s1563_s0 = inlined_call_operand.vmem [shape: bf16[256,216], index: 0, kind: input, shape index: {}]   ;;  %s1564_s2 = inlined_call_operand.vmem [shape: f32[2,8], index: 2, kind: input, shape index: {}]   ;;  %s1565_s3 = inlined_call_operand.vmem [shape: bf16[256,8], index: 3, kind: output, shape index: {}]  }
   0x1   :  { %352 = vmatprep.subr.bf16.mxu0 %v1160_v0  ;;  %1037 = vmatprep.subr.bf16.mxu1 %v1160_v0  ;;  %v1098_v1 = vld [vmem:[%s1562_s1] sm:$0xff]   ;;  %v1099_v2 = vld [vmem:[%s1562_s1 + $0x8] sm:$0xff]   ;;  %v1100_v3 = vld [vmem:[%s1562_s1 + $0x10] sm:$0xff]   ;;  %vm874_vm2 = vcmask 60416  }
   0x2   :  { %353 = vmatpush1.bf16.msra.mxu0 %v1098_v1  ;;  %1051 = vmatpush1.bf16.msra.mxu1 %v1098_v1  ;;  %v1101_v4 = vld [vmem:[%s1562_s1 + $0x18] sm:$0xff]   ;;  %v1102_v5 = vld [vmem:[%s1562_s1 + $0x20] sm:$0xff]   ;;  %v1103_v8 = vld [vmem:[%s1562_s1 + $0x28] sm:$0xff]   ;;  %v515_v49 = vshrl.u32 %v514_v48, 7 }
   0x3   :  { %354 = vmatprep.subr.bf16.mxu0 %v1160_v0  ;;  %1038 = vmatprep.subr.bf16.mxu1 %v1160_v0  ;;  %v1114_v6 = vld [vmem:[%s1563_s0 + $0x4] ss:$8 sps:$4 sm:$0xff]   ;;  %v1104_v9 = vld [vmem:[%s1562_s1 + $0x30] sm:$0xff]   ;;  %v1105_v10 = vld [vmem:[%s1562_s1 + $0x38] sm:$0xff]  }
   0x4   :  { %957 = vmatprep.mubr.msk.bf16.mxu0 %vm299_vm0, %v1114_v6  ;;  %v1117_v7 = vld [vmem:[%s1563_s0 + $0x84] ss:$8 sps:$4 sm:$0xff]   ;;  %v1108_v13 = vld [vmem:[%s1562_s1 + $0x50] sm:$0xff]   ;;  %v1109_v14 = vld [vmem:[%s1562_s1 + $0x58] sm:$0xff]   ;;  %v516_v50 = vsub.s32 0, %v515_v49  ;;  %v552_v52 = vsub.s32 1, %v515_v49 }
   0x5   :  { %965 = vmatprep.mubr.msk.bf16.mxu1 %vm299_vm0, %v1117_v7  ;;  %v1106_v11 = vld [vmem:[%s1562_s1 + $0x40] sm:$0xff]   ;;  %v1107_v12 = vld [vmem:[%s1562_s1 + $0x48] sm:$0xff]   ;;  %v1118_v20 = vld [vmem:[%s1563_s0 + $0x14] ss:$8 sps:$4 sm:$0xff]  }
   0x6   :  { %355 = vmatpush1.bf16.msra.mxu0 %v1099_v2  ;;  %1052 = vmatpush1.bf16.msra.mxu1 %v1099_v2  ;;  %v1110_v15 = vld [vmem:[%s1562_s1 + $0x60] sm:$0xff]   ;;  %v1111_v16 = vld [vmem:[%s1562_s1 + $0x68] ss:$0 sps:$4 sm:$0xff]   ;;  %v1120_v21 = vld [vmem:[%s1563_s0 + $0x94] ss:$8 sps:$4 sm:$0xff]  }
   0x7   :  { %356 = vmatprep.subr.bf16.mxu0 %v1160_v0  ;;  %1039 = vmatprep.subr.bf16.mxu1 %v1160_v0  ;;  %v350_v17 = vsel %vm348_vm1, %v1111_v16, 0  ;;  %v1112_v18 = vld [vmem:[%s1563_s0] ss:$8 sps:$4 sm:$0xff]   ;;  %v1122_v22 = vld [vmem:[%s1563_s0 + $0x10] ss:$8 sps:$4 sm:$0xff]  }
   0x8   :  { %v1115_v19 = vld [vmem:[%s1563_s0 + $0x80] ss:$8 sps:$4 sm:$0xff]   ;;  %v1123_v23 = vld [vmem:[%s1563_s0 + $0x90] ss:$8 sps:$4 sm:$0xff]   ;;  %v1124_v24 = vld [vmem:[%s1563_s0 + $0x24] ss:$8 sps:$4 sm:$0xff]  }
   0x9   :  { %v1126_v25 = vld [vmem:[%s1563_s0 + $0xa4] ss:$8 sps:$4 sm:$0xff]   ;;  %v1128_v26 = vld [vmem:[%s1563_s0 + $0x20] ss:$8 sps:$4 sm:$0xff]   ;;  %v1130_v28 = vld [vmem:[%s1563_s0 + $0x34] ss:$8 sps:$4 sm:$0xff]  }
   0xa   :  { %357 = vmatpush1.bf16.msra.mxu0 %v1100_v3  ;;  %1053 = vmatpush1.bf16.msra.mxu1 %v1100_v3  ;;  %v1129_v27 = vld [vmem:[%s1563_s0 + $0xa0] ss:$8 sps:$4 sm:$0xff]   ;;  %v1132_v29 = vld [vmem:[%s1563_s0 + $0xb4] ss:$8 sps:$4 sm:$0xff]   ;;  %v1134_v30 = vld [vmem:[%s1563_s0 + $0x30] ss:$8 sps:$4 sm:$0xff]  }
   0xb   :  { %358 = vmatprep.subr.bf16.mxu0 %v1160_v0  ;;  %1040 = vmatprep.subr.bf16.mxu1 %v1160_v0  ;;  %v1135_v31 = vld [vmem:[%s1563_s0 + $0xb0] ss:$8 sps:$4 sm:$0xff]   ;;  %v1136_v32 = vld [vmem:[%s1563_s0 + $0x44] ss:$8 sps:$4 sm:$0xff]   ;;  %v1140_v34 = vld [vmem:[%s1563_s0 + $0x40] ss:$8 sps:$4 sm:$0xff]  }
   0xc   :  { %v1138_v33 = vld [vmem:[%s1563_s0 + $0xc4] ss:$8 sps:$4 sm:$0xff]   ;;  %v1141_v35 = vld [vmem:[%s1563_s0 + $0xc0] ss:$8 sps:$4 sm:$0xff]   ;;  %v1142_v36 = vld [vmem:[%s1563_s0 + $0x54] ss:$8 sps:$4 sm:$0xff]  }
   0xd   :  { %v1144_v37 = vld [vmem:[%s1563_s0 + $0xd4] ss:$8 sps:$4 sm:$0xff]   ;;  %v1146_v38 = vld [vmem:[%s1563_s0 + $0x50] ss:$8 sps:$4 sm:$0xff]   ;;  %v1148_v40 = vld [vmem:[%s1563_s0 + $0x64] ss:$8 sps:$4 sm:$0xff]  }
   0xe   :  { %359 = vmatpush1.bf16.msra.mxu0 %v1101_v4  ;;  %1054 = vmatpush1.bf16.msra.mxu1 %v1101_v4  ;;  %v1147_v39 = vld [vmem:[%s1563_s0 + $0xd0] ss:$8 sps:$4 sm:$0xff]   ;;  %v1150_v41 = vld [vmem:[%s1563_s0 + $0xe4] ss:$8 sps:$4 sm:$0xff]   ;;  %v1152_v42 = vld [vmem:[%s1563_s0 + $0x60] ss:$8 sps:$4 sm:$0xff]  }
   0xf   :  { %360 = vmatprep.subr.bf16.mxu0 %v1160_v0  ;;  %1041 = vmatprep.subr.bf16.mxu1 %v1160_v0  ;;  %v1153_v43 = vld [vmem:[%s1563_s0 + $0xe0] ss:$8 sps:$4 sm:$0xff]   ;;  %v1154_v44 = vld [vmem:[%s1563_s0 + $0x74] ss:$8 sps:$4 sm:$0xff]   ;;  %v1158_v46 = vld [vmem:[%s1563_s0 + $0x70] ss:$8 sps:$4 sm:$0xff]  }
  0x10   :  { %v1156_v45 = vld [vmem:[%s1563_s0 + $0xf4] ss:$8 sps:$4 sm:$0xff]   ;;  %v1159_v47 = vld [vmem:[%s1563_s0 + $0xf0] ss:$8 sps:$4 sm:$0xff]   ;;  %v513_v51 = vld [vmem:[%s1564_s2] sm:$0x3] }
  0x11   :  { %v1366_v53 = vrot.slane %v513_v51, %v516_v50  ;;  %v1368_v54 = vrot.slane %v513_v51, %v552_v52 }
  0x12   :  { %361 = vmatpush1.bf16.msra.mxu0 %v1102_v5  ;;  %1055 = vmatpush1.bf16.msra.mxu1 %v1102_v5 }
  0x13   :  { %362 = vmatprep.subr.bf16.mxu0 %v1160_v0  ;;  %1042 = vmatprep.subr.bf16.mxu1 %v1160_v0 }
  0x16   :  { %363 = vmatpush1.bf16.msra.mxu0 %v1103_v8  ;;  %1056 = vmatpush1.bf16.msra.mxu1 %v1103_v8 }
  0x17   :  { %364 = vmatprep.subr.bf16.mxu0 %v1160_v0  ;;  %1043 = vmatprep.subr.bf16.mxu1 %v1160_v0 }
  0x1a   :  { %365 = vmatpush1.bf16.msra.mxu0 %v1104_v9  ;;  %1057 = vmatpush1.bf16.msra.mxu1 %v1104_v9 }
  0x1b   :  { %366 = vmatprep.subr.bf16.mxu0 %v1160_v0  ;;  %1044 = vmatprep.subr.bf16.mxu1 %v1160_v0 }
  0x1e   :  { %367 = vmatpush1.bf16.msra.mxu0 %v1105_v10  ;;  %1058 = vmatpush1.bf16.msra.mxu1 %v1105_v10 }
  0x1f   :  { %368 = vmatprep.subr.bf16.mxu0 %v1160_v0  ;;  %1045 = vmatprep.subr.bf16.mxu1 %v1160_v0 }
  0x22   :  { %369 = vmatpush1.bf16.msra.mxu0 %v1106_v11  ;;  %1059 = vmatpush1.bf16.msra.mxu1 %v1106_v11 }
  0x23   :  { %370 = vmatprep.subr.bf16.mxu0 %v1160_v0  ;;  %1046 = vmatprep.subr.bf16.mxu1 %v1160_v0 }
  0x26   :  { %371 = vmatpush1.bf16.msra.mxu0 %v1107_v12  ;;  %1060 = vmatpush1.bf16.msra.mxu1 %v1107_v12 }
  0x27   :  { %372 = vmatprep.subr.bf16.mxu0 %v1160_v0  ;;  %1047 = vmatprep.subr.bf16.mxu1 %v1160_v0 }
  0x2a   :  { %373 = vmatpush1.bf16.msra.mxu0 %v1108_v13  ;;  %1061 = vmatpush1.bf16.msra.mxu1 %v1108_v13 }
  0x2b   :  { %374 = vmatprep.subr.bf16.mxu0 %v1160_v0  ;;  %1048 = vmatprep.subr.bf16.mxu1 %v1160_v0 }
  0x2e   :  { %375 = vmatpush1.bf16.msra.mxu0 %v1109_v14  ;;  %1062 = vmatpush1.bf16.msra.mxu1 %v1109_v14 }
  0x2f   :  { %376 = vmatprep.subr.bf16.mxu0 %v1160_v0  ;;  %1049 = vmatprep.subr.bf16.mxu1 %v1160_v0 }
  0x32   :  { %377 = vmatpush1.bf16.msra.mxu0 %v1110_v15  ;;  %1063 = vmatpush1.bf16.msra.mxu1 %v1110_v15 }
  0x33   :  { %378 = vmatprep.subr.bf16.mxu0 %v1160_v0  ;;  %1050 = vmatprep.subr.bf16.mxu1 %v1160_v0 }
  0x36   :  { %379 = vmatpush1.bf16.msra.mxu0 %v350_v17  ;;  %1064 = vmatpush1.bf16.msra.mxu1 %v350_v17 }
  0x39   :  { %385 = vmatmul.mubr.bf16.vlgmr.msra.gmra.mrb[0].mxu0 %v1112_v18  ;;  %449 = vmatmul.mubr.bf16.vlgmr.msra.gmra.mrb[0].mxu1 %v1115_v19 }
  0x3a   :  { %958 = vmatprep.mubr.msk.bf16.mxu0 %vm299_vm0, %v1118_v20  ;;  %966 = vmatprep.mubr.msk.bf16.mxu1 %vm299_vm0, %v1120_v21 }
  0x41   :  { %393 = vmatmul.mubr.bf16.gmra.mrb[4].mxu0 %v1122_v22  ;;  %457 = vmatmul.mubr.bf16.gmra.mrb[4].mxu1 %v1123_v23 }
  0x42   :  { %959 = vmatprep.mubr.msk.bf16.mxu0 %vm299_vm0, %v1124_v24  ;;  %967 = vmatprep.mubr.msk.bf16.mxu1 %vm299_vm0, %v1126_v25 }
  0x49   :  { %401 = vmatmul.mubr.bf16.gmra.mrb[8].mxu0 %v1128_v26  ;;  %465 = vmatmul.mubr.bf16.gmra.mrb[8].mxu1 %v1129_v27 }
  0x4a   :  { %960 = vmatprep.mubr.msk.bf16.mxu0 %vm299_vm0, %v1130_v28  ;;  %968 = vmatprep.mubr.msk.bf16.mxu1 %vm299_vm0, %v1132_v29 }
  0x51   :  { %409 = vmatmul.mubr.bf16.gmra.mrb[12].mxu0 %v1134_v30  ;;  %473 = vmatmul.mubr.bf16.gmra.mrb[12].mxu1 %v1135_v31 }
  0x52   :  { %961 = vmatprep.mubr.msk.bf16.mxu0 %vm299_vm0, %v1136_v32  ;;  %969 = vmatprep.mubr.msk.bf16.mxu1 %vm299_vm0, %v1138_v33 }
  0x59   :  { %417 = vmatmul.mubr.bf16.gmra.mrb[16].mxu0 %v1140_v34  ;;  %481 = vmatmul.mubr.bf16.gmra.mrb[16].mxu1 %v1141_v35 }
  0x5a   :  { %962 = vmatprep.mubr.msk.bf16.mxu0 %vm299_vm0, %v1142_v36  ;;  %970 = vmatprep.mubr.msk.bf16.mxu1 %vm299_vm0, %v1144_v37 }
  0x61   :  { %425 = vmatmul.mubr.bf16.gmra.mrb[20].mxu0 %v1146_v38  ;;  %489 = vmatmul.mubr.bf16.gmra.mrb[20].mxu1 %v1147_v39 }
  0x62   :  { %963 = vmatprep.mubr.msk.bf16.mxu0 %vm299_vm0, %v1148_v40  ;;  %971 = vmatprep.mubr.msk.bf16.mxu1 %vm299_vm0, %v1150_v41 }
  0x69   :  { %433 = vmatmul.mubr.bf16.gmra.mrb[24].mxu0 %v1152_v42  ;;  %497 = vmatmul.mubr.bf16.gmra.mrb[24].mxu1 %v1153_v43 }
  0x6a   :  { %964 = vmatprep.mubr.msk.bf16.mxu0 %vm299_vm0, %v1154_v44  ;;  %972 = vmatprep.mubr.msk.bf16.mxu1 %vm299_vm0, %v1156_v45 }
  0x71   :  { %441 = vmatmul.mubr.bf16.gmra.mrb[28].mxu0 %v1158_v46  ;;  %505 = vmatmul.mubr.bf16.gmra.mrb[28].mxu1 %v1159_v47 }
 0x10c   :  { %v386_v55 = vpop.f32.mrb[0].mxu0  ;;  %v450_v56 = vpop.f32.mrb[0].mxu1 }
 0x10d   :  { %v518_v57 = vmul.f32 %v1366_v53, %v386_v55  ;;  %v534_v58 = vmul.f32 %v1366_v53, %v450_v56  ;;  %v388_v59 = vpop.f32.mrb[1].mxu0  ;;  %v452_v60 = vpop.f32.mrb[1].mxu1 }
 0x10e   :  { %v389_v61 = vpop.f32.mrb[2].mxu0  ;;  %v453_v62 = vpop.f32.mrb[2].mxu1 }
 0x10f   :  { %v554_v63 = vadd.f32 %v1368_v54, %v518_v57  ;;  %v570_v0 = vadd.f32 %v1368_v54, %v534_v58  ;;  %v519_v1 = vmul.f32 %v1366_v53, %v389_v61  ;;  %v535_v2 = vmul.f32 %v1366_v53, %v453_v62  ;;  %v391_v3 = vpop.f32.mrb[3].mxu0  ;;  %v455_v4 = vpop.f32.mrb[3].mxu1 }
 0x111   :  { %v586_v5 = vmax.f32 %v554_v63, 0.0  ;;  %v602_v6 = vmax.f32 %v570_v0, 0.0  ;;  %v555_v7 = vadd.f32 %v1368_v54, %v519_v1  ;;  %v571_v8 = vadd.f32 %v1368_v54, %v535_v2 }
 0x113   :  { %v1065_v9 = vround.rtne.f32 %v586_v5  ;;  %v1081_v10 = vround.rtne.f32 %v602_v6  ;;  %v587_v11 = vmax.f32 %v555_v7, 0.0  ;;  %v603_v12 = vmax.f32 %v571_v8, 0.0 }
 0x114   :  { %v394_v13 = vpop.f32.mrb[4].mxu0  ;;  %v458_v14 = vpop.f32.mrb[4].mxu1 }
 0x115   :  { %v650_v15 = vmax.f32 %v1065_v9, 0.0  ;;  %v666_v16 = vmax.f32 %v1081_v10, 0.0  ;;  %v1066_v17 = vround.rtne.f32 %v587_v11  ;;  %v1082_v18 = vround.rtne.f32 %v603_v12  ;;  %v396_v19 = vpop.f32.mrb[5].mxu0  ;;  %v460_v20 = vpop.f32.mrb[5].mxu1 }
 0x116   :  { %v520_v21 = vmul.f32 %v1366_v53, %v394_v13  ;;  %v536_v22 = vmul.f32 %v1366_v53, %v458_v14  ;;  %v397_v23 = vpop.f32.mrb[6].mxu0  ;;  %v461_v24 = vpop.f32.mrb[6].mxu1 }
 0x117   :  { %v682_v25 = vmin.f32 %v650_v15, 15.0  ;;  %v698_v26 = vmin.f32 %v666_v16, 15.0  ;;  %v651_v27 = vmax.f32 %v1066_v17, 0.0  ;;  %v667_v28 = vmax.f32 %v1082_v18, 0.0  ;;  %v399_v29 = vpop.f32.mrb[7].mxu0  ;;  %v463_v30 = vpop.f32.mrb[7].mxu1 }
 0x118   :  { %v556_v31 = vadd.f32 %v1368_v54, %v520_v21  ;;  %v572_v32 = vadd.f32 %v1368_v54, %v536_v22  ;;  %v521_v33 = vmul.f32 %v1366_v53, %v397_v23  ;;  %v537_v34 = vmul.f32 %v1366_v53, %v461_v24 }
 0x119   :  { %v714_v35 = vmul.f32 0.4, %v682_v25  ;;  %v730_v36 = vmul.f32 0.4, %v698_v26  ;;  %v683_v37 = vmin.f32 %v651_v27, 15.0  ;;  %v699_v38 = vmin.f32 %v667_v28, 15.0 }
 0x11a   :  { %v588_v39 = vmax.f32 %v556_v31, 0.0  ;;  %v604_v40 = vmax.f32 %v572_v32, 0.0  ;;  %v557_v41 = vadd.f32 %v1368_v54, %v521_v33  ;;  %v573_v42 = vadd.f32 %v1368_v54, %v537_v34 }
 0x11b   :  { %v1005_v43 = vpack.c.bf16 %v714_v35, %v714_v35  ;;  %v1021_v44 = vpack.c.bf16 %v730_v36, %v730_v36  ;;  %v715_v45 = vmul.f32 0.4, %v683_v37  ;;  %v731_v46 = vmul.f32 0.4, %v699_v38 }
 0x11c   :  { %v1067_v47 = vround.rtne.f32 %v588_v39  ;;  %v1083_v48 = vround.rtne.f32 %v604_v40  ;;  %v589_v49 = vmax.f32 %v557_v41, 0.0  ;;  %v605_v50 = vmax.f32 %v573_v42, 0.0  ;;  %v402_v51 = vpop.f32.mrb[8].mxu0  ;;  %v466_v52 = vpop.f32.mrb[8].mxu1 }
 0x11d   :  { %875 = vst.msk [vmem:[%s1565_s3] sm:$0xf] %vm874_vm2, %v1005_v43  ;;  %891 = vst.msk [vmem:[%s1565_s3 + $0x40] sm:$0xf] %vm874_vm2, %v1021_v44  ;;  %v1006_v55 = vpack.c.bf16 %v715_v45, %v715_v45  ;;  %v1022_v56 = vpack.c.bf16 %v731_v46, %v731_v46  ;;  %v522_v57 = vmul.f32 %v1366_v53, %v402_v51  ;;  %v404_v59 = vpop.f32.mrb[9].mxu0  ;;  %v468_v60 = vpop.f32.mrb[9].mxu1 }
 0x11e   :  { %v538_v58 = vmul.f32 %v1366_v53, %v466_v52  ;;  %v652_v61 = vmax.f32 %v1067_v47, 0.0  ;;  %v668_v62 = vmax.f32 %v1083_v48, 0.0  ;;  %v1068_v63 = vround.rtne.f32 %v589_v49  ;;  %v405_v1 = vpop.f32.mrb[10].mxu0  ;;  %v469_v2 = vpop.f32.mrb[10].mxu1 }
 0x11f   :  { %v1084_v0 = vround.rtne.f32 %v605_v50  ;;  %876 = vst.msk [vmem:[%s1565_s3 + $0x4] sm:$0xf] %vm874_vm2, %v1006_v55  ;;  %892 = vst.msk [vmem:[%s1565_s3 + $0x44] sm:$0xf] %vm874_vm2, %v1022_v56  ;;  %v558_v3 = vadd.f32 %v1368_v54, %v522_v57  ;;  %v523_v5 = vmul.f32 %v1366_v53, %v405_v1  ;;  %v539_v6 = vmul.f32 %v1366_v53, %v469_v2  ;;  %v407_v7 = vpop.f32.mrb[11].mxu0  ;;  %v471_v8 = vpop.f32.mrb[11].mxu1 }
 0x120   :  { %v574_v4 = vadd.f32 %v1368_v54, %v538_v58  ;;  %v684_v9 = vmin.f32 %v652_v61, 15.0  ;;  %v700_v10 = vmin.f32 %v668_v62, 15.0  ;;  %v653_v11 = vmax.f32 %v1068_v63, 0.0 }
 0x121   :  { %v669_v12 = vmax.f32 %v1084_v0, 0.0  ;;  %v590_v13 = vmax.f32 %v558_v3, 0.0  ;;  %v559_v15 = vadd.f32 %v1368_v54, %v523_v5  ;;  %v575_v16 = vadd.f32 %v1368_v54, %v539_v6 }
 0x122   :  { %v606_v14 = vmax.f32 %v574_v4, 0.0  ;;  %v716_v17 = vmul.f32 0.4, %v684_v9  ;;  %v732_v18 = vmul.f32 0.4, %v700_v10  ;;  %v685_v19 = vmin.f32 %v653_v11, 15.0 }
 0x123   :  { %v701_v20 = vmin.f32 %v669_v12, 15.0  ;;  %v1069_v21 = vround.rtne.f32 %v590_v13  ;;  %v591_v23 = vmax.f32 %v559_v15, 0.0  ;;  %v607_v24 = vmax.f32 %v575_v16, 0.0 }
 0x124   :  { %v1085_v22 = vround.rtne.f32 %v606_v14  ;;  %v1007_v25 = vpack.c.bf16 %v716_v17, %v716_v17  ;;  %v1023_v26 = vpack.c.bf16 %v732_v18, %v732_v18  ;;  %v717_v27 = vmul.f32 0.4, %v685_v19  ;;  %v410_v29 = vpop.f32.mrb[12].mxu0  ;;  %v474_v30 = vpop.f32.mrb[12].mxu1 }
 0x125   :  { %v733_v28 = vmul.f32 0.4, %v701_v20  ;;  %v654_v31 = vmax.f32 %v1069_v21, 0.0  ;;  %v1070_v33 = vround.rtne.f32 %v591_v23  ;;  %v1086_v34 = vround.rtne.f32 %v607_v24  ;;  %v412_v35 = vpop.f32.mrb[13].mxu0  ;;  %v476_v36 = vpop.f32.mrb[13].mxu1 }
 0x126   :  { %v670_v32 = vmax.f32 %v1085_v22, 0.0  ;;  %877 = vst.msk [vmem:[%s1565_s3 + $0x8] sm:$0xf] %vm874_vm2, %v1007_v25  ;;  %893 = vst.msk [vmem:[%s1565_s3 + $0x48] sm:$0xf] %vm874_vm2, %v1023_v26  ;;  %v1008_v37 = vpack.c.bf16 %v717_v27, %v717_v27  ;;  %v524_v39 = vmul.f32 %v1366_v53, %v410_v29  ;;  %v540_v40 = vmul.f32 %v1366_v53, %v474_v30  ;;  %v413_v41 = vpop.f32.mrb[14].mxu0 }
 0x127   :  { %v1024_v38 = vpack.c.bf16 %v733_v28, %v733_v28  ;;  %v477_v42 = vpop.f32.mrb[14].mxu1  ;;  %v686_v43 = vmin.f32 %v654_v31, 15.0  ;;  %v655_v45 = vmax.f32 %v1070_v33, 0.0  ;;  %v671_v46 = vmax.f32 %v1086_v34, 0.0  ;;  %v415_v47 = vpop.f32.mrb[15].mxu0 }
 0x128   :  { %v702_v44 = vmin.f32 %v670_v32, 15.0  ;;  %v479_v48 = vpop.f32.mrb[15].mxu1  ;;  %878 = vst.msk [vmem:[%s1565_s3 + $0xc] sm:$0xf] %vm874_vm2, %v1008_v37  ;;  %v560_v49 = vadd.f32 %v1368_v54, %v524_v39  ;;  %v576_v50 = vadd.f32 %v1368_v54, %v540_v40  ;;  %v525_v51 = vmul.f32 %v1366_v53, %v413_v41 }
 0x129   :  { %894 = vst.msk [vmem:[%s1565_s3 + $0x4c] sm:$0xf] %vm874_vm2, %v1024_v38  ;;  %v541_v52 = vmul.f32 %v1366_v53, %v477_v42  ;;  %v718_v55 = vmul.f32 0.4, %v686_v43  ;;  %v687_v57 = vmin.f32 %v655_v45, 15.0  ;;  %v703_v58 = vmin.f32 %v671_v46, 15.0 }
 0x12a   :  { %v734_v56 = vmul.f32 0.4, %v702_v44  ;;  %v592_v59 = vmax.f32 %v560_v49, 0.0  ;;  %v608_v60 = vmax.f32 %v576_v50, 0.0  ;;  %v561_v61 = vadd.f32 %v1368_v54, %v525_v51 }
 0x12b   :  { %v577_v62 = vadd.f32 %v1368_v54, %v541_v52  ;;  %v1009_v63 = vpack.c.bf16 %v718_v55, %v718_v55  ;;  %v719_v1 = vmul.f32 0.4, %v687_v57  ;;  %v735_v2 = vmul.f32 0.4, %v703_v58 }
 0x12c   :  { %v1025_v0 = vpack.c.bf16 %v734_v56, %v734_v56  ;;  %v1071_v3 = vround.rtne.f32 %v592_v59  ;;  %v1087_v4 = vround.rtne.f32 %v608_v60  ;;  %v593_v5 = vmax.f32 %v561_v61, 0.0  ;;  %v418_v7 = vpop.f32.mrb[16].mxu0  ;;  %v482_v8 = vpop.f32.mrb[16].mxu1 }
 0x12d   :  { %v609_v6 = vmax.f32 %v577_v62, 0.0  ;;  %879 = vst.msk [vmem:[%s1565_s3 + $0x10] sm:$0xf] %vm874_vm2, %v1009_v63  ;;  %v1010_v9 = vpack.c.bf16 %v719_v1, %v719_v1  ;;  %v1026_v10 = vpack.c.bf16 %v735_v2, %v735_v2  ;;  %v526_v11 = vmul.f32 %v1366_v53, %v418_v7  ;;  %v420_v13 = vpop.f32.mrb[17].mxu0  ;;  %v484_v14 = vpop.f32.mrb[17].mxu1 }
 0x12e   :  { %895 = vst.msk [vmem:[%s1565_s3 + $0x50] sm:$0xf] %vm874_vm2, %v1025_v0  ;;  %v542_v12 = vmul.f32 %v1366_v53, %v482_v8  ;;  %v656_v15 = vmax.f32 %v1071_v3, 0.0  ;;  %v672_v16 = vmax.f32 %v1087_v4, 0.0  ;;  %v1072_v17 = vround.rtne.f32 %v593_v5  ;;  %v421_v19 = vpop.f32.mrb[18].mxu0  ;;  %v485_v20 = vpop.f32.mrb[18].mxu1 }
 0x12f   :  { %v1088_v18 = vround.rtne.f32 %v609_v6  ;;  %880 = vst.msk [vmem:[%s1565_s3 + $0x14] sm:$0xf] %vm874_vm2, %v1010_v9  ;;  %896 = vst.msk [vmem:[%s1565_s3 + $0x54] sm:$0xf] %vm874_vm2, %v1026_v10  ;;  %v562_v21 = vadd.f32 %v1368_v54, %v526_v11  ;;  %v527_v23 = vmul.f32 %v1366_v53, %v421_v19  ;;  %v543_v24 = vmul.f32 %v1366_v53, %v485_v20  ;;  %v423_v25 = vpop.f32.mrb[19].mxu0  ;;  %v487_v26 = vpop.f32.mrb[19].mxu1 }
 0x130   :  { %v578_v22 = vadd.f32 %v1368_v54, %v542_v12  ;;  %v688_v27 = vmin.f32 %v656_v15, 15.0  ;;  %v704_v28 = vmin.f32 %v672_v16, 15.0  ;;  %v657_v29 = vmax.f32 %v1072_v17, 0.0 }
 0x131   :  { %v673_v30 = vmax.f32 %v1088_v18, 0.0  ;;  %v594_v31 = vmax.f32 %v562_v21, 0.0  ;;  %v563_v33 = vadd.f32 %v1368_v54, %v527_v23  ;;  %v579_v34 = vadd.f32 %v1368_v54, %v543_v24 }
 0x132   :  { %v610_v32 = vmax.f32 %v578_v22, 0.0  ;;  %v720_v35 = vmul.f32 0.4, %v688_v27  ;;  %v736_v36 = vmul.f32 0.4, %v704_v28  ;;  %v689_v37 = vmin.f32 %v657_v29, 15.0 }
 0x133   :  { %v705_v38 = vmin.f32 %v673_v30, 15.0  ;;  %v1073_v39 = vround.rtne.f32 %v594_v31  ;;  %v595_v41 = vmax.f32 %v563_v33, 0.0  ;;  %v611_v42 = vmax.f32 %v579_v34, 0.0 }
 0x134   :  { %v1089_v40 = vround.rtne.f32 %v610_v32  ;;  %v1011_v43 = vpack.c.bf16 %v720_v35, %v720_v35  ;;  %v1027_v44 = vpack.c.bf16 %v736_v36, %v736_v36  ;;  %v721_v45 = vmul.f32 0.4, %v689_v37  ;;  %v426_v47 = vpop.f32.mrb[20].mxu0  ;;  %v490_v48 = vpop.f32.mrb[20].mxu1 }
 0x135   :  { %v737_v46 = vmul.f32 0.4, %v705_v38  ;;  %v658_v49 = vmax.f32 %v1073_v39, 0.0  ;;  %v1074_v51 = vround.rtne.f32 %v595_v41  ;;  %v1090_v52 = vround.rtne.f32 %v611_v42  ;;  %v428_v55 = vpop.f32.mrb[21].mxu0  ;;  %v492_v56 = vpop.f32.mrb[21].mxu1 }
 0x136   :  { %v674_v50 = vmax.f32 %v1089_v40, 0.0  ;;  %881 = vst.msk [vmem:[%s1565_s3 + $0x18] sm:$0xf] %vm874_vm2, %v1011_v43  ;;  %897 = vst.msk [vmem:[%s1565_s3 + $0x58] sm:$0xf] %vm874_vm2, %v1027_v44  ;;  %v1012_v57 = vpack.c.bf16 %v721_v45, %v721_v45  ;;  %v528_v59 = vmul.f32 %v1366_v53, %v426_v47  ;;  %v544_v60 = vmul.f32 %v1366_v53, %v490_v48  ;;  %v429_v61 = vpop.f32.mrb[22].mxu0 }
 0x137   :  { %v1028_v58 = vpack.c.bf16 %v737_v46, %v737_v46  ;;  %v493_v62 = vpop.f32.mrb[22].mxu1  ;;  %v690_v63 = vmin.f32 %v658_v49, 15.0  ;;  %v659_v1 = vmax.f32 %v1074_v51, 0.0  ;;  %v675_v2 = vmax.f32 %v1090_v52, 0.0  ;;  %v431_v3 = vpop.f32.mrb[23].mxu0 }
 0x138   :  { %v706_v0 = vmin.f32 %v674_v50, 15.0  ;;  %v495_v4 = vpop.f32.mrb[23].mxu1  ;;  %882 = vst.msk [vmem:[%s1565_s3 + $0x1c] sm:$0xf] %vm874_vm2, %v1012_v57  ;;  %v564_v5 = vadd.f32 %v1368_v54, %v528_v59  ;;  %v580_v6 = vadd.f32 %v1368_v54, %v544_v60  ;;  %v529_v7 = vmul.f32 %v1366_v53, %v429_v61 }
 0x139   :  { %898 = vst.msk [vmem:[%s1565_s3 + $0x5c] sm:$0xf] %vm874_vm2, %v1028_v58  ;;  %v545_v8 = vmul.f32 %v1366_v53, %v493_v62  ;;  %v722_v9 = vmul.f32 0.4, %v690_v63  ;;  %v691_v11 = vmin.f32 %v659_v1, 15.0  ;;  %v707_v12 = vmin.f32 %v675_v2, 15.0 }
 0x13a   :  { %v738_v10 = vmul.f32 0.4, %v706_v0  ;;  %v596_v13 = vmax.f32 %v564_v5, 0.0  ;;  %v612_v14 = vmax.f32 %v580_v6, 0.0  ;;  %v565_v15 = vadd.f32 %v1368_v54, %v529_v7 }
 0x13b   :  { %v581_v16 = vadd.f32 %v1368_v54, %v545_v8  ;;  %v1013_v17 = vpack.c.bf16 %v722_v9, %v722_v9  ;;  %v723_v19 = vmul.f32 0.4, %v691_v11  ;;  %v739_v20 = vmul.f32 0.4, %v707_v12 }
 0x13c   :  { %v1029_v18 = vpack.c.bf16 %v738_v10, %v738_v10  ;;  %v1075_v21 = vround.rtne.f32 %v596_v13  ;;  %v1091_v22 = vround.rtne.f32 %v612_v14  ;;  %v597_v23 = vmax.f32 %v565_v15, 0.0  ;;  %v434_v25 = vpop.f32.mrb[24].mxu0  ;;  %v498_v26 = vpop.f32.mrb[24].mxu1 }
 0x13d   :  { %v613_v24 = vmax.f32 %v581_v16, 0.0  ;;  %883 = vst.msk [vmem:[%s1565_s3 + $0x20] sm:$0xf] %vm874_vm2, %v1013_v17  ;;  %v1014_v27 = vpack.c.bf16 %v723_v19, %v723_v19  ;;  %v1030_v28 = vpack.c.bf16 %v739_v20, %v739_v20  ;;  %v530_v29 = vmul.f32 %v1366_v53, %v434_v25  ;;  %v436_v31 = vpop.f32.mrb[25].mxu0  ;;  %v500_v32 = vpop.f32.mrb[25].mxu1 }
 0x13e   :  { %899 = vst.msk [vmem:[%s1565_s3 + $0x60] sm:$0xf] %vm874_vm2, %v1029_v18  ;;  %v546_v30 = vmul.f32 %v1366_v53, %v498_v26  ;;  %v660_v33 = vmax.f32 %v1075_v21, 0.0  ;;  %v676_v34 = vmax.f32 %v1091_v22, 0.0  ;;  %v1076_v35 = vround.rtne.f32 %v597_v23  ;;  %v437_v37 = vpop.f32.mrb[26].mxu0  ;;  %v501_v38 = vpop.f32.mrb[26].mxu1 }
 0x13f   :  { %v1092_v36 = vround.rtne.f32 %v613_v24  ;;  %884 = vst.msk [vmem:[%s1565_s3 + $0x24] sm:$0xf] %vm874_vm2, %v1014_v27  ;;  %900 = vst.msk [vmem:[%s1565_s3 + $0x64] sm:$0xf] %vm874_vm2, %v1030_v28  ;;  %v566_v39 = vadd.f32 %v1368_v54, %v530_v29  ;;  %v531_v41 = vmul.f32 %v1366_v53, %v437_v37  ;;  %v547_v42 = vmul.f32 %v1366_v53, %v501_v38  ;;  %v439_v43 = vpop.f32.mrb[27].mxu0  ;;  %v503_v44 = vpop.f32.mrb[27].mxu1 }
 0x140   :  { %v582_v40 = vadd.f32 %v1368_v54, %v546_v30  ;;  %v692_v45 = vmin.f32 %v660_v33, 15.0  ;;  %v708_v46 = vmin.f32 %v676_v34, 15.0  ;;  %v661_v47 = vmax.f32 %v1076_v35, 0.0 }
 0x141   :  { %v677_v48 = vmax.f32 %v1092_v36, 0.0  ;;  %v598_v49 = vmax.f32 %v566_v39, 0.0  ;;  %v567_v51 = vadd.f32 %v1368_v54, %v531_v41  ;;  %v583_v52 = vadd.f32 %v1368_v54, %v547_v42 }
 0x142   :  { %v614_v50 = vmax.f32 %v582_v40, 0.0  ;;  %v724_v55 = vmul.f32 0.4, %v692_v45  ;;  %v740_v56 = vmul.f32 0.4, %v708_v46  ;;  %v693_v57 = vmin.f32 %v661_v47, 15.0 }
 0x143   :  { %v709_v58 = vmin.f32 %v677_v48, 15.0  ;;  %v1077_v59 = vround.rtne.f32 %v598_v49  ;;  %v599_v61 = vmax.f32 %v567_v51, 0.0  ;;  %v615_v62 = vmax.f32 %v583_v52, 0.0 }
 0x144   :  { %v1093_v60 = vround.rtne.f32 %v614_v50  ;;  %v1015_v63 = vpack.c.bf16 %v724_v55, %v724_v55  ;;  %v1031_v0 = vpack.c.bf16 %v740_v56, %v740_v56  ;;  %v725_v1 = vmul.f32 0.4, %v693_v57  ;;  %v442_v3 = vpop.f32.mrb[28].mxu0  ;;  %v506_v4 = vpop.f32.mrb[28].mxu1 }
 0x145   :  { %v741_v2 = vmul.f32 0.4, %v709_v58  ;;  %v662_v5 = vmax.f32 %v1077_v59, 0.0  ;;  %v1078_v7 = vround.rtne.f32 %v599_v61  ;;  %v1094_v8 = vround.rtne.f32 %v615_v62  ;;  %v444_v9 = vpop.f32.mrb[29].mxu0  ;;  %v508_v10 = vpop.f32.mrb[29].mxu1 }
 0x146   :  { %v678_v6 = vmax.f32 %v1093_v60, 0.0  ;;  %885 = vst.msk [vmem:[%s1565_s3 + $0x28] sm:$0xf] %vm874_vm2, %v1015_v63  ;;  %901 = vst.msk [vmem:[%s1565_s3 + $0x68] sm:$0xf] %vm874_vm2, %v1031_v0  ;;  %v1016_v11 = vpack.c.bf16 %v725_v1, %v725_v1  ;;  %v532_v13 = vmul.f32 %v1366_v53, %v442_v3  ;;  %v548_v14 = vmul.f32 %v1366_v53, %v506_v4  ;;  %v445_v15 = vpop.f32.mrb[30].mxu0 }
 0x147   :  { %v1032_v12 = vpack.c.bf16 %v741_v2, %v741_v2  ;;  %v509_v16 = vpop.f32.mrb[30].mxu1  ;;  %v694_v17 = vmin.f32 %v662_v5, 15.0  ;;  %v663_v19 = vmax.f32 %v1078_v7, 0.0  ;;  %v679_v20 = vmax.f32 %v1094_v8, 0.0  ;;  %v447_v21 = vpop.f32.mrb[31].mxu0 }
 0x148   :  { %v710_v18 = vmin.f32 %v678_v6, 15.0  ;;  %v511_v22 = vpop.f32.mrb[31].mxu1  ;;  %886 = vst.msk [vmem:[%s1565_s3 + $0x2c] sm:$0xf] %vm874_vm2, %v1016_v11  ;;  %v568_v23 = vadd.f32 %v1368_v54, %v532_v13  ;;  %v584_v24 = vadd.f32 %v1368_v54, %v548_v14  ;;  %v533_v25 = vmul.f32 %v1366_v53, %v445_v15 }
 0x149   :  { %902 = vst.msk [vmem:[%s1565_s3 + $0x6c] sm:$0xf] %vm874_vm2, %v1032_v12  ;;  %v549_v26 = vmul.f32 %v1366_v53, %v509_v16  ;;  %v726_v27 = vmul.f32 0.4, %v694_v17  ;;  %v695_v29 = vmin.f32 %v663_v19, 15.0  ;;  %v711_v30 = vmin.f32 %v679_v20, 15.0 }
 0x14a   :  { %v742_v28 = vmul.f32 0.4, %v710_v18  ;;  %v600_v31 = vmax.f32 %v568_v23, 0.0  ;;  %v616_v32 = vmax.f32 %v584_v24, 0.0  ;;  %v569_v33 = vadd.f32 %v1368_v54, %v533_v25 }
 0x14b   :  { %v585_v34 = vadd.f32 %v1368_v54, %v549_v26  ;;  %v1017_v35 = vpack.c.bf16 %v726_v27, %v726_v27  ;;  %v727_v37 = vmul.f32 0.4, %v695_v29  ;;  %v743_v38 = vmul.f32 0.4, %v711_v30 }
 0x14c   :  { %v1033_v36 = vpack.c.bf16 %v742_v28, %v742_v28  ;;  %v1079_v39 = vround.rtne.f32 %v600_v31  ;;  %v1095_v40 = vround.rtne.f32 %v616_v32  ;;  %v601_v41 = vmax.f32 %v569_v33, 0.0 }
 0x14d   :  { %v617_v42 = vmax.f32 %v585_v34, 0.0  ;;  %887 = vst.msk [vmem:[%s1565_s3 + $0x30] sm:$0xf] %vm874_vm2, %v1017_v35  ;;  %v1018_v53 = vpack.c.bf16 %v727_v37, %v727_v37  ;;  %v1034_v54 = vpack.c.bf16 %v743_v38, %v743_v38 }
 0x14e   :  { %903 = vst.msk [vmem:[%s1565_s3 + $0x70] sm:$0xf] %vm874_vm2, %v1033_v36  ;;  %v664_v43 = vmax.f32 %v1079_v39, 0.0  ;;  %v680_v44 = vmax.f32 %v1095_v40, 0.0  ;;  %v1080_v45 = vround.rtne.f32 %v601_v41 }
 0x14f   :  { %v1096_v46 = vround.rtne.f32 %v617_v42  ;;  %888 = vst.msk [vmem:[%s1565_s3 + $0x34] sm:$0xf] %vm874_vm2, %v1018_v53  ;;  %904 = vst.msk [vmem:[%s1565_s3 + $0x74] sm:$0xf] %vm874_vm2, %v1034_v54 }
 0x150   :  { %v696_v47 = vmin.f32 %v664_v43, 15.0  ;;  %v712_v48 = vmin.f32 %v680_v44, 15.0  ;;  %v665_v49 = vmax.f32 %v1080_v45, 0.0 }
 0x151   :  { %v681_v50 = vmax.f32 %v1096_v46, 0.0 }
 0x152   :  { %v728_v51 = vmul.f32 0.4, %v696_v47  ;;  %v744_v52 = vmul.f32 0.4, %v712_v48  ;;  %v697_v55 = vmin.f32 %v665_v49, 15.0 }
 0x153   :  { %v713_v56 = vmin.f32 %v681_v50, 15.0 }
 0x154   :  { %v1019_v57 = vpack.c.bf16 %v728_v51, %v728_v51  ;;  %v1035_v58 = vpack.c.bf16 %v744_v52, %v744_v52  ;;  %v729_v59 = vmul.f32 0.4, %v697_v55 }
 0x155   :  { %v745_v60 = vmul.f32 0.4, %v713_v56 }
 0x156   :  { %889 = vst.msk [vmem:[%s1565_s3 + $0x38] sm:$0xf] %vm874_vm2, %v1019_v57  ;;  %905 = vst.msk [vmem:[%s1565_s3 + $0x78] sm:$0xf] %vm874_vm2, %v1035_v58  ;;  %v1020_v61 = vpack.c.bf16 %v729_v59, %v729_v59 }
 0x157   :  { %v1036_v62 = vpack.c.bf16 %v745_v60, %v745_v60 }
 0x158   :  { %890 = vst.msk [vmem:[%s1565_s3 + $0x3c] sm:$0xf] %vm874_vm2, %v1020_v61 }
 0x159   :  { %906 = vst.msk [vmem:[%s1565_s3 + $0x7c] sm:$0xf] %vm874_vm2, %v1036_v62 }

// kernel: quant_resnet_forward.15
= control target key start
LH: loop header
LB: loop body
LE: loop exit
PB: predicated region body
PF: predicated region fallthrough
CT: control target
= control target key end

     0   :  { %v1370_v0 = vmov 0   ;;  %vm302_vm0 = vcmask 719872   ;;  %vm351_vm1 = vcmask 1043456   ;;  %v517_v48 = vlaneseq  ;;  %s1921_s1 = inlined_call_operand.vmem [shape: bf16[216,8], index: 1, kind: input, shape index: {}]   ;;  %s1922_s0 = inlined_call_operand.vmem [shape: bf16[256,216], index: 0, kind: input, shape index: {}]   ;;  %s1923_s3 = inlined_call_operand.vmem [shape: bf16[256,8], index: 3, kind: input, shape index: {}]   ;;  %s1924_s2 = inlined_call_operand.vmem [shape: f32[2,8], index: 2, kind: input, shape index: {}]   ;;  %s1925_s4 = inlined_call_operand.vmem [shape: bf16[256,8], index: 4, kind: output, shape index: {}]  }
   0x1   :  { %355 = vmatprep.subr.bf16.mxu0 %v1370_v0  ;;  %1247 = vmatprep.subr.bf16.mxu1 %v1370_v0  ;;  %v1308_v1 = vld [vmem:[%s1921_s1] sm:$0xff]   ;;  %v1309_v2 = vld [vmem:[%s1921_s1 + $0x8] sm:$0xff]   ;;  %v1310_v3 = vld [vmem:[%s1921_s1 + $0x10] sm:$0xff]   ;;  %vm1005_vm2 = vcmask 60416  }
   0x2   :  { %356 = vmatpush1.bf16.msra.mxu0 %v1308_v1  ;;  %1261 = vmatpush1.bf16.msra.mxu1 %v1308_v1  ;;  %v1311_v4 = vld [vmem:[%s1921_s1 + $0x18] sm:$0xff]   ;;  %v1312_v5 = vld [vmem:[%s1921_s1 + $0x20] sm:$0xff]   ;;  %v1313_v8 = vld [vmem:[%s1921_s1 + $0x28] sm:$0xff]   ;;  %v518_v49 = vshrl.u32 %v517_v48, 7 }
   0x3   :  { %357 = vmatprep.subr.bf16.mxu0 %v1370_v0  ;;  %1248 = vmatprep.subr.bf16.mxu1 %v1370_v0  ;;  %v1324_v6 = vld [vmem:[%s1922_s0 + $0x4] ss:$8 sps:$4 sm:$0xff]   ;;  %v1314_v9 = vld [vmem:[%s1921_s1 + $0x30] sm:$0xff]   ;;  %v1315_v10 = vld [vmem:[%s1921_s1 + $0x38] sm:$0xff]  }
   0x4   :  { %1088 = vmatprep.mubr.msk.bf16.mxu0 %vm302_vm0, %v1324_v6  ;;  %v1327_v7 = vld [vmem:[%s1922_s0 + $0x84] ss:$8 sps:$4 sm:$0xff]   ;;  %v1318_v13 = vld [vmem:[%s1921_s1 + $0x50] sm:$0xff]   ;;  %v1319_v14 = vld [vmem:[%s1921_s1 + $0x58] sm:$0xff]   ;;  %v519_v54 = vsub.s32 0, %v518_v49  ;;  %v555_v55 = vsub.s32 1, %v518_v49 }
   0x5   :  { %1096 = vmatprep.mubr.msk.bf16.mxu1 %vm302_vm0, %v1327_v7  ;;  %v1316_v11 = vld [vmem:[%s1921_s1 + $0x40] sm:$0xff]   ;;  %v1317_v12 = vld [vmem:[%s1921_s1 + $0x48] sm:$0xff]   ;;  %v1328_v20 = vld [vmem:[%s1922_s0 + $0x14] ss:$8 sps:$4 sm:$0xff]  }
   0x6   :  { %358 = vmatpush1.bf16.msra.mxu0 %v1309_v2  ;;  %1262 = vmatpush1.bf16.msra.mxu1 %v1309_v2  ;;  %v1320_v15 = vld [vmem:[%s1921_s1 + $0x60] sm:$0xff]   ;;  %v1321_v16 = vld [vmem:[%s1921_s1 + $0x68] ss:$0 sps:$4 sm:$0xff]   ;;  %v1330_v21 = vld [vmem:[%s1922_s0 + $0x94] ss:$8 sps:$4 sm:$0xff]  }
   0x7   :  { %359 = vmatprep.subr.bf16.mxu0 %v1370_v0  ;;  %1249 = vmatprep.subr.bf16.mxu1 %v1370_v0  ;;  %v353_v17 = vsel %vm351_vm1, %v1321_v16, 0  ;;  %v1322_v18 = vld [vmem:[%s1922_s0] ss:$8 sps:$4 sm:$0xff]   ;;  %v1332_v22 = vld [vmem:[%s1922_s0 + $0x10] ss:$8 sps:$4 sm:$0xff]  }
   0x8   :  { %v1325_v19 = vld [vmem:[%s1922_s0 + $0x80] ss:$8 sps:$4 sm:$0xff]   ;;  %v1333_v23 = vld [vmem:[%s1922_s0 + $0x90] ss:$8 sps:$4 sm:$0xff]   ;;  %v1334_v24 = vld [vmem:[%s1922_s0 + $0x24] ss:$8 sps:$4 sm:$0xff]  }
   0x9   :  { %v1336_v25 = vld [vmem:[%s1922_s0 + $0xa4] ss:$8 sps:$4 sm:$0xff]   ;;  %v1338_v26 = vld [vmem:[%s1922_s0 + $0x20] ss:$8 sps:$4 sm:$0xff]   ;;  %v1340_v28 = vld [vmem:[%s1922_s0 + $0x34] ss:$8 sps:$4 sm:$0xff]  }
   0xa   :  { %360 = vmatpush1.bf16.msra.mxu0 %v1310_v3  ;;  %1263 = vmatpush1.bf16.msra.mxu1 %v1310_v3  ;;  %v1339_v27 = vld [vmem:[%s1922_s0 + $0xa0] ss:$8 sps:$4 sm:$0xff]   ;;  %v1342_v29 = vld [vmem:[%s1922_s0 + $0xb4] ss:$8 sps:$4 sm:$0xff]   ;;  %v1344_v30 = vld [vmem:[%s1922_s0 + $0x30] ss:$8 sps:$4 sm:$0xff]  }
   0xb   :  { %361 = vmatprep.subr.bf16.mxu0 %v1370_v0  ;;  %1250 = vmatprep.subr.bf16.mxu1 %v1370_v0  ;;  %v1345_v31 = vld [vmem:[%s1922_s0 + $0xb0] ss:$8 sps:$4 sm:$0xff]   ;;  %v1346_v32 = vld [vmem:[%s1922_s0 + $0x44] ss:$8 sps:$4 sm:$0xff]   ;;  %v1350_v34 = vld [vmem:[%s1922_s0 + $0x40] ss:$8 sps:$4 sm:$0xff]  }
   0xc   :  { %v1348_v33 = vld [vmem:[%s1922_s0 + $0xc4] ss:$8 sps:$4 sm:$0xff]   ;;  %v1351_v35 = vld [vmem:[%s1922_s0 + $0xc0] ss:$8 sps:$4 sm:$0xff]   ;;  %v1352_v36 = vld [vmem:[%s1922_s0 + $0x54] ss:$8 sps:$4 sm:$0xff]  }
   0xd   :  { %v1354_v37 = vld [vmem:[%s1922_s0 + $0xd4] ss:$8 sps:$4 sm:$0xff]   ;;  %v1356_v38 = vld [vmem:[%s1922_s0 + $0x50] ss:$8 sps:$4 sm:$0xff]   ;;  %v1358_v40 = vld [vmem:[%s1922_s0 + $0x64] ss:$8 sps:$4 sm:$0xff]  }
   0xe   :  { %362 = vmatpush1.bf16.msra.mxu0 %v1311_v4  ;;  %1264 = vmatpush1.bf16.msra.mxu1 %v1311_v4  ;;  %v1357_v39 = vld [vmem:[%s1922_s0 + $0xd0] ss:$8 sps:$4 sm:$0xff]   ;;  %v1360_v41 = vld [vmem:[%s1922_s0 + $0xe4] ss:$8 sps:$4 sm:$0xff]   ;;  %v1362_v42 = vld [vmem:[%s1922_s0 + $0x60] ss:$8 sps:$4 sm:$0xff]  }
   0xf   :  { %363 = vmatprep.subr.bf16.mxu0 %v1370_v0  ;;  %1251 = vmatprep.subr.bf16.mxu1 %v1370_v0  ;;  %v1363_v43 = vld [vmem:[%s1922_s0 + $0xe0] ss:$8 sps:$4 sm:$0xff]   ;;  %v1364_v44 = vld [vmem:[%s1922_s0 + $0x74] ss:$8 sps:$4 sm:$0xff]   ;;  %v1368_v46 = vld [vmem:[%s1922_s0 + $0x70] ss:$8 sps:$4 sm:$0xff]  }
  0x10   :  { %v1366_v45 = vld [vmem:[%s1922_s0 + $0xf4] ss:$8 sps:$4 sm:$0xff]   ;;  %v1369_v47 = vld [vmem:[%s1922_s0 + $0xf0] ss:$8 sps:$4 sm:$0xff]   ;;  %v1169_v50 = vld [vmem:[%s1923_s3] sm:$0xff]  }
  0x11   :  { %v1239_v51 = vld [vmem:[%s1923_s3 + $0x40] sm:$0xff]   ;;  %v1232_v52 = vld [vmem:[%s1923_s3 + $0x8] sm:$0xff]   ;;  %v1170_v57 = vunpack.c.l.bf16 %v1169_v50  ;;  %v1171_v59 = vunpack.c.h.bf16 %v1169_v50  ;;  %v1233_v1 = vld [vmem:[%s1923_s3 + $0x10] sm:$0xff]  }
  0x12   :  { %364 = vmatpush1.bf16.msra.mxu0 %v1312_v5  ;;  %1265 = vmatpush1.bf16.msra.mxu1 %v1312_v5  ;;  %v1240_v53 = vld [vmem:[%s1923_s3 + $0x48] sm:$0xff]   ;;  %v516_v56 = vld [vmem:[%s1924_s2] sm:$0x3]  ;;  %v1202_v58 = vunpack.c.l.bf16 %v1239_v51  ;;  %v1203_v60 = vunpack.c.h.bf16 %v1239_v51  ;;  %v1174_v61 = vunpack.c.l.bf16 %v1232_v52  ;;  %v1175_v63 = vunpack.c.h.bf16 %v1232_v52  ;;  %v1241_v2 = vld [vmem:[%s1923_s3 + $0x50] sm:$0xff]  }
  0x13   :  { %365 = vmatprep.subr.bf16.mxu0 %v1370_v0  ;;  %1252 = vmatprep.subr.bf16.mxu1 %v1370_v0  ;;  %v1206_v62 = vunpack.c.l.bf16 %v1240_v53  ;;  %v1599_v3 = vrot.slane %v516_v56, %v519_v54  ;;  %v1601_v4 = vrot.slane %v516_v56, %v555_v55  ;;  %v1603_v5 = vmul.f32 2.5, %v1170_v57  ;;  %v1243_v16 = vld [vmem:[%s1923_s3 + $0x60] sm:$0xff]   ;;  %v1238_v57 = vld [vmem:[%s1923_s3 + $0x38] sm:$0xff]  }
  0x14   :  { %v1605_v6 = vmul.f32 2.5, %v1202_v58  ;;  %v1607_v7 = vmul.f32 2.5, %v1171_v59  ;;  %v1246_v58 = vld [vmem:[%s1923_s3 + $0x78] sm:$0xff]  }
  0x16   :  { %366 = vmatpush1.bf16.msra.mxu0 %v1313_v8  ;;  %1266 = vmatpush1.bf16.msra.mxu1 %v1313_v8  ;;  %v1609_v8 = vmul.f32 2.5, %v1203_v60 }
  0x17   :  { %367 = vmatprep.subr.bf16.mxu0 %v1370_v0  ;;  %1253 = vmatprep.subr.bf16.mxu1 %v1370_v0 }
  0x1a   :  { %368 = vmatpush1.bf16.msra.mxu0 %v1314_v9  ;;  %1267 = vmatpush1.bf16.msra.mxu1 %v1314_v9  ;;  %v1234_v9 = vld [vmem:[%s1923_s3 + $0x18] sm:$0xff]  }
  0x1b   :  { %369 = vmatprep.subr.bf16.mxu0 %v1370_v0  ;;  %1254 = vmatprep.subr.bf16.mxu1 %v1370_v0 }
  0x1e   :  { %370 = vmatpush1.bf16.msra.mxu0 %v1315_v10  ;;  %1268 = vmatpush1.bf16.msra.mxu1 %v1315_v10  ;;  %v1242_v10 = vld [vmem:[%s1923_s3 + $0x58] sm:$0xff]  }
  0x1f   :  { %371 = vmatprep.subr.bf16.mxu0 %v1370_v0  ;;  %1255 = vmatprep.subr.bf16.mxu1 %v1370_v0 }
  0x22   :  { %372 = vmatpush1.bf16.msra.mxu0 %v1316_v11  ;;  %1269 = vmatpush1.bf16.msra.mxu1 %v1316_v11  ;;  %v1617_v11 = vmul.f32 2.5, %v1174_v61 }
  0x23   :  { %373 = vmatprep.subr.bf16.mxu0 %v1370_v0  ;;  %1256 = vmatprep.subr.bf16.mxu1 %v1370_v0 }
  0x26   :  { %374 = vmatpush1.bf16.msra.mxu0 %v1317_v12  ;;  %1270 = vmatpush1.bf16.msra.mxu1 %v1317_v12  ;;  %v1619_v12 = vmul.f32 2.5, %v1206_v62 }
  0x27   :  { %375 = vmatprep.subr.bf16.mxu0 %v1370_v0  ;;  %1257 = vmatprep.subr.bf16.mxu1 %v1370_v0 }
  0x2a   :  { %376 = vmatpush1.bf16.msra.mxu0 %v1318_v13  ;;  %1271 = vmatpush1.bf16.msra.mxu1 %v1318_v13  ;;  %v1178_v13 = vunpack.c.l.bf16 %v1233_v1 }
  0x2b   :  { %377 = vmatprep.subr.bf16.mxu0 %v1370_v0  ;;  %1258 = vmatprep.subr.bf16.mxu1 %v1370_v0 }
  0x2e   :  { %378 = vmatpush1.bf16.msra.mxu0 %v1319_v14  ;;  %1272 = vmatpush1.bf16.msra.mxu1 %v1319_v14  ;;  %v1210_v14 = vunpack.c.l.bf16 %v1241_v2 }
  0x2f   :  { %379 = vmatprep.subr.bf16.mxu0 %v1370_v0  ;;  %1259 = vmatprep.subr.bf16.mxu1 %v1370_v0 }
  0x32   :  { %380 = vmatpush1.bf16.msra.mxu0 %v1320_v15  ;;  %1273 = vmatpush1.bf16.msra.mxu1 %v1320_v15  ;;  %v1235_v15 = vld [vmem:[%s1923_s3 + $0x20] sm:$0xff]  }
  0x33   :  { %381 = vmatprep.subr.bf16.mxu0 %v1370_v0  ;;  %1260 = vmatprep.subr.bf16.mxu1 %v1370_v0  ;;  %v1207_v0 = vunpack.c.h.bf16 %v1240_v53 }
  0x36   :  { %382 = vmatpush1.bf16.msra.mxu0 %v353_v17  ;;  %1274 = vmatpush1.bf16.msra.mxu1 %v353_v17  ;;  %v1627_v17 = vmul.f32 2.5, %v1175_v63 }
  0x39   :  { %388 = vmatmul.mubr.bf16.vlgmr.msra.gmra.mrb[0].mxu0 %v1322_v18  ;;  %452 = vmatmul.mubr.bf16.vlgmr.msra.gmra.mrb[0].mxu1 %v1325_v19  ;;  %v1629_v18 = vmul.f32 2.5, %v1207_v0  ;;  %v1179_v19 = vunpack.c.h.bf16 %v1233_v1 }
  0x3a   :  { %1089 = vmatprep.mubr.msk.bf16.mxu0 %vm302_vm0, %v1328_v20  ;;  %1097 = vmatprep.mubr.msk.bf16.mxu1 %vm302_vm0, %v1330_v21  ;;  %v1211_v20 = vunpack.c.h.bf16 %v1241_v2  ;;  %v1236_v21 = vld [vmem:[%s1923_s3 + $0x28] sm:$0xff]  }
  0x41   :  { %396 = vmatmul.mubr.bf16.gmra.mrb[4].mxu0 %v1332_v22  ;;  %460 = vmatmul.mubr.bf16.gmra.mrb[4].mxu1 %v1333_v23  ;;  %v1244_v22 = vld [vmem:[%s1923_s3 + $0x68] sm:$0xff]   ;;  %v1182_v23 = vunpack.c.l.bf16 %v1234_v9 }
  0x42   :  { %1090 = vmatprep.mubr.msk.bf16.mxu0 %vm302_vm0, %v1334_v24  ;;  %1098 = vmatprep.mubr.msk.bf16.mxu1 %vm302_vm0, %v1336_v25  ;;  %v1214_v24 = vunpack.c.l.bf16 %v1242_v10  ;;  %v1183_v25 = vunpack.c.h.bf16 %v1234_v9 }
  0x49   :  { %404 = vmatmul.mubr.bf16.gmra.mrb[8].mxu0 %v1338_v26  ;;  %468 = vmatmul.mubr.bf16.gmra.mrb[8].mxu1 %v1339_v27  ;;  %v1215_v26 = vunpack.c.h.bf16 %v1242_v10  ;;  %v1186_v27 = vunpack.c.l.bf16 %v1235_v15 }
  0x4a   :  { %1091 = vmatprep.mubr.msk.bf16.mxu0 %vm302_vm0, %v1340_v28  ;;  %1099 = vmatprep.mubr.msk.bf16.mxu1 %vm302_vm0, %v1342_v29  ;;  %v1218_v28 = vunpack.c.l.bf16 %v1243_v16  ;;  %v1187_v29 = vunpack.c.h.bf16 %v1235_v15 }
  0x4c   :  { %v1661_v48 = vmul.f32 2.5, %v1218_v28  ;;  %v1663_v49 = vmul.f32 2.5, %v1187_v29  ;;  %v1231_v28 = vunpack.c.h.bf16 %v1246_v58 }
  0x51   :  { %412 = vmatmul.mubr.bf16.gmra.mrb[12].mxu0 %v1344_v30  ;;  %476 = vmatmul.mubr.bf16.gmra.mrb[12].mxu1 %v1345_v31  ;;  %v1219_v30 = vunpack.c.h.bf16 %v1243_v16  ;;  %v1637_v31 = vmul.f32 2.5, %v1178_v13 }
  0x52   :  { %1092 = vmatprep.mubr.msk.bf16.mxu0 %vm302_vm0, %v1346_v32  ;;  %1100 = vmatprep.mubr.msk.bf16.mxu1 %vm302_vm0, %v1348_v33  ;;  %v1639_v32 = vmul.f32 2.5, %v1210_v14  ;;  %v1190_v33 = vunpack.c.l.bf16 %v1236_v21 }
  0x53   :  { %v1665_v50 = vmul.f32 2.5, %v1219_v30 }
  0x54   :  { %v1669_v55 = vmul.f32 2.5, %v1190_v33 }
  0x59   :  { %420 = vmatmul.mubr.bf16.gmra.mrb[16].mxu0 %v1350_v34  ;;  %484 = vmatmul.mubr.bf16.gmra.mrb[16].mxu1 %v1351_v35  ;;  %v1222_v34 = vunpack.c.l.bf16 %v1244_v22  ;;  %v1641_v35 = vmul.f32 2.5, %v1179_v19  ;;  %v1198_v19 = vunpack.c.l.bf16 %v1238_v57 }
  0x5a   :  { %1093 = vmatprep.mubr.msk.bf16.mxu0 %vm302_vm0, %v1352_v36  ;;  %1101 = vmatprep.mubr.msk.bf16.mxu1 %vm302_vm0, %v1354_v37  ;;  %v1643_v36 = vmul.f32 2.5, %v1211_v20  ;;  %v1191_v37 = vunpack.c.h.bf16 %v1236_v21  ;;  %v1230_v20 = vunpack.c.l.bf16 %v1246_v58 }
  0x5b   :  { %v1671_v56 = vmul.f32 2.5, %v1222_v34 }
  0x5c   :  { %v1679_v61 = vmul.f32 2.5, %v1191_v37 }
  0x61   :  { %428 = vmatmul.mubr.bf16.gmra.mrb[20].mxu0 %v1356_v38  ;;  %492 = vmatmul.mubr.bf16.gmra.mrb[20].mxu1 %v1357_v39  ;;  %v1223_v38 = vunpack.c.h.bf16 %v1244_v22  ;;  %v1645_v39 = vmul.f32 2.5, %v1182_v23 }
  0x62   :  { %1094 = vmatprep.mubr.msk.bf16.mxu0 %vm302_vm0, %v1358_v40  ;;  %1102 = vmatprep.mubr.msk.bf16.mxu1 %vm302_vm0, %v1360_v41  ;;  %v1647_v40 = vmul.f32 2.5, %v1214_v24  ;;  %v1649_v41 = vmul.f32 2.5, %v1183_v25 }
  0x63   :  { %v1681_v62 = vmul.f32 2.5, %v1223_v38 }
  0x69   :  { %436 = vmatmul.mubr.bf16.gmra.mrb[24].mxu0 %v1362_v42  ;;  %500 = vmatmul.mubr.bf16.gmra.mrb[24].mxu1 %v1363_v43  ;;  %v1651_v42 = vmul.f32 2.5, %v1215_v26  ;;  %v1237_v43 = vld [vmem:[%s1923_s3 + $0x30] sm:$0xff]  }
  0x6a   :  { %1095 = vmatprep.mubr.msk.bf16.mxu0 %vm302_vm0, %v1364_v44  ;;  %1103 = vmatprep.mubr.msk.bf16.mxu1 %vm302_vm0, %v1366_v45  ;;  %v1245_v44 = vld [vmem:[%s1923_s3 + $0x70] sm:$0xff]   ;;  %v1194_v63 = vunpack.c.l.bf16 %v1237_v43  ;;  %v1195_v15 = vunpack.c.h.bf16 %v1237_v43  ;;  %v1701_v43 = vmul.f32 2.5, %v1198_v19 }
  0x6b   :  { %v1226_v0 = vunpack.c.l.bf16 %v1245_v44  ;;  %v1227_v16 = vunpack.c.h.bf16 %v1245_v44  ;;  %v1703_v44 = vmul.f32 2.5, %v1230_v20 }
  0x6c   :  { %v1691_v25 = vmul.f32 2.5, %v1194_v63 }
  0x6d   :  { %v1693_v26 = vmul.f32 2.5, %v1226_v0  ;;  %v1699_v38 = vmul.f32 2.5, %v1227_v16 }
  0x71   :  { %444 = vmatmul.mubr.bf16.gmra.mrb[28].mxu0 %v1368_v46  ;;  %508 = vmatmul.mubr.bf16.gmra.mrb[28].mxu1 %v1369_v47  ;;  %v1659_v47 = vmul.f32 2.5, %v1186_v27  ;;  %v1199_v27 = vunpack.c.h.bf16 %v1238_v57 }
 0x10c   :  { %v389_v45 = vpop.f32.mrb[0].mxu0  ;;  %v453_v46 = vpop.f32.mrb[0].mxu1 }
 0x10d   :  { %v521_v51 = vmul.f32 %v1599_v3, %v389_v45  ;;  %v537_v52 = vmul.f32 %v1599_v3, %v453_v46  ;;  %v391_v53 = vpop.f32.mrb[1].mxu0  ;;  %v455_v54 = vpop.f32.mrb[1].mxu1 }
 0x10e   :  { %v392_v59 = vpop.f32.mrb[2].mxu0  ;;  %v456_v60 = vpop.f32.mrb[2].mxu1 }
 0x10f   :  { %v557_v1 = vadd.f32 %v1601_v4, %v521_v51  ;;  %v573_v2 = vadd.f32 %v1601_v4, %v537_v52  ;;  %v522_v9 = vmul.f32 %v1599_v3, %v392_v59  ;;  %v538_v10 = vmul.f32 %v1599_v3, %v456_v60  ;;  %v394_v13 = vpop.f32.mrb[3].mxu0  ;;  %v458_v14 = vpop.f32.mrb[3].mxu1 }
 0x110   :  { %v1707_v59 = vmul.f32 2.5, %v1199_v27  ;;  %v1709_v60 = vmul.f32 2.5, %v1231_v28 }
 0x111   :  { %v685_v21 = vadd.f32 %v1603_v5, %v557_v1  ;;  %v701_v22 = vadd.f32 %v1605_v6, %v573_v2  ;;  %v558_v23 = vadd.f32 %v1601_v4, %v522_v9  ;;  %v574_v24 = vadd.f32 %v1601_v4, %v538_v10 }
 0x112   :  { %v1697_v6 = vmul.f32 2.5, %v1195_v15 }
 0x113   :  { %v717_v29 = vmax.f32 %v685_v21, 0.0  ;;  %v733_v30 = vmax.f32 %v701_v22, 0.0  ;;  %v686_v33 = vadd.f32 %v1607_v7, %v558_v23  ;;  %v702_v34 = vadd.f32 %v1609_v8, %v574_v24 }
 0x114   :  { %v397_v5 = vpop.f32.mrb[4].mxu0  ;;  %v461_v37 = vpop.f32.mrb[4].mxu1 }
 0x115   :  { %v1275_v45 = vround.rtne.f32 %v717_v29  ;;  %v1291_v46 = vround.rtne.f32 %v733_v30  ;;  %v718_v51 = vmax.f32 %v686_v33, 0.0  ;;  %v734_v52 = vmax.f32 %v702_v34, 0.0  ;;  %v399_v53 = vpop.f32.mrb[5].mxu0  ;;  %v463_v54 = vpop.f32.mrb[5].mxu1 }
 0x116   :  { %v523_v7 = vmul.f32 %v1599_v3, %v397_v5  ;;  %v539_v8 = vmul.f32 %v1599_v3, %v461_v37  ;;  %v400_v57 = vpop.f32.mrb[6].mxu0  ;;  %v464_v58 = vpop.f32.mrb[6].mxu1 }
 0x117   :  { %v781_v63 = vmax.f32 %v1275_v45, 0.0  ;;  %v797_v0 = vmax.f32 %v1291_v46, 0.0  ;;  %v1276_v1 = vround.rtne.f32 %v718_v51  ;;  %v1292_v2 = vround.rtne.f32 %v734_v52  ;;  %v402_v9 = vpop.f32.mrb[7].mxu0  ;;  %v466_v10 = vpop.f32.mrb[7].mxu1 }
 0x118   :  { %v559_v13 = vadd.f32 %v1601_v4, %v523_v7  ;;  %v575_v14 = vadd.f32 %v1601_v4, %v539_v8  ;;  %v524_v15 = vmul.f32 %v1599_v3, %v400_v57  ;;  %v540_v16 = vmul.f32 %v1599_v3, %v464_v58 }
 0x119   :  { %v813_v19 = vmin.f32 %v781_v63, 15.0  ;;  %v829_v20 = vmin.f32 %v797_v0, 15.0  ;;  %v782_v21 = vmax.f32 %v1276_v1, 0.0  ;;  %v798_v22 = vmax.f32 %v1292_v2, 0.0 }
 0x11a   :  { %v687_v23 = vadd.f32 %v1617_v11, %v559_v13  ;;  %v703_v24 = vadd.f32 %v1619_v12, %v575_v14  ;;  %v560_v27 = vadd.f32 %v1601_v4, %v524_v15  ;;  %v576_v28 = vadd.f32 %v1601_v4, %v540_v16 }
 0x11b   :  { %v845_v29 = vmul.f32 0.4, %v813_v19  ;;  %v861_v30 = vmul.f32 0.4, %v829_v20  ;;  %v814_v33 = vmin.f32 %v782_v21, 15.0  ;;  %v830_v34 = vmin.f32 %v798_v22, 15.0 }
 0x11c   :  { %v719_v5 = vmax.f32 %v687_v23, 0.0  ;;  %v735_v37 = vmax.f32 %v703_v24, 0.0  ;;  %v688_v45 = vadd.f32 %v1627_v17, %v560_v27  ;;  %v704_v46 = vadd.f32 %v1629_v18, %v576_v28  ;;  %v405_v51 = vpop.f32.mrb[8].mxu0  ;;  %v469_v52 = vpop.f32.mrb[8].mxu1 }
 0x11d   :  { %v1136_v53 = vpack.c.bf16 %v845_v29, %v845_v29  ;;  %v1152_v11 = vpack.c.bf16 %v861_v30, %v861_v30  ;;  %v846_v54 = vmul.f32 0.4, %v814_v33  ;;  %v862_v12 = vmul.f32 0.4, %v830_v34  ;;  %v407_v7 = vpop.f32.mrb[9].mxu0  ;;  %v471_v8 = vpop.f32.mrb[9].mxu1 }
 0x11e   :  { %v1277_v57 = vround.rtne.f32 %v719_v5  ;;  %v1293_v58 = vround.rtne.f32 %v735_v37  ;;  %v720_v63 = vmax.f32 %v688_v45, 0.0  ;;  %v736_v0 = vmax.f32 %v704_v46, 0.0  ;;  %v408_v1 = vpop.f32.mrb[10].mxu0  ;;  %v472_v2 = vpop.f32.mrb[10].mxu1 }
 0x11f   :  { %1006 = vst.msk [vmem:[%s1925_s4] sm:$0xf] %vm1005_vm2, %v1136_v53  ;;  %1022 = vst.msk [vmem:[%s1925_s4 + $0x40] sm:$0xf] %vm1005_vm2, %v1152_v11  ;;  %v1137_v17 = vpack.c.bf16 %v846_v54, %v846_v54  ;;  %v1153_v18 = vpack.c.bf16 %v862_v12, %v862_v12  ;;  %v525_v9 = vmul.f32 %v1599_v3, %v405_v51  ;;  %v410_v13 = vpop.f32.mrb[11].mxu0  ;;  %v474_v14 = vpop.f32.mrb[11].mxu1 }
 0x120   :  { %v541_v10 = vmul.f32 %v1599_v3, %v469_v52  ;;  %v783_v15 = vmax.f32 %v1277_v57, 0.0  ;;  %v799_v16 = vmax.f32 %v1293_v58, 0.0  ;;  %v1278_v19 = vround.rtne.f32 %v720_v63 }
 0x121   :  { %v1294_v20 = vround.rtne.f32 %v736_v0  ;;  %1007 = vst.msk [vmem:[%s1925_s4 + $0x4] sm:$0xf] %vm1005_vm2, %v1137_v17  ;;  %1023 = vst.msk [vmem:[%s1925_s4 + $0x44] sm:$0xf] %vm1005_vm2, %v1153_v18  ;;  %v561_v21 = vadd.f32 %v1601_v4, %v525_v9  ;;  %v526_v23 = vmul.f32 %v1599_v3, %v408_v1  ;;  %v542_v24 = vmul.f32 %v1599_v3, %v472_v2 }
 0x122   :  { %v577_v22 = vadd.f32 %v1601_v4, %v541_v10  ;;  %v815_v27 = vmin.f32 %v783_v15, 15.0  ;;  %v831_v28 = vmin.f32 %v799_v16, 15.0  ;;  %v784_v29 = vmax.f32 %v1278_v19, 0.0 }
 0x123   :  { %v800_v30 = vmax.f32 %v1294_v20, 0.0  ;;  %v689_v33 = vadd.f32 %v1637_v31, %v561_v21  ;;  %v562_v5 = vadd.f32 %v1601_v4, %v526_v23  ;;  %v578_v37 = vadd.f32 %v1601_v4, %v542_v24 }
 0x124   :  { %v705_v34 = vadd.f32 %v1639_v32, %v577_v22  ;;  %v847_v45 = vmul.f32 0.4, %v815_v27  ;;  %v863_v46 = vmul.f32 0.4, %v831_v28  ;;  %v816_v51 = vmin.f32 %v784_v29, 15.0  ;;  %v413_v7 = vpop.f32.mrb[12].mxu0 }
 0x125   :  { %v832_v52 = vmin.f32 %v800_v30, 15.0  ;;  %v721_v53 = vmax.f32 %v689_v33, 0.0  ;;  %v690_v54 = vadd.f32 %v1641_v35, %v562_v5  ;;  %v706_v12 = vadd.f32 %v1643_v36, %v578_v37  ;;  %v477_v8 = vpop.f32.mrb[12].mxu1  ;;  %v415_v63 = vpop.f32.mrb[13].mxu0 }
 0x126   :  { %v737_v11 = vmax.f32 %v705_v34, 0.0  ;;  %v1138_v57 = vpack.c.bf16 %v847_v45, %v847_v45  ;;  %v1154_v31 = vpack.c.bf16 %v863_v46, %v863_v46  ;;  %v848_v58 = vmul.f32 0.4, %v816_v51  ;;  %v479_v0 = vpop.f32.mrb[13].mxu1  ;;  %v416_v9 = vpop.f32.mrb[14].mxu0 }
 0x127   :  { %v864_v32 = vmul.f32 0.4, %v832_v52  ;;  %v1279_v1 = vround.rtne.f32 %v721_v53  ;;  %v722_v17 = vmax.f32 %v690_v54, 0.0  ;;  %v738_v18 = vmax.f32 %v706_v12, 0.0  ;;  %v480_v10 = vpop.f32.mrb[14].mxu1  ;;  %v418_v15 = vpop.f32.mrb[15].mxu0 }
 0x128   :  { %v1295_v2 = vround.rtne.f32 %v737_v11  ;;  %1008 = vst.msk [vmem:[%s1925_s4 + $0x8] sm:$0xf] %vm1005_vm2, %v1138_v57  ;;  %1024 = vst.msk [vmem:[%s1925_s4 + $0x48] sm:$0xf] %vm1005_vm2, %v1154_v31  ;;  %v1139_v35 = vpack.c.bf16 %v848_v58, %v848_v58  ;;  %v527_v13 = vmul.f32 %v1599_v3, %v413_v7  ;;  %v543_v14 = vmul.f32 %v1599_v3, %v477_v8  ;;  %v482_v16 = vpop.f32.mrb[15].mxu1 }
 0x129   :  { %v1155_v36 = vpack.c.bf16 %v864_v32, %v864_v32  ;;  %v785_v19 = vmax.f32 %v1279_v1, 0.0  ;;  %v1280_v21 = vround.rtne.f32 %v722_v17  ;;  %v1296_v22 = vround.rtne.f32 %v738_v18 }
 0x12a   :  { %v801_v20 = vmax.f32 %v1295_v2, 0.0  ;;  %1009 = vst.msk [vmem:[%s1925_s4 + $0xc] sm:$0xf] %vm1005_vm2, %v1139_v35  ;;  %v563_v23 = vadd.f32 %v1601_v4, %v527_v13  ;;  %v579_v24 = vadd.f32 %v1601_v4, %v543_v14  ;;  %v528_v27 = vmul.f32 %v1599_v3, %v416_v9 }
 0x12b   :  { %1025 = vst.msk [vmem:[%s1925_s4 + $0x4c] sm:$0xf] %vm1005_vm2, %v1155_v36  ;;  %v544_v28 = vmul.f32 %v1599_v3, %v480_v10  ;;  %v817_v29 = vmin.f32 %v785_v19, 15.0  ;;  %v786_v33 = vmax.f32 %v1280_v21, 0.0  ;;  %v802_v34 = vmax.f32 %v1296_v22, 0.0 }
 0x12c   :  { %v833_v30 = vmin.f32 %v801_v20, 15.0  ;;  %v691_v5 = vadd.f32 %v1645_v39, %v563_v23  ;;  %v707_v37 = vadd.f32 %v1647_v40, %v579_v24  ;;  %v564_v45 = vadd.f32 %v1601_v4, %v528_v27  ;;  %v421_v51 = vpop.f32.mrb[16].mxu0  ;;  %v485_v52 = vpop.f32.mrb[16].mxu1 }
 0x12d   :  { %v580_v46 = vadd.f32 %v1601_v4, %v544_v28  ;;  %v849_v53 = vmul.f32 0.4, %v817_v29  ;;  %v818_v54 = vmin.f32 %v786_v33, 15.0  ;;  %v834_v12 = vmin.f32 %v802_v34, 15.0  ;;  %v423_v58 = vpop.f32.mrb[17].mxu0  ;;  %v487_v39 = vpop.f32.mrb[17].mxu1 }
 0x12e   :  { %v865_v11 = vmul.f32 0.4, %v833_v30  ;;  %v723_v7 = vmax.f32 %v691_v5, 0.0  ;;  %v739_v8 = vmax.f32 %v707_v37, 0.0  ;;  %v692_v57 = vadd.f32 %v1649_v41, %v564_v45  ;;  %v424_v1 = vpop.f32.mrb[18].mxu0  ;;  %v488_v2 = vpop.f32.mrb[18].mxu1 }
 0x12f   :  { %v708_v31 = vadd.f32 %v1651_v42, %v580_v46  ;;  %v1140_v32 = vpack.c.bf16 %v849_v53, %v849_v53  ;;  %v850_v63 = vmul.f32 0.4, %v818_v54  ;;  %v866_v0 = vmul.f32 0.4, %v834_v12  ;;  %v426_v35 = vpop.f32.mrb[19].mxu0  ;;  %v490_v36 = vpop.f32.mrb[19].mxu1 }
 0x130   :  { %v1156_v40 = vpack.c.bf16 %v865_v11, %v865_v11  ;;  %v1281_v17 = vround.rtne.f32 %v723_v7  ;;  %v1297_v18 = vround.rtne.f32 %v739_v8  ;;  %v724_v9 = vmax.f32 %v692_v57, 0.0 }
 0x131   :  { %v740_v10 = vmax.f32 %v708_v31, 0.0  ;;  %1010 = vst.msk [vmem:[%s1925_s4 + $0x10] sm:$0xf] %vm1005_vm2, %v1140_v32  ;;  %v1141_v41 = vpack.c.bf16 %v850_v63, %v850_v63  ;;  %v1157_v42 = vpack.c.bf16 %v866_v0, %v866_v0  ;;  %v529_v13 = vmul.f32 %v1599_v3, %v421_v51 }
 0x132   :  { %1026 = vst.msk [vmem:[%s1925_s4 + $0x50] sm:$0xf] %vm1005_vm2, %v1156_v40  ;;  %v545_v14 = vmul.f32 %v1599_v3, %v485_v52  ;;  %v787_v15 = vmax.f32 %v1281_v17, 0.0  ;;  %v803_v16 = vmax.f32 %v1297_v18, 0.0  ;;  %v1282_v19 = vround.rtne.f32 %v724_v9 }
 0x133   :  { %v1298_v20 = vround.rtne.f32 %v740_v10  ;;  %1011 = vst.msk [vmem:[%s1925_s4 + $0x14] sm:$0xf] %vm1005_vm2, %v1141_v41  ;;  %1027 = vst.msk [vmem:[%s1925_s4 + $0x54] sm:$0xf] %vm1005_vm2, %v1157_v42  ;;  %v565_v21 = vadd.f32 %v1601_v4, %v529_v13  ;;  %v530_v23 = vmul.f32 %v1599_v3, %v424_v1  ;;  %v546_v24 = vmul.f32 %v1599_v3, %v488_v2 }
 0x134   :  { %v581_v22 = vadd.f32 %v1601_v4, %v545_v14  ;;  %v819_v27 = vmin.f32 %v787_v15, 15.0  ;;  %v835_v28 = vmin.f32 %v803_v16, 15.0  ;;  %v788_v29 = vmax.f32 %v1282_v19, 0.0  ;;  %v429_v33 = vpop.f32.mrb[20].mxu0  ;;  %v493_v34 = vpop.f32.mrb[20].mxu1 }
 0x135   :  { %v804_v30 = vmax.f32 %v1298_v20, 0.0  ;;  %v693_v5 = vadd.f32 %v1659_v47, %v565_v21  ;;  %v566_v45 = vadd.f32 %v1601_v4, %v530_v23  ;;  %v582_v46 = vadd.f32 %v1601_v4, %v546_v24  ;;  %v431_v51 = vpop.f32.mrb[21].mxu0  ;;  %v495_v52 = vpop.f32.mrb[21].mxu1 }
 0x136   :  { %v709_v37 = vadd.f32 %v1661_v48, %v581_v22  ;;  %v851_v53 = vmul.f32 0.4, %v819_v27  ;;  %v867_v11 = vmul.f32 0.4, %v835_v28  ;;  %v820_v54 = vmin.f32 %v788_v29, 15.0  ;;  %v432_v58 = vpop.f32.mrb[22].mxu0 }
 0x137   :  { %v836_v12 = vmin.f32 %v804_v30, 15.0  ;;  %v725_v7 = vmax.f32 %v693_v5, 0.0  ;;  %v694_v57 = vadd.f32 %v1663_v49, %v566_v45  ;;  %v710_v31 = vadd.f32 %v1665_v50, %v582_v46  ;;  %v496_v47 = vpop.f32.mrb[22].mxu1  ;;  %v434_v63 = vpop.f32.mrb[23].mxu0 }
 0x138   :  { %v741_v8 = vmax.f32 %v709_v37, 0.0  ;;  %v1142_v39 = vpack.c.bf16 %v851_v53, %v851_v53  ;;  %v1158_v48 = vpack.c.bf16 %v867_v11, %v867_v11  ;;  %v852_v32 = vmul.f32 0.4, %v820_v54  ;;  %v498_v0 = vpop.f32.mrb[23].mxu1 }
 0x139   :  { %v868_v40 = vmul.f32 0.4, %v836_v12  ;;  %v1283_v1 = vround.rtne.f32 %v725_v7  ;;  %v726_v17 = vmax.f32 %v694_v57, 0.0  ;;  %v742_v18 = vmax.f32 %v710_v31, 0.0 }
 0x13a   :  { %v1299_v2 = vround.rtne.f32 %v741_v8  ;;  %1012 = vst.msk [vmem:[%s1925_s4 + $0x18] sm:$0xf] %vm1005_vm2, %v1142_v39  ;;  %1028 = vst.msk [vmem:[%s1925_s4 + $0x58] sm:$0xf] %vm1005_vm2, %v1158_v48  ;;  %v1143_v49 = vpack.c.bf16 %v852_v32, %v852_v32  ;;  %v531_v9 = vmul.f32 %v1599_v3, %v429_v33  ;;  %v547_v10 = vmul.f32 %v1599_v3, %v493_v34 }
 0x13b   :  { %v1159_v50 = vpack.c.bf16 %v868_v40, %v868_v40  ;;  %v789_v35 = vmax.f32 %v1283_v1, 0.0  ;;  %v1284_v41 = vround.rtne.f32 %v726_v17  ;;  %v1300_v42 = vround.rtne.f32 %v742_v18 }
 0x13c   :  { %v805_v36 = vmax.f32 %v1299_v2, 0.0  ;;  %1013 = vst.msk [vmem:[%s1925_s4 + $0x1c] sm:$0xf] %vm1005_vm2, %v1143_v49  ;;  %v567_v13 = vadd.f32 %v1601_v4, %v531_v9  ;;  %v583_v14 = vadd.f32 %v1601_v4, %v547_v10  ;;  %v532_v15 = vmul.f32 %v1599_v3, %v432_v58  ;;  %v437_v19 = vpop.f32.mrb[24].mxu0  ;;  %v501_v20 = vpop.f32.mrb[24].mxu1 }
 0x13d   :  { %1029 = vst.msk [vmem:[%s1925_s4 + $0x5c] sm:$0xf] %vm1005_vm2, %v1159_v50  ;;  %v548_v16 = vmul.f32 %v1599_v3, %v496_v47  ;;  %v821_v21 = vmin.f32 %v789_v35, 15.0  ;;  %v790_v23 = vmax.f32 %v1284_v41, 0.0  ;;  %v806_v24 = vmax.f32 %v1300_v42, 0.0  ;;  %v439_v27 = vpop.f32.mrb[25].mxu0 }
 0x13e   :  { %v837_v22 = vmin.f32 %v805_v36, 15.0  ;;  %v503_v28 = vpop.f32.mrb[25].mxu1  ;;  %v695_v29 = vadd.f32 %v1669_v55, %v567_v13  ;;  %v711_v30 = vadd.f32 %v1671_v56, %v583_v14  ;;  %v568_v33 = vadd.f32 %v1601_v4, %v532_v15  ;;  %v440_v5 = vpop.f32.mrb[26].mxu0 }
 0x13f   :  { %v584_v34 = vadd.f32 %v1601_v4, %v548_v16  ;;  %v504_v37 = vpop.f32.mrb[26].mxu1  ;;  %v853_v45 = vmul.f32 0.4, %v821_v21  ;;  %v822_v51 = vmin.f32 %v790_v23, 15.0  ;;  %v838_v52 = vmin.f32 %v806_v24, 15.0  ;;  %v442_v7 = vpop.f32.mrb[27].mxu0 }
 0x140   :  { %v869_v46 = vmul.f32 0.4, %v837_v22  ;;  %v727_v53 = vmax.f32 %v695_v29, 0.0  ;;  %v743_v11 = vmax.f32 %v711_v30, 0.0  ;;  %v696_v54 = vadd.f32 %v1679_v61, %v568_v33  ;;  %v506_v55 = vpop.f32.mrb[27].mxu1 }
 0x141   :  { %v712_v12 = vadd.f32 %v1681_v62, %v584_v34  ;;  %v1144_v8 = vpack.c.bf16 %v853_v45, %v853_v45  ;;  %v854_v57 = vmul.f32 0.4, %v822_v51  ;;  %v870_v31 = vmul.f32 0.4, %v838_v52 }
 0x142   :  { %v1160_v56 = vpack.c.bf16 %v869_v46, %v869_v46  ;;  %v1285_v58 = vround.rtne.f32 %v727_v53  ;;  %v1301_v47 = vround.rtne.f32 %v743_v11  ;;  %v728_v39 = vmax.f32 %v696_v54, 0.0 }
 0x143   :  { %v744_v48 = vmax.f32 %v712_v12, 0.0  ;;  %1014 = vst.msk [vmem:[%s1925_s4 + $0x20] sm:$0xf] %vm1005_vm2, %v1144_v8  ;;  %v1145_v61 = vpack.c.bf16 %v854_v57, %v854_v57  ;;  %v1161_v62 = vpack.c.bf16 %v870_v31, %v870_v31  ;;  %v533_v32 = vmul.f32 %v1599_v3, %v437_v19 }
 0x144   :  { %1030 = vst.msk [vmem:[%s1925_s4 + $0x60] sm:$0xf] %vm1005_vm2, %v1160_v56  ;;  %v549_v40 = vmul.f32 %v1599_v3, %v501_v20  ;;  %v791_v63 = vmax.f32 %v1285_v58, 0.0  ;;  %v807_v0 = vmax.f32 %v1301_v47, 0.0  ;;  %v1286_v1 = vround.rtne.f32 %v728_v39  ;;  %v445_v17 = vpop.f32.mrb[28].mxu0  ;;  %v509_v18 = vpop.f32.mrb[28].mxu1 }
 0x145   :  { %v1302_v2 = vround.rtne.f32 %v744_v48  ;;  %1015 = vst.msk [vmem:[%s1925_s4 + $0x24] sm:$0xf] %vm1005_vm2, %v1145_v61  ;;  %1031 = vst.msk [vmem:[%s1925_s4 + $0x64] sm:$0xf] %vm1005_vm2, %v1161_v62  ;;  %v569_v49 = vadd.f32 %v1601_v4, %v533_v32  ;;  %v534_v9 = vmul.f32 %v1599_v3, %v440_v5  ;;  %v550_v10 = vmul.f32 %v1599_v3, %v504_v37  ;;  %v447_v35 = vpop.f32.mrb[29].mxu0  ;;  %v511_v36 = vpop.f32.mrb[29].mxu1 }
 0x146   :  { %v585_v50 = vadd.f32 %v1601_v4, %v549_v40  ;;  %v823_v41 = vmin.f32 %v791_v63, 15.0  ;;  %v839_v42 = vmin.f32 %v807_v0, 15.0  ;;  %v792_v13 = vmax.f32 %v1286_v1, 0.0  ;;  %v448_v15 = vpop.f32.mrb[30].mxu0  ;;  %v512_v16 = vpop.f32.mrb[30].mxu1 }
 0x147   :  { %v808_v14 = vmax.f32 %v1302_v2, 0.0  ;;  %v697_v19 = vadd.f32 %v1691_v25, %v569_v49  ;;  %v570_v21 = vadd.f32 %v1601_v4, %v534_v9  ;;  %v586_v22 = vadd.f32 %v1601_v4, %v550_v10  ;;  %v450_v23 = vpop.f32.mrb[31].mxu0  ;;  %v514_v24 = vpop.f32.mrb[31].mxu1 }
 0x148   :  { %v713_v20 = vadd.f32 %v1693_v26, %v585_v50  ;;  %v855_v27 = vmul.f32 0.4, %v823_v41  ;;  %v871_v28 = vmul.f32 0.4, %v839_v42  ;;  %v824_v29 = vmin.f32 %v792_v13, 15.0 }
 0x149   :  { %v840_v30 = vmin.f32 %v808_v14, 15.0  ;;  %v729_v33 = vmax.f32 %v697_v19, 0.0  ;;  %v698_v5 = vadd.f32 %v1697_v6, %v570_v21  ;;  %v714_v37 = vadd.f32 %v1699_v38, %v586_v22 }
 0x14a   :  { %v745_v34 = vmax.f32 %v713_v20, 0.0  ;;  %v1146_v45 = vpack.c.bf16 %v855_v27, %v855_v27  ;;  %v1162_v25 = vpack.c.bf16 %v871_v28, %v871_v28  ;;  %v856_v46 = vmul.f32 0.4, %v824_v29 }
 0x14b   :  { %v872_v26 = vmul.f32 0.4, %v840_v30  ;;  %v1287_v51 = vround.rtne.f32 %v729_v33  ;;  %v730_v53 = vmax.f32 %v698_v5, 0.0  ;;  %v746_v11 = vmax.f32 %v714_v37, 0.0 }
 0x14c   :  { %v1303_v52 = vround.rtne.f32 %v745_v34  ;;  %1016 = vst.msk [vmem:[%s1925_s4 + $0x28] sm:$0xf] %vm1005_vm2, %v1146_v45  ;;  %1032 = vst.msk [vmem:[%s1925_s4 + $0x68] sm:$0xf] %vm1005_vm2, %v1162_v25  ;;  %v1147_v6 = vpack.c.bf16 %v856_v46, %v856_v46  ;;  %v535_v54 = vmul.f32 %v1599_v3, %v445_v17  ;;  %v551_v12 = vmul.f32 %v1599_v3, %v509_v18 }
 0x14d   :  { %v1163_v38 = vpack.c.bf16 %v872_v26, %v872_v26  ;;  %v793_v7 = vmax.f32 %v1287_v51, 0.0  ;;  %v1288_v8 = vround.rtne.f32 %v730_v53  ;;  %v1304_v56 = vround.rtne.f32 %v746_v11 }
 0x14e   :  { %v809_v55 = vmax.f32 %v1303_v52, 0.0  ;;  %1017 = vst.msk [vmem:[%s1925_s4 + $0x2c] sm:$0xf] %vm1005_vm2, %v1147_v6  ;;  %v571_v57 = vadd.f32 %v1601_v4, %v535_v54  ;;  %v587_v31 = vadd.f32 %v1601_v4, %v551_v12  ;;  %v536_v58 = vmul.f32 %v1599_v3, %v448_v15 }
 0x14f   :  { %1033 = vst.msk [vmem:[%s1925_s4 + $0x6c] sm:$0xf] %vm1005_vm2, %v1163_v38  ;;  %v552_v47 = vmul.f32 %v1599_v3, %v512_v16  ;;  %v825_v39 = vmin.f32 %v793_v7, 15.0  ;;  %v794_v61 = vmax.f32 %v1288_v8, 0.0  ;;  %v810_v62 = vmax.f32 %v1304_v56, 0.0 }
 0x150   :  { %v841_v48 = vmin.f32 %v809_v55, 15.0  ;;  %v699_v32 = vadd.f32 %v1701_v43, %v571_v57  ;;  %v715_v40 = vadd.f32 %v1703_v44, %v587_v31  ;;  %v572_v63 = vadd.f32 %v1601_v4, %v536_v58 }
 0x151   :  { %v588_v0 = vadd.f32 %v1601_v4, %v552_v47  ;;  %v857_v1 = vmul.f32 0.4, %v825_v39  ;;  %v826_v17 = vmin.f32 %v794_v61, 15.0  ;;  %v842_v18 = vmin.f32 %v810_v62, 15.0 }
 0x152   :  { %v873_v2 = vmul.f32 0.4, %v841_v48  ;;  %v731_v49 = vmax.f32 %v699_v32, 0.0  ;;  %v747_v50 = vmax.f32 %v715_v40, 0.0  ;;  %v700_v3 = vadd.f32 %v1707_v59, %v572_v63 }
 0x153   :  { %v716_v9 = vadd.f32 %v1709_v60, %v588_v0  ;;  %v1148_v10 = vpack.c.bf16 %v857_v1, %v857_v1  ;;  %v858_v36 = vmul.f32 0.4, %v826_v17  ;;  %v874_v43 = vmul.f32 0.4, %v842_v18 }
 0x154   :  { %v1164_v35 = vpack.c.bf16 %v873_v2, %v873_v2  ;;  %v1289_v41 = vround.rtne.f32 %v731_v49  ;;  %v1305_v44 = vround.rtne.f32 %v747_v50  ;;  %v732_v42 = vmax.f32 %v700_v3, 0.0 }
 0x155   :  { %v748_v13 = vmax.f32 %v716_v9, 0.0  ;;  %1018 = vst.msk [vmem:[%s1925_s4 + $0x30] sm:$0xf] %vm1005_vm2, %v1148_v10  ;;  %v1149_v4 = vpack.c.bf16 %v858_v36, %v858_v36  ;;  %v1165_v59 = vpack.c.bf16 %v874_v43, %v874_v43 }
 0x156   :  { %1034 = vst.msk [vmem:[%s1925_s4 + $0x70] sm:$0xf] %vm1005_vm2, %v1164_v35  ;;  %v795_v60 = vmax.f32 %v1289_v41, 0.0  ;;  %v811_v14 = vmax.f32 %v1305_v44, 0.0  ;;  %v1290_v15 = vround.rtne.f32 %v732_v42 }
 0x157   :  { %v1306_v16 = vround.rtne.f32 %v748_v13  ;;  %1019 = vst.msk [vmem:[%s1925_s4 + $0x34] sm:$0xf] %vm1005_vm2, %v1149_v4  ;;  %1035 = vst.msk [vmem:[%s1925_s4 + $0x74] sm:$0xf] %vm1005_vm2, %v1165_v59 }
 0x158   :  { %v827_v19 = vmin.f32 %v795_v60, 15.0  ;;  %v843_v20 = vmin.f32 %v811_v14, 15.0  ;;  %v796_v21 = vmax.f32 %v1290_v15, 0.0 }
 0x159   :  { %v812_v22 = vmax.f32 %v1306_v16, 0.0 }
 0x15a   :  { %v859_v23 = vmul.f32 0.4, %v827_v19  ;;  %v875_v24 = vmul.f32 0.4, %v843_v20  ;;  %v828_v27 = vmin.f32 %v796_v21, 15.0 }
 0x15b   :  { %v844_v28 = vmin.f32 %v812_v22, 15.0 }
 0x15c   :  { %v1150_v29 = vpack.c.bf16 %v859_v23, %v859_v23  ;;  %v1166_v30 = vpack.c.bf16 %v875_v24, %v875_v24  ;;  %v860_v33 = vmul.f32 0.4, %v828_v27 }
 0x15d   :  { %v876_v34 = vmul.f32 0.4, %v844_v28 }
 0x15e   :  { %1020 = vst.msk [vmem:[%s1925_s4 + $0x38] sm:$0xf] %vm1005_vm2, %v1150_v29  ;;  %1036 = vst.msk [vmem:[%s1925_s4 + $0x78] sm:$0xf] %vm1005_vm2, %v1166_v30  ;;  %v1151_v5 = vpack.c.bf16 %v860_v33, %v860_v33 }
 0x15f   :  { %v1167_v37 = vpack.c.bf16 %v876_v34, %v876_v34 }
 0x160   :  { %1021 = vst.msk [vmem:[%s1925_s4 + $0x3c] sm:$0xf] %vm1005_vm2, %v1151_v5 }
 0x161   :  { %1037 = vst.msk [vmem:[%s1925_s4 + $0x7c] sm:$0xf] %vm1005_vm2, %v1167_v37 }

// kernel: quant_resnet_forward.16
= control target key start
LH: loop header
LB: loop body
LE: loop exit
PB: predicated region body
PF: predicated region fallthrough
CT: control target
= control target key end

     0   :  { %v348_v0 = vmov 0   ;;  %vm145_vm0 = vcmask 719872   ;;  %vm152_vm1 = vcmask 1043456   ;;  %v206_v20 = vlaneseq  ;;  %s466_s1 = inlined_call_operand.vmem [shape: bf16[216,16], index: 1, kind: input, shape index: {}]   ;;  %s467_s0 = inlined_call_operand.vmem [shape: bf16[32,216], index: 0, kind: input, shape index: {}]   ;;  %s468_s2 = inlined_call_operand.vmem [shape: f32[2,16], index: 2, kind: input, shape index: {}]   ;;  %s469_s3 = inlined_call_operand.vmem [shape: bf16[32,16], index: 3, kind: output, shape index: {}]  }
   0x1   :  { %156 = vmatprep.subr.bf16.mxu0 %v348_v0  ;;  %295 = vmatprep.subr.bf16.mxu1 %v348_v0  ;;  %v328_v1 = vld [vmem:[%s466_s1] sm:$0xff]   ;;  %v329_v2 = vld [vmem:[%s466_s1 + $0x8] sm:$0xff]   ;;  %v330_v3 = vld [vmem:[%s466_s1 + $0x10] sm:$0xff]   ;;  %vm258_vm2 = vcmask 125952  }
   0x2   :  { %157 = vmatpush1.bf16.msra.mxu0 %v328_v1  ;;  %309 = vmatpush1.bf16.msra.mxu1 %v328_v1  ;;  %v331_v4 = vld [vmem:[%s466_s1 + $0x18] sm:$0xff]   ;;  %v332_v5 = vld [vmem:[%s466_s1 + $0x20] sm:$0xff]   ;;  %v333_v8 = vld [vmem:[%s466_s1 + $0x28] sm:$0xff]   ;;  %v207_v21 = vshrl.u32 %v206_v20, 7 }
   0x3   :  { %158 = vmatprep.subr.bf16.mxu0 %v348_v0  ;;  %296 = vmatprep.subr.bf16.mxu1 %v348_v0  ;;  %v344_v6 = vld [vmem:[%s467_s0 + $0x4] ss:$8 sps:$4 sm:$0xff]   ;;  %v347_v7 = vld [vmem:[%s467_s0 + $0x14] ss:$8 sps:$4 sm:$0xff]   ;;  %v341_v16 = vld [vmem:[%s466_s1 + $0x68] ss:$0 sps:$4 sm:$0xff]  }
   0x4   :  { %285 = vmatprep.mubr.msk.bf16.mxu0 %vm145_vm0, %v344_v6  ;;  %286 = vmatprep.mubr.msk.bf16.mxu1 %vm145_vm0, %v347_v7  ;;  %v334_v9 = vld [vmem:[%s466_s1 + $0x30] sm:$0xff]   ;;  %v335_v10 = vld [vmem:[%s466_s1 + $0x38] sm:$0xff]   ;;  %v336_v11 = vld [vmem:[%s466_s1 + $0x40] sm:$0xff]   ;;  %v154_v17 = vsel %vm152_vm1, %v341_v16, 0  ;;  %v208_v22 = vsub.s32 0, %v207_v21  ;;  %v216_v24 = vsub.s32 1, %v207_v21 }
   0x5   :  { %v337_v12 = vld [vmem:[%s466_s1 + $0x48] sm:$0xff]   ;;  %v338_v13 = vld [vmem:[%s466_s1 + $0x50] sm:$0xff]   ;;  %v339_v14 = vld [vmem:[%s466_s1 + $0x58] sm:$0xff]  }
   0x6   :  { %159 = vmatpush1.bf16.msra.mxu0 %v329_v2  ;;  %310 = vmatpush1.bf16.msra.mxu1 %v329_v2  ;;  %v340_v15 = vld [vmem:[%s466_s1 + $0x60] sm:$0xff]   ;;  %v345_v19 = vld [vmem:[%s467_s0 + $0x10] ss:$8 sps:$4 sm:$0xff]  }
   0x7   :  { %160 = vmatprep.subr.bf16.mxu0 %v348_v0  ;;  %297 = vmatprep.subr.bf16.mxu1 %v348_v0  ;;  %v342_v18 = vld [vmem:[%s467_s0] ss:$8 sps:$4 sm:$0xff]  }
   0x8   :  { %v205_v23 = vld [vmem:[%s468_s2] sm:$0x3] }
   0x9   :  { %v209_v25 = vrot.slane %v205_v23, %v208_v22  ;;  %v217_v26 = vrot.slane %v205_v23, %v216_v24 }
   0xa   :  { %161 = vmatpush1.bf16.msra.mxu0 %v330_v3  ;;  %311 = vmatpush1.bf16.msra.mxu1 %v330_v3 }
   0xb   :  { %162 = vmatprep.subr.bf16.mxu0 %v348_v0  ;;  %298 = vmatprep.subr.bf16.mxu1 %v348_v0 }
   0xe   :  { %163 = vmatpush1.bf16.msra.mxu0 %v331_v4  ;;  %312 = vmatpush1.bf16.msra.mxu1 %v331_v4 }
   0xf   :  { %164 = vmatprep.subr.bf16.mxu0 %v348_v0  ;;  %299 = vmatprep.subr.bf16.mxu1 %v348_v0 }
  0x12   :  { %165 = vmatpush1.bf16.msra.mxu0 %v332_v5  ;;  %313 = vmatpush1.bf16.msra.mxu1 %v332_v5 }
  0x13   :  { %166 = vmatprep.subr.bf16.mxu0 %v348_v0  ;;  %300 = vmatprep.subr.bf16.mxu1 %v348_v0 }
  0x16   :  { %167 = vmatpush1.bf16.msra.mxu0 %v333_v8  ;;  %314 = vmatpush1.bf16.msra.mxu1 %v333_v8 }
  0x17   :  { %168 = vmatprep.subr.bf16.mxu0 %v348_v0  ;;  %301 = vmatprep.subr.bf16.mxu1 %v348_v0 }
  0x1a   :  { %169 = vmatpush1.bf16.msra.mxu0 %v334_v9  ;;  %315 = vmatpush1.bf16.msra.mxu1 %v334_v9 }
  0x1b   :  { %170 = vmatprep.subr.bf16.mxu0 %v348_v0  ;;  %302 = vmatprep.subr.bf16.mxu1 %v348_v0 }
  0x1e   :  { %171 = vmatpush1.bf16.msra.mxu0 %v335_v10  ;;  %316 = vmatpush1.bf16.msra.mxu1 %v335_v10 }
  0x1f   :  { %172 = vmatprep.subr.bf16.mxu0 %v348_v0  ;;  %303 = vmatprep.subr.bf16.mxu1 %v348_v0 }
  0x22   :  { %173 = vmatpush1.bf16.msra.mxu0 %v336_v11  ;;  %317 = vmatpush1.bf16.msra.mxu1 %v336_v11 }
  0x23   :  { %174 = vmatprep.subr.bf16.mxu0 %v348_v0  ;;  %304 = vmatprep.subr.bf16.mxu1 %v348_v0 }
  0x26   :  { %175 = vmatpush1.bf16.msra.mxu0 %v337_v12  ;;  %318 = vmatpush1.bf16.msra.mxu1 %v337_v12 }
  0x27   :  { %176 = vmatprep.subr.bf16.mxu0 %v348_v0  ;;  %305 = vmatprep.subr.bf16.mxu1 %v348_v0 }
  0x2a   :  { %177 = vmatpush1.bf16.msra.mxu0 %v338_v13  ;;  %319 = vmatpush1.bf16.msra.mxu1 %v338_v13 }
  0x2b   :  { %178 = vmatprep.subr.bf16.mxu0 %v348_v0  ;;  %306 = vmatprep.subr.bf16.mxu1 %v348_v0 }
  0x2e   :  { %179 = vmatpush1.bf16.msra.mxu0 %v339_v14  ;;  %320 = vmatpush1.bf16.msra.mxu1 %v339_v14 }
  0x2f   :  { %180 = vmatprep.subr.bf16.mxu0 %v348_v0  ;;  %307 = vmatprep.subr.bf16.mxu1 %v348_v0 }
  0x32   :  { %181 = vmatpush1.bf16.msra.mxu0 %v340_v15  ;;  %321 = vmatpush1.bf16.msra.mxu1 %v340_v15 }
  0x33   :  { %182 = vmatprep.subr.bf16.mxu0 %v348_v0  ;;  %308 = vmatprep.subr.bf16.mxu1 %v348_v0 }
  0x36   :  { %183 = vmatpush1.bf16.msra.mxu0 %v154_v17  ;;  %322 = vmatpush1.bf16.msra.mxu1 %v154_v17 }
  0x39   :  { %189 = vmatmul.mubr.bf16.vlgmr.msra.gmra.mrb[0].mxu0 %v342_v18  ;;  %197 = vmatmul.mubr.bf16.vlgmr.msra.gmra.mrb[0].mxu1 %v345_v19 }
 0x10c   :  { %v190_v27 = vpop.f32.mrb[0].mxu0  ;;  %v198_v28 = vpop.f32.mrb[0].mxu1 }
 0x10d   :  { %v210_v29 = vmul.f32 %v209_v25, %v190_v27  ;;  %v212_v30 = vmul.f32 %v209_v25, %v198_v28  ;;  %v192_v31 = vpop.f32.mrb[1].mxu0  ;;  %v200_v32 = vpop.f32.mrb[1].mxu1 }
 0x10e   :  { %v193_v33 = vpop.f32.mrb[2].mxu0  ;;  %v201_v34 = vpop.f32.mrb[2].mxu1 }
 0x10f   :  { %v218_v35 = vadd.f32 %v217_v26, %v210_v29  ;;  %v220_v36 = vadd.f32 %v217_v26, %v212_v30  ;;  %v211_v37 = vmul.f32 %v209_v25, %v193_v33  ;;  %v213_v38 = vmul.f32 %v209_v25, %v201_v34  ;;  %v195_v39 = vpop.f32.mrb[3].mxu0  ;;  %v203_v40 = vpop.f32.mrb[3].mxu1 }
 0x111   :  { %v222_v41 = vmax.f32 %v218_v35, 0.0  ;;  %v224_v42 = vmax.f32 %v220_v36, 0.0  ;;  %v219_v43 = vadd.f32 %v217_v26, %v211_v37  ;;  %v221_v44 = vadd.f32 %v217_v26, %v213_v38 }
 0x113   :  { %v323_v45 = vround.rtne.f32 %v222_v41  ;;  %v325_v46 = vround.rtne.f32 %v224_v42  ;;  %v223_v47 = vmax.f32 %v219_v43, 0.0  ;;  %v225_v48 = vmax.f32 %v221_v44, 0.0 }
 0x115   :  { %v230_v49 = vmax.f32 %v323_v45, 0.0  ;;  %v232_v50 = vmax.f32 %v325_v46, 0.0  ;;  %v324_v51 = vround.rtne.f32 %v223_v47  ;;  %v326_v52 = vround.rtne.f32 %v225_v48 }
 0x117   :  { %v234_v53 = vmin.f32 %v230_v49, 15.0  ;;  %v236_v54 = vmin.f32 %v232_v50, 15.0  ;;  %v231_v55 = vmax.f32 %v324_v51, 0.0  ;;  %v233_v56 = vmax.f32 %v326_v52, 0.0 }
 0x119   :  { %v238_v57 = vmul.f32 0.4, %v234_v53  ;;  %v240_v58 = vmul.f32 0.4, %v236_v54  ;;  %v235_v59 = vmin.f32 %v231_v55, 15.0  ;;  %v237_v60 = vmin.f32 %v233_v56, 15.0 }
 0x11b   :  { %v291_v61 = vpack.c.bf16 %v238_v57, %v238_v57  ;;  %v293_v62 = vpack.c.bf16 %v240_v58, %v240_v58  ;;  %v239_v63 = vmul.f32 0.4, %v235_v59  ;;  %v241_v0 = vmul.f32 0.4, %v237_v60 }
 0x11d   :  { %259 = vst.msk [vmem:[%s469_s3] sm:$0xf] %vm258_vm2, %v291_v61  ;;  %261 = vst.msk [vmem:[%s469_s3 + $0x8] sm:$0xf] %vm258_vm2, %v293_v62  ;;  %v292_v1 = vpack.c.bf16 %v239_v63, %v239_v63  ;;  %v294_v2 = vpack.c.bf16 %v241_v0, %v241_v0 }
 0x11f   :  { %260 = vst.msk [vmem:[%s469_s3 + $0x4] sm:$0xf] %vm258_vm2, %v292_v1  ;;  %262 = vst.msk [vmem:[%s469_s3 + $0xc] sm:$0xf] %vm258_vm2, %v294_v2 }

// kernel: quant_resnet_forward.17
= control target key start
LH: loop header
LB: loop body
LE: loop exit
PB: predicated region body
PF: predicated region fallthrough
CT: control target
= control target key end

     0   :  { %vm37_vm0 = vcmask 1043456   ;;  %vm30_vm1 = vcmask 64512   ;;  %v91_v4 = vlaneseq  ;;  %vm123_vm2 = vcmask 125952   ;;  %s200_s1 = inlined_call_operand.vmem [shape: bf16[8,16], index: 1, kind: input, shape index: {}]   ;;  %s201_s0 = inlined_call_operand.vmem [shape: bf16[32,8], index: 0, kind: input, shape index: {}]   ;;  %s202_s2 = inlined_call_operand.vmem [shape: f32[2,16], index: 2, kind: input, shape index: {}]   ;;  %s203_s3 = inlined_call_operand.vmem [shape: bf16[32,16], index: 3, kind: output, shape index: {}]  }
   0x1   :  { %v19_v0 = vld [vmem:[%s200_s1] sm:$0xf]  ;;  %v155_v3 = vld [vmem:[%s201_s0 + $0x8] sm:$0xff]  }
   0x2   :  { %153 = vmatprep.subr.msk.bf16.mxu0 %vm37_vm0, %v19_v0  ;;  %v39_v1 = vsel %vm37_vm0, %v19_v0, 0  ;;  %v154_v2 = vld [vmem:[%s201_s0] sm:$0xff]   ;;  %v92_v5 = vshrl.u32 %v91_v4, 7 }
   0x3   :  { %148 = vmatpush3.bf16.msra.mxu0 %v39_v1  ;;  %149 = vmatprep.mubr.msk.bf16.mxu0 %vm30_vm1, %v154_v2  ;;  %v90_v7 = vld [vmem:[%s202_s2] sm:$0x3] }
   0x4   :  { %v93_v6 = vsub.s32 0, %v92_v5  ;;  %v101_v8 = vsub.s32 1, %v92_v5 }
   0x6   :  { %150 = vmatmul.mubr.msk.bf16.vlgmr.msra.gmra.mrb[0].mxu0 %vm30_vm1, %v155_v3  ;;  %v94_v9 = vrot.slane %v90_v7, %v93_v6  ;;  %v102_v10 = vrot.slane %v90_v7, %v101_v8 }
  0xd9   :  { %v151_v11 = vpop.f32.mrb[0].mxu0 }
  0xda   :  { %v97_v12 = vmul.f32 %v151_v11, %v94_v9  ;;  %v75_v13 = vpop.f32.mrb[1].mxu0 }
  0xdb   :  { %v95_v14 = vmul.f32 %v94_v9, %v75_v13  ;;  %v152_v15 = vpop.f32.mrb[2].mxu0 }
  0xdc   :  { %v105_v16 = vadd.f32 %v102_v10, %v97_v12  ;;  %v98_v17 = vmul.f32 %v152_v15, %v94_v9  ;;  %v78_v18 = vpop.f32.mrb[3].mxu0 }
  0xdd   :  { %v103_v19 = vadd.f32 %v102_v10, %v95_v14  ;;  %v96_v20 = vmul.f32 %v94_v9, %v78_v18 }
  0xde   :  { %v142_v21 = vpack.c.bf16 %v105_v16, %v105_v16  ;;  %v106_v22 = vadd.f32 %v102_v10, %v98_v17 }
  0xdf   :  { %v140_v23 = vpack.c.bf16 %v103_v19, %v103_v19  ;;  %v104_v24 = vadd.f32 %v102_v10, %v96_v20 }
  0xe0   :  { %126 = vst.msk [vmem:[%s203_s3 + $0x8] sm:$0xf] %vm123_vm2, %v142_v21  ;;  %v143_v25 = vpack.c.bf16 %v106_v22, %v106_v22 }
  0xe1   :  { %124 = vst.msk [vmem:[%s203_s3] sm:$0xf] %vm123_vm2, %v140_v23  ;;  %v141_v26 = vpack.c.bf16 %v104_v24, %v104_v24 }
  0xe2   :  { %127 = vst.msk [vmem:[%s203_s3 + $0xc] sm:$0xf] %vm123_vm2, %v143_v25 }
  0xe3   :  { %125 = vst.msk [vmem:[%s203_s3 + $0x4] sm:$0xf] %vm123_vm2, %v141_v26 }

// kernel: quant_resnet_forward.18
= control target key start
LH: loop header
LB: loop body
LE: loop exit
PB: predicated region body
PF: predicated region fallthrough
CT: control target
= control target key end

     0   :  { %v589_v0 = vmov 0   ;;  %vm280_vm0 = vcmask 392192   ;;  %v386_v36 = vlaneseq  ;;  %vm454_vm1 = vcmask 125952   ;;  %s758_s1 = inlined_call_operand.vmem [shape: bf16[432,16], index: 1, kind: input, shape index: {}]   ;;  %s759_s0 = inlined_call_operand.vmem [shape: bf16[32,432], index: 0, kind: input, shape index: {}]   ;;  %s760_s2 = inlined_call_operand.vmem [shape: f32[2,16], index: 2, kind: input, shape index: {}]   ;;  %s761_s3 = inlined_call_operand.vmem [shape: bf16[32,16], index: 3, kind: input, shape index: {}]   ;;  %s762_s4 = inlined_call_operand.vmem [shape: bf16[32,16], index: 4, kind: output, shape index: {}]  }
   0x1   :  { %336 = vmatprep.subr.bf16.mxu1 %v589_v0  ;;  %v550_v1 = vld [vmem:[%s758_s1 + $0x80] sm:$0xff]   ;;  %v551_v2 = vld [vmem:[%s758_s1 + $0x88] sm:$0xff]   ;;  %v554_v5 = vld [vmem:[%s758_s1 + $0x90] sm:$0xff]  }
   0x2   :  { %337 = vmatpush1.bf16.msra.mxu1 %v550_v1  ;;  %v552_v3 = vld [vmem:[%s758_s1 + $0x40] sm:$0xff]   ;;  %v555_v6 = vld [vmem:[%s758_s1 + $0x48] sm:$0xff]   ;;  %v558_v8 = vld [vmem:[%s758_s1 + $0x50] sm:$0xff]   ;;  %v387_v38 = vshrl.u32 %v386_v36, 7 }
   0x3   :  { %338 = vmatprep.subr.bf16.mxu1 %v589_v0  ;;  %v553_v4 = vld [vmem:[%s758_s1] sm:$0xff]   ;;  %517 = vmatprep.subr.bf16.mxu0 %v552_v3  ;;  %v556_v7 = vld [vmem:[%s758_s1 + $0x8] sm:$0xff]   ;;  %v559_v9 = vld [vmem:[%s758_s1 + $0x10] sm:$0xff]  }
   0x4   :  { %518 = vmatpush3.bf16.msra.mxu0 %v553_v4  ;;  %v557_v10 = vld [vmem:[%s758_s1 + $0x98] sm:$0xff]   ;;  %v560_v12 = vld [vmem:[%s758_s1 + $0xa0] sm:$0xff]   ;;  %v563_v15 = vld [vmem:[%s758_s1 + $0xa8] sm:$0xff]   ;;  %v388_v44 = vsub.s32 0, %v387_v38  ;;  %v396_v47 = vsub.s32 1, %v387_v38 }
   0x5   :  { %519 = vmatprep.subr.bf16.mxu0 %v555_v6  ;;  %v561_v11 = vld [vmem:[%s758_s1 + $0x58] sm:$0xff]   ;;  %v564_v14 = vld [vmem:[%s758_s1 + $0x60] sm:$0xff]   ;;  %v567_v17 = vld [vmem:[%s758_s1 + $0x68] sm:$0xff]  }
   0x6   :  { %339 = vmatpush1.bf16.msra.mxu1 %v551_v2  ;;  %v562_v13 = vld [vmem:[%s758_s1 + $0x18] sm:$0xff]   ;;  %v565_v16 = vld [vmem:[%s758_s1 + $0x20] sm:$0xff]   ;;  %v566_v18 = vld [vmem:[%s758_s1 + $0xb0] sm:$0xff]  }
   0x7   :  { %340 = vmatprep.subr.bf16.mxu1 %v589_v0  ;;  %v568_v19 = vld [vmem:[%s758_s1 + $0x28] sm:$0xff]   ;;  %v570_v20 = vld [vmem:[%s758_s1 + $0x70] sm:$0xff]   ;;  %v569_v21 = vld [vmem:[%s758_s1 + $0xb8] sm:$0xff]  }
   0x8   :  { %520 = vmatpush3.bf16.msra.mxu0 %v556_v7  ;;  %v571_v22 = vld [vmem:[%s758_s1 + $0x30] sm:$0xff]   ;;  %v573_v23 = vld [vmem:[%s758_s1 + $0x78] sm:$0xff]   ;;  %v572_v27 = vld [vmem:[%s758_s1 + $0xc0] sm:$0xff]  }
   0x9   :  { %521 = vmatprep.subr.bf16.mxu0 %v558_v8  ;;  %v577_v24 = vld [vmem:[%s759_s0 + $0x4] ss:$16 sps:$4 sm:$0xff]   ;;  %v574_v25 = vld [vmem:[%s758_s1 + $0x38] sm:$0xff]   ;;  %v575_v28 = vld [vmem:[%s759_s0] ss:$16 sps:$4 sm:$0xff]  }
   0xa   :  { %341 = vmatpush1.bf16.msra.mxu1 %v554_v5  ;;  %319 = vmatprep.mubr.bf16.mxu0 %v577_v24  ;;  %v582_v26 = vld [vmem:[%s759_s0 + $0xc] ss:$16 sps:$4 sm:$0xff]   ;;  %v583_v29 = vld [vmem:[%s759_s0 + $0x24] ss:$16 sps:$4 sm:$0xff]   ;;  %v585_v32 = vld [vmem:[%s759_s0 + $0x20] ss:$16 sps:$4 sm:$0xff]  }
   0xb   :  { %342 = vmatprep.subr.bf16.mxu1 %v589_v0  ;;  %498 = vmatprep.mubr.msk.bf16.mxu1 %vm280_vm0, %v582_v26  ;;  %v578_v30 = vld [vmem:[%s758_s1 + $0xc8] sm:$0xff]   ;;  %v579_v31 = vld [vmem:[%s758_s1 + $0xd0] sm:$0xff]   ;;  %v385_v45 = vld [vmem:[%s760_s2] sm:$0x3] }
   0xc   :  { %522 = vmatpush3.bf16.msra.mxu0 %v559_v9  ;;  %v580_v33 = vld [vmem:[%s759_s0 + $0x8] ss:$16 sps:$4 sm:$0xff]   ;;  %v586_v34 = vld [vmem:[%s759_s0 + $0x2c] ss:$16 sps:$4 sm:$0xff]   ;;  %v509_v46 = vld [vmem:[%s761_s3] sm:$0xff]   ;;  %v389_v48 = vrot.slane %v385_v45, %v388_v44  ;;  %v397_v54 = vrot.slane %v385_v45, %v396_v47 }
   0xd   :  { %523 = vmatprep.subr.bf16.mxu0 %v561_v11  ;;  %v588_v35 = vld [vmem:[%s759_s0 + $0x28] ss:$16 sps:$4 sm:$0xff]   ;;  %v510_v49 = vunpack.c.l.bf16 %v509_v46  ;;  %v511_v56 = vunpack.c.h.bf16 %v509_v46 }
   0xe   :  { %343 = vmatpush1.bf16.msra.mxu1 %v557_v10  ;;  %v516_v2 = vld [vmem:[%s761_s3 + $0x8] sm:$0xff]  }
   0xf   :  { %344 = vmatprep.subr.bf16.mxu1 %v589_v0  ;;  %v410_v62 = vmul.f32 2.5, %v510_v49  ;;  %v411_v5 = vmul.f32 2.5, %v511_v56  ;;  %v514_v6 = vunpack.c.l.bf16 %v516_v2  ;;  %v515_v10 = vunpack.c.h.bf16 %v516_v2 }
  0x10   :  { %524 = vmatpush3.bf16.msra.mxu0 %v562_v13 }
  0x11   :  { %525 = vmatprep.subr.bf16.mxu0 %v564_v14 }
  0x12   :  { %345 = vmatpush1.bf16.msra.mxu1 %v560_v12 }
  0x13   :  { %346 = vmatprep.subr.bf16.mxu1 %v589_v0 }
  0x14   :  { %526 = vmatpush3.bf16.msra.mxu0 %v565_v16 }
  0x15   :  { %527 = vmatprep.subr.bf16.mxu0 %v567_v17 }
  0x16   :  { %347 = vmatpush1.bf16.msra.mxu1 %v563_v15  ;;  %v412_v15 = vmul.f32 2.5, %v514_v6 }
  0x17   :  { %348 = vmatprep.subr.bf16.mxu1 %v589_v0 }
  0x18   :  { %528 = vmatpush3.bf16.msra.mxu0 %v568_v19 }
  0x19   :  { %529 = vmatprep.subr.bf16.mxu0 %v570_v20 }
  0x1a   :  { %349 = vmatpush1.bf16.msra.mxu1 %v566_v18 }
  0x1b   :  { %350 = vmatprep.subr.bf16.mxu1 %v589_v0 }
  0x1c   :  { %530 = vmatpush3.bf16.msra.mxu0 %v571_v22  ;;  %v413_v22 = vmul.f32 2.5, %v515_v10 }
  0x1d   :  { %531 = vmatprep.subr.bf16.mxu0 %v573_v23 }
  0x1e   :  { %351 = vmatpush1.bf16.msra.mxu1 %v569_v21 }
  0x1f   :  { %352 = vmatprep.subr.bf16.mxu1 %v589_v0 }
  0x20   :  { %532 = vmatpush3.bf16.msra.mxu0 %v574_v25 }
  0x22   :  { %353 = vmatpush1.bf16.msra.mxu1 %v572_v27 }
  0x23   :  { %354 = vmatprep.subr.bf16.mxu1 %v589_v0  ;;  %320 = vmatmul.mubr.bf16.vlgmr.msra.gmra.mrb[0].mxu0 %v575_v28 }
  0x24   :  { %327 = vmatprep.mubr.bf16.mxu0 %v583_v29 }
  0x26   :  { %355 = vmatpush1.bf16.msra.mxu1 %v578_v30 }
  0x27   :  { %356 = vmatprep.subr.bf16.mxu1 %v589_v0 }
  0x2a   :  { %357 = vmatpush1.bf16.msra.mxu1 %v579_v31 }
  0x2b   :  { %328 = vmatmul.mubr.bf16.gmra.mrb[4].mxu0 %v585_v32 }
  0x2d   :  { %369 = vmatmul.mubr.bf16.vlgmr.msra.gmra.mrb[0].mxu1 %v580_v33 }
  0x2e   :  { %499 = vmatprep.mubr.msk.bf16.mxu1 %vm280_vm0, %v586_v34 }
  0x35   :  { %377 = vmatmul.mubr.bf16.gmra.mrb[4].mxu1 %v588_v35 }
  0xf6   :  { %v533_v37 = vpop.f32.mrb[0].mxu0 }
  0xf7   :  { %v534_v39 = vpop.f32.mrb[1].mxu0 }
  0xf8   :  { %v535_v40 = vadd.f32 %v534_v39, %v533_v37  ;;  %v536_v41 = vpop.f32.mrb[2].mxu0 }
  0xf9   :  { %v537_v42 = vpop.f32.mrb[3].mxu0 }
  0xfa   :  { %v538_v43 = vadd.f32 %v537_v42, %v536_v41 }
  0xfe   :  { %v539_v50 = vpop.f32.mrb[4].mxu0 }
  0xff   :  { %v540_v52 = vpop.f32.mrb[5].mxu0 }
 0x100   :  { %v370_v51 = vpop.f32.mrb[0].mxu1  ;;  %v541_v57 = vadd.f32 %v540_v52, %v539_v50  ;;  %v542_v58 = vpop.f32.mrb[6].mxu0 }
 0x101   :  { %v371_v53 = vadd.f32 %v535_v40, %v370_v51  ;;  %v372_v55 = vpop.f32.mrb[1].mxu1  ;;  %v543_v60 = vpop.f32.mrb[7].mxu0 }
 0x102   :  { %v373_v59 = vpop.f32.mrb[2].mxu1  ;;  %v544_v1 = vadd.f32 %v543_v60, %v542_v58 }
 0x103   :  { %v390_v61 = vmul.f32 %v389_v48, %v371_v53  ;;  %v374_v63 = vadd.f32 %v538_v43, %v373_v59  ;;  %v375_v0 = vpop.f32.mrb[3].mxu1 }
 0x105   :  { %v398_v3 = vadd.f32 %v397_v54, %v390_v61  ;;  %v391_v4 = vmul.f32 %v389_v48, %v374_v63 }
 0x107   :  { %v414_v7 = vadd.f32 %v410_v62, %v398_v3  ;;  %v399_v8 = vadd.f32 %v397_v54, %v391_v4 }
 0x108   :  { %v378_v9 = vpop.f32.mrb[4].mxu1 }
 0x109   :  { %v418_v11 = vmax.f32 %v414_v7, 0.0  ;;  %v415_v12 = vadd.f32 %v411_v5, %v399_v8  ;;  %v379_v13 = vadd.f32 %v541_v57, %v378_v9  ;;  %v380_v14 = vpop.f32.mrb[5].mxu1 }
 0x10a   :  { %v381_v16 = vpop.f32.mrb[6].mxu1 }
 0x10b   :  { %v545_v17 = vround.rtne.f32 %v418_v11  ;;  %v419_v18 = vmax.f32 %v415_v12, 0.0  ;;  %v392_v19 = vmul.f32 %v389_v48, %v379_v13  ;;  %v382_v20 = vadd.f32 %v544_v1, %v381_v16  ;;  %v383_v21 = vpop.f32.mrb[7].mxu1 }
 0x10d   :  { %v426_v23 = vmax.f32 %v545_v17, 0.0  ;;  %v546_v24 = vround.rtne.f32 %v419_v18  ;;  %v400_v25 = vadd.f32 %v397_v54, %v392_v19  ;;  %v393_v26 = vmul.f32 %v389_v48, %v382_v20 }
 0x10f   :  { %v430_v27 = vmin.f32 %v426_v23, 15.0  ;;  %v427_v28 = vmax.f32 %v546_v24, 0.0  ;;  %v416_v29 = vadd.f32 %v412_v15, %v400_v25  ;;  %v401_v30 = vadd.f32 %v397_v54, %v393_v26 }
 0x111   :  { %v434_v31 = vmul.f32 0.4, %v430_v27  ;;  %v431_v32 = vmin.f32 %v427_v28, 15.0  ;;  %v420_v33 = vmax.f32 %v416_v29, 0.0  ;;  %v417_v34 = vadd.f32 %v413_v22, %v401_v30 }
 0x113   :  { %v504_v35 = vpack.c.bf16 %v434_v31, %v434_v31  ;;  %v435_v36 = vmul.f32 0.4, %v431_v32  ;;  %v547_v37 = vround.rtne.f32 %v420_v33  ;;  %v421_v38 = vmax.f32 %v417_v34, 0.0 }
 0x115   :  { %455 = vst.msk [vmem:[%s762_s4] sm:$0xf] %vm454_vm1, %v504_v35  ;;  %v505_v39 = vpack.c.bf16 %v435_v36, %v435_v36  ;;  %v428_v40 = vmax.f32 %v547_v37, 0.0  ;;  %v548_v41 = vround.rtne.f32 %v421_v38 }
 0x117   :  { %456 = vst.msk [vmem:[%s762_s4 + $0x4] sm:$0xf] %vm454_vm1, %v505_v39  ;;  %v432_v42 = vmin.f32 %v428_v40, 15.0  ;;  %v429_v43 = vmax.f32 %v548_v41, 0.0 }
 0x119   :  { %v436_v44 = vmul.f32 0.4, %v432_v42  ;;  %v433_v45 = vmin.f32 %v429_v43, 15.0 }
 0x11b   :  { %v506_v46 = vpack.c.bf16 %v436_v44, %v436_v44  ;;  %v437_v47 = vmul.f32 0.4, %v433_v45 }
 0x11d   :  { %457 = vst.msk [vmem:[%s762_s4 + $0x8] sm:$0xf] %vm454_vm1, %v506_v46  ;;  %v507_v48 = vpack.c.bf16 %v437_v47, %v437_v47 }
 0x11f   :  { %458 = vst.msk [vmem:[%s762_s4 + $0xc] sm:$0xf] %vm454_vm1, %v507_v48 }

// kernel: quant_resnet_forward.19
= control target key start
LH: loop header
LB: loop body
LE: loop exit
PB: predicated region body
PF: predicated region fallthrough
CT: control target
= control target key end

     0   :  { %v441_v0 = vmov 0   ;;  %v442_v15 = vmov 1983009808   ;;  %v75_v17 = vlaneseq  ;;  %vm253_vm0 = vcmask 392192   ;;  %s564_s1 = inlined_call_operand.vmem [shape: bf16[432,32], index: 1, kind: input, shape index: {}]   ;;  %s565_s0 = inlined_call_operand.vmem [shape: bf16[4,432], index: 0, kind: input, shape index: {}]   ;;  %s566_s2 = inlined_call_operand.vmem [shape: f32[2,32], index: 2, kind: input, shape index: {}]   ;;  %s567_s3 = inlined_call_operand.vmem [shape: bf16[4,32], index: 3, kind: output, shape index: {}]  }
   0x1   :  { %297 = vmatprep.subr.bf16.mxu1 %v441_v0  ;;  %v413_v1 = vld [vmem:[%s564_s1 + $0x80] sm:$0xff]   ;;  %v414_v2 = vld [vmem:[%s564_s1 + $0x88] sm:$0xff]   ;;  %v417_v5 = vld [vmem:[%s564_s1 + $0x90] sm:$0xff]   ;;  %v73_v16 = vunpack.c.l.s4 %v442_v15  ;;  %vm354_vm1 = vcmask 254976  }
   0x2   :  { %298 = vmatpush1.bf16.msra.mxu1 %v413_v1  ;;  %v415_v3 = vld [vmem:[%s564_s1 + $0x40] sm:$0xff]   ;;  %v418_v6 = vld [vmem:[%s564_s1 + $0x48] sm:$0xff]   ;;  %v421_v8 = vld [vmem:[%s564_s1 + $0x50] sm:$0xff]   ;;  %v76_v22 = vshrl.u32 %v75_v17, 7 }
   0x3   :  { %299 = vmatprep.subr.bf16.mxu1 %v441_v0  ;;  %v416_v4 = vld [vmem:[%s564_s1] sm:$0xff]   ;;  %388 = vmatprep.subr.bf16.mxu0 %v415_v3  ;;  %v419_v7 = vld [vmem:[%s564_s1 + $0x8] sm:$0xff]   ;;  %v422_v9 = vld [vmem:[%s564_s1 + $0x10] sm:$0xff]   ;;  %v74_v21 = vunpack.c.0.s8 %v73_v16 }
   0x4   :  { %389 = vmatpush3.bf16.msra.mxu0 %v416_v4  ;;  %v420_v10 = vld [vmem:[%s564_s1 + $0x98] sm:$0xff]   ;;  %v423_v12 = vld [vmem:[%s564_s1 + $0xa0] sm:$0xff]   ;;  %v426_v18 = vld [vmem:[%s564_s1 + $0xa8] sm:$0xff]   ;;  %v340_v45 = vsub.s32 0, %v76_v22  ;;  %v345_v47 = vsub.s32 1, %v76_v22 }
   0x5   :  { %390 = vmatprep.subr.bf16.mxu0 %v418_v6  ;;  %v424_v11 = vld [vmem:[%s564_s1 + $0x58] sm:$0xff]   ;;  %v427_v14 = vld [vmem:[%s564_s1 + $0x60] sm:$0xff]   ;;  %v430_v20 = vld [vmem:[%s564_s1 + $0x68] sm:$0xff]   ;;  %v77_v26 = vsub.s32 %v74_v21, %v76_v22 }
   0x6   :  { %300 = vmatpush1.bf16.msra.mxu1 %v414_v2  ;;  %v425_v13 = vld [vmem:[%s564_s1 + $0x18] sm:$0xff]   ;;  %v428_v19 = vld [vmem:[%s564_s1 + $0x20] sm:$0xff]   ;;  %v429_v23 = vld [vmem:[%s564_s1 + $0xb0] sm:$0xff]  }
   0x7   :  { %301 = vmatprep.subr.bf16.mxu1 %v441_v0  ;;  %v431_v24 = vld [vmem:[%s564_s1 + $0x28] sm:$0xff]   ;;  %v433_v25 = vld [vmem:[%s564_s1 + $0x70] sm:$0xff]   ;;  %v432_v27 = vld [vmem:[%s564_s1 + $0xb8] sm:$0xff]  }
   0x8   :  { %391 = vmatpush3.bf16.msra.mxu0 %v419_v7  ;;  %v434_v28 = vld [vmem:[%s564_s1 + $0x30] sm:$0xff]   ;;  %v15_v29 = vld [vmem:[%s565_s0] sm:$0xff]  ;;  %v436_v30 = vld [vmem:[%s564_s1 + $0x78] sm:$0xff]  }
   0x9   :  { %392 = vmatprep.subr.bf16.mxu0 %v421_v8  ;;  %v71_v31 = vcombine.high %v15_v29, %v15_v29  ;;  %v78_v32 = vrot.slane %v15_v29, %v77_v26  ;;  %v437_v35 = vld [vmem:[%s564_s1 + $0x38] sm:$0xff]   ;;  %v435_v36 = vld [vmem:[%s564_s1 + $0xc0] sm:$0xff]   ;;  %v439_v38 = vld [vmem:[%s564_s1 + $0xc8] sm:$0xff]  }
   0xa   :  { %302 = vmatpush1.bf16.msra.mxu1 %v417_v5  ;;  %v440_v39 = vld [vmem:[%s564_s1 + $0xd0] sm:$0xff]   ;;  %v337_v46 = vld [vmem:[%s566_s2] sm:$0x3] }
   0xb   :  { %303 = vmatprep.subr.bf16.mxu1 %v441_v0  ;;  %v86_v33 = vcombine.high %v78_v32, %v78_v32  ;;  %v85_v34 = vrot.slane %v71_v31, %v77_v26  ;;  %v341_v48 = vrot.slane %v337_v46, %v340_v45  ;;  %v346_v51 = vrot.slane %v337_v46, %v345_v47 }
   0xc   :  { %393 = vmatpush3.bf16.msra.mxu0 %v422_v9 }
   0xd   :  { %394 = vmatprep.subr.bf16.mxu0 %v424_v11  ;;  %v87_v37 = vcombine.high %v85_v34, %v85_v34  ;;  %289 = vmatprep.mubr.bf16.mxu0 %v86_v33 }
   0xe   :  { %304 = vmatpush1.bf16.msra.mxu1 %v420_v10 }
   0xf   :  { %305 = vmatprep.subr.bf16.mxu1 %v441_v0  ;;  %387 = vmatprep.mubr.msk.bf16.mxu1 %vm253_vm0, %v87_v37 }
  0x10   :  { %395 = vmatpush3.bf16.msra.mxu0 %v425_v13 }
  0x11   :  { %396 = vmatprep.subr.bf16.mxu0 %v427_v14 }
  0x12   :  { %306 = vmatpush1.bf16.msra.mxu1 %v423_v12 }
  0x13   :  { %307 = vmatprep.subr.bf16.mxu1 %v441_v0 }
  0x14   :  { %397 = vmatpush3.bf16.msra.mxu0 %v428_v19 }
  0x15   :  { %398 = vmatprep.subr.bf16.mxu0 %v430_v20 }
  0x16   :  { %308 = vmatpush1.bf16.msra.mxu1 %v426_v18 }
  0x17   :  { %309 = vmatprep.subr.bf16.mxu1 %v441_v0 }
  0x18   :  { %399 = vmatpush3.bf16.msra.mxu0 %v431_v24 }
  0x19   :  { %400 = vmatprep.subr.bf16.mxu0 %v433_v25 }
  0x1a   :  { %310 = vmatpush1.bf16.msra.mxu1 %v429_v23 }
  0x1b   :  { %311 = vmatprep.subr.bf16.mxu1 %v441_v0 }
  0x1c   :  { %401 = vmatpush3.bf16.msra.mxu0 %v434_v28 }
  0x1d   :  { %402 = vmatprep.subr.bf16.mxu0 %v436_v30 }
  0x1e   :  { %312 = vmatpush1.bf16.msra.mxu1 %v432_v27 }
  0x1f   :  { %313 = vmatprep.subr.bf16.mxu1 %v441_v0 }
  0x20   :  { %403 = vmatpush3.bf16.msra.mxu0 %v437_v35 }
  0x22   :  { %314 = vmatpush1.bf16.msra.mxu1 %v435_v36 }
  0x23   :  { %315 = vmatprep.subr.bf16.mxu1 %v441_v0  ;;  %290 = vmatmul.mubr.bf16.vlgmr.msra.gmra.mrb[0].mxu0 %v78_v32 }
  0x26   :  { %316 = vmatpush1.bf16.msra.mxu1 %v439_v38 }
  0x27   :  { %317 = vmatprep.subr.bf16.mxu1 %v441_v0 }
  0x2a   :  { %318 = vmatpush1.bf16.msra.mxu1 %v440_v39 }
  0x2d   :  { %330 = vmatmul.mubr.bf16.vlgmr.msra.gmra.mrb[0].mxu1 %v85_v34 }
  0xf6   :  { %v404_v40 = vpop.f32.mrb[0].mxu0 }
  0xf7   :  { %v405_v41 = vpop.f32.mrb[1].mxu0 }
  0xf8   :  { %v406_v42 = vadd.f32 %v405_v41, %v404_v40  ;;  %v407_v43 = vpop.f32.mrb[2].mxu0 }
  0xf9   :  { %v408_v44 = vpop.f32.mrb[3].mxu0 }
 0x100   :  { %v331_v49 = vpop.f32.mrb[0].mxu1 }
 0x101   :  { %v332_v50 = vadd.f32 %v406_v42, %v331_v49  ;;  %v333_v52 = vpop.f32.mrb[1].mxu1 }
 0x102   :  { %v334_v53 = vpop.f32.mrb[2].mxu1 }
 0x103   :  { %v342_v54 = vmul.f32 %v341_v48, %v332_v50  ;;  %v335_v55 = vpop.f32.mrb[3].mxu1 }
 0x105   :  { %v347_v56 = vadd.f32 %v346_v51, %v342_v54 }
 0x107   :  { %v348_v57 = vmax.f32 %v347_v56, 0.0 }
 0x109   :  { %v410_v58 = vround.rtne.f32 %v348_v57 }
 0x10b   :  { %v350_v59 = vmax.f32 %v410_v58, 0.0 }
 0x10d   :  { %v351_v60 = vmin.f32 %v350_v59, 15.0 }
 0x10f   :  { %v352_v61 = vmul.f32 0.4, %v351_v60 }
 0x111   :  { %v353_v62 = vpack.c.bf16 %v352_v61, %v352_v61 }
 0x113   :  { %355 = vst.msk [vmem:[%s567_s3] sm:$0x3] %vm354_vm1, %v353_v62 }

// kernel: quant_resnet_forward.20
= control target key start
LH: loop header
LB: loop body
LE: loop exit
PB: predicated region body
PF: predicated region fallthrough
CT: control target
= control target key end

     0   :  { %v99_v0 = vmov 0.0   ;;  %vm100_vm0 = vmmov 0   ;;  %vm24_vm1 = vcmask 130048   ;;  %v69_v3 = vlaneseq  ;;  %s133_s1 = inlined_call_operand.vmem [shape: bf16[16,32], index: 1, kind: input, shape index: {}]   ;;  %s134_s0 = inlined_call_operand.vmem [shape: bf16[4,16], index: 0, kind: input, shape index: {}]   ;;  %s135_s2 = inlined_call_operand.vmem [shape: f32[2,32], index: 2, kind: input, shape index: {}]   ;;  %s136_s3 = inlined_call_operand.vmem [shape: bf16[4,32], index: 3, kind: output, shape index: {}]  }
   0x1   :  { %90 = vmatprep.subr.bf16.mxu0 %v99_v0  ;;  %v98_v1 = vld [vmem:[%s133_s1] sm:$0xff]   ;;  %92 = vmatprep.mubr.msk.bf16.mxu0 %vm100_vm0, %v99_v0  ;;  %vm80_vm2 = vcmask 254976  }
   0x2   :  { %91 = vmatpush3.bf16.msra.mxu0 %v98_v1  ;;  %v15_v2 = vld [vmem:[%s134_s0] sm:$0x3]  ;;  %v70_v4 = vshrl.u32 %v69_v3, 7 }
   0x3   :  { %v68_v6 = vld [vmem:[%s135_s2] sm:$0x3] }
   0x4   :  { %v71_v5 = vsub.s32 0, %v70_v4  ;;  %v76_v7 = vsub.s32 1, %v70_v4 }
   0x5   :  { %93 = vmatmul.mubr.msk.bf16.vlgmr.msra.gmra.mrb[0].mxu0 %vm24_vm1, %v15_v2 }
   0x6   :  { %v72_v8 = vrot.slane %v68_v6, %v71_v5  ;;  %v77_v9 = vrot.slane %v68_v6, %v76_v7 }
  0xd8   :  { %v62_v10 = vpop.f32.mrb[0].mxu0 }
  0xd9   :  { %v73_v11 = vmul.f32 %v72_v8, %v62_v10  ;;  %v94_v12 = vpop.f32.mrb[1].mxu0 }
  0xda   :  { %v65_v13 = vpop.f32.mrb[2].mxu0 }
  0xdb   :  { %v78_v14 = vadd.f32 %v77_v9, %v73_v11  ;;  %v95_v15 = vpop.f32.mrb[3].mxu0 }
  0xdd   :  { %v79_v16 = vpack.c.bf16 %v78_v14, %v78_v14 }
  0xdf   :  { %81 = vst.msk [vmem:[%s136_s3] sm:$0x3] %vm80_vm2, %v79_v16 }

// kernel: quant_resnet_forward.21
= control target key start
LH: loop header
LB: loop body
LE: loop exit
PB: predicated region body
PF: predicated region fallthrough
CT: control target
= control target key end

     0   :  { %v888_v22 = vmov 1983009808   ;;  %v134_v24 = vlaneseq  ;;  %v889_v44 = vmov 0.0   ;;  %vm890_vm0 = vmmov 0   ;;  %s1109_s1 = inlined_call_operand.vmem [shape: bf16[864,32], index: 1, kind: input, shape index: {}]   ;;  %s1110_s0 = inlined_call_operand.vmem [shape: bf16[4,864], index: 0, kind: input, shape index: {}]   ;;  %s1111_s2 = inlined_call_operand.vmem [shape: f32[2,32], index: 2, kind: input, shape index: {}]   ;;  %s1112_s3 = inlined_call_operand.vmem [shape: bf16[4,32], index: 3, kind: input, shape index: {}]   ;;  %s1113_s4 = inlined_call_operand.vmem [shape: bf16[4,32], index: 4, kind: output, shape index: {}]  }
   0x1   :  { %v832_v0 = vld [vmem:[%s1109_s1 + $0x40] sm:$0xff]   ;;  %v836_v4 = vld [vmem:[%s1109_s1 + $0x48] sm:$0xff]   ;;  %v840_v8 = vld [vmem:[%s1109_s1 + $0x50] sm:$0xff]   ;;  %v132_v23 = vunpack.c.l.s4 %v888_v22  ;;  %vm493_vm1 = vcmask 785408   ;;  %vm678_vm2 = vcmask 254976  }
   0x2   :  { %v833_v1 = vld [vmem:[%s1109_s1 + $0xc0] sm:$0xff]   ;;  %739 = vmatprep.subr.bf16.mxu0 %v832_v0  ;;  %v837_v5 = vld [vmem:[%s1109_s1 + $0xc8] sm:$0xff]   ;;  %v841_v9 = vld [vmem:[%s1109_s1 + $0xd0] sm:$0xff]   ;;  %v994_v30 = vshrl.u32 %v134_v24, 7 }
   0x3   :  { %v834_v2 = vld [vmem:[%s1109_s1] sm:$0xff]   ;;  %761 = vmatprep.subr.bf16.mxu1 %v833_v1  ;;  %v838_v6 = vld [vmem:[%s1109_s1 + $0x8] sm:$0xff]   ;;  %v842_v10 = vld [vmem:[%s1109_s1 + $0x10] sm:$0xff]   ;;  %v133_v29 = vunpack.c.0.s8 %v132_v23 }
   0x4   :  { %v835_v3 = vld [vmem:[%s1109_s1 + $0x80] sm:$0xff]   ;;  %740 = vmatpush3.bf16.msra.mxu0 %v834_v2  ;;  %v839_v7 = vld [vmem:[%s1109_s1 + $0x88] sm:$0xff]   ;;  %v843_v11 = vld [vmem:[%s1109_s1 + $0x90] sm:$0xff]   ;;  %v660_v24 = vsub.s32 0, %v994_v30 }
   0x5   :  { %762 = vmatpush3.bf16.msra.mxu1 %v835_v3  ;;  %741 = vmatprep.subr.bf16.mxu0 %v836_v4  ;;  %v844_v12 = vld [vmem:[%s1109_s1 + $0x58] sm:$0xff]   ;;  %v848_v16 = vld [vmem:[%s1109_s1 + $0x60] sm:$0xff]   ;;  %v852_v20 = vld [vmem:[%s1109_s1 + $0x68] sm:$0xff]   ;;  %v1009_v35 = vsub.s32 %v133_v29, %v994_v30 }
   0x6   :  { %763 = vmatprep.subr.bf16.mxu1 %v837_v5  ;;  %v845_v13 = vld [vmem:[%s1109_s1 + $0xd8] sm:$0xff]   ;;  %v849_v17 = vld [vmem:[%s1109_s1 + $0xe0] sm:$0xff]   ;;  %v853_v21 = vld [vmem:[%s1109_s1 + $0xe8] sm:$0xff]  }
   0x7   :  { %v846_v14 = vld [vmem:[%s1109_s1 + $0x18] sm:$0xff]   ;;  %v850_v18 = vld [vmem:[%s1109_s1 + $0x20] sm:$0xff]   ;;  %v854_v25 = vld [vmem:[%s1109_s1 + $0x28] sm:$0xff]  }
   0x8   :  { %742 = vmatpush3.bf16.msra.mxu0 %v838_v6  ;;  %v847_v15 = vld [vmem:[%s1109_s1 + $0x98] sm:$0xff]   ;;  %v851_v19 = vld [vmem:[%s1109_s1 + $0xa0] sm:$0xff]   ;;  %v855_v26 = vld [vmem:[%s1109_s1 + $0xa8] sm:$0xff]  }
   0x9   :  { %764 = vmatpush3.bf16.msra.mxu1 %v839_v7  ;;  %743 = vmatprep.subr.bf16.mxu0 %v840_v8  ;;  %v856_v27 = vld [vmem:[%s1109_s1 + $0x70] sm:$0xff]   ;;  %v860_v33 = vld [vmem:[%s1109_s1 + $0x78] sm:$0xff]   ;;  %v18_v38 = vld [vmem:[%s1110_s0] sm:$0xff] }
   0xa   :  { %765 = vmatprep.subr.bf16.mxu1 %v841_v9  ;;  %v857_v28 = vld [vmem:[%s1109_s1 + $0xf0] sm:$0xff]   ;;  %v861_v34 = vld [vmem:[%s1109_s1 + $0xf8] sm:$0xff]   ;;  %v19_v39 = vld [vmem:[%s1110_s0 + $0x8] sm:$0x3f]  ;;  %v137_v40 = vrot.slane %v18_v38, %v1009_v35  ;;  %v130_v41 = vcombine.high %v18_v38, %v18_v38 }
   0xb   :  { %v858_v31 = vld [vmem:[%s1109_s1 + $0x30] sm:$0xff]   ;;  %v862_v36 = vld [vmem:[%s1109_s1 + $0x38] sm:$0xff]   ;;  %v866_v42 = vld [vmem:[%s1109_s1 + $0x140] sm:$0xff]   ;;  %v1028_v43 = vrot.slane %v19_v39, %v1009_v35  ;;  %v147_v1 = vcombine.high %v19_v39, %v19_v39 }
   0xc   :  { %744 = vmatpush3.bf16.msra.mxu0 %v842_v10  ;;  %v859_v32 = vld [vmem:[%s1109_s1 + $0xb0] sm:$0xff]   ;;  %v863_v37 = vld [vmem:[%s1109_s1 + $0xb8] sm:$0xff]   ;;  %v145_v45 = vcombine.high %v137_v40, %v137_v40  ;;  %v144_v46 = vrot.slane %v130_v41, %v1009_v35  ;;  %v867_v47 = vld [vmem:[%s1109_s1 + $0x100] sm:$0xff]  }
   0xd   :  { %766 = vmatpush3.bf16.msra.mxu1 %v843_v11  ;;  %745 = vmatprep.subr.bf16.mxu0 %v844_v12  ;;  %v868_v48 = vld [vmem:[%s1109_s1 + $0x148] sm:$0xff]   ;;  %v162_v50 = vcombine.high %v1028_v43, %v1028_v43  ;;  %v872_v52 = vld [vmem:[%s1109_s1 + $0x180] sm:$0xff]   ;;  %v870_v53 = vld [vmem:[%s1109_s1 + $0x150] sm:$0xff]   ;;  %v161_v5 = vrot.slane %v147_v1, %v1009_v35 }
   0xe   :  { %767 = vmatprep.subr.bf16.mxu1 %v845_v13  ;;  %529 = vmatprep.mubr.bf16.mxu0 %v145_v45  ;;  %v146_v49 = vcombine.high %v144_v46, %v144_v46  ;;  %v869_v51 = vld [vmem:[%s1109_s1 + $0x108] sm:$0xff]   ;;  %v871_v55 = vld [vmem:[%s1109_s1 + $0x110] sm:$0xff]   ;;  %v873_v56 = vld [vmem:[%s1109_s1 + $0x158] sm:$0xff]  }
   0xf   :  { %v875_v54 = vld [vmem:[%s1109_s1 + $0x188] sm:$0xff]   ;;  %v878_v57 = vld [vmem:[%s1109_s1 + $0x190] sm:$0xff]   ;;  %v874_v58 = vld [vmem:[%s1109_s1 + $0x118] sm:$0xff]  }
  0x10   :  { %746 = vmatpush3.bf16.msra.mxu0 %v846_v14  ;;  %569 = vmatprep.mubr.bf16.mxu1 %v146_v49  ;;  %v876_v59 = vld [vmem:[%s1109_s1 + $0x160] sm:$0xff]   ;;  %v881_v60 = vld [vmem:[%s1109_s1 + $0x198] sm:$0xff]   ;;  %v879_v62 = vld [vmem:[%s1109_s1 + $0x168] sm:$0xff]  }
  0x11   :  { %768 = vmatpush3.bf16.msra.mxu1 %v847_v15  ;;  %747 = vmatprep.subr.bf16.mxu0 %v848_v16  ;;  %v877_v61 = vld [vmem:[%s1109_s1 + $0x120] sm:$0xff]   ;;  %v880_v0 = vld [vmem:[%s1109_s1 + $0x128] sm:$0xff]   ;;  %v882_v2 = vld [vmem:[%s1109_s1 + $0x170] sm:$0xff]  }
  0x12   :  { %769 = vmatprep.subr.bf16.mxu1 %v849_v17  ;;  %v884_v63 = vld [vmem:[%s1109_s1 + $0x1a0] sm:$0xff]   ;;  %v887_v3 = vld [vmem:[%s1109_s1 + $0x1a8] sm:$0xff]   ;;  %v883_v4 = vld [vmem:[%s1109_s1 + $0x130] sm:$0xff]  }
  0x13   :  { %v885_v6 = vld [vmem:[%s1109_s1 + $0x178] sm:$0xff]  }
  0x14   :  { %748 = vmatpush3.bf16.msra.mxu0 %v850_v18  ;;  %v886_v7 = vld [vmem:[%s1109_s1 + $0x138] sm:$0xff]  }
  0x15   :  { %770 = vmatpush3.bf16.msra.mxu1 %v851_v19  ;;  %749 = vmatprep.subr.bf16.mxu0 %v852_v20 }
  0x16   :  { %771 = vmatprep.subr.bf16.mxu1 %v853_v21 }
  0x18   :  { %750 = vmatpush3.bf16.msra.mxu0 %v854_v25 }
  0x19   :  { %772 = vmatpush3.bf16.msra.mxu1 %v855_v26  ;;  %751 = vmatprep.subr.bf16.mxu0 %v856_v27  ;;  %v657_v26 = vld [vmem:[%s1111_s2] sm:$0x3] }
  0x1a   :  { %773 = vmatprep.subr.bf16.mxu1 %v857_v28  ;;  %v668_v27 = vld [vmem:[%s1112_s3] sm:$0x3] }
  0x1b   :  { %v669_v35 = vunpack.c.l.bf16 %v668_v27 }
  0x1c   :  { %752 = vmatpush3.bf16.msra.mxu0 %v858_v31  ;;  %v665_v31 = vsub.s32 1, %v994_v30 }
  0x1d   :  { %774 = vmatpush3.bf16.msra.mxu1 %v859_v32  ;;  %753 = vmatprep.subr.bf16.mxu0 %v860_v33  ;;  %v670_v39 = vmul.f32 2.5, %v669_v35 }
  0x1e   :  { %775 = vmatprep.subr.bf16.mxu1 %v861_v34  ;;  %v661_v34 = vrot.slane %v657_v26, %v660_v24 }
  0x20   :  { %754 = vmatpush3.bf16.msra.mxu0 %v862_v36 }
  0x21   :  { %776 = vmatpush3.bf16.msra.mxu1 %v863_v37  ;;  %783 = vmatprep.subr.bf16.mxu0 %v866_v42  ;;  %v666_v37 = vrot.slane %v657_v26, %v665_v31 }
  0x22   :  { %812 = vmatprep.subr.bf16.mxu1 %v889_v44 }
  0x23   :  { %530 = vmatmul.mubr.bf16.vlgmr.msra.gmra.mrb[0].mxu0 %v137_v40 }
  0x24   :  { %784 = vmatpush3.bf16.msra.mxu0 %v867_v47  ;;  %570 = vmatmul.mubr.bf16.vlgmr.msra.gmra.mrb[0].mxu1 %v144_v46 }
  0x25   :  { %785 = vmatprep.subr.bf16.mxu0 %v868_v48  ;;  %813 = vmatpush3.bf16.msra.mxu1 %v872_v52 }
  0x26   :  { %609 = vmatprep.mubr.bf16.mxu0 %v162_v50  ;;  %814 = vmatprep.subr.bf16.mxu1 %v889_v44 }
  0x27   :  { %824 = vmatprep.mubr.msk.bf16.mxu1 %vm890_vm0, %v889_v44 }
  0x28   :  { %786 = vmatpush3.bf16.msra.mxu0 %v869_v51 }
  0x29   :  { %787 = vmatprep.subr.bf16.mxu0 %v870_v53  ;;  %815 = vmatpush3.bf16.msra.mxu1 %v875_v54 }
  0x2a   :  { %816 = vmatprep.subr.bf16.mxu1 %v889_v44 }
  0x2c   :  { %788 = vmatpush3.bf16.msra.mxu0 %v871_v55 }
  0x2d   :  { %789 = vmatprep.subr.bf16.mxu0 %v873_v56  ;;  %817 = vmatpush3.bf16.msra.mxu1 %v878_v57 }
  0x2e   :  { %818 = vmatprep.subr.bf16.mxu1 %v889_v44 }
  0x30   :  { %790 = vmatpush3.bf16.msra.mxu0 %v874_v58 }
  0x31   :  { %791 = vmatprep.subr.bf16.mxu0 %v876_v59  ;;  %819 = vmatpush3.bf16.msra.mxu1 %v881_v60 }
  0x32   :  { %820 = vmatprep.subr.bf16.mxu1 %v889_v44 }
  0x34   :  { %792 = vmatpush3.bf16.msra.mxu0 %v877_v61 }
  0x35   :  { %793 = vmatprep.subr.bf16.mxu0 %v879_v62  ;;  %821 = vmatpush3.bf16.msra.mxu1 %v884_v63 }
  0x36   :  { %822 = vmatprep.subr.bf16.mxu1 %v889_v44 }
  0x38   :  { %794 = vmatpush3.bf16.msra.mxu0 %v880_v0 }
  0x39   :  { %795 = vmatprep.subr.bf16.mxu0 %v882_v2  ;;  %823 = vmatpush3.bf16.msra.mxu1 %v887_v3 }
  0x3c   :  { %796 = vmatpush3.bf16.msra.mxu0 %v883_v4  ;;  %825 = vmatmul.mubr.msk.bf16.vlgmr.msra.gmra.mrb[4].mxu1 %vm493_vm1, %v161_v5 }
  0x3d   :  { %797 = vmatprep.subr.bf16.mxu0 %v885_v6 }
  0x40   :  { %798 = vmatpush3.bf16.msra.mxu0 %v886_v7 }
  0x43   :  { %610 = vmatmul.mubr.bf16.vlgmr.msra.gmra.mrb[4].mxu0 %v1028_v43 }
  0xf6   :  { %v755_v8 = vpop.f32.mrb[0].mxu0 }
  0xf7   :  { %v756_v9 = vpop.f32.mrb[1].mxu0  ;;  %v777_v10 = vpop.f32.mrb[0].mxu1 }
  0xf8   :  { %v757_v11 = vadd.f32 %v756_v9, %v755_v8  ;;  %v758_v12 = vpop.f32.mrb[2].mxu0  ;;  %v778_v13 = vpop.f32.mrb[1].mxu1 }
  0xf9   :  { %v759_v14 = vpop.f32.mrb[3].mxu0  ;;  %v779_v15 = vadd.f32 %v778_v13, %v777_v10  ;;  %v780_v16 = vpop.f32.mrb[2].mxu1 }
  0xfa   :  { %v781_v17 = vpop.f32.mrb[3].mxu1 }
  0xfb   :  { %v572_v18 = vadd.f32 %v779_v15, %v757_v11 }
 0x10f   :  { %v651_v19 = vpop.f32.mrb[4].mxu1 }
 0x110   :  { %v826_v20 = vpop.f32.mrb[5].mxu1 }
 0x111   :  { %v654_v21 = vpop.f32.mrb[6].mxu1 }
 0x112   :  { %v827_v22 = vpop.f32.mrb[7].mxu1 }
 0x116   :  { %v799_v23 = vpop.f32.mrb[4].mxu0 }
 0x117   :  { %v800_v25 = vpop.f32.mrb[5].mxu0 }
 0x118   :  { %v801_v28 = vadd.f32 %v800_v25, %v799_v23  ;;  %v802_v29 = vpop.f32.mrb[6].mxu0 }
 0x119   :  { %v803_v32 = vpop.f32.mrb[7].mxu0 }
 0x11a   :  { %v612_v33 = vadd.f32 %v801_v28, %v572_v18 }
 0x11c   :  { %v652_v36 = vadd.f32 %v651_v19, %v612_v33 }
 0x11e   :  { %v662_v38 = vmul.f32 %v661_v34, %v652_v36 }
 0x120   :  { %v667_v40 = vadd.f32 %v666_v37, %v662_v38 }
 0x122   :  { %v671_v41 = vadd.f32 %v670_v39, %v667_v40 }
 0x124   :  { %v672_v42 = vmax.f32 %v671_v41, 0.0 }
 0x126   :  { %v828_v43 = vround.rtne.f32 %v672_v42 }
 0x128   :  { %v674_v44 = vmax.f32 %v828_v43, 0.0 }
 0x12a   :  { %v675_v45 = vmin.f32 %v674_v44, 15.0 }
 0x12c   :  { %v676_v46 = vmul.f32 0.4, %v675_v45 }
 0x12e   :  { %v677_v47 = vpack.c.bf16 %v676_v46, %v676_v46 }
 0x130   :  { %679 = vst.msk [vmem:[%s1113_s4] sm:$0x3] %vm678_vm2, %v677_v47 }

// kernel: quant_resnet_forward.24
= control target key start
LH: loop header
LB: loop body
LE: loop exit
PB: predicated region body
PF: predicated region fallthrough
CT: control target
= control target key end

     0   :  { %v131_v30 = vlaneseq  ;;  %v931_v33 = vmov 1966171168   ;;  %v932_v38 = vmov 0.0   ;;  %vm933_vm0 = vmmov 0   ;;  %s1135_s0 = inlined_call_operand.vmem [shape: bf16[2,1,1,1,27,64], index: 0, kind: input, shape index: {}, may-alias: {0,4}]   ;;  %s1136_s1 = inlined_call_operand.vmem [shape: bf16[2,864], index: 1, kind: input, shape index: {}]   ;;  %s1137_s2 = inlined_call_operand.vmem [shape: bf16[864,64], index: 2, kind: input, shape index: {}]   ;;  %s1138_s3 = inlined_call_operand.vmem [shape: f32[2,64], index: 3, kind: input, shape index: {}]   ;;  %s1139_s4 = inlined_call_operand.vmem [shape: bf16[2,1,1,1,27,64], index: 4, kind: output, shape index: {}, may-alias: {0,4}]  }
   0x1   :  { %v876_v0 = vld [vmem:[%s1137_s2 + $0x40] sm:$0xff]   ;;  %v880_v4 = vld [vmem:[%s1137_s2 + $0x48] sm:$0xff]   ;;  %v884_v8 = vld [vmem:[%s1137_s2 + $0x50] sm:$0xff]   ;;  %v129_v34 = vunpack.c.l.s4 %v931_v33  ;;  %vm505_vm1 = vcmask 785408   ;;  %vm686_vm2 = vcmask 516096  }
   0x2   :  { %v877_v1 = vld [vmem:[%s1137_s2 + $0xc0] sm:$0xff]   ;;  %783 = vmatprep.subr.bf16.mxu0 %v876_v0  ;;  %v881_v5 = vld [vmem:[%s1137_s2 + $0xc8] sm:$0xff]   ;;  %v885_v9 = vld [vmem:[%s1137_s2 + $0xd0] sm:$0xff]   ;;  %v1055_v35 = vshrl.u32 %v131_v30, 7 }
   0x3   :  { %v878_v2 = vld [vmem:[%s1137_s2] sm:$0xff]   ;;  %805 = vmatprep.subr.bf16.mxu1 %v877_v1  ;;  %v882_v6 = vld [vmem:[%s1137_s2 + $0x8] sm:$0xff]   ;;  %v886_v10 = vld [vmem:[%s1137_s2 + $0x10] sm:$0xff]   ;;  %v130_v40 = vunpack.c.0.s8 %v129_v34 }
   0x4   :  { %v879_v3 = vld [vmem:[%s1137_s2 + $0x80] sm:$0xff]   ;;  %784 = vmatpush3.bf16.msra.mxu0 %v878_v2  ;;  %v883_v7 = vld [vmem:[%s1137_s2 + $0x88] sm:$0xff]   ;;  %v887_v11 = vld [vmem:[%s1137_s2 + $0x90] sm:$0xff]  }
   0x5   :  { %806 = vmatpush3.bf16.msra.mxu1 %v879_v3  ;;  %785 = vmatprep.subr.bf16.mxu0 %v880_v4  ;;  %v888_v12 = vld [vmem:[%s1137_s2 + $0x58] sm:$0xff]   ;;  %v892_v16 = vld [vmem:[%s1137_s2 + $0x60] sm:$0xff]   ;;  %v896_v20 = vld [vmem:[%s1137_s2 + $0x68] sm:$0xff]   ;;  %v133_v41 = vsub.s32 %v130_v40, %v1055_v35 }
   0x6   :  { %807 = vmatprep.subr.bf16.mxu1 %v881_v5  ;;  %v889_v13 = vld [vmem:[%s1137_s2 + $0xd8] sm:$0xff]   ;;  %v893_v17 = vld [vmem:[%s1137_s2 + $0xe0] sm:$0xff]   ;;  %v897_v21 = vld [vmem:[%s1137_s2 + $0xe8] sm:$0xff]  }
   0x7   :  { %v890_v14 = vld [vmem:[%s1137_s2 + $0x18] sm:$0xff]   ;;  %v894_v18 = vld [vmem:[%s1137_s2 + $0x20] sm:$0xff]   ;;  %v898_v22 = vld [vmem:[%s1137_s2 + $0x28] sm:$0xff]  }
   0x8   :  { %786 = vmatpush3.bf16.msra.mxu0 %v882_v6  ;;  %v891_v15 = vld [vmem:[%s1137_s2 + $0x98] sm:$0xff]   ;;  %v895_v19 = vld [vmem:[%s1137_s2 + $0xa0] sm:$0xff]   ;;  %v899_v23 = vld [vmem:[%s1137_s2 + $0xa8] sm:$0xff]  }
   0x9   :  { %808 = vmatpush3.bf16.msra.mxu1 %v883_v7  ;;  %787 = vmatprep.subr.bf16.mxu0 %v884_v8  ;;  %v900_v24 = vld [vmem:[%s1137_s2 + $0x70] sm:$0xff]   ;;  %v904_v28 = vld [vmem:[%s1137_s2 + $0x78] sm:$0xff]   ;;  %v909_v36 = vld [vmem:[%s1137_s2 + $0x140] sm:$0xff]  }
   0xa   :  { %809 = vmatprep.subr.bf16.mxu1 %v885_v9  ;;  %v901_v25 = vld [vmem:[%s1137_s2 + $0xf0] sm:$0xff]   ;;  %v905_v29 = vld [vmem:[%s1137_s2 + $0xf8] sm:$0xff]   ;;  %v17_v37 = vld [vmem:[%s1136_s1] sm:$0x7f] }
   0xb   :  { %v902_v26 = vld [vmem:[%s1137_s2 + $0x30] sm:$0xff]   ;;  %v906_v31 = vld [vmem:[%s1137_s2 + $0x38] sm:$0xff]   ;;  %v127_v39 = vcombine.high %v17_v37, %v17_v37  ;;  %v134_v42 = vrot.slane %v17_v37, %v133_v41  ;;  %v910_v48 = vld [vmem:[%s1137_s2 + $0x100] sm:$0xff]  }
   0xc   :  { %788 = vmatpush3.bf16.msra.mxu0 %v886_v10  ;;  %v903_v27 = vld [vmem:[%s1137_s2 + $0xb0] sm:$0xff]   ;;  %v907_v32 = vld [vmem:[%s1137_s2 + $0xb8] sm:$0xff]   ;;  %v911_v50 = vld [vmem:[%s1137_s2 + $0x148] sm:$0xff]  }
   0xd   :  { %810 = vmatpush3.bf16.msra.mxu1 %v887_v11  ;;  %789 = vmatprep.subr.bf16.mxu0 %v888_v12  ;;  %v141_v43 = vrot.slane %v127_v39, %v133_v41  ;;  %v142_v44 = vcombine.high %v134_v42, %v134_v42  ;;  %v150_v45 = vrot.slane %v134_v42, %v133_v41  ;;  %v915_v52 = vld [vmem:[%s1137_s2 + $0x180] sm:$0xff]   ;;  %v912_v54 = vld [vmem:[%s1137_s2 + $0x108] sm:$0xff]   ;;  %v913_v55 = vld [vmem:[%s1137_s2 + $0x150] sm:$0xff]  }
   0xe   :  { %811 = vmatprep.subr.bf16.mxu1 %v889_v13  ;;  %v918_v56 = vld [vmem:[%s1137_s2 + $0x188] sm:$0xff]   ;;  %v914_v57 = vld [vmem:[%s1137_s2 + $0x110] sm:$0xff]   ;;  %v916_v58 = vld [vmem:[%s1137_s2 + $0x158] sm:$0xff]  }
   0xf   :  { %v143_v46 = vcombine.high %v141_v43, %v141_v43  ;;  %v164_v47 = vrot.slane %v142_v44, %v133_v41  ;;  %v172_v49 = vcombine.high %v150_v45, %v150_v45  ;;  %v921_v59 = vld [vmem:[%s1137_s2 + $0x190] sm:$0xff]   ;;  %v917_v60 = vld [vmem:[%s1137_s2 + $0x118] sm:$0xff]   ;;  %v919_v61 = vld [vmem:[%s1137_s2 + $0x160] sm:$0xff]   ;;  %v157_v4 = vrot.slane %v141_v43, %v133_v41 }
  0x10   :  { %790 = vmatpush3.bf16.msra.mxu0 %v890_v14  ;;  %v924_v62 = vld [vmem:[%s1137_s2 + $0x198] sm:$0xff]   ;;  %v920_v63 = vld [vmem:[%s1137_s2 + $0x120] sm:$0xff]   ;;  %v922_v0 = vld [vmem:[%s1137_s2 + $0x168] sm:$0xff]  }
  0x11   :  { %812 = vmatpush3.bf16.msra.mxu1 %v891_v15  ;;  %791 = vmatprep.subr.bf16.mxu0 %v892_v16  ;;  %v174_v51 = vcombine.high %v164_v47, %v164_v47  ;;  %v171_v53 = vrot.slane %v143_v46, %v133_v41  ;;  %v927_v1 = vld [vmem:[%s1137_s2 + $0x1a0] sm:$0xff]   ;;  %v923_v2 = vld [vmem:[%s1137_s2 + $0x128] sm:$0xff]   ;;  %v925_v3 = vld [vmem:[%s1137_s2 + $0x170] sm:$0xff]   ;;  %v173_v8 = vcombine.high %v157_v4, %v157_v4 }
  0x12   :  { %813 = vmatprep.subr.bf16.mxu1 %v893_v17  ;;  %541 = vmatprep.mubr.bf16.mxu0 %v164_v47  ;;  %v930_v5 = vld [vmem:[%s1137_s2 + $0x1a8] sm:$0xff]   ;;  %v926_v6 = vld [vmem:[%s1137_s2 + $0x130] sm:$0xff]   ;;  %v928_v7 = vld [vmem:[%s1137_s2 + $0x178] sm:$0xff]  }
  0x13   :  { %581 = vmatprep.mubr.bf16.mxu1 %v174_v51  ;;  %v929_v9 = vld [vmem:[%s1137_s2 + $0x138] sm:$0xff]  }
  0x14   :  { %792 = vmatpush3.bf16.msra.mxu0 %v894_v18 }
  0x15   :  { %814 = vmatpush3.bf16.msra.mxu1 %v895_v19  ;;  %793 = vmatprep.subr.bf16.mxu0 %v896_v20 }
  0x16   :  { %815 = vmatprep.subr.bf16.mxu1 %v897_v21 }
  0x18   :  { %794 = vmatpush3.bf16.msra.mxu0 %v898_v22 }
  0x19   :  { %816 = vmatpush3.bf16.msra.mxu1 %v899_v23  ;;  %795 = vmatprep.subr.bf16.mxu0 %v900_v24 }
  0x1a   :  { %817 = vmatprep.subr.bf16.mxu1 %v901_v25 }
  0x1c   :  { %796 = vmatpush3.bf16.msra.mxu0 %v902_v26  ;;  %v672_v26 = vsub.s32 0, %v1055_v35 }
  0x1d   :  { %818 = vmatpush3.bf16.msra.mxu1 %v903_v27  ;;  %797 = vmatprep.subr.bf16.mxu0 %v904_v28  ;;  %v669_v28 = vld [vmem:[%s1138_s3] sm:$0x3] }
  0x1e   :  { %819 = vmatprep.subr.bf16.mxu1 %v905_v29  ;;  %v673_v34 = vrot.slane %v669_v28, %v672_v26 }
  0x20   :  { %798 = vmatpush3.bf16.msra.mxu0 %v906_v31  ;;  %v677_v31 = vsub.s32 1, %v1055_v35 }
  0x21   :  { %820 = vmatpush3.bf16.msra.mxu1 %v907_v32  ;;  %827 = vmatprep.subr.bf16.mxu0 %v909_v36 }
  0x22   :  { %856 = vmatprep.subr.bf16.mxu1 %v932_v38  ;;  %v678_v37 = vrot.slane %v669_v28, %v677_v31 }
  0x23   :  { %542 = vmatmul.mubr.bf16.vlgmr.msra.gmra.mrb[0].mxu0 %v150_v45 }
  0x24   :  { %828 = vmatpush3.bf16.msra.mxu0 %v910_v48  ;;  %582 = vmatmul.mubr.bf16.vlgmr.msra.gmra.mrb[0].mxu1 %v172_v49 }
  0x25   :  { %829 = vmatprep.subr.bf16.mxu0 %v911_v50  ;;  %857 = vmatpush3.bf16.msra.mxu1 %v915_v52 }
  0x26   :  { %621 = vmatprep.mubr.bf16.mxu0 %v171_v53  ;;  %858 = vmatprep.subr.bf16.mxu1 %v932_v38 }
  0x27   :  { %868 = vmatprep.mubr.msk.bf16.mxu1 %vm933_vm0, %v932_v38 }
  0x28   :  { %830 = vmatpush3.bf16.msra.mxu0 %v912_v54 }
  0x29   :  { %831 = vmatprep.subr.bf16.mxu0 %v913_v55  ;;  %859 = vmatpush3.bf16.msra.mxu1 %v918_v56 }
  0x2a   :  { %860 = vmatprep.subr.bf16.mxu1 %v932_v38 }
  0x2c   :  { %832 = vmatpush3.bf16.msra.mxu0 %v914_v57 }
  0x2d   :  { %833 = vmatprep.subr.bf16.mxu0 %v916_v58  ;;  %861 = vmatpush3.bf16.msra.mxu1 %v921_v59 }
  0x2e   :  { %862 = vmatprep.subr.bf16.mxu1 %v932_v38 }
  0x30   :  { %834 = vmatpush3.bf16.msra.mxu0 %v917_v60 }
  0x31   :  { %835 = vmatprep.subr.bf16.mxu0 %v919_v61  ;;  %863 = vmatpush3.bf16.msra.mxu1 %v924_v62 }
  0x32   :  { %864 = vmatprep.subr.bf16.mxu1 %v932_v38 }
  0x34   :  { %836 = vmatpush3.bf16.msra.mxu0 %v920_v63 }
  0x35   :  { %837 = vmatprep.subr.bf16.mxu0 %v922_v0  ;;  %865 = vmatpush3.bf16.msra.mxu1 %v927_v1 }
  0x36   :  { %866 = vmatprep.subr.bf16.mxu1 %v932_v38 }
  0x38   :  { %838 = vmatpush3.bf16.msra.mxu0 %v923_v2 }
  0x39   :  { %839 = vmatprep.subr.bf16.mxu0 %v925_v3  ;;  %867 = vmatpush3.bf16.msra.mxu1 %v930_v5 }
  0x3c   :  { %840 = vmatpush3.bf16.msra.mxu0 %v926_v6  ;;  %869 = vmatmul.mubr.msk.bf16.vlgmr.msra.gmra.mrb[4].mxu1 %vm505_vm1, %v173_v8 }
  0x3d   :  { %841 = vmatprep.subr.bf16.mxu0 %v928_v7 }
  0x40   :  { %842 = vmatpush3.bf16.msra.mxu0 %v929_v9 }
  0x43   :  { %622 = vmatmul.mubr.bf16.vlgmr.msra.gmra.mrb[4].mxu0 %v157_v4 }
  0xf6   :  { %v799_v10 = vpop.f32.mrb[0].mxu0 }
  0xf7   :  { %v800_v11 = vpop.f32.mrb[1].mxu0  ;;  %v821_v12 = vpop.f32.mrb[0].mxu1 }
  0xf8   :  { %v801_v13 = vadd.f32 %v800_v11, %v799_v10  ;;  %v802_v14 = vpop.f32.mrb[2].mxu0  ;;  %v822_v15 = vpop.f32.mrb[1].mxu1 }
  0xf9   :  { %v803_v16 = vpop.f32.mrb[3].mxu0  ;;  %v823_v17 = vadd.f32 %v822_v15, %v821_v12  ;;  %v824_v18 = vpop.f32.mrb[2].mxu1 }
  0xfa   :  { %v825_v19 = vpop.f32.mrb[3].mxu1 }
  0xfb   :  { %v584_v20 = vadd.f32 %v823_v17, %v801_v13 }
 0x10f   :  { %v663_v21 = vpop.f32.mrb[4].mxu1 }
 0x110   :  { %v870_v22 = vpop.f32.mrb[5].mxu1 }
 0x111   :  { %v666_v23 = vpop.f32.mrb[6].mxu1 }
 0x112   :  { %v871_v24 = vpop.f32.mrb[7].mxu1 }
 0x116   :  { %v843_v25 = vpop.f32.mrb[4].mxu0 }
 0x117   :  { %v844_v27 = vpop.f32.mrb[5].mxu0 }
 0x118   :  { %v845_v29 = vadd.f32 %v844_v27, %v843_v25  ;;  %v846_v30 = vpop.f32.mrb[6].mxu0 }
 0x119   :  { %v847_v32 = vpop.f32.mrb[7].mxu0 }
 0x11a   :  { %v624_v33 = vadd.f32 %v845_v29, %v584_v20 }
 0x11c   :  { %v664_v36 = vadd.f32 %v663_v21, %v624_v33 }
 0x11e   :  { %v674_v38 = vmul.f32 %v673_v34, %v664_v36 }
 0x120   :  { %v679_v39 = vadd.f32 %v678_v37, %v674_v38 }
 0x122   :  { %v680_v40 = vmax.f32 %v679_v39, 0.0 }
 0x124   :  { %v872_v41 = vround.rtne.f32 %v680_v40 }
 0x126   :  { %v682_v42 = vmax.f32 %v872_v41, 0.0 }
 0x128   :  { %v683_v43 = vmin.f32 %v682_v42, 15.0 }
 0x12a   :  { %v684_v44 = vmul.f32 0.4, %v683_v43 }
 0x12c   :  { %v685_v45 = vpack.c.bf16 %v684_v44, %v684_v44 }
 0x12e   :  { %687 = vst.msk [vmem:[#allocation2] sm:$0x1] %vm686_vm2, %v685_v45 }
 0x135   :  { %v705_v46 = vld [vmem:[#allocation2] sm:$0x1] }
 0x136   :  { %782 = vst [vmem:[%s1139_s4 + $0xd] sm:$0x1] %v705_v46 }

// kernel: quant_resnet_forward.22
= control target key start
LH: loop header
LB: loop body
LE: loop exit
PB: predicated region body
PF: predicated region fallthrough
CT: control target
= control target key end

     0   :  { %v112_v0 = vmov 0.0   ;;  %vm113_vm0 = vmmov 0   ;;  %vm32_vm1 = vcmask 261120   ;;  %v77_v4 = vlaneseq  ;;  %s149_s1 = inlined_call_operand.vmem [shape: bf16[32,64], index: 1, kind: input, shape index: {}]   ;;  %s150_s0 = inlined_call_operand.vmem [shape: bf16[2,32], index: 0, kind: input, shape index: {}]   ;;  %s151_s2 = inlined_call_operand.vmem [shape: f32[2,64], index: 2, kind: input, shape index: {}]   ;;  %s152_s3 = inlined_call_operand.vmem [shape: bf16[2,64], index: 3, kind: output, shape index: {}]  }
   0x1   :  { %100 = vmatprep.subr.bf16.mxu0 %v112_v0  ;;  %v110_v1 = vld [vmem:[%s149_s1] sm:$0xff]   ;;  %104 = vmatprep.mubr.msk.bf16.mxu0 %vm113_vm0, %v112_v0  ;;  %v111_v2 = vld [vmem:[%s149_s1 + $0x8] sm:$0xff]   ;;  %vm88_vm2 = vcmask 516096  }
   0x2   :  { %101 = vmatpush3.bf16.msra.mxu0 %v110_v1  ;;  %v15_v3 = vld [vmem:[%s150_s0] sm:$0x1]  ;;  %v78_v5 = vshrl.u32 %v77_v4, 7 }
   0x3   :  { %102 = vmatprep.subr.bf16.mxu0 %v112_v0  ;;  %v76_v7 = vld [vmem:[%s151_s2] sm:$0x3] }
   0x4   :  { %v79_v6 = vsub.s32 0, %v78_v5  ;;  %v84_v8 = vsub.s32 1, %v78_v5 }
   0x6   :  { %103 = vmatpush3.bf16.msra.mxu0 %v111_v2  ;;  %v80_v9 = vrot.slane %v76_v7, %v79_v6  ;;  %v85_v10 = vrot.slane %v76_v7, %v84_v8 }
   0x9   :  { %105 = vmatmul.mubr.msk.bf16.vlgmr.msra.gmra.mrb[0].mxu0 %vm32_vm1, %v15_v3 }
  0xdc   :  { %v70_v11 = vpop.f32.mrb[0].mxu0 }
  0xdd   :  { %v81_v12 = vmul.f32 %v80_v9, %v70_v11  ;;  %v106_v13 = vpop.f32.mrb[1].mxu0 }
  0xde   :  { %v73_v14 = vpop.f32.mrb[2].mxu0 }
  0xdf   :  { %v86_v15 = vadd.f32 %v85_v10, %v81_v12  ;;  %v107_v16 = vpop.f32.mrb[3].mxu0 }
  0xe1   :  { %v87_v17 = vpack.c.bf16 %v86_v15, %v86_v15 }
  0xe3   :  { %89 = vst.msk [vmem:[%s152_s3] sm:$0x1] %vm88_vm2, %v87_v17 }

// kernel: quant_resnet_forward.23
= control target key start
LH: loop header
LB: loop body
LE: loop exit
PB: predicated region body
PF: predicated region fallthrough
CT: control target
= control target key end

     0   :  { %v1660_v11 = vmov 1966171168   ;;  %v242_v13 = vlaneseq  ;;  %vm995_vm0 = vcmask 523264   ;;  %vm1300_vm1 = vcmask 516096   ;;  %s2097_s1 = inlined_call_operand.vmem [shape: bf16[1728,64], index: 1, kind: input, shape index: {}]   ;;  %s2098_s0 = inlined_call_operand.vmem [shape: bf16[2,1728], index: 0, kind: input, shape index: {}]   ;;  %s2099_s2 = inlined_call_operand.vmem [shape: f32[2,64], index: 2, kind: input, shape index: {}]   ;;  %s2100_s3 = inlined_call_operand.vmem [shape: bf16[2,64], index: 3, kind: input, shape index: {}]   ;;  %s2101_s4 = inlined_call_operand.vmem [shape: bf16[2,64], index: 4, kind: output, shape index: {}]  }
   0x1   :  { %v1550_v0 = vld [vmem:[%s2097_s1 + $0x40] sm:$0xff]   ;;  %v1552_v2 = vld [vmem:[%s2097_s1 + $0x48] sm:$0xff]   ;;  %v1554_v4 = vld [vmem:[%s2097_s1 + $0x50] sm:$0xff]   ;;  %v240_v12 = vunpack.c.l.s4 %v1660_v11 }
   0x2   :  { %v1551_v1 = vld [vmem:[%s2097_s1] sm:$0xff]   ;;  %1415 = vmatprep.subr.bf16.mxu1 %v1550_v0  ;;  %v1553_v3 = vld [vmem:[%s2097_s1 + $0x8] sm:$0xff]   ;;  %v1555_v5 = vld [vmem:[%s2097_s1 + $0x10] sm:$0xff]   ;;  %v1732_v19 = vshrl.u32 %v242_v13, 7 }
   0x3   :  { %1416 = vmatpush3.bf16.msra.mxu1 %v1551_v1  ;;  %v1556_v6 = vld [vmem:[%s2097_s1 + $0x58] sm:$0xff]   ;;  %v1560_v8 = vld [vmem:[%s2097_s1 + $0x140] sm:$0xff]   ;;  %v1564_v15 = vld [vmem:[%s2097_s1 + $0x148] sm:$0xff]   ;;  %v241_v18 = vunpack.c.0.s8 %v240_v12 }
   0x4   :  { %1417 = vmatprep.subr.bf16.mxu1 %v1552_v2  ;;  %v1557_v7 = vld [vmem:[%s2097_s1 + $0x18] sm:$0xff]   ;;  %v1561_v9 = vld [vmem:[%s2097_s1 + $0x100] sm:$0xff]   ;;  %1459 = vmatprep.subr.bf16.mxu0 %v1560_v8  ;;  %v1565_v16 = vld [vmem:[%s2097_s1 + $0x108] sm:$0xff]  }
   0x5   :  { %v1558_v10 = vld [vmem:[%s2097_s1 + $0x60] sm:$0xff]   ;;  %1460 = vmatpush3.bf16.msra.mxu0 %v1561_v9  ;;  %v1562_v17 = vld [vmem:[%s2097_s1 + $0x68] sm:$0xff]   ;;  %v1568_v21 = vld [vmem:[%s2097_s1 + $0x150] sm:$0xff]   ;;  %v1747_v24 = vsub.s32 %v241_v18, %v1732_v19 }
   0x6   :  { %v1559_v14 = vld [vmem:[%s2097_s1 + $0x20] sm:$0xff]   ;;  %1461 = vmatprep.subr.bf16.mxu0 %v1564_v15  ;;  %v1563_v20 = vld [vmem:[%s2097_s1 + $0x28] sm:$0xff]   ;;  %v1569_v22 = vld [vmem:[%s2097_s1 + $0x110] sm:$0xff]  }
   0x7   :  { %1418 = vmatpush3.bf16.msra.mxu1 %v1553_v3  ;;  %v1566_v23 = vld [vmem:[%s2097_s1 + $0x70] sm:$0xff]   ;;  %v1572_v26 = vld [vmem:[%s2097_s1 + $0x158] sm:$0xff]   ;;  %v18_v28 = vld [vmem:[%s2098_s0] sm:$0xff] }
   0x8   :  { %1419 = vmatprep.subr.bf16.mxu1 %v1554_v4  ;;  %v1567_v25 = vld [vmem:[%s2097_s1 + $0x30] sm:$0xff]   ;;  %v1570_v27 = vld [vmem:[%s2097_s1 + $0x78] sm:$0xff]   ;;  %v245_v29 = vrot.slane %v18_v28, %v1747_v24  ;;  %v238_v31 = vcombine.high %v18_v28, %v18_v28  ;;  %v1575_v34 = vld [vmem:[%s2097_s1 + $0xc0] sm:$0xff]  }
   0x9   :  { %1462 = vmatpush3.bf16.msra.mxu0 %v1565_v16  ;;  %v1574_v30 = vld [vmem:[%s2097_s1 + $0x118] sm:$0xff]   ;;  %v1577_v36 = vld [vmem:[%s2097_s1 + $0x160] sm:$0xff]   ;;  %v1782_v40 = vld [vmem:[%s2098_s0 + $0x8] sm:$0x3f] }
   0xa   :  { %1463 = vmatprep.subr.bf16.mxu0 %v1568_v21  ;;  %v1571_v32 = vld [vmem:[%s2097_s1 + $0x38] sm:$0xff]   ;;  %v253_v33 = vcombine.high %v245_v29, %v245_v29  ;;  %v252_v35 = vrot.slane %v238_v31, %v1747_v24  ;;  %v1578_v38 = vld [vmem:[%s2097_s1 + $0x120] sm:$0xff]   ;;  %v1788_v42 = vrot.slane %v245_v29, %v1747_v24  ;;  %v1579_v43 = vld [vmem:[%s2097_s1 + $0xc8] sm:$0xff]   ;;  %v1812_v50 = vrot.slane %v1782_v40, %v1747_v24 }
   0xb   :  { %1420 = vmatpush3.bf16.msra.mxu1 %v1555_v5  ;;  %v1576_v41 = vld [vmem:[%s2097_s1 + $0x80] sm:$0xff]   ;;  %v1581_v46 = vld [vmem:[%s2097_s1 + $0x168] sm:$0xff]   ;;  %v1583_v49 = vld [vmem:[%s2097_s1 + $0xd0] sm:$0xff]  }
   0xc   :  { %1421 = vmatprep.subr.bf16.mxu1 %v1556_v6  ;;  %v275_v37 = vrot.slane %v253_v33, %v1747_v24  ;;  %v254_v39 = vcombine.high %v252_v35, %v252_v35  ;;  %v1582_v47 = vld [vmem:[%s2097_s1 + $0x128] sm:$0xff]   ;;  %v1585_v51 = vld [vmem:[%s2097_s1 + $0x170] sm:$0xff]   ;;  %v1587_v54 = vld [vmem:[%s2097_s1 + $0xd8] sm:$0xff]   ;;  %v302_v55 = vcombine.high %v1812_v50, %v1812_v50  ;;  %v1838_v59 = vrot.slane %v252_v35, %v1747_v24 }
   0xd   :  { %1464 = vmatpush3.bf16.msra.mxu0 %v1569_v22  ;;  %v1580_v48 = vld [vmem:[%s2097_s1 + $0x88] sm:$0xff]   ;;  %v1586_v52 = vld [vmem:[%s2097_s1 + $0x130] sm:$0xff]   ;;  %v1589_v56 = vld [vmem:[%s2097_s1 + $0x178] sm:$0xff]   ;;  %v283_v18 = vcombine.high %v1788_v42, %v1788_v42  ;;  %v1951_v35 = vrot.slane %v1812_v50, %v1747_v24 }
   0xe   :  { %1465 = vmatprep.subr.bf16.mxu0 %v1572_v26  ;;  %1031 = vmatprep.mubr.bf16.mxu1 %v275_v37  ;;  %v1794_v44 = vrot.slane %v254_v39, %v1747_v24  ;;  %v285_v45 = vcombine.high %v275_v37, %v275_v37  ;;  %v1584_v53 = vld [vmem:[%s2097_s1 + $0x90] sm:$0xff]   ;;  %v1590_v57 = vld [vmem:[%s2097_s1 + $0x138] sm:$0xff]   ;;  %v1591_v60 = vld [vmem:[%s2097_s1 + $0xe0] sm:$0xff]   ;;  %v1844_v61 = vrot.slane %v302_v55, %v1747_v24 }
   0xf   :  { %1422 = vmatpush3.bf16.msra.mxu1 %v1557_v7  ;;  %v1588_v58 = vld [vmem:[%s2097_s1 + $0x98] sm:$0xff]   ;;  %v1594_v62 = vld [vmem:[%s2097_s1 + $0x240] sm:$0xff]   ;;  %v1596_v1 = vld [vmem:[%s2097_s1 + $0xe8] sm:$0xff]  }
  0x10   :  { %1423 = vmatprep.subr.bf16.mxu1 %v1558_v10  ;;  %1111 = vmatprep.mubr.bf16.mxu0 %v1794_v44  ;;  %v1595_v63 = vld [vmem:[%s2097_s1 + $0x200] sm:$0xff]   ;;  %v1598_v2 = vld [vmem:[%s2097_s1 + $0x248] sm:$0xff]   ;;  %v1600_v5 = vld [vmem:[%s2097_s1 + $0xf0] sm:$0xff]   ;;  %v286_v21 = vcombine.high %v1794_v44, %v1794_v44 }
  0x11   :  { %1466 = vmatpush3.bf16.msra.mxu0 %v1574_v30  ;;  %v1592_v0 = vld [vmem:[%s2097_s1 + $0xa0] sm:$0xff]   ;;  %v1599_v3 = vld [vmem:[%s2097_s1 + $0x208] sm:$0xff]   ;;  %v1602_v6 = vld [vmem:[%s2097_s1 + $0x250] sm:$0xff]  }
  0x12   :  { %1467 = vmatprep.subr.bf16.mxu0 %v1577_v36  ;;  %v1597_v4 = vld [vmem:[%s2097_s1 + $0xa8] sm:$0xff]   ;;  %v1603_v7 = vld [vmem:[%s2097_s1 + $0x210] sm:$0xff]   ;;  %v1604_v9 = vld [vmem:[%s2097_s1 + $0xf8] sm:$0xff]  }
  0x13   :  { %1424 = vmatpush3.bf16.msra.mxu1 %v1559_v14  ;;  %v1601_v8 = vld [vmem:[%s2097_s1 + $0xb0] sm:$0xff]   ;;  %v1606_v10 = vld [vmem:[%s2097_s1 + $0x258] sm:$0xff]   ;;  %v1608_v13 = vld [vmem:[%s2097_s1 + $0x1c0] sm:$0xff]  }
  0x14   :  { %1425 = vmatprep.subr.bf16.mxu1 %v1562_v17  ;;  %v1607_v11 = vld [vmem:[%s2097_s1 + $0x218] sm:$0xff]   ;;  %v1610_v14 = vld [vmem:[%s2097_s1 + $0x260] sm:$0xff]   ;;  %v287_v17 = vcombine.high %v1782_v40, %v1782_v40  ;;  %v1614_v22 = vld [vmem:[%s2097_s1 + $0x268] sm:$0xff]  }
  0x15   :  { %1468 = vmatpush3.bf16.msra.mxu0 %v1578_v38  ;;  %v1605_v12 = vld [vmem:[%s2097_s1 + $0xb8] sm:$0xff]   ;;  %v1611_v15 = vld [vmem:[%s2097_s1 + $0x220] sm:$0xff]   ;;  %v1616_v26 = vld [vmem:[%s2097_s1 + $0x1d0] sm:$0xff]   ;;  %v1661_v38 = vmov 0  }
  0x16   :  { %1469 = vmatprep.subr.bf16.mxu0 %v1581_v46  ;;  %v1609_v16 = vld [vmem:[%s2097_s1 + $0x180] sm:$0xff]   ;;  %v1618_v28 = vld [vmem:[%s2097_s1 + $0x270] sm:$0xff]   ;;  %v1620_v31 = vld [vmem:[%s2097_s1 + $0x1d8] sm:$0xff]  }
  0x17   :  { %1426 = vmatpush3.bf16.msra.mxu1 %v1563_v20  ;;  %v1612_v20 = vld [vmem:[%s2097_s1 + $0x1c8] sm:$0xff]   ;;  %v1619_v29 = vld [vmem:[%s2097_s1 + $0x230] sm:$0xff]   ;;  %v1622_v33 = vld [vmem:[%s2097_s1 + $0x278] sm:$0xff]  }
  0x18   :  { %1427 = vmatprep.subr.bf16.mxu1 %v1566_v23  ;;  %v1615_v23 = vld [vmem:[%s2097_s1 + $0x228] sm:$0xff]   ;;  %v1617_v30 = vld [vmem:[%s2097_s1 + $0x190] sm:$0xff]   ;;  %v1621_v36 = vld [vmem:[%s2097_s1 + $0x198] sm:$0xff]  }
  0x19   :  { %1470 = vmatpush3.bf16.msra.mxu0 %v1582_v47  ;;  %v1626_v39 = vld [vmem:[%s2097_s1 + $0x300] sm:$0xff]   ;;  %v1632_v44 = vld [vmem:[%s2097_s1 + $0x310] sm:$0xff]   ;;  %v1635_v47 = vld [vmem:[%s2097_s1 + $0x318] sm:$0xff]  }
  0x1a   :  { %1471 = vmatprep.subr.bf16.mxu0 %v1585_v51  ;;  %v1624_v40 = vld [vmem:[%s2097_s1 + $0x1e0] sm:$0xff]   ;;  %v1630_v46 = vld [vmem:[%s2097_s1 + $0x1f0] sm:$0xff]   ;;  %v1634_v51 = vld [vmem:[%s2097_s1 + $0x1b8] sm:$0xff]  }
  0x1b   :  { %1428 = vmatpush3.bf16.msra.mxu1 %v1567_v25  ;;  %v1613_v25 = vld [vmem:[%s2097_s1 + $0x188] sm:$0xff]   ;;  %v1638_v50 = vld [vmem:[%s2097_s1 + $0x320] sm:$0xff]  }
  0x1c   :  { %1429 = vmatprep.subr.bf16.mxu1 %v1570_v27  ;;  %v1927_v27 = vrot.slane %v287_v17, %v1747_v24  ;;  %v1637_v55 = vld [vmem:[%s2097_s1 + $0x280] sm:$0xff]  }
  0x1d   :  { %1472 = vmatpush3.bf16.msra.mxu0 %v1586_v52  ;;  %v1636_v52 = vld [vmem:[%s2097_s1 + $0x2c0] sm:$0xff]  }
  0x1e   :  { %1473 = vmatprep.subr.bf16.mxu0 %v1589_v56  ;;  %v1639_v56 = vld [vmem:[%s2097_s1 + $0x2c8] sm:$0xff]  }
  0x1f   :  { %1430 = vmatpush3.bf16.msra.mxu1 %v1571_v32  ;;  %v303_v32 = vcombine.high %v1927_v27, %v1927_v27 }
  0x20   :  { %1437 = vmatprep.subr.bf16.mxu1 %v1575_v34  ;;  %v1623_v34 = vld [vmem:[%s2097_s1 + $0x238] sm:$0xff]  }
  0x21   :  { %1474 = vmatpush3.bf16.msra.mxu0 %v1590_v57  ;;  %v331_v37 = vrot.slane %v303_v32, %v1747_v24  ;;  %v333_v57 = vcombine.high %v1844_v61, %v1844_v61 }
  0x22   :  { %1032 = vmatmul.mubr.bf16.vlgmr.msra.gmra.mrb[0].mxu1 %v1788_v42  ;;  %1503 = vmatprep.subr.bf16.mxu0 %v1594_v62  ;;  %v1625_v42 = vld [vmem:[%s2097_s1 + $0x1a0] sm:$0xff]   ;;  %v1643_v62 = vld [vmem:[%s2097_s1 + $0x290] sm:$0xff]  }
  0x23   :  { %1438 = vmatpush3.bf16.msra.mxu1 %v1576_v41  ;;  %1071 = vmatprep.mubr.bf16.mxu1 %v285_v45  ;;  %v1629_v41 = vld [vmem:[%s2097_s1 + $0x308] sm:$0xff]  }
  0x24   :  { %1439 = vmatprep.subr.bf16.mxu1 %v1579_v43  ;;  %1112 = vmatmul.mubr.bf16.vlgmr.msra.gmra.mrb[0].mxu0 %v1838_v59  ;;  %v1627_v43 = vld [vmem:[%s2097_s1 + $0x1e8] sm:$0xff]  }
  0x25   :  { %1504 = vmatpush3.bf16.msra.mxu0 %v1595_v63  ;;  %1191 = vmatprep.mubr.bf16.mxu0 %v1844_v61  ;;  %v1628_v45 = vld [vmem:[%s2097_s1 + $0x1a8] sm:$0xff]   ;;  %v1647_v61 = vld [vmem:[%s2097_s1 + $0x338] sm:$0xff]  }
  0x26   :  { %1505 = vmatprep.subr.bf16.mxu0 %v1598_v2  ;;  %v1645_v63 = vld [vmem:[%s2097_s1 + $0x2d8] sm:$0xff]   ;;  %v1648_v2 = vld [vmem:[%s2097_s1 + $0x2e0] sm:$0xff]  }
  0x27   :  { %1440 = vmatpush3.bf16.msra.mxu1 %v1580_v48  ;;  %v1631_v48 = vld [vmem:[%s2097_s1 + $0x1b0] sm:$0xff]  }
  0x28   :  { %1441 = vmatprep.subr.bf16.mxu1 %v1583_v49  ;;  %v1633_v49 = vld [vmem:[%s2097_s1 + $0x1f8] sm:$0xff]  }
  0x29   :  { %1506 = vmatpush3.bf16.msra.mxu0 %v1599_v3  ;;  %v1653_v3 = vld [vmem:[%s2097_s1 + $0x348] sm:$0xff]  }
  0x2a   :  { %1507 = vmatprep.subr.bf16.mxu0 %v1602_v6  ;;  %v1656_v6 = vld [vmem:[%s2097_s1 + $0x350] sm:$0xff]  }
  0x2b   :  { %1442 = vmatpush3.bf16.msra.mxu1 %v1584_v53  ;;  %v284_v53 = vcombine.high %v1838_v59, %v1838_v59  ;;  %v1640_v59 = vld [vmem:[%s2097_s1 + $0x288] sm:$0xff]  }
  0x2c   :  { %1443 = vmatprep.subr.bf16.mxu1 %v1587_v54  ;;  %v1641_v54 = vld [vmem:[%s2097_s1 + $0x328] sm:$0xff]  }
  0x2d   :  { %1508 = vmatpush3.bf16.msra.mxu0 %v1603_v7  ;;  %v1652_v7 = vld [vmem:[%s2097_s1 + $0x2a8] sm:$0xff]  }
  0x2e   :  { %1509 = vmatprep.subr.bf16.mxu0 %v1606_v10  ;;  %v1655_v10 = vld [vmem:[%s2097_s1 + $0x2b0] sm:$0xff]  }
  0x2f   :  { %1444 = vmatpush3.bf16.msra.mxu1 %v1588_v58  ;;  %v1644_v58 = vld [vmem:[%s2097_s1 + $0x330] sm:$0xff]  }
  0x30   :  { %1445 = vmatprep.subr.bf16.mxu1 %v1591_v60  ;;  %v1642_v60 = vld [vmem:[%s2097_s1 + $0x2d0] sm:$0xff]  }
  0x31   :  { %1510 = vmatpush3.bf16.msra.mxu0 %v1607_v11  ;;  %v1657_v11 = vld [vmem:[%s2097_s1 + $0x2f8] sm:$0xff]  }
  0x32   :  { %1511 = vmatprep.subr.bf16.mxu0 %v1610_v14  ;;  %v332_v14 = vcombine.high %v1951_v35, %v1951_v35 }
  0x33   :  { %1446 = vmatpush3.bf16.msra.mxu1 %v1592_v0  ;;  %v1650_v0 = vld [vmem:[%s2097_s1 + $0x340] sm:$0xff]  }
  0x34   :  { %1447 = vmatprep.subr.bf16.mxu1 %v1596_v1  ;;  %v1646_v1 = vld [vmem:[%s2097_s1 + $0x298] sm:$0xff]  }
  0x35   :  { %1512 = vmatpush3.bf16.msra.mxu0 %v1611_v15 }
  0x36   :  { %1513 = vmatprep.subr.bf16.mxu0 %v1614_v22 }
  0x37   :  { %1448 = vmatpush3.bf16.msra.mxu1 %v1597_v4  ;;  %v1649_v4 = vld [vmem:[%s2097_s1 + $0x2a0] sm:$0xff]  }
  0x38   :  { %1449 = vmatprep.subr.bf16.mxu1 %v1600_v5  ;;  %v1651_v5 = vld [vmem:[%s2097_s1 + $0x2e8] sm:$0xff]  }
  0x39   :  { %1514 = vmatpush3.bf16.msra.mxu0 %v1615_v23 }
  0x3a   :  { %1515 = vmatprep.subr.bf16.mxu0 %v1618_v28 }
  0x3b   :  { %1450 = vmatpush3.bf16.msra.mxu1 %v1601_v8  ;;  %v1654_v8 = vld [vmem:[%s2097_s1 + $0x2f0] sm:$0xff]  }
  0x3c   :  { %1451 = vmatprep.subr.bf16.mxu1 %v1604_v9  ;;  %v1659_v9 = vld [vmem:[%s2097_s1 + $0x358] sm:$0xff]  }
  0x3d   :  { %1516 = vmatpush3.bf16.msra.mxu0 %v1619_v29 }
  0x3e   :  { %1517 = vmatprep.subr.bf16.mxu0 %v1622_v33 }
  0x3f   :  { %1452 = vmatpush3.bf16.msra.mxu1 %v1605_v12  ;;  %v317_v12 = vrot.slane %v1927_v27, %v1747_v24 }
  0x40   :  { %1481 = vmatprep.subr.bf16.mxu1 %v1608_v13  ;;  %v1658_v13 = vld [vmem:[%s2097_s1 + $0x2b8] sm:$0xff]  }
  0x41   :  { %1518 = vmatpush3.bf16.msra.mxu0 %v1623_v34 }
  0x42   :  { %1072 = vmatmul.mubr.bf16.vlgmr.msra.gmra.mrb[4].mxu1 %v283_v18  ;;  %1239 = vmatprep.subr.bf16.mxu0 %v1661_v38 }
  0x43   :  { %1482 = vmatpush3.bf16.msra.mxu1 %v1609_v16  ;;  %1151 = vmatprep.mubr.bf16.mxu1 %v286_v21 }
  0x44   :  { %1483 = vmatprep.subr.bf16.mxu1 %v1612_v20  ;;  %1192 = vmatmul.mubr.bf16.vlgmr.msra.gmra.mrb[4].mxu0 %v1951_v35 }
  0x45   :  { %1240 = vmatpush1.bf16.msra.mxu0 %v1626_v39  ;;  %1414 = vmatprep.mubr.msk.bf16.mxu0 %vm995_vm0, %v331_v37 }
  0x46   :  { %1241 = vmatprep.subr.bf16.mxu0 %v1661_v38 }
  0x47   :  { %1484 = vmatpush3.bf16.msra.mxu1 %v1613_v25 }
  0x48   :  { %1485 = vmatprep.subr.bf16.mxu1 %v1616_v26 }
  0x49   :  { %1242 = vmatpush1.bf16.msra.mxu0 %v1629_v41 }
  0x4a   :  { %1243 = vmatprep.subr.bf16.mxu0 %v1661_v38 }
  0x4b   :  { %1486 = vmatpush3.bf16.msra.mxu1 %v1617_v30 }
  0x4c   :  { %1487 = vmatprep.subr.bf16.mxu1 %v1620_v31 }
  0x4d   :  { %1244 = vmatpush1.bf16.msra.mxu0 %v1632_v44 }
  0x4e   :  { %1245 = vmatprep.subr.bf16.mxu0 %v1661_v38 }
  0x4f   :  { %1488 = vmatpush3.bf16.msra.mxu1 %v1621_v36 }
  0x50   :  { %1489 = vmatprep.subr.bf16.mxu1 %v1624_v40 }
  0x51   :  { %1246 = vmatpush1.bf16.msra.mxu0 %v1635_v47 }
  0x52   :  { %1247 = vmatprep.subr.bf16.mxu0 %v1661_v38 }
  0x53   :  { %1490 = vmatpush3.bf16.msra.mxu1 %v1625_v42 }
  0x54   :  { %1491 = vmatprep.subr.bf16.mxu1 %v1627_v43 }
  0x55   :  { %1248 = vmatpush1.bf16.msra.mxu0 %v1638_v50  ;;  %v1282_v50 = vsub.s32 0, %v1732_v19 }
  0x56   :  { %1249 = vmatprep.subr.bf16.mxu0 %v1661_v38 }
  0x57   :  { %1492 = vmatpush3.bf16.msra.mxu1 %v1628_v45 }
  0x58   :  { %1493 = vmatprep.subr.bf16.mxu1 %v1630_v46 }
  0x59   :  { %1250 = vmatpush1.bf16.msra.mxu0 %v1641_v54 }
  0x5a   :  { %1251 = vmatprep.subr.bf16.mxu0 %v1661_v38 }
  0x5b   :  { %1494 = vmatpush3.bf16.msra.mxu1 %v1631_v48 }
  0x5c   :  { %1495 = vmatprep.subr.bf16.mxu1 %v1633_v49 }
  0x5d   :  { %1252 = vmatpush1.bf16.msra.mxu0 %v1644_v58 }
  0x5e   :  { %1253 = vmatprep.subr.bf16.mxu0 %v1661_v38 }
  0x5f   :  { %1496 = vmatpush3.bf16.msra.mxu1 %v1634_v51 }
  0x60   :  { %1525 = vmatprep.subr.bf16.mxu1 %v1636_v52  ;;  %v1279_v52 = vld [vmem:[%s2099_s2] sm:$0x3] }
  0x61   :  { %1254 = vmatpush1.bf16.msra.mxu0 %v1647_v61 }
  0x62   :  { %1152 = vmatmul.mubr.bf16.vlgmr.msra.gmra.mrb[8].mxu1 %v284_v53  ;;  %1255 = vmatprep.subr.bf16.mxu0 %v1661_v38  ;;  %v1290_v53 = vld [vmem:[%s2100_s3] sm:$0x1] }
  0x63   :  { %1526 = vmatpush3.bf16.msra.mxu1 %v1637_v55  ;;  %1231 = vmatprep.mubr.bf16.mxu1 %v333_v57 }
  0x64   :  { %1527 = vmatprep.subr.bf16.mxu1 %v1639_v56  ;;  %v1287_v56 = vsub.s32 1, %v1732_v19 }
  0x65   :  { %1256 = vmatpush1.bf16.msra.mxu0 %v1650_v0 }
  0x66   :  { %1257 = vmatprep.subr.bf16.mxu0 %v1661_v38 }
  0x67   :  { %1528 = vmatpush3.bf16.msra.mxu1 %v1640_v59  ;;  %v1283_v59 = vrot.slane %v1279_v52, %v1282_v50 }
  0x68   :  { %1529 = vmatprep.subr.bf16.mxu1 %v1642_v60  ;;  %v1291_v60 = vunpack.c.l.bf16 %v1290_v53 }
  0x69   :  { %1258 = vmatpush1.bf16.msra.mxu0 %v1653_v3 }
  0x6a   :  { %1259 = vmatprep.subr.bf16.mxu0 %v1661_v38  ;;  %v1292_v0 = vmul.f32 2.5, %v1291_v60 }
  0x6b   :  { %1530 = vmatpush3.bf16.msra.mxu1 %v1643_v62  ;;  %v1288_v62 = vrot.slane %v1279_v52, %v1287_v56 }
  0x6c   :  { %1531 = vmatprep.subr.bf16.mxu1 %v1645_v63 }
  0x6d   :  { %1260 = vmatpush1.bf16.msra.mxu0 %v1656_v6 }
  0x6e   :  { %1261 = vmatprep.subr.bf16.mxu0 %v1661_v38 }
  0x6f   :  { %1532 = vmatpush3.bf16.msra.mxu1 %v1646_v1 }
  0x70   :  { %1533 = vmatprep.subr.bf16.mxu1 %v1648_v2 }
  0x71   :  { %1262 = vmatpush1.bf16.msra.mxu0 %v1659_v9 }
  0x73   :  { %1534 = vmatpush3.bf16.msra.mxu1 %v1649_v4 }
  0x74   :  { %1535 = vmatprep.subr.bf16.mxu1 %v1651_v5  ;;  %1272 = vmatmul.mubr.bf16.vlgmr.msra.gmra.mrb[8].mxu0 %v317_v12 }
  0x77   :  { %1536 = vmatpush3.bf16.msra.mxu1 %v1652_v7 }
  0x78   :  { %1537 = vmatprep.subr.bf16.mxu1 %v1654_v8 }
  0x7b   :  { %1538 = vmatpush3.bf16.msra.mxu1 %v1655_v10 }
  0x7c   :  { %1539 = vmatprep.subr.bf16.mxu1 %v1657_v11 }
  0x7f   :  { %1540 = vmatpush3.bf16.msra.mxu1 %v1658_v13 }
  0x82   :  { %1232 = vmatmul.mubr.bf16.vlgmr.msra.gmra.mrb[12].mxu1 %v332_v14 }
  0xf5   :  { %v1431_v15 = vpop.f32.mrb[0].mxu1 }
  0xf6   :  { %v1432_v16 = vpop.f32.mrb[1].mxu1 }
  0xf7   :  { %v1433_v17 = vadd.f32 %v1432_v16, %v1431_v15  ;;  %v1434_v18 = vpop.f32.mrb[2].mxu1  ;;  %v1475_v21 = vpop.f32.mrb[0].mxu0 }
  0xf8   :  { %v1435_v20 = vpop.f32.mrb[3].mxu1  ;;  %v1476_v24 = vpop.f32.mrb[1].mxu0 }
  0xf9   :  { %v1477_v22 = vadd.f32 %v1476_v24, %v1475_v21  ;;  %v1478_v23 = vpop.f32.mrb[2].mxu0 }
  0xfa   :  { %v1479_v25 = vpop.f32.mrb[3].mxu0 }
 0x115   :  { %v1453_v26 = vpop.f32.mrb[4].mxu1 }
 0x116   :  { %v1454_v27 = vpop.f32.mrb[5].mxu1 }
 0x117   :  { %v1455_v28 = vadd.f32 %v1454_v27, %v1453_v26  ;;  %v1456_v29 = vpop.f32.mrb[6].mxu1  ;;  %v1519_v33 = vpop.f32.mrb[4].mxu0 }
 0x118   :  { %v1457_v30 = vpop.f32.mrb[7].mxu1  ;;  %v1520_v34 = vpop.f32.mrb[5].mxu0 }
 0x119   :  { %v1074_v31 = vadd.f32 %v1455_v28, %v1433_v17  ;;  %v1521_v35 = vadd.f32 %v1520_v34, %v1519_v33  ;;  %v1522_v36 = vpop.f32.mrb[6].mxu0 }
 0x11a   :  { %v1523_v37 = vpop.f32.mrb[7].mxu0 }
 0x11b   :  { %v1114_v32 = vadd.f32 %v1477_v22, %v1074_v31 }
 0x135   :  { %v1497_v38 = vpop.f32.mrb[8].mxu1 }
 0x136   :  { %v1498_v39 = vpop.f32.mrb[9].mxu1 }
 0x137   :  { %v1499_v40 = vadd.f32 %v1498_v39, %v1497_v38  ;;  %v1500_v41 = vpop.f32.mrb[10].mxu1 }
 0x138   :  { %v1501_v42 = vpop.f32.mrb[11].mxu1 }
 0x139   :  { %v1154_v43 = vadd.f32 %v1499_v40, %v1114_v32 }
 0x13b   :  { %v1194_v44 = vadd.f32 %v1521_v35, %v1154_v43 }
 0x147   :  { %v1273_v45 = vpop.f32.mrb[8].mxu0 }
 0x148   :  { %v1275_v46 = vpop.f32.mrb[9].mxu0 }
 0x149   :  { %v1276_v47 = vpop.f32.mrb[10].mxu0 }
 0x14a   :  { %v1277_v48 = vpop.f32.mrb[11].mxu0 }
 0x155   :  { %v1541_v49 = vpop.f32.mrb[12].mxu1 }
 0x156   :  { %v1542_v51 = vpop.f32.mrb[13].mxu1 }
 0x157   :  { %v1543_v54 = vadd.f32 %v1542_v51, %v1541_v49  ;;  %v1544_v55 = vpop.f32.mrb[14].mxu1 }
 0x158   :  { %v1545_v57 = vpop.f32.mrb[15].mxu1 }
 0x159   :  { %v1234_v58 = vadd.f32 %v1543_v54, %v1194_v44 }
 0x15b   :  { %v1274_v61 = vadd.f32 %v1273_v45, %v1234_v58 }
 0x15d   :  { %v1284_v63 = vmul.f32 %v1283_v59, %v1274_v61 }
 0x15f   :  { %v1289_v1 = vadd.f32 %v1288_v62, %v1284_v63 }
 0x161   :  { %v1293_v2 = vadd.f32 %v1292_v0, %v1289_v1 }
 0x163   :  { %v1294_v3 = vmax.f32 %v1293_v2, 0.0 }
 0x165   :  { %v1547_v4 = vround.rtne.f32 %v1294_v3 }
 0x167   :  { %v1296_v5 = vmax.f32 %v1547_v4, 0.0 }
 0x169   :  { %v1297_v6 = vmin.f32 %v1296_v5, 15.0 }
 0x16b   :  { %v1298_v7 = vmul.f32 0.4, %v1297_v6 }
 0x16d   :  { %v1299_v8 = vpack.c.bf16 %v1298_v7, %v1298_v7 }
 0x16f   :  { %1301 = vst.msk [vmem:[%s2101_s4] sm:$0x1] %vm1300_vm1, %v1299_v8 }

</bundles_post_ra>
